<compile_context>
chip_gen: v5e
topology: v5e:2x2
jax: 0.10.0
libtpu: 0.0.40
codegen_flags: <defaults>
</compile_context>

<pallas_src>
import jax
import jax.numpy as jnp
from jax.experimental import pallas as pl
from jax.experimental.pallas import tpu as pltpu


# ----------------------------------------------------------------------------
# Fused kernel: one batch tile per grid step.
# ----------------------------------------------------------------------------
def _mnist_fused_kernel(x_ref, m1_ref, b1_ref, m2_ref, b2_ref,
                        wf1_ref, bf1_ref, wf2_ref, bf2_ref, wf3_ref, bf3_ref,
                        o_ref):
    tb = x_ref.shape[0]
    x = x_ref[...]                                           # (tb, 28, 28) f32

    # conv1 + bias + ReLU  ->  a1: rows = (b, i), lanes = j*30 + c   (720 lanes)
    a1 = jnp.zeros((tb * 24, 720), jnp.float32)
    for ki in range(5):
        xs = x[:, ki:ki + 24, :].reshape(tb * 24, 28).astype(jnp.bfloat16)
        a1 = a1 + jnp.dot(xs, m1_ref[ki], preferred_element_type=jnp.float32)
    a1 = jnp.maximum(a1 + b1_ref[...], 0.0).reshape(tb, 24, 720)

    # conv2 + bias + ReLU  ->  a2: rows = (b, i), lanes = j*15 + f   (300 lanes)
    a2 = jnp.zeros((tb * 20, 300), jnp.float32)
    for ki in range(5):
        s = a1[:, ki:ki + 20, :].reshape(tb * 20, 720).astype(jnp.bfloat16)
        a2 = a2 + jnp.dot(s, m2_ref[ki], preferred_element_type=jnp.float32)
    a2 = jnp.maximum(a2 + b2_ref[...], 0.0).reshape(tb, 20, 300)

    # fc1 + ReLU: the 6000-wide contraction accumulated over the 20 rows (h),
    # with fc1's weight pre-permuted so no activation transpose/flatten needed.
    h1 = jnp.zeros((tb, 128), jnp.float32)
    for hh in range(20):
        h1 = h1 + jnp.dot(a2[:, hh, :].astype(jnp.bfloat16), wf1_ref[hh],
                          preferred_element_type=jnp.float32)
    h1 = jnp.maximum(h1 + bf1_ref[...], 0.0)

    # fc2 (get_feature output) -> ReLU -> fc3 (logits)
    h2 = jnp.dot(h1.astype(jnp.bfloat16), wf2_ref[...],
                 preferred_element_type=jnp.float32) + bf2_ref[...]
    h2 = jnp.maximum(h2, 0.0)
    y = jnp.dot(h2.astype(jnp.bfloat16), wf3_ref[...],
                preferred_element_type=jnp.float32) + bf3_ref[...]
    o_ref[0] = y.astype(o_ref.dtype)                         # (tb, 10)


# ----------------------------------------------------------------------------
# One-time parameter preparation (offline): banded conv matrices, permuted fc1.
# ----------------------------------------------------------------------------
def _prepare_params(params):
    f32, bf16 = jnp.float32, jnp.bfloat16

    # conv1 -> 5 banded matrices M1[ki]: (28, 24*30);  M1[ki][u, j*30+c] =
    # w1[ki, u-j, c] if 0 <= u-j < 5 else 0.
    w1 = jnp.transpose(params["conv1_w"], (2, 3, 1, 0))[:, :, 0, :]  # (5,5,30)
    uu = jnp.arange(28)[:, None]
    jj = jnp.arange(24)[None, :]
    kj = uu - jj
    valid = (kj >= 0) & (kj < 5)
    m1 = jnp.where(valid[None, :, :, None],
                   w1[:, jnp.clip(kj, 0, 4), :], 0.0)        # (5,28,24,30)
    m1 = m1.reshape(5, 28, 720).astype(bf16)
    b1 = jnp.tile(params["conv1_b"], 24).reshape(1, 720).astype(f32)

    # conv2 -> 5 banded matrices M2[ki]: (24*30, 20*15);
    # M2[ki][u*30+c, j*15+f] = w2[ki, u-j, c, f] if 0 <= u-j < 5 else 0.
    w2 = jnp.transpose(params["conv2_w"], (2, 3, 1, 0))      # (5,5,30,15)
    uu = jnp.arange(24)[:, None]
    jj = jnp.arange(20)[None, :]
    kj = uu - jj
    valid = (kj >= 0) & (kj < 5)
    m2 = jnp.where(valid[None, :, :, None, None],
                   w2[:, jnp.clip(kj, 0, 4), :, :], 0.0)     # (5,24,20,30,15)
    m2 = jnp.transpose(m2, (0, 1, 3, 2, 4)).reshape(5, 720, 300).astype(bf16)
    b2 = jnp.tile(params["conv2_b"], 20).reshape(1, 300).astype(f32)

    # fc1: rows permuted from PyTorch's NCHW flatten (c*400 + h*20 + w) to the
    # kernel's (h, w*15+c) layout -> shape (20, 300, 128).
    wf1 = jnp.transpose(params["fc1_w"].reshape(128, 15, 20, 20), (2, 3, 1, 0))
    wf1 = wf1.reshape(20, 300, 128).astype(bf16)

    return {
        "m1": m1, "b1": b1, "m2": m2, "b2": b2,
        "wf1": wf1, "bf1": params["fc1_b"].reshape(1, 128).astype(f32),
        "wf2": params["fc2_w"].T.astype(bf16),
        "bf2": params["fc2_b"].reshape(1, 50).astype(f32),
        "wf3": params["fc3_w"].T.astype(bf16),
        "bf3": params["fc3_b"].reshape(1, 10).astype(f32),
    }


# ----------------------------------------------------------------------------
# Public forward: NCHW input, identical semantics to MnistCNN.forward.
# ----------------------------------------------------------------------------
def mnist_cnn_forward(params, x_nchw):
    b = x_nchw.shape[0]
    assert x_nchw.shape[1:] == (1, 28, 28), x_nchw.shape
    prep = _prepare_params(params)
    x_img = x_nchw[:, 0, :, :]                               # (B, 28, 28)

    # Batch tiling: >= 2 parallel grid blocks whenever B >= 2 (v7x megacore),
    # capped at 4 images/block to keep per-block VMEM small on every gen.
    tb = max(1, min(4, pl.cdiv(b, 2)))
    nt = pl.cdiv(b, tb)
    b_pad = nt * tb
    if b_pad != b:
        x_img = jnp.pad(x_img, ((0, b_pad - b), (0, 0), (0, 0)))

    out = pl.pallas_call(
        _mnist_fused_kernel,
        out_shape=jax.ShapeDtypeStruct((nt, tb, 10), jnp.float32),
        grid=(nt,),
        in_specs=[
            pl.BlockSpec((tb, 28, 28), lambda i: (i, 0, 0)),       # images
            pl.BlockSpec((5, 28, 720), lambda i: (0, 0, 0)),       # conv1 banded
            pl.BlockSpec((1, 720), lambda i: (0, 0)),              # conv1 bias
            pl.BlockSpec((5, 720, 300), lambda i: (0, 0, 0)),      # conv2 banded
            pl.BlockSpec((1, 300), lambda i: (0, 0)),              # conv2 bias
            pl.BlockSpec((20, 300, 128), lambda i: (0, 0, 0)),     # fc1 (permuted)
            pl.BlockSpec((1, 128), lambda i: (0, 0)),              # fc1 bias
            pl.BlockSpec((128, 50), lambda i: (0, 0)),             # fc2
            pl.BlockSpec((1, 50), lambda i: (0, 0)),               # fc2 bias
            pl.BlockSpec((50, 10), lambda i: (0, 0)),              # fc3
            pl.BlockSpec((1, 10), lambda i: (0, 0)),               # fc3 bias
        ],
        out_specs=pl.BlockSpec((1, tb, 10), lambda i: (i, 0, 0)),
        compiler_params=pltpu.CompilerParams(
            dimension_semantics=("parallel",),
            vmem_limit_bytes=32 * 1024 * 1024),
    )(x_img, prep["m1"], prep["b1"], prep["m2"], prep["b2"],
      prep["wf1"], prep["bf1"], prep["wf2"], prep["bf2"],
      prep["wf3"], prep["bf3"])

    return out.reshape(b_pad, 10)[:b]


# ----------------------------------------------------------------------------
# Deterministic parameter init (PyTorch default-like uniform(-1/sqrt(fan_in))).
# ----------------------------------------------------------------------------
def init_params(key):
    ks = jax.random.split(key, 10)

    def u(k, shape, fan_in):
        bound = 1.0 / float(fan_in) ** 0.5
        return jax.random.uniform(k, shape, jnp.float32, -bound, bound)

    return {
        "conv1_w": u(ks[0], (30, 1, 5, 5), 1 * 25),
        "conv1_b": u(ks[1], (30,), 1 * 25),
        "conv2_w": u(ks[2], (15, 30, 5, 5), 30 * 25),
        "conv2_b": u(ks[3], (15,), 30 * 25),
        "fc1_w":   u(ks[4], (128, 6000), 6000),
        "fc1_b":   u(ks[5], (128,), 6000),
        "fc2_w":   u(ks[6], (50, 128), 128),
        "fc2_b":   u(ks[7], (50,), 128),
        "fc3_w":   u(ks[8], (10, 50), 50),
        "fc3_b":   u(ks[9], (10,), 50),
    }


# ----------------------------------------------------------------------------
# Pure-JAX reference (for correctness check).
# ----------------------------------------------------------------------------
def _dot_hi(a, b):
    return jnp.dot(a, b, precision=jax.lax.Precision.HIGHEST)


def reference_forward(params, x_nchw):
    dn = ("NCHW", "OIHW", "NCHW")
    out = jax.lax.conv_general_dilated(
        x_nchw, params["conv1_w"], (1, 1), "VALID", dimension_numbers=dn,
        precision=jax.lax.Precision.HIGHEST)
    out = jnp.maximum(out + params["conv1_b"][None, :, None, None], 0.0)
    out = jax.lax.conv_general_dilated(
        out, params["conv2_w"], (1, 1), "VALID", dimension_numbers=dn,
        precision=jax.lax.Precision.HIGHEST)
    out = jnp.maximum(out + params["conv2_b"][None, :, None, None], 0.0)
    out = out.reshape(out.shape[0], -1)
    out = jnp.maximum(_dot_hi(out, params["fc1_w"].T) + params["fc1_b"], 0.0)
    out = _dot_hi(out, params["fc2_w"].T) + params["fc2_b"]
    out = jnp.maximum(out, 0.0)
    out = _dot_hi(out, params["fc3_w"].T) + params["fc3_b"]
    return out


if __name__ == "__main__":
    key = jax.random.PRNGKey(0)
    pkey, xkey = jax.random.split(key)
    params = init_params(pkey)

    # MNIST-sized input (28x28 is required so the flatten yields 6000 features)
    x = jax.random.normal(xkey, (2, 1, 28, 28), jnp.float32)

    y = jax.jit(mnist_cnn_forward)(params, x)
    y = jax.block_until_ready(y)

    y_ref = reference_forward(params, x)
    assert y.shape == (2, 10), y.shape
    assert bool(jnp.allclose(y, y_ref, atol=1e-2, rtol=1e-2)), float(
        jnp.max(jnp.abs(y - y_ref)))

    print("KERNEL_OK")
</pallas_src>

<mosaic_0001>
module attributes {stable_mosaic.version = 11 : i64} {
  func.func @_mnist_fused_kernel(%arg0: i32, %arg1: memref<1x28x28xf32, #tpu.memory_space<vmem>>, %arg2: memref<5x28x720xbf16, #tpu.memory_space<vmem>>, %arg3: memref<1x720xf32, #tpu.memory_space<vmem>>, %arg4: memref<5x720x300xbf16, #tpu.memory_space<vmem>>, %arg5: memref<1x300xf32, #tpu.memory_space<vmem>>, %arg6: memref<20x300x128xbf16, #tpu.memory_space<vmem>>, %arg7: memref<1x128xf32, #tpu.memory_space<vmem>>, %arg8: memref<128x50xbf16, #tpu.memory_space<vmem>>, %arg9: memref<1x50xf32, #tpu.memory_space<vmem>>, %arg10: memref<50x10xbf16, #tpu.memory_space<vmem>>, %arg11: memref<1x10xf32, #tpu.memory_space<vmem>>, %arg12: memref<1x1x10xf32, #tpu.memory_space<vmem>>) attributes {dimension_semantics = [#tpu.dimension_semantics<parallel>], iteration_bounds = array<i64: 2>, scalar_prefetch = 0 : i64, scratch_operands = 0 : i64, tpu.core_type = #tpu.core_type<tc>, window_params = [{transform_indices = @transform_0, window_bounds = array<i64: 1, 28, 28>}, {pipeline_mode = #tpu.pipeline_mode<synchronous>, transform_indices = @transform_1, window_bounds = array<i64: 5, 28, 720>}, {pipeline_mode = #tpu.pipeline_mode<synchronous>, transform_indices = @transform_2, window_bounds = array<i64: 1, 720>}, {pipeline_mode = #tpu.pipeline_mode<synchronous>, transform_indices = @transform_3, window_bounds = array<i64: 5, 720, 300>}, {pipeline_mode = #tpu.pipeline_mode<synchronous>, transform_indices = @transform_4, window_bounds = array<i64: 1, 300>}, {pipeline_mode = #tpu.pipeline_mode<synchronous>, transform_indices = @transform_5, window_bounds = array<i64: 20, 300, 128>}, {pipeline_mode = #tpu.pipeline_mode<synchronous>, transform_indices = @transform_6, window_bounds = array<i64: 1, 128>}, {pipeline_mode = #tpu.pipeline_mode<synchronous>, transform_indices = @transform_7, window_bounds = array<i64: 128, 50>}, {pipeline_mode = #tpu.pipeline_mode<synchronous>, transform_indices = @transform_8, window_bounds = array<i64: 1, 50>}, {pipeline_mode = #tpu.pipeline_mode<synchronous>, transform_indices = @transform_9, window_bounds = array<i64: 50, 10>}, {pipeline_mode = #tpu.pipeline_mode<synchronous>, transform_indices = @transform_10, window_bounds = array<i64: 1, 10>}, {transform_indices = @transform_11, window_bounds = array<i64: 1, 1, 10>}]} {
    %c0 = arith.constant 0 : index
    %c0_0 = arith.constant 0 : index
    %c0_1 = arith.constant 0 : index
    %0 = vector.load %arg1[%c0, %c0_0, %c0_1] : memref<1x28x28xf32, #tpu.memory_space<vmem>>, vector<1x28x28xf32>
    %cst = arith.constant 0.000000e+00 : f32
    %1 = vector.broadcast %cst : f32 to vector<24x720xf32>
    %2 = vector.extract_strided_slice %0 {offsets = [0, 0, 0], sizes = [1, 24, 28], strides = [1, 1, 1]} : vector<1x28x28xf32> to vector<1x24x28xf32>
    %3 = vector.shape_cast %2 : vector<1x24x28xf32> to vector<24x28xf32>
    %4 = arith.truncf %3 : vector<24x28xf32> to vector<24x28xbf16>
    %c0_2 = arith.constant 0 : index
    %c0_3 = arith.constant 0 : index
    %c0_4 = arith.constant 0 : index
    %5 = vector.load %arg2[%c0_2, %c0_3, %c0_4] : memref<5x28x720xbf16, #tpu.memory_space<vmem>>, vector<1x28x720xbf16>
    %6 = vector.shape_cast %5 : vector<1x28x720xbf16> to vector<28x720xbf16>
    %cst_5 = arith.constant dense<0.000000e+00> : vector<24x720xf32>
    %7 = tpu.matmul %4, %6, %cst_5 {dimension_numbers = #tpu.dot_dimension_numbers<[1], [0], [0], [1], [0, 0, 1, 1], [], []>} : vector<24x28xbf16>, vector<28x720xbf16>, vector<24x720xf32> -> vector<24x720xf32>
    %8 = arith.addf %1, %7 : vector<24x720xf32>
    %9 = vector.extract_strided_slice %0 {offsets = [0, 1, 0], sizes = [1, 24, 28], strides = [1, 1, 1]} : vector<1x28x28xf32> to vector<1x24x28xf32>
    %10 = vector.shape_cast %9 : vector<1x24x28xf32> to vector<24x28xf32>
    %11 = arith.truncf %10 : vector<24x28xf32> to vector<24x28xbf16>
    %c1 = arith.constant 1 : index
    %c0_6 = arith.constant 0 : index
    %c0_7 = arith.constant 0 : index
    %12 = vector.load %arg2[%c1, %c0_6, %c0_7] : memref<5x28x720xbf16, #tpu.memory_space<vmem>>, vector<1x28x720xbf16>
    %13 = vector.shape_cast %12 : vector<1x28x720xbf16> to vector<28x720xbf16>
    %cst_8 = arith.constant dense<0.000000e+00> : vector<24x720xf32>
    %14 = tpu.matmul %11, %13, %cst_8 {dimension_numbers = #tpu.dot_dimension_numbers<[1], [0], [0], [1], [0, 0, 1, 1], [], []>} : vector<24x28xbf16>, vector<28x720xbf16>, vector<24x720xf32> -> vector<24x720xf32>
    %15 = arith.addf %8, %14 : vector<24x720xf32>
    %16 = vector.extract_strided_slice %0 {offsets = [0, 2, 0], sizes = [1, 24, 28], strides = [1, 1, 1]} : vector<1x28x28xf32> to vector<1x24x28xf32>
    %17 = vector.shape_cast %16 : vector<1x24x28xf32> to vector<24x28xf32>
    %18 = arith.truncf %17 : vector<24x28xf32> to vector<24x28xbf16>
    %c2 = arith.constant 2 : index
    %c0_9 = arith.constant 0 : index
    %c0_10 = arith.constant 0 : index
    %19 = vector.load %arg2[%c2, %c0_9, %c0_10] : memref<5x28x720xbf16, #tpu.memory_space<vmem>>, vector<1x28x720xbf16>
    %20 = vector.shape_cast %19 : vector<1x28x720xbf16> to vector<28x720xbf16>
    %cst_11 = arith.constant dense<0.000000e+00> : vector<24x720xf32>
    %21 = tpu.matmul %18, %20, %cst_11 {dimension_numbers = #tpu.dot_dimension_numbers<[1], [0], [0], [1], [0, 0, 1, 1], [], []>} : vector<24x28xbf16>, vector<28x720xbf16>, vector<24x720xf32> -> vector<24x720xf32>
    %22 = arith.addf %15, %21 : vector<24x720xf32>
    %23 = vector.extract_strided_slice %0 {offsets = [0, 3, 0], sizes = [1, 24, 28], strides = [1, 1, 1]} : vector<1x28x28xf32> to vector<1x24x28xf32>
    %24 = vector.shape_cast %23 : vector<1x24x28xf32> to vector<24x28xf32>
    %25 = arith.truncf %24 : vector<24x28xf32> to vector<24x28xbf16>
    %c3 = arith.constant 3 : index
    %c0_12 = arith.constant 0 : index
    %c0_13 = arith.constant 0 : index
    %26 = vector.load %arg2[%c3, %c0_12, %c0_13] : memref<5x28x720xbf16, #tpu.memory_space<vmem>>, vector<1x28x720xbf16>
    %27 = vector.shape_cast %26 : vector<1x28x720xbf16> to vector<28x720xbf16>
    %cst_14 = arith.constant dense<0.000000e+00> : vector<24x720xf32>
    %28 = tpu.matmul %25, %27, %cst_14 {dimension_numbers = #tpu.dot_dimension_numbers<[1], [0], [0], [1], [0, 0, 1, 1], [], []>} : vector<24x28xbf16>, vector<28x720xbf16>, vector<24x720xf32> -> vector<24x720xf32>
    %29 = arith.addf %22, %28 : vector<24x720xf32>
    %30 = vector.extract_strided_slice %0 {offsets = [0, 4, 0], sizes = [1, 24, 28], strides = [1, 1, 1]} : vector<1x28x28xf32> to vector<1x24x28xf32>
    %31 = vector.shape_cast %30 : vector<1x24x28xf32> to vector<24x28xf32>
    %32 = arith.truncf %31 : vector<24x28xf32> to vector<24x28xbf16>
    %c4 = arith.constant 4 : index
    %c0_15 = arith.constant 0 : index
    %c0_16 = arith.constant 0 : index
    %33 = vector.load %arg2[%c4, %c0_15, %c0_16] : memref<5x28x720xbf16, #tpu.memory_space<vmem>>, vector<1x28x720xbf16>
    %34 = vector.shape_cast %33 : vector<1x28x720xbf16> to vector<28x720xbf16>
    %cst_17 = arith.constant dense<0.000000e+00> : vector<24x720xf32>
    %35 = tpu.matmul %32, %34, %cst_17 {dimension_numbers = #tpu.dot_dimension_numbers<[1], [0], [0], [1], [0, 0, 1, 1], [], []>} : vector<24x28xbf16>, vector<28x720xbf16>, vector<24x720xf32> -> vector<24x720xf32>
    %36 = arith.addf %29, %35 : vector<24x720xf32>
    %c0_18 = arith.constant 0 : index
    %c0_19 = arith.constant 0 : index
    %37 = vector.load %arg3[%c0_18, %c0_19] : memref<1x720xf32, #tpu.memory_space<vmem>>, vector<1x720xf32>
    %38 = vector.broadcast %37 : vector<1x720xf32> to vector<24x720xf32>
    %39 = arith.addf %36, %38 : vector<24x720xf32>
    %cst_20 = arith.constant 0.000000e+00 : f32
    %40 = vector.broadcast %cst_20 : f32 to vector<24x720xf32>
    %41 = arith.maximumf %39, %40 : vector<24x720xf32>
    %42 = vector.shape_cast %41 : vector<24x720xf32> to vector<1x24x720xf32>
    %cst_21 = arith.constant 0.000000e+00 : f32
    %43 = vector.broadcast %cst_21 : f32 to vector<20x300xf32>
    %44 = vector.extract_strided_slice %42 {offsets = [0, 0, 0], sizes = [1, 20, 720], strides = [1, 1, 1]} : vector<1x24x720xf32> to vector<1x20x720xf32>
    %45 = vector.shape_cast %44 : vector<1x20x720xf32> to vector<20x720xf32>
    %46 = arith.truncf %45 : vector<20x720xf32> to vector<20x720xbf16>
    %c0_22 = arith.constant 0 : index
    %c0_23 = arith.constant 0 : index
    %c0_24 = arith.constant 0 : index
    %47 = vector.load %arg4[%c0_22, %c0_23, %c0_24] : memref<5x720x300xbf16, #tpu.memory_space<vmem>>, vector<1x720x300xbf16>
    %48 = vector.shape_cast %47 : vector<1x720x300xbf16> to vector<720x300xbf16>
    %cst_25 = arith.constant dense<0.000000e+00> : vector<20x300xf32>
    %49 = tpu.matmul %46, %48, %cst_25 {dimension_numbers = #tpu.dot_dimension_numbers<[1], [0], [0], [1], [0, 0, 1, 1], [], []>} : vector<20x720xbf16>, vector<720x300xbf16>, vector<20x300xf32> -> vector<20x300xf32>
    %50 = arith.addf %43, %49 : vector<20x300xf32>
    %51 = vector.extract_strided_slice %42 {offsets = [0, 1, 0], sizes = [1, 20, 720], strides = [1, 1, 1]} : vector<1x24x720xf32> to vector<1x20x720xf32>
    %52 = vector.shape_cast %51 : vector<1x20x720xf32> to vector<20x720xf32>
    %53 = arith.truncf %52 : vector<20x720xf32> to vector<20x720xbf16>
    %c1_26 = arith.constant 1 : index
    %c0_27 = arith.constant 0 : index
    %c0_28 = arith.constant 0 : index
    %54 = vector.load %arg4[%c1_26, %c0_27, %c0_28] : memref<5x720x300xbf16, #tpu.memory_space<vmem>>, vector<1x720x300xbf16>
    %55 = vector.shape_cast %54 : vector<1x720x300xbf16> to vector<720x300xbf16>
    %cst_29 = arith.constant dense<0.000000e+00> : vector<20x300xf32>
    %56 = tpu.matmul %53, %55, %cst_29 {dimension_numbers = #tpu.dot_dimension_numbers<[1], [0], [0], [1], [0, 0, 1, 1], [], []>} : vector<20x720xbf16>, vector<720x300xbf16>, vector<20x300xf32> -> vector<20x300xf32>
    %57 = arith.addf %50, %56 : vector<20x300xf32>
    %58 = vector.extract_strided_slice %42 {offsets = [0, 2, 0], sizes = [1, 20, 720], strides = [1, 1, 1]} : vector<1x24x720xf32> to vector<1x20x720xf32>
    %59 = vector.shape_cast %58 : vector<1x20x720xf32> to vector<20x720xf32>
    %60 = arith.truncf %59 : vector<20x720xf32> to vector<20x720xbf16>
    %c2_30 = arith.constant 2 : index
    %c0_31 = arith.constant 0 : index
    %c0_32 = arith.constant 0 : index
    %61 = vector.load %arg4[%c2_30, %c0_31, %c0_32] : memref<5x720x300xbf16, #tpu.memory_space<vmem>>, vector<1x720x300xbf16>
    %62 = vector.shape_cast %61 : vector<1x720x300xbf16> to vector<720x300xbf16>
    %cst_33 = arith.constant dense<0.000000e+00> : vector<20x300xf32>
    %63 = tpu.matmul %60, %62, %cst_33 {dimension_numbers = #tpu.dot_dimension_numbers<[1], [0], [0], [1], [0, 0, 1, 1], [], []>} : vector<20x720xbf16>, vector<720x300xbf16>, vector<20x300xf32> -> vector<20x300xf32>
    %64 = arith.addf %57, %63 : vector<20x300xf32>
    %65 = vector.extract_strided_slice %42 {offsets = [0, 3, 0], sizes = [1, 20, 720], strides = [1, 1, 1]} : vector<1x24x720xf32> to vector<1x20x720xf32>
    %66 = vector.shape_cast %65 : vector<1x20x720xf32> to vector<20x720xf32>
    %67 = arith.truncf %66 : vector<20x720xf32> to vector<20x720xbf16>
    %c3_34 = arith.constant 3 : index
    %c0_35 = arith.constant 0 : index
    %c0_36 = arith.constant 0 : index
    %68 = vector.load %arg4[%c3_34, %c0_35, %c0_36] : memref<5x720x300xbf16, #tpu.memory_space<vmem>>, vector<1x720x300xbf16>
    %69 = vector.shape_cast %68 : vector<1x720x300xbf16> to vector<720x300xbf16>
    %cst_37 = arith.constant dense<0.000000e+00> : vector<20x300xf32>
    %70 = tpu.matmul %67, %69, %cst_37 {dimension_numbers = #tpu.dot_dimension_numbers<[1], [0], [0], [1], [0, 0, 1, 1], [], []>} : vector<20x720xbf16>, vector<720x300xbf16>, vector<20x300xf32> -> vector<20x300xf32>
    %71 = arith.addf %64, %70 : vector<20x300xf32>
    %72 = vector.extract_strided_slice %42 {offsets = [0, 4, 0], sizes = [1, 20, 720], strides = [1, 1, 1]} : vector<1x24x720xf32> to vector<1x20x720xf32>
    %73 = vector.shape_cast %72 : vector<1x20x720xf32> to vector<20x720xf32>
    %74 = arith.truncf %73 : vector<20x720xf32> to vector<20x720xbf16>
    %c4_38 = arith.constant 4 : index
    %c0_39 = arith.constant 0 : index
    %c0_40 = arith.constant 0 : index
    %75 = vector.load %arg4[%c4_38, %c0_39, %c0_40] : memref<5x720x300xbf16, #tpu.memory_space<vmem>>, vector<1x720x300xbf16>
    %76 = vector.shape_cast %75 : vector<1x720x300xbf16> to vector<720x300xbf16>
    %cst_41 = arith.constant dense<0.000000e+00> : vector<20x300xf32>
    %77 = tpu.matmul %74, %76, %cst_41 {dimension_numbers = #tpu.dot_dimension_numbers<[1], [0], [0], [1], [0, 0, 1, 1], [], []>} : vector<20x720xbf16>, vector<720x300xbf16>, vector<20x300xf32> -> vector<20x300xf32>
    %78 = arith.addf %71, %77 : vector<20x300xf32>
    %c0_42 = arith.constant 0 : index
    %c0_43 = arith.constant 0 : index
    %79 = vector.load %arg5[%c0_42, %c0_43] : memref<1x300xf32, #tpu.memory_space<vmem>>, vector<1x300xf32>
    %80 = vector.broadcast %79 : vector<1x300xf32> to vector<20x300xf32>
    %81 = arith.addf %78, %80 : vector<20x300xf32>
    %cst_44 = arith.constant 0.000000e+00 : f32
    %82 = vector.broadcast %cst_44 : f32 to vector<20x300xf32>
    %83 = arith.maximumf %81, %82 : vector<20x300xf32>
    %84 = vector.shape_cast %83 : vector<20x300xf32> to vector<1x20x300xf32>
    %cst_45 = arith.constant 0.000000e+00 : f32
    %85 = vector.broadcast %cst_45 : f32 to vector<1x128xf32>
    %86 = vector.extract_strided_slice %84 {offsets = [0, 0, 0], sizes = [1, 1, 300], strides = [1, 1, 1]} : vector<1x20x300xf32> to vector<1x1x300xf32>
    %87 = vector.shape_cast %86 : vector<1x1x300xf32> to vector<1x300xf32>
    %88 = arith.truncf %87 : vector<1x300xf32> to vector<1x300xbf16>
    %c0_46 = arith.constant 0 : index
    %c0_47 = arith.constant 0 : index
    %c0_48 = arith.constant 0 : index
    %89 = vector.load %arg6[%c0_46, %c0_47, %c0_48] : memref<20x300x128xbf16, #tpu.memory_space<vmem>>, vector<1x300x128xbf16>
    %90 = vector.shape_cast %89 : vector<1x300x128xbf16> to vector<300x128xbf16>
    %cst_49 = arith.constant dense<0.000000e+00> : vector<1x128xf32>
    %91 = tpu.matmul %88, %90, %cst_49 {dimension_numbers = #tpu.dot_dimension_numbers<[1], [0], [0], [1], [0, 0, 1, 1], [], []>} : vector<1x300xbf16>, vector<300x128xbf16>, vector<1x128xf32> -> vector<1x128xf32>
    %92 = arith.addf %85, %91 : vector<1x128xf32>
    %93 = vector.extract_strided_slice %84 {offsets = [0, 1, 0], sizes = [1, 1, 300], strides = [1, 1, 1]} : vector<1x20x300xf32> to vector<1x1x300xf32>
    %94 = vector.shape_cast %93 : vector<1x1x300xf32> to vector<1x300xf32>
    %95 = arith.truncf %94 : vector<1x300xf32> to vector<1x300xbf16>
    %c1_50 = arith.constant 1 : index
    %c0_51 = arith.constant 0 : index
    %c0_52 = arith.constant 0 : index
    %96 = vector.load %arg6[%c1_50, %c0_51, %c0_52] : memref<20x300x128xbf16, #tpu.memory_space<vmem>>, vector<1x300x128xbf16>
    %97 = vector.shape_cast %96 : vector<1x300x128xbf16> to vector<300x128xbf16>
    %cst_53 = arith.constant dense<0.000000e+00> : vector<1x128xf32>
    %98 = tpu.matmul %95, %97, %cst_53 {dimension_numbers = #tpu.dot_dimension_numbers<[1], [0], [0], [1], [0, 0, 1, 1], [], []>} : vector<1x300xbf16>, vector<300x128xbf16>, vector<1x128xf32> -> vector<1x128xf32>
    %99 = arith.addf %92, %98 : vector<1x128xf32>
    %100 = vector.extract_strided_slice %84 {offsets = [0, 2, 0], sizes = [1, 1, 300], strides = [1, 1, 1]} : vector<1x20x300xf32> to vector<1x1x300xf32>
    %101 = vector.shape_cast %100 : vector<1x1x300xf32> to vector<1x300xf32>
    %102 = arith.truncf %101 : vector<1x300xf32> to vector<1x300xbf16>
    %c2_54 = arith.constant 2 : index
    %c0_55 = arith.constant 0 : index
    %c0_56 = arith.constant 0 : index
    %103 = vector.load %arg6[%c2_54, %c0_55, %c0_56] : memref<20x300x128xbf16, #tpu.memory_space<vmem>>, vector<1x300x128xbf16>
    %104 = vector.shape_cast %103 : vector<1x300x128xbf16> to vector<300x128xbf16>
    %cst_57 = arith.constant dense<0.000000e+00> : vector<1x128xf32>
    %105 = tpu.matmul %102, %104, %cst_57 {dimension_numbers = #tpu.dot_dimension_numbers<[1], [0], [0], [1], [0, 0, 1, 1], [], []>} : vector<1x300xbf16>, vector<300x128xbf16>, vector<1x128xf32> -> vector<1x128xf32>
    %106 = arith.addf %99, %105 : vector<1x128xf32>
    %107 = vector.extract_strided_slice %84 {offsets = [0, 3, 0], sizes = [1, 1, 300], strides = [1, 1, 1]} : vector<1x20x300xf32> to vector<1x1x300xf32>
    %108 = vector.shape_cast %107 : vector<1x1x300xf32> to vector<1x300xf32>
    %109 = arith.truncf %108 : vector<1x300xf32> to vector<1x300xbf16>
    %c3_58 = arith.constant 3 : index
    %c0_59 = arith.constant 0 : index
    %c0_60 = arith.constant 0 : index
    %110 = vector.load %arg6[%c3_58, %c0_59, %c0_60] : memref<20x300x128xbf16, #tpu.memory_space<vmem>>, vector<1x300x128xbf16>
    %111 = vector.shape_cast %110 : vector<1x300x128xbf16> to vector<300x128xbf16>
    %cst_61 = arith.constant dense<0.000000e+00> : vector<1x128xf32>
    %112 = tpu.matmul %109, %111, %cst_61 {dimension_numbers = #tpu.dot_dimension_numbers<[1], [0], [0], [1], [0, 0, 1, 1], [], []>} : vector<1x300xbf16>, vector<300x128xbf16>, vector<1x128xf32> -> vector<1x128xf32>
    %113 = arith.addf %106, %112 : vector<1x128xf32>
    %114 = vector.extract_strided_slice %84 {offsets = [0, 4, 0], sizes = [1, 1, 300], strides = [1, 1, 1]} : vector<1x20x300xf32> to vector<1x1x300xf32>
    %115 = vector.shape_cast %114 : vector<1x1x300xf32> to vector<1x300xf32>
    %116 = arith.truncf %115 : vector<1x300xf32> to vector<1x300xbf16>
    %c4_62 = arith.constant 4 : index
    %c0_63 = arith.constant 0 : index
    %c0_64 = arith.constant 0 : index
    %117 = vector.load %arg6[%c4_62, %c0_63, %c0_64] : memref<20x300x128xbf16, #tpu.memory_space<vmem>>, vector<1x300x128xbf16>
    %118 = vector.shape_cast %117 : vector<1x300x128xbf16> to vector<300x128xbf16>
    %cst_65 = arith.constant dense<0.000000e+00> : vector<1x128xf32>
    %119 = tpu.matmul %116, %118, %cst_65 {dimension_numbers = #tpu.dot_dimension_numbers<[1], [0], [0], [1], [0, 0, 1, 1], [], []>} : vector<1x300xbf16>, vector<300x128xbf16>, vector<1x128xf32> -> vector<1x128xf32>
    %120 = arith.addf %113, %119 : vector<1x128xf32>
    %121 = vector.extract_strided_slice %84 {offsets = [0, 5, 0], sizes = [1, 1, 300], strides = [1, 1, 1]} : vector<1x20x300xf32> to vector<1x1x300xf32>
    %122 = vector.shape_cast %121 : vector<1x1x300xf32> to vector<1x300xf32>
    %123 = arith.truncf %122 : vector<1x300xf32> to vector<1x300xbf16>
    %c5 = arith.constant 5 : index
    %c0_66 = arith.constant 0 : index
    %c0_67 = arith.constant 0 : index
    %124 = vector.load %arg6[%c5, %c0_66, %c0_67] : memref<20x300x128xbf16, #tpu.memory_space<vmem>>, vector<1x300x128xbf16>
    %125 = vector.shape_cast %124 : vector<1x300x128xbf16> to vector<300x128xbf16>
    %cst_68 = arith.constant dense<0.000000e+00> : vector<1x128xf32>
    %126 = tpu.matmul %123, %125, %cst_68 {dimension_numbers = #tpu.dot_dimension_numbers<[1], [0], [0], [1], [0, 0, 1, 1], [], []>} : vector<1x300xbf16>, vector<300x128xbf16>, vector<1x128xf32> -> vector<1x128xf32>
    %127 = arith.addf %120, %126 : vector<1x128xf32>
    %128 = vector.extract_strided_slice %84 {offsets = [0, 6, 0], sizes = [1, 1, 300], strides = [1, 1, 1]} : vector<1x20x300xf32> to vector<1x1x300xf32>
    %129 = vector.shape_cast %128 : vector<1x1x300xf32> to vector<1x300xf32>
    %130 = arith.truncf %129 : vector<1x300xf32> to vector<1x300xbf16>
    %c6 = arith.constant 6 : index
    %c0_69 = arith.constant 0 : index
    %c0_70 = arith.constant 0 : index
    %131 = vector.load %arg6[%c6, %c0_69, %c0_70] : memref<20x300x128xbf16, #tpu.memory_space<vmem>>, vector<1x300x128xbf16>
    %132 = vector.shape_cast %131 : vector<1x300x128xbf16> to vector<300x128xbf16>
    %cst_71 = arith.constant dense<0.000000e+00> : vector<1x128xf32>
    %133 = tpu.matmul %130, %132, %cst_71 {dimension_numbers = #tpu.dot_dimension_numbers<[1], [0], [0], [1], [0, 0, 1, 1], [], []>} : vector<1x300xbf16>, vector<300x128xbf16>, vector<1x128xf32> -> vector<1x128xf32>
    %134 = arith.addf %127, %133 : vector<1x128xf32>
    %135 = vector.extract_strided_slice %84 {offsets = [0, 7, 0], sizes = [1, 1, 300], strides = [1, 1, 1]} : vector<1x20x300xf32> to vector<1x1x300xf32>
    %136 = vector.shape_cast %135 : vector<1x1x300xf32> to vector<1x300xf32>
    %137 = arith.truncf %136 : vector<1x300xf32> to vector<1x300xbf16>
    %c7 = arith.constant 7 : index
    %c0_72 = arith.constant 0 : index
    %c0_73 = arith.constant 0 : index
    %138 = vector.load %arg6[%c7, %c0_72, %c0_73] : memref<20x300x128xbf16, #tpu.memory_space<vmem>>, vector<1x300x128xbf16>
    %139 = vector.shape_cast %138 : vector<1x300x128xbf16> to vector<300x128xbf16>
    %cst_74 = arith.constant dense<0.000000e+00> : vector<1x128xf32>
    %140 = tpu.matmul %137, %139, %cst_74 {dimension_numbers = #tpu.dot_dimension_numbers<[1], [0], [0], [1], [0, 0, 1, 1], [], []>} : vector<1x300xbf16>, vector<300x128xbf16>, vector<1x128xf32> -> vector<1x128xf32>
    %141 = arith.addf %134, %140 : vector<1x128xf32>
    %142 = vector.extract_strided_slice %84 {offsets = [0, 8, 0], sizes = [1, 1, 300], strides = [1, 1, 1]} : vector<1x20x300xf32> to vector<1x1x300xf32>
    %143 = vector.shape_cast %142 : vector<1x1x300xf32> to vector<1x300xf32>
    %144 = arith.truncf %143 : vector<1x300xf32> to vector<1x300xbf16>
    %c8 = arith.constant 8 : index
    %c0_75 = arith.constant 0 : index
    %c0_76 = arith.constant 0 : index
    %145 = vector.load %arg6[%c8, %c0_75, %c0_76] : memref<20x300x128xbf16, #tpu.memory_space<vmem>>, vector<1x300x128xbf16>
    %146 = vector.shape_cast %145 : vector<1x300x128xbf16> to vector<300x128xbf16>
    %cst_77 = arith.constant dense<0.000000e+00> : vector<1x128xf32>
    %147 = tpu.matmul %144, %146, %cst_77 {dimension_numbers = #tpu.dot_dimension_numbers<[1], [0], [0], [1], [0, 0, 1, 1], [], []>} : vector<1x300xbf16>, vector<300x128xbf16>, vector<1x128xf32> -> vector<1x128xf32>
    %148 = arith.addf %141, %147 : vector<1x128xf32>
    %149 = vector.extract_strided_slice %84 {offsets = [0, 9, 0], sizes = [1, 1, 300], strides = [1, 1, 1]} : vector<1x20x300xf32> to vector<1x1x300xf32>
    %150 = vector.shape_cast %149 : vector<1x1x300xf32> to vector<1x300xf32>
    %151 = arith.truncf %150 : vector<1x300xf32> to vector<1x300xbf16>
    %c9 = arith.constant 9 : index
    %c0_78 = arith.constant 0 : index
    %c0_79 = arith.constant 0 : index
    %152 = vector.load %arg6[%c9, %c0_78, %c0_79] : memref<20x300x128xbf16, #tpu.memory_space<vmem>>, vector<1x300x128xbf16>
    %153 = vector.shape_cast %152 : vector<1x300x128xbf16> to vector<300x128xbf16>
    %cst_80 = arith.constant dense<0.000000e+00> : vector<1x128xf32>
    %154 = tpu.matmul %151, %153, %cst_80 {dimension_numbers = #tpu.dot_dimension_numbers<[1], [0], [0], [1], [0, 0, 1, 1], [], []>} : vector<1x300xbf16>, vector<300x128xbf16>, vector<1x128xf32> -> vector<1x128xf32>
    %155 = arith.addf %148, %154 : vector<1x128xf32>
    %156 = vector.extract_strided_slice %84 {offsets = [0, 10, 0], sizes = [1, 1, 300], strides = [1, 1, 1]} : vector<1x20x300xf32> to vector<1x1x300xf32>
    %157 = vector.shape_cast %156 : vector<1x1x300xf32> to vector<1x300xf32>
    %158 = arith.truncf %157 : vector<1x300xf32> to vector<1x300xbf16>
    %c10 = arith.constant 10 : index
    %c0_81 = arith.constant 0 : index
    %c0_82 = arith.constant 0 : index
    %159 = vector.load %arg6[%c10, %c0_81, %c0_82] : memref<20x300x128xbf16, #tpu.memory_space<vmem>>, vector<1x300x128xbf16>
    %160 = vector.shape_cast %159 : vector<1x300x128xbf16> to vector<300x128xbf16>
    %cst_83 = arith.constant dense<0.000000e+00> : vector<1x128xf32>
    %161 = tpu.matmul %158, %160, %cst_83 {dimension_numbers = #tpu.dot_dimension_numbers<[1], [0], [0], [1], [0, 0, 1, 1], [], []>} : vector<1x300xbf16>, vector<300x128xbf16>, vector<1x128xf32> -> vector<1x128xf32>
    %162 = arith.addf %155, %161 : vector<1x128xf32>
    %163 = vector.extract_strided_slice %84 {offsets = [0, 11, 0], sizes = [1, 1, 300], strides = [1, 1, 1]} : vector<1x20x300xf32> to vector<1x1x300xf32>
    %164 = vector.shape_cast %163 : vector<1x1x300xf32> to vector<1x300xf32>
    %165 = arith.truncf %164 : vector<1x300xf32> to vector<1x300xbf16>
    %c11 = arith.constant 11 : index
    %c0_84 = arith.constant 0 : index
    %c0_85 = arith.constant 0 : index
    %166 = vector.load %arg6[%c11, %c0_84, %c0_85] : memref<20x300x128xbf16, #tpu.memory_space<vmem>>, vector<1x300x128xbf16>
    %167 = vector.shape_cast %166 : vector<1x300x128xbf16> to vector<300x128xbf16>
    %cst_86 = arith.constant dense<0.000000e+00> : vector<1x128xf32>
    %168 = tpu.matmul %165, %167, %cst_86 {dimension_numbers = #tpu.dot_dimension_numbers<[1], [0], [0], [1], [0, 0, 1, 1], [], []>} : vector<1x300xbf16>, vector<300x128xbf16>, vector<1x128xf32> -> vector<1x128xf32>
    %169 = arith.addf %162, %168 : vector<1x128xf32>
    %170 = vector.extract_strided_slice %84 {offsets = [0, 12, 0], sizes = [1, 1, 300], strides = [1, 1, 1]} : vector<1x20x300xf32> to vector<1x1x300xf32>
    %171 = vector.shape_cast %170 : vector<1x1x300xf32> to vector<1x300xf32>
    %172 = arith.truncf %171 : vector<1x300xf32> to vector<1x300xbf16>
    %c12 = arith.constant 12 : index
    %c0_87 = arith.constant 0 : index
    %c0_88 = arith.constant 0 : index
    %173 = vector.load %arg6[%c12, %c0_87, %c0_88] : memref<20x300x128xbf16, #tpu.memory_space<vmem>>, vector<1x300x128xbf16>
    %174 = vector.shape_cast %173 : vector<1x300x128xbf16> to vector<300x128xbf16>
    %cst_89 = arith.constant dense<0.000000e+00> : vector<1x128xf32>
    %175 = tpu.matmul %172, %174, %cst_89 {dimension_numbers = #tpu.dot_dimension_numbers<[1], [0], [0], [1], [0, 0, 1, 1], [], []>} : vector<1x300xbf16>, vector<300x128xbf16>, vector<1x128xf32> -> vector<1x128xf32>
    %176 = arith.addf %169, %175 : vector<1x128xf32>
    %177 = vector.extract_strided_slice %84 {offsets = [0, 13, 0], sizes = [1, 1, 300], strides = [1, 1, 1]} : vector<1x20x300xf32> to vector<1x1x300xf32>
    %178 = vector.shape_cast %177 : vector<1x1x300xf32> to vector<1x300xf32>
    %179 = arith.truncf %178 : vector<1x300xf32> to vector<1x300xbf16>
    %c13 = arith.constant 13 : index
    %c0_90 = arith.constant 0 : index
    %c0_91 = arith.constant 0 : index
    %180 = vector.load %arg6[%c13, %c0_90, %c0_91] : memref<20x300x128xbf16, #tpu.memory_space<vmem>>, vector<1x300x128xbf16>
    %181 = vector.shape_cast %180 : vector<1x300x128xbf16> to vector<300x128xbf16>
    %cst_92 = arith.constant dense<0.000000e+00> : vector<1x128xf32>
    %182 = tpu.matmul %179, %181, %cst_92 {dimension_numbers = #tpu.dot_dimension_numbers<[1], [0], [0], [1], [0, 0, 1, 1], [], []>} : vector<1x300xbf16>, vector<300x128xbf16>, vector<1x128xf32> -> vector<1x128xf32>
    %183 = arith.addf %176, %182 : vector<1x128xf32>
    %184 = vector.extract_strided_slice %84 {offsets = [0, 14, 0], sizes = [1, 1, 300], strides = [1, 1, 1]} : vector<1x20x300xf32> to vector<1x1x300xf32>
    %185 = vector.shape_cast %184 : vector<1x1x300xf32> to vector<1x300xf32>
    %186 = arith.truncf %185 : vector<1x300xf32> to vector<1x300xbf16>
    %c14 = arith.constant 14 : index
    %c0_93 = arith.constant 0 : index
    %c0_94 = arith.constant 0 : index
    %187 = vector.load %arg6[%c14, %c0_93, %c0_94] : memref<20x300x128xbf16, #tpu.memory_space<vmem>>, vector<1x300x128xbf16>
    %188 = vector.shape_cast %187 : vector<1x300x128xbf16> to vector<300x128xbf16>
    %cst_95 = arith.constant dense<0.000000e+00> : vector<1x128xf32>
    %189 = tpu.matmul %186, %188, %cst_95 {dimension_numbers = #tpu.dot_dimension_numbers<[1], [0], [0], [1], [0, 0, 1, 1], [], []>} : vector<1x300xbf16>, vector<300x128xbf16>, vector<1x128xf32> -> vector<1x128xf32>
    %190 = arith.addf %183, %189 : vector<1x128xf32>
    %191 = vector.extract_strided_slice %84 {offsets = [0, 15, 0], sizes = [1, 1, 300], strides = [1, 1, 1]} : vector<1x20x300xf32> to vector<1x1x300xf32>
    %192 = vector.shape_cast %191 : vector<1x1x300xf32> to vector<1x300xf32>
    %193 = arith.truncf %192 : vector<1x300xf32> to vector<1x300xbf16>
    %c15 = arith.constant 15 : index
    %c0_96 = arith.constant 0 : index
    %c0_97 = arith.constant 0 : index
    %194 = vector.load %arg6[%c15, %c0_96, %c0_97] : memref<20x300x128xbf16, #tpu.memory_space<vmem>>, vector<1x300x128xbf16>
    %195 = vector.shape_cast %194 : vector<1x300x128xbf16> to vector<300x128xbf16>
    %cst_98 = arith.constant dense<0.000000e+00> : vector<1x128xf32>
    %196 = tpu.matmul %193, %195, %cst_98 {dimension_numbers = #tpu.dot_dimension_numbers<[1], [0], [0], [1], [0, 0, 1, 1], [], []>} : vector<1x300xbf16>, vector<300x128xbf16>, vector<1x128xf32> -> vector<1x128xf32>
    %197 = arith.addf %190, %196 : vector<1x128xf32>
    %198 = vector.extract_strided_slice %84 {offsets = [0, 16, 0], sizes = [1, 1, 300], strides = [1, 1, 1]} : vector<1x20x300xf32> to vector<1x1x300xf32>
    %199 = vector.shape_cast %198 : vector<1x1x300xf32> to vector<1x300xf32>
    %200 = arith.truncf %199 : vector<1x300xf32> to vector<1x300xbf16>
    %c16 = arith.constant 16 : index
    %c0_99 = arith.constant 0 : index
    %c0_100 = arith.constant 0 : index
    %201 = vector.load %arg6[%c16, %c0_99, %c0_100] : memref<20x300x128xbf16, #tpu.memory_space<vmem>>, vector<1x300x128xbf16>
    %202 = vector.shape_cast %201 : vector<1x300x128xbf16> to vector<300x128xbf16>
    %cst_101 = arith.constant dense<0.000000e+00> : vector<1x128xf32>
    %203 = tpu.matmul %200, %202, %cst_101 {dimension_numbers = #tpu.dot_dimension_numbers<[1], [0], [0], [1], [0, 0, 1, 1], [], []>} : vector<1x300xbf16>, vector<300x128xbf16>, vector<1x128xf32> -> vector<1x128xf32>
    %204 = arith.addf %197, %203 : vector<1x128xf32>
    %205 = vector.extract_strided_slice %84 {offsets = [0, 17, 0], sizes = [1, 1, 300], strides = [1, 1, 1]} : vector<1x20x300xf32> to vector<1x1x300xf32>
    %206 = vector.shape_cast %205 : vector<1x1x300xf32> to vector<1x300xf32>
    %207 = arith.truncf %206 : vector<1x300xf32> to vector<1x300xbf16>
    %c17 = arith.constant 17 : index
    %c0_102 = arith.constant 0 : index
    %c0_103 = arith.constant 0 : index
    %208 = vector.load %arg6[%c17, %c0_102, %c0_103] : memref<20x300x128xbf16, #tpu.memory_space<vmem>>, vector<1x300x128xbf16>
    %209 = vector.shape_cast %208 : vector<1x300x128xbf16> to vector<300x128xbf16>
    %cst_104 = arith.constant dense<0.000000e+00> : vector<1x128xf32>
    %210 = tpu.matmul %207, %209, %cst_104 {dimension_numbers = #tpu.dot_dimension_numbers<[1], [0], [0], [1], [0, 0, 1, 1], [], []>} : vector<1x300xbf16>, vector<300x128xbf16>, vector<1x128xf32> -> vector<1x128xf32>
    %211 = arith.addf %204, %210 : vector<1x128xf32>
    %212 = vector.extract_strided_slice %84 {offsets = [0, 18, 0], sizes = [1, 1, 300], strides = [1, 1, 1]} : vector<1x20x300xf32> to vector<1x1x300xf32>
    %213 = vector.shape_cast %212 : vector<1x1x300xf32> to vector<1x300xf32>
    %214 = arith.truncf %213 : vector<1x300xf32> to vector<1x300xbf16>
    %c18 = arith.constant 18 : index
    %c0_105 = arith.constant 0 : index
    %c0_106 = arith.constant 0 : index
    %215 = vector.load %arg6[%c18, %c0_105, %c0_106] : memref<20x300x128xbf16, #tpu.memory_space<vmem>>, vector<1x300x128xbf16>
    %216 = vector.shape_cast %215 : vector<1x300x128xbf16> to vector<300x128xbf16>
    %cst_107 = arith.constant dense<0.000000e+00> : vector<1x128xf32>
    %217 = tpu.matmul %214, %216, %cst_107 {dimension_numbers = #tpu.dot_dimension_numbers<[1], [0], [0], [1], [0, 0, 1, 1], [], []>} : vector<1x300xbf16>, vector<300x128xbf16>, vector<1x128xf32> -> vector<1x128xf32>
    %218 = arith.addf %211, %217 : vector<1x128xf32>
    %219 = vector.extract_strided_slice %84 {offsets = [0, 19, 0], sizes = [1, 1, 300], strides = [1, 1, 1]} : vector<1x20x300xf32> to vector<1x1x300xf32>
    %220 = vector.shape_cast %219 : vector<1x1x300xf32> to vector<1x300xf32>
    %221 = arith.truncf %220 : vector<1x300xf32> to vector<1x300xbf16>
    %c19 = arith.constant 19 : index
    %c0_108 = arith.constant 0 : index
    %c0_109 = arith.constant 0 : index
    %222 = vector.load %arg6[%c19, %c0_108, %c0_109] : memref<20x300x128xbf16, #tpu.memory_space<vmem>>, vector<1x300x128xbf16>
    %223 = vector.shape_cast %222 : vector<1x300x128xbf16> to vector<300x128xbf16>
    %cst_110 = arith.constant dense<0.000000e+00> : vector<1x128xf32>
    %224 = tpu.matmul %221, %223, %cst_110 {dimension_numbers = #tpu.dot_dimension_numbers<[1], [0], [0], [1], [0, 0, 1, 1], [], []>} : vector<1x300xbf16>, vector<300x128xbf16>, vector<1x128xf32> -> vector<1x128xf32>
    %225 = arith.addf %218, %224 : vector<1x128xf32>
    %c0_111 = arith.constant 0 : index
    %c0_112 = arith.constant 0 : index
    %226 = vector.load %arg7[%c0_111, %c0_112] : memref<1x128xf32, #tpu.memory_space<vmem>>, vector<1x128xf32>
    %227 = arith.addf %225, %226 : vector<1x128xf32>
    %cst_113 = arith.constant 0.000000e+00 : f32
    %228 = vector.broadcast %cst_113 : f32 to vector<1x128xf32>
    %229 = arith.maximumf %227, %228 : vector<1x128xf32>
    %230 = arith.truncf %229 : vector<1x128xf32> to vector<1x128xbf16>
    %c0_114 = arith.constant 0 : index
    %c0_115 = arith.constant 0 : index
    %231 = vector.load %arg8[%c0_114, %c0_115] : memref<128x50xbf16, #tpu.memory_space<vmem>>, vector<128x50xbf16>
    %cst_116 = arith.constant dense<0.000000e+00> : vector<1x50xf32>
    %232 = tpu.matmul %230, %231, %cst_116 {dimension_numbers = #tpu.dot_dimension_numbers<[1], [0], [0], [1], [0, 0, 1, 1], [], []>} : vector<1x128xbf16>, vector<128x50xbf16>, vector<1x50xf32> -> vector<1x50xf32>
    %c0_117 = arith.constant 0 : index
    %c0_118 = arith.constant 0 : index
    %233 = vector.load %arg9[%c0_117, %c0_118] : memref<1x50xf32, #tpu.memory_space<vmem>>, vector<1x50xf32>
    %234 = arith.addf %232, %233 : vector<1x50xf32>
    %cst_119 = arith.constant 0.000000e+00 : f32
    %235 = vector.broadcast %cst_119 : f32 to vector<1x50xf32>
    %236 = arith.maximumf %234, %235 : vector<1x50xf32>
    %237 = arith.truncf %236 : vector<1x50xf32> to vector<1x50xbf16>
    %c0_120 = arith.constant 0 : index
    %c0_121 = arith.constant 0 : index
    %238 = vector.load %arg10[%c0_120, %c0_121] : memref<50x10xbf16, #tpu.memory_space<vmem>>, vector<50x10xbf16>
    %cst_122 = arith.constant dense<0.000000e+00> : vector<1x10xf32>
    %239 = tpu.matmul %237, %238, %cst_122 {dimension_numbers = #tpu.dot_dimension_numbers<[1], [0], [0], [1], [0, 0, 1, 1], [], []>} : vector<1x50xbf16>, vector<50x10xbf16>, vector<1x10xf32> -> vector<1x10xf32>
    %c0_123 = arith.constant 0 : index
    %c0_124 = arith.constant 0 : index
    %240 = vector.load %arg11[%c0_123, %c0_124] : memref<1x10xf32, #tpu.memory_space<vmem>>, vector<1x10xf32>
    %241 = arith.addf %239, %240 : vector<1x10xf32>
    %c0_125 = arith.constant 0 : index
    %c0_126 = arith.constant 0 : index
    %c0_127 = arith.constant 0 : index
    %242 = vector.load %arg12[%c0_125, %c0_126, %c0_127] : memref<1x1x10xf32, #tpu.memory_space<vmem>>, vector<1x1x10xf32>
    %243 = vector.shape_cast %242 : vector<1x1x10xf32> to vector<1x10xf32>
    %244 = vector.shape_cast %241 : vector<1x10xf32> to vector<1x1x10xf32>
    tpu.vector_store %arg12[%c0_125, %c0_126, %c0_127], %244 {strides = array<i32>} : memref<1x1x10xf32, #tpu.memory_space<vmem>>, vector<1x1x10xf32>,
    return
  }
  func.func @transform_0(%arg0: i32) -> (i32, i32, i32) {
    %c0_i32 = arith.constant 0 : i32
    %c0_i32_0 = arith.constant 0 : i32
    %c0_i32_1 = arith.constant 0 : i32
    return %arg0, %c0_i32, %c0_i32_0 : i32, i32, i32
  }
  func.func @transform_1(%arg0: i32) -> (i32, i32, i32) {
    %c0_i32 = arith.constant 0 : i32
    %c0_i32_0 = arith.constant 0 : i32
    %c0_i32_1 = arith.constant 0 : i32
    %c0_i32_2 = arith.constant 0 : i32
    return %c0_i32, %c0_i32_0, %c0_i32_1 : i32, i32, i32
  }
  func.func @transform_2(%arg0: i32) -> (i32, i32) {
    %c0_i32 = arith.constant 0 : i32
    %c0_i32_0 = arith.constant 0 : i32
    %c0_i32_1 = arith.constant 0 : i32
    return %c0_i32, %c0_i32_0 : i32, i32
  }
  func.func @transform_3(%arg0: i32) -> (i32, i32, i32) {
    %c0_i32 = arith.constant 0 : i32
    %c0_i32_0 = arith.constant 0 : i32
    %c0_i32_1 = arith.constant 0 : i32
    %c0_i32_2 = arith.constant 0 : i32
    return %c0_i32, %c0_i32_0, %c0_i32_1 : i32, i32, i32
  }
  func.func @transform_4(%arg0: i32) -> (i32, i32) {
    %c0_i32 = arith.constant 0 : i32
    %c0_i32_0 = arith.constant 0 : i32
    %c0_i32_1 = arith.constant 0 : i32
    return %c0_i32, %c0_i32_0 : i32, i32
  }
  func.func @transform_5(%arg0: i32) -> (i32, i32, i32) {
    %c0_i32 = arith.constant 0 : i32
    %c0_i32_0 = arith.constant 0 : i32
    %c0_i32_1 = arith.constant 0 : i32
    %c0_i32_2 = arith.constant 0 : i32
    return %c0_i32, %c0_i32_0, %c0_i32_1 : i32, i32, i32
  }
  func.func @transform_6(%arg0: i32) -> (i32, i32) {
    %c0_i32 = arith.constant 0 : i32
    %c0_i32_0 = arith.constant 0 : i32
    %c0_i32_1 = arith.constant 0 : i32
    return %c0_i32, %c0_i32_0 : i32, i32
  }
  func.func @transform_7(%arg0: i32) -> (i32, i32) {
    %c0_i32 = arith.constant 0 : i32
    %c0_i32_0 = arith.constant 0 : i32
    %c0_i32_1 = arith.constant 0 : i32
    return %c0_i32, %c0_i32_0 : i32, i32
  }
  func.func @transform_8(%arg0: i32) -> (i32, i32) {
    %c0_i32 = arith.constant 0 : i32
    %c0_i32_0 = arith.constant 0 : i32
    %c0_i32_1 = arith.constant 0 : i32
    return %c0_i32, %c0_i32_0 : i32, i32
  }
  func.func @transform_9(%arg0: i32) -> (i32, i32) {
    %c0_i32 = arith.constant 0 : i32
    %c0_i32_0 = arith.constant 0 : i32
    %c0_i32_1 = arith.constant 0 : i32
    return %c0_i32, %c0_i32_0 : i32, i32
  }
  func.func @transform_10(%arg0: i32) -> (i32, i32) {
    %c0_i32 = arith.constant 0 : i32
    %c0_i32_0 = arith.constant 0 : i32
    %c0_i32_1 = arith.constant 0 : i32
    return %c0_i32, %c0_i32_0 : i32, i32
  }
  func.func @transform_11(%arg0: i32) -> (i32, i32, i32) {
    %c0_i32 = arith.constant 0 : i32
    %c0_i32_0 = arith.constant 0 : i32
    %c0_i32_1 = arith.constant 0 : i32
    return %arg0, %c0_i32, %c0_i32_0 : i32, i32, i32
  }
}

</mosaic_0001>

<bundles_post_ra>
// kernel: tile.13
= control target key start
LH: loop header
LB: loop body
LE: loop exit
PB: predicated region body
PF: predicated region fallthrough
CT: control target
= control target key end

     0   :  { %s34_s0 = inlined_call_operand.vmem [shape: f32[30], index: 0, kind: input, shape index: {}]   ;;  %s35_s1 = inlined_call_operand.vmem [shape: f32[24,30], index: 1, kind: output, shape index: {}]  }
   0x1   :  { %v4_v0 = vld [vmem:[%s34_s0] ss:$0 sm:$0xff] }
   0x2   :  { %5 = vst [vmem:[%s35_s1] sm:$0xff] %v4_v0 }
   0x3   :  { %10 = vst [vmem:[%s35_s1 + $0x8] sm:$0xff] %v4_v0 }
   0x4   :  { %11 = vst [vmem:[%s35_s1 + $0x10] sm:$0xff] %v4_v0 }

// kernel: tile.14
= control target key start
LH: loop header
LB: loop body
LE: loop exit
PB: predicated region body
PF: predicated region fallthrough
CT: control target
= control target key end

     0   :  { %vm36_vm0 = vcmask 80896   ;;  %vm9_vm1 = vcmask 15360   ;;  %s289_s14 = smov 118   ;;  %s290_s15 = smov 126   ;;  %vm50_vm2 = vcmask 130048   ;;  %vm23_vm3 = vcmask 64512   ;;  %s427_s0 = inlined_call_operand.vmem [shape: f32[24,30], index: 0, kind: input, shape index: {}]   ;;  %s428_s1 = inlined_call_operand.vmem [shape: f32[1,720], index: 1, kind: output, shape index: {}]  }
   0x1   :  { %v237_v0 = vld [vmem:[%s427_s0 + $0x15] sm:$0x1]   ;;  %v233_v3 = vld [vmem:[%s427_s0 + $0x11] sm:$0x1]   ;;  %v239_v6 = vld [vmem:[%s427_s0 + $0x8] sm:$0x1]  }
   0x2   :  { %v238_v1 = vld [vmem:[%s427_s0 + $0x15] sm:$0x1]   ;;  %v234_v4 = vld [vmem:[%s427_s0 + $0x11] sm:$0x1]   ;;  %v240_v7 = vld [vmem:[%s427_s0 + $0x8] sm:$0x1]  }
   0x3   :  { %v37_v2 = vsel %vm36_vm0, %v238_v1, %v237_v0  ;;  %v10_v5 = vsel %vm9_vm1, %v234_v4, %v233_v3  ;;  %v235_v8 = vld [vmem:[%s427_s0 + $0x4] sm:$0x1]   ;;  %v241_v10 = vld [vmem:[%s427_s0 + $0xc] sm:$0x1]   ;;  %vm64_vm4 = vcmask 195584   ;;  %v51_v12 = vsel %vm50_vm2, %v240_v7, %v239_v6  ;;  %s291_s28 = smov 104  }
   0x4   :  { %38 = vrot.lane.b32.xlu1 %v37_v2, %s289_s14  ;;  %11 = vrot.lane.b32.xlu0 %v10_v5, %s290_s15  ;;  %v236_v9 = vld [vmem:[%s427_s0 + $0x4] sm:$0x1]   ;;  %v242_v11 = vld [vmem:[%s427_s0 + $0xc] sm:$0x1]   ;;  %s292_s29 = smov 112   ;;  %s293_s30 = smov 120  }
   0x5   :  { %v65_v13 = vsel %vm64_vm4, %v242_v11, %v241_v10  ;;  %v24_v14 = vsel %vm23_vm3, %v236_v9, %v235_v8  ;;  %v243_v15 = vld [vmem:[%s427_s0 + $0x10] sm:$0x1]   ;;  %v245_v16 = vld [vmem:[%s427_s0 + $0x14] sm:$0x1]   ;;  %v244_v17 = vld [vmem:[%s427_s0 + $0x3] sm:$0x1]  }
   0x6   :  { %66 = vrot.lane.b32.xlu2 %v65_v13, %s291_s28  ;;  %s294_s8 = smov 96   ;;  %s295_s9 = smov 88   ;;  %v246_v18 = vld [vmem:[%s427_s0 + $0x7] sm:$0x1]   ;;  %v248_v19 = vld [vmem:[%s427_s0 + $0xf] sm:$0x1]  }
   0x7   :  { %s296_s10 = smov 90   ;;  %v247_v20 = vld [vmem:[%s427_s0 + $0xb] sm:$0x1]   ;;  %s297_s17 = smov 82   ;;  %v249_v21 = vld [vmem:[%s427_s0 + $0x2] sm:$0x1]  }
   0x8   :  { %s298_s18 = smov 66   ;;  %s299_s19 = smov 74   ;;  %v251_v22 = vld [vmem:[%s427_s0 + $0x6] sm:$0x1]   ;;  %v250_v23 = vld [vmem:[%s427_s0 + $0x13] sm:$0x1]  }
   0x9   :  { %s300_s26 = smov 60   ;;  %s301_s27 = smov 52   ;;  %v252_v24 = vld [vmem:[%s427_s0 + $0x17] sm:$0x1]   ;;  %v254_v25 = vld [vmem:[%s427_s0 + $0xe] sm:$0x1]  }
   0xa   :  { %s302_s28 = smov 58   ;;  %v253_v26 = vld [vmem:[%s427_s0 + $0xa] sm:$0x1]   ;;  %s303_s6 = smov 50   ;;  %v255_v27 = vld [vmem:[%s427_s0 + $0x1] sm:$0x1]  }
   0xb   :  { %s304_s7 = smov 36   ;;  %v257_v28 = vld [vmem:[%s427_s0 + $0x5] sm:$0x1]   ;;  %v256_v29 = vld [vmem:[%s427_s0 + $0x12] sm:$0x1]   ;;  %s306_s15 = smov 30  }
   0xc   :  { %52 = vrot.lane.b32.xlu1 %v51_v12, %s292_s29  ;;  %25 = vrot.lane.b32.xlu0 %v24_v14, %s293_s30  ;;  %s307_s16 = smov 22   ;;  %v258_v30 = vld [vmem:[%s427_s0 + $0x16] sm:$0x1]   ;;  %v260_v31 = vld [vmem:[%s427_s0 + $0xd] sm:$0x1]   ;;  %s309_s24 = smov 20  }
   0xd   :  { %v259_v32 = vld [vmem:[%s427_s0 + $0x9] sm:$0x1]   ;;  %s310_s25 = smov 6   ;;  %v2_v33 = vld [vmem:[%s427_s0] sm:$0x1]   ;;  %vm3_vm5 = vcmask 244736  }
   0xe   :  { %76 = vrot.lane.b32.xlu2 %v243_v15, %s294_s8  ;;  %s305_s8 = smov 44   ;;  %4 = vst.msk [vmem:[#allocation0] sm:$0x1] %vm3_vm5, %v2_v33   ;;  %vm40_vm6 = vcmask 162816   ;;  %vm13_vm7 = vcmask 228352   ;;  %vm16_vm8 = vcmask 1048560  }
   0xf   :  { %vm43_vm9 = vcmask 1048496   ;;  %vm68_vm10 = vcmask 48128   ;;  %vm78_vm11 = vcmask 1031936   ;;  %vm54_vm12 = vcmask 113664  }
  0x10   :  { %vm71_vm13 = vcmask 1048384   ;;  %vm27_vm14 = vcmask 179200   ;;  %vm30_vm15 = vcmask 1048512   ;;  %vm57_vm0 = vcmask 1048448  }
  0x11   :  { %vm98_vm1 = vcmask 917136   ;;  %vm139_vm2 = vcmask 654736   ;;  %vm91_vm3 = vcmask 966336   ;;  %vm85_vm4 = vcmask 982736  }
  0x12   :  { %vm119_vm5 = vcmask 736736  }
  0x14   :  { %89 = vrot.lane.b32.xlu1 %v245_v16, %s295_s9  ;;  %83 = vrot.lane.b32.xlu0 %v244_v17, %s296_s10 }
  0x16   :  { %96 = vrot.lane.b32.xlu2 %v246_v18, %s297_s17  ;;  %s308_s17 = smov 28  }
  0x1c   :  { %110 = vrot.lane.b32.xlu1 %v248_v19, %s298_s18  ;;  %103 = vrot.lane.b32.xlu0 %v247_v20, %s299_s19 }
  0x1e   :  { %117 = vrot.lane.b32.xlu2 %v249_v21, %s300_s26  ;;  %s311_s26 = smov 14  }
  0x24   :  { %130 = vrot.lane.b32.xlu1 %v251_v22, %s301_s27  ;;  %123 = vrot.lane.b32.xlu0 %v250_v23, %s302_s28 }
  0x26   :  { %137 = vrot.lane.b32.xlu2 %v252_v24, %s303_s6 }
  0x2c   :  { %151 = vrot.lane.b32.xlu1 %v254_v25, %s304_s7  ;;  %144 = vrot.lane.b32.xlu0 %v253_v26, %s305_s8 }
  0x2e   :  { %158 = vrot.lane.b32.xlu2 %v255_v27, %s306_s15 }
  0x34   :  { %171 = vrot.lane.b32.xlu1 %v257_v28, %s307_s16  ;;  %164 = vrot.lane.b32.xlu0 %v256_v29, %s308_s17 }
  0x36   :  { %178 = vrot.lane.b32.xlu2 %v258_v30, %s309_s24 }
  0x3c   :  { %192 = vrot.lane.b32.xlu1 %v260_v31, %s310_s25  ;;  %185 = vrot.lane.b32.xlu0 %v259_v32, %s311_s26 }
  0x60   :  { %v67_v34 = vpop.permute.xlu2 %66  }
  0x68   :  { %v77_v35 = vpop.permute.xlu2 %76  }
  0x70   :  { %v97_v36 = vpop.permute.xlu2 %96  }
  0x76   :  { %v39_v37 = vpop.permute.xlu1 %38   ;;  %v12_v38 = vpop.permute.xlu0 %11  }
  0x77   :  { %42 = vst.msk [vmem:[#allocation0 + $0x28] sm:$0x1] %vm40_vm6, %v39_v37   ;;  %vm160_vm6 = vcmask 490736  }
  0x78   :  { %15 = vst.msk [vmem:[#allocation0 + $0x20] sm:$0x1] %vm13_vm7, %v12_v38   ;;  %v118_v39 = vpop.permute.xlu2 %117   ;;  %vm112_vm7 = vcmask 785936  }
  0x79   :  { %18 = vst.msk [vmem:[#allocation0 + $0x18] sm:$0x1] %vm16_vm8, %v12_v38   ;;  %vm105_vm8 = vcmask 851536  }
  0x7a   :  { %45 = vst.msk [vmem:[#allocation0 + $0x20] sm:$0x1] %vm43_vm9, %v39_v37   ;;  %vm180_vm9 = vcmask 408736  }
  0x7b   :  { %70 = vst.msk [vmem:[#allocation0 + $0x18] sm:$0x1] %vm68_vm10, %v67_v34   ;;  %vm132_vm10 = vcmask 671136  }
  0x7c   :  { %80 = vst.msk [vmem:[#allocation0 + $0x18] sm:$0x1] %vm78_vm11, %v77_v35   ;;  %vm125_vm11 = vcmask 720336  }
  0x7e   :  { %v53_v40 = vpop.permute.xlu1 %52   ;;  %v26_v41 = vpop.permute.xlu0 %25  }
  0x7f   :  { %56 = vst.msk [vmem:[#allocation0 + $0x10] sm:$0x1] %vm54_vm12, %v53_v40   ;;  %vm153_vm12 = vcmask 539936  }
  0x80   :  { %73 = vst.msk [vmem:[#allocation0 + $0x10] sm:$0x1] %vm71_vm13, %v67_v34   ;;  %v138_v42 = vpop.permute.xlu2 %137   ;;  %vm146_vm13 = vcmask 605536  }
  0x81   :  { %29 = vst.msk [vmem:[#allocation0 + $0x8] sm:$0x1] %vm27_vm14, %v26_v41   ;;  %vm173_vm14 = vcmask 425136  }
  0x82   :  { %31 = vst.msk [vmem:[#allocation0] sm:$0x1] %vm30_vm15, %v26_v41   ;;  %vm166_vm15 = vcmask 474336  }
  0x83   :  { %59 = vst.msk [vmem:[#allocation0 + $0x8] sm:$0x1] %vm57_vm0, %v53_v40   ;;  %vm194_vm0 = vcmask 293936  }
  0x84   :  { %100 = vst.msk [vmem:[#allocation0 + $0x8] sm:$0x1] %vm98_vm1, %v97_v36   ;;  %vm187_vm1 = vcmask 359536  }
  0x85   :  { %141 = vst.msk [vmem:[#allocation0 + $0x28] sm:$0x1] %vm139_vm2, %v138_v42  }
  0x86   :  { %v90_v43 = vpop.permute.xlu1 %89   ;;  %v84_v44 = vpop.permute.xlu0 %83  }
  0x87   :  { %93 = vst.msk [vmem:[#allocation0 + $0x20] sm:$0x1] %vm91_vm3, %v90_v43  }
  0x88   :  { %86 = vst.msk [vmem:[#allocation0] sm:$0x1] %vm85_vm4, %v84_v44   ;;  %v159_v45 = vpop.permute.xlu2 %158  }
  0x89   :  { %120 = vst.msk [vmem:[#allocation0] sm:$0x1] %vm119_vm5, %v118_v39  }
  0x8a   :  { %161 = vst.msk [vmem:[#allocation0] sm:$0x1] %vm160_vm6, %v159_v45  }
  0x8e   :  { %v111_v46 = vpop.permute.xlu1 %110   ;;  %v104_v47 = vpop.permute.xlu0 %103  }
  0x8f   :  { %114 = vst.msk [vmem:[#allocation0 + $0x18] sm:$0x1] %vm112_vm7, %v111_v46  }
  0x90   :  { %107 = vst.msk [vmem:[#allocation0 + $0x10] sm:$0x1] %vm105_vm8, %v104_v47   ;;  %v179_v49 = vpop.permute.xlu2 %178  }
  0x91   :  { %v199_v48 = vld [vmem:[#allocation0] sm:$0x1]  ;;  %182 = vst.msk [vmem:[#allocation0 + $0x28] sm:$0x1] %vm180_vm9, %v179_v49  }
  0x92   :  { %202 = vst [vmem:[%s428_s1] sm:$0x1] %v199_v48 }
  0x96   :  { %v131_v50 = vpop.permute.xlu1 %130   ;;  %v124_v51 = vpop.permute.xlu0 %123  }
  0x97   :  { %134 = vst.msk [vmem:[#allocation0 + $0x8] sm:$0x1] %vm132_vm10, %v131_v50  }
  0x98   :  { %127 = vst.msk [vmem:[#allocation0 + $0x20] sm:$0x1] %vm125_vm11, %v124_v51   ;;  %v228_v52 = vld [vmem:[#allocation0 + $0x28] sm:$0x1] }
  0x99   :  { %265 = vst [vmem:[%s428_s1 + $0x5] sm:$0x1] %v228_v52 }
  0x9e   :  { %v152_v53 = vpop.permute.xlu1 %151   ;;  %v145_v54 = vpop.permute.xlu0 %144  }
  0x9f   :  { %155 = vst.msk [vmem:[#allocation0 + $0x18] sm:$0x1] %vm153_vm12, %v152_v53  }
  0xa0   :  { %148 = vst.msk [vmem:[#allocation0 + $0x10] sm:$0x1] %vm146_vm13, %v145_v54  }
  0xa6   :  { %v172_v55 = vpop.permute.xlu1 %171   ;;  %v165_v56 = vpop.permute.xlu0 %164  }
  0xa7   :  { %175 = vst.msk [vmem:[#allocation0 + $0x8] sm:$0x1] %vm173_vm14, %v172_v55  }
  0xa8   :  { %168 = vst.msk [vmem:[#allocation0 + $0x20] sm:$0x1] %vm166_vm15, %v165_v56  }
  0xae   :  { %v204_v57 = vld [vmem:[#allocation0 + $0x8] sm:$0x1]  ;;  %v193_v58 = vpop.permute.xlu1 %192   ;;  %v186_v60 = vpop.permute.xlu0 %185  }
  0xaf   :  { %261 = vst [vmem:[%s428_s1 + $0x1] sm:$0x1] %v204_v57  ;;  %v222_v59 = vld [vmem:[#allocation0 + $0x20] sm:$0x1] }
  0xb0   :  { %264 = vst [vmem:[%s428_s1 + $0x4] sm:$0x1] %v222_v59 }
  0xb1   :  { %196 = vst.msk [vmem:[#allocation0 + $0x18] sm:$0x1] %vm194_vm0, %v193_v58  }
  0xb2   :  { %189 = vst.msk [vmem:[#allocation0 + $0x10] sm:$0x1] %vm187_vm1, %v186_v60  }
  0xb8   :  { %v216_v61 = vld [vmem:[#allocation0 + $0x18] sm:$0x1] }
  0xb9   :  { %263 = vst [vmem:[%s428_s1 + $0x3] sm:$0x1] %v216_v61  ;;  %v210_v62 = vld [vmem:[#allocation0 + $0x10] sm:$0x1] }
  0xba   :  { %262 = vst [vmem:[%s428_s1 + $0x2] sm:$0x1] %v210_v62 }

// kernel: tile.18
= control target key start
LH: loop header
LB: loop body
LE: loop exit
PB: predicated region body
PF: predicated region fallthrough
CT: control target
= control target key end

     0   :  { %s34_s0 = inlined_call_operand.vmem [shape: f32[15], index: 0, kind: input, shape index: {}]   ;;  %s35_s1 = inlined_call_operand.vmem [shape: f32[20,15], index: 1, kind: output, shape index: {}]  }
   0x1   :  { %v4_v0 = vld [vmem:[%s34_s0] ss:$0 sm:$0xff] }
   0x2   :  { %5 = vst [vmem:[%s35_s1] sm:$0xff] %v4_v0 }
   0x3   :  { %10 = vst [vmem:[%s35_s1 + $0x8] sm:$0xff] %v4_v0 }
   0x4   :  { %11 = vst [vmem:[%s35_s1 + $0x10] sm:$0xff] %v4_v0 }

// kernel: tile.19
= control target key start
LH: loop header
LB: loop body
LE: loop exit
PB: predicated region body
PF: predicated region fallthrough
CT: control target
= control target key end

     0   :  { %vm9_vm0 = vcmask 7168   ;;  %s204_s12 = smov 127   ;;  %s205_s13 = smov 112   ;;  %vm23_vm1 = vcmask 64512   ;;  %vm3_vm2 = vcmask 121856   ;;  %vm13_vm3 = vcmask 113664   ;;  %s308_s0 = inlined_call_operand.vmem [shape: f32[20,15], index: 0, kind: input, shape index: {}]   ;;  %s309_s1 = inlined_call_operand.vmem [shape: f32[1,300], index: 1, kind: output, shape index: {}]  }
   0x1   :  { %v162_v0 = vld [vmem:[%s308_s0 + $0x11] sm:$0x1]   ;;  %v166_v3 = vld [vmem:[%s308_s0 + $0x10] sm:$0x1]   ;;  %v164_v4 = vld [vmem:[%s308_s0 + $0x8] sm:$0x1]  }
   0x2   :  { %v163_v1 = vld [vmem:[%s308_s0 + $0x11] sm:$0x1]   ;;  %34 = vrot.lane.b32.xlu1 %v166_v3, %s205_s13  ;;  %v165_v5 = vld [vmem:[%s308_s0 + $0x8] sm:$0x1]   ;;  %v168_v6 = vld [vmem:[%s308_s0 + $0xf] sm:$0x1]  }
   0x3   :  { %v10_v2 = vsel %vm9_vm0, %v163_v1, %v162_v0  ;;  %s206_s20 = smov 97   ;;  %v24_v7 = vsel %vm23_vm1, %v165_v5, %v164_v4  ;;  %v167_v8 = vld [vmem:[%s308_s0 + $0x7] sm:$0x1]   ;;  %s207_s23 = smov 120   ;;  %v169_v9 = vld [vmem:[%s308_s0 + $0x6] sm:$0x1]  }
   0x4   :  { %11 = vrot.lane.b32.xlu0 %v10_v2, %s204_s12  ;;  %47 = vrot.lane.b32.xlu2 %v168_v6, %s206_s20  ;;  %s208_s24 = smov 105   ;;  %s209_s27 = smov 90   ;;  %v170_v10 = vld [vmem:[%s308_s0 + $0xe] sm:$0x1]   ;;  %v171_v11 = vld [vmem:[%s308_s0 + $0x5] sm:$0x1]  }
   0x5   :  { %s210_s3 = smov 82   ;;  %s211_s4 = smov 75   ;;  %v172_v12 = vld [vmem:[%s308_s0 + $0xd] sm:$0x1]   ;;  %v173_v13 = vld [vmem:[%s308_s0 + $0x4] sm:$0x1]  }
   0x6   :  { %s212_s7 = smov 67   ;;  %v174_v14 = vld [vmem:[%s308_s0 + $0xc] sm:$0x1]   ;;  %s213_s12 = smov 60   ;;  %v175_v15 = vld [vmem:[%s308_s0 + $0x3] sm:$0x1]  }
   0x7   :  { %s214_s13 = smov 52   ;;  %s215_s16 = smov 45   ;;  %v176_v16 = vld [vmem:[%s308_s0 + $0xb] sm:$0x1]   ;;  %v177_v17 = vld [vmem:[%s308_s0 + $0x2] sm:$0x1]  }
   0x8   :  { %s216_s21 = smov 37   ;;  %s217_s22 = smov 30   ;;  %v178_v18 = vld [vmem:[%s308_s0 + $0x13] sm:$0x1]   ;;  %v179_v19 = vld [vmem:[%s308_s0 + $0xa] sm:$0x1]  }
   0x9   :  { %s218_s25 = smov 29   ;;  %v180_v20 = vld [vmem:[%s308_s0 + $0x1] sm:$0x1]   ;;  %s219_s30 = smov 22   ;;  %v181_v21 = vld [vmem:[%s308_s0 + $0x12] sm:$0x1]  }
   0xa   :  { %41 = vrot.lane.b32.xlu1 %v167_v8, %s208_s24  ;;  %s220_s2 = smov 15   ;;  %s221_s5 = smov 14   ;;  %v182_v22 = vld [vmem:[%s308_s0 + $0x9] sm:$0x1]   ;;  %v2_v23 = vld [vmem:[%s308_s0] sm:$0x1]  }
   0xb   :  { %s222_s8 = smov 7   ;;  %4 = vst.msk [vmem:[#allocation0] sm:$0x1] %vm3_vm2, %v2_v23   ;;  %vm16_vm4 = vcmask 1048568   ;;  %vm27_vm5 = vcmask 56320   ;;  %vm30_vm6 = vcmask 1048512  }
   0xc   :  { %25 = vrot.lane.b32.xlu0 %v24_v7, %s207_s23  ;;  %54 = vrot.lane.b32.xlu2 %v169_v9, %s209_s27  ;;  %vm36_vm7 = vcmask 1040256   ;;  %vm43_vm8 = vcmask 982856   ;;  %vm49_vm9 = vcmask 917256   ;;  %vm56_vm10 = vcmask 859856  }
   0xd   :  { %vm114_vm11 = vcmask 359656   ;;  %vm62_vm12 = vcmask 794256   ;;  %vm69_vm13 = vcmask 736856   ;;  %vm75_vm14 = vcmask 671256  }
   0xe   :  { %vm134_vm15 = vcmask 236656   ;;  %vm82_vm0 = vcmask 613856   ;;  %vm88_vm1 = vcmask 548256   ;;  %vm95_vm2 = vcmask 490856  }
  0x12   :  { %67 = vrot.lane.b32.xlu1 %v171_v11, %s211_s4 }
  0x14   :  { %60 = vrot.lane.b32.xlu0 %v170_v10, %s210_s3  ;;  %73 = vrot.lane.b32.xlu2 %v172_v12, %s212_s7 }
  0x1a   :  { %86 = vrot.lane.b32.xlu1 %v174_v14, %s214_s13 }
  0x1c   :  { %80 = vrot.lane.b32.xlu0 %v173_v13, %s213_s12  ;;  %93 = vrot.lane.b32.xlu2 %v175_v15, %s215_s16 }
  0x22   :  { %106 = vrot.lane.b32.xlu1 %v177_v17, %s217_s22 }
  0x24   :  { %99 = vrot.lane.b32.xlu0 %v176_v16, %s216_s21  ;;  %112 = vrot.lane.b32.xlu2 %v178_v18, %s218_s25 }
  0x2a   :  { %126 = vrot.lane.b32.xlu1 %v180_v20, %s220_s2 }
  0x2c   :  { %119 = vrot.lane.b32.xlu0 %v179_v19, %s219_s30  ;;  %132 = vrot.lane.b32.xlu2 %v181_v21, %s221_s5 }
  0x34   :  { %139 = vrot.lane.b32.xlu0 %v182_v22, %s222_s8 }
  0x5e   :  { %v48_v24 = vpop.permute.xlu2 %47  }
  0x66   :  { %v55_v25 = vpop.permute.xlu2 %54  }
  0x6e   :  { %v74_v26 = vpop.permute.xlu2 %73  }
  0x74   :  { %v35_v28 = vpop.permute.xlu1 %34  }
  0x76   :  { %v12_v27 = vpop.permute.xlu0 %11   ;;  %v94_v29 = vpop.permute.xlu2 %93  }
  0x77   :  { %15 = vst.msk [vmem:[#allocation0 + $0x10] sm:$0x1] %vm13_vm3, %v12_v27   ;;  %vm101_vm3 = vcmask 425256  }
  0x78   :  { %18 = vst.msk [vmem:[#allocation0 + $0x8] sm:$0x1] %vm16_vm4, %v12_v27   ;;  %vm108_vm4 = vcmask 367856  }
  0x7c   :  { %v42_v31 = vpop.permute.xlu1 %41  }
  0x7e   :  { %v26_v30 = vpop.permute.xlu0 %25   ;;  %v113_v32 = vpop.permute.xlu2 %112  }
  0x7f   :  { %29 = vst.msk [vmem:[#allocation0 + $0x8] sm:$0x1] %vm27_vm5, %v26_v30   ;;  %vm121_vm5 = vcmask 302256  }
  0x80   :  { %31 = vst.msk [vmem:[#allocation0] sm:$0x1] %vm30_vm6, %v26_v30   ;;  %vm128_vm6 = vcmask 244856  }
  0x81   :  { %38 = vst.msk [vmem:[#allocation0 + $0x8] sm:$0x1] %vm36_vm7, %v35_v28   ;;  %vm141_vm7 = vcmask 179256  }
  0x82   :  { %44 = vst.msk [vmem:[#allocation0] sm:$0x1] %vm43_vm8, %v42_v31  }
  0x83   :  { %51 = vst.msk [vmem:[#allocation0 + $0x8] sm:$0x1] %vm49_vm9, %v48_v24  }
  0x84   :  { %57 = vst.msk [vmem:[#allocation0] sm:$0x1] %vm56_vm10, %v55_v25   ;;  %v68_v34 = vpop.permute.xlu1 %67  }
  0x85   :  { %116 = vst.msk [vmem:[#allocation0 + $0x10] sm:$0x1] %vm114_vm11, %v113_v32  }
  0x86   :  { %v61_v33 = vpop.permute.xlu0 %60   ;;  %70 = vst.msk [vmem:[#allocation0] sm:$0x1] %vm69_vm13, %v68_v34   ;;  %v133_v35 = vpop.permute.xlu2 %132  }
  0x87   :  { %64 = vst.msk [vmem:[#allocation0 + $0x8] sm:$0x1] %vm62_vm12, %v61_v33  }
  0x88   :  { %77 = vst.msk [vmem:[#allocation0 + $0x8] sm:$0x1] %vm75_vm14, %v74_v26  }
  0x89   :  { %136 = vst.msk [vmem:[#allocation0 + $0x10] sm:$0x1] %vm134_vm15, %v133_v35  }
  0x8c   :  { %v87_v37 = vpop.permute.xlu1 %86  }
  0x8d   :  { %90 = vst.msk [vmem:[#allocation0 + $0x8] sm:$0x1] %vm88_vm1, %v87_v37  }
  0x8e   :  { %v81_v36 = vpop.permute.xlu0 %80  }
  0x8f   :  { %83 = vst.msk [vmem:[#allocation0] sm:$0x1] %vm82_vm0, %v81_v36  }
  0x90   :  { %96 = vst.msk [vmem:[#allocation0] sm:$0x1] %vm95_vm2, %v94_v29   ;;  %v157_v38 = vld [vmem:[#allocation0 + $0x10] sm:$0x1] }
  0x91   :  { %184 = vst [vmem:[%s309_s1 + $0x2] sm:$0x1] %v157_v38 }
  0x94   :  { %v107_v40 = vpop.permute.xlu1 %106  }
  0x95   :  { %109 = vst.msk [vmem:[#allocation0] sm:$0x1] %vm108_vm4, %v107_v40  }
  0x96   :  { %v100_v39 = vpop.permute.xlu0 %99  }
  0x97   :  { %103 = vst.msk [vmem:[#allocation0 + $0x8] sm:$0x1] %vm101_vm3, %v100_v39  }
  0x9c   :  { %v127_v42 = vpop.permute.xlu1 %126  }
  0x9d   :  { %129 = vst.msk [vmem:[#allocation0] sm:$0x1] %vm128_vm6, %v127_v42  }
  0x9e   :  { %v120_v41 = vpop.permute.xlu0 %119  }
  0x9f   :  { %123 = vst.msk [vmem:[#allocation0 + $0x8] sm:$0x1] %vm121_vm5, %v120_v41  }
  0xa4   :  { %v146_v44 = vld [vmem:[#allocation0] sm:$0x1] }
  0xa5   :  { %149 = vst [vmem:[%s309_s1] sm:$0x1] %v146_v44 }
  0xa6   :  { %v140_v43 = vpop.permute.xlu0 %139  }
  0xa7   :  { %143 = vst.msk [vmem:[#allocation0 + $0x8] sm:$0x1] %vm141_vm7, %v140_v43  }
  0xae   :  { %v151_v45 = vld [vmem:[#allocation0 + $0x8] sm:$0x1] }
  0xaf   :  { %183 = vst [vmem:[%s309_s1 + $0x1] sm:$0x1] %v151_v45 }

// kernel: mnist_cnn_forward.1
= control target key start
LH: loop header
LB: loop body
LE: loop exit
PB: predicated region body
PF: predicated region fallthrough
CT: control target
= control target key end

     0   :  { %16 = vsyncpa [#allocation3], 0  ;;  %s27027_s0 = inlined_call_operand.vmem [shape: f32[2,28,28], index: 0, kind: input, shape index: {}]   ;;  %s27028_s1 = inlined_call_operand.vmem [shape: bf16[5,28,720], index: 1, kind: input, shape index: {}]   ;;  %s27029_s2 = inlined_call_operand.vmem [shape: f32[1,720], index: 2, kind: input, shape index: {}]   ;;  %s27030_s3 = inlined_call_operand.vmem [shape: bf16[5,720,300], index: 3, kind: input, shape index: {}]   ;;  %s27031_s4 = inlined_call_operand.vmem [shape: f32[1,300], index: 4, kind: input, shape index: {}]   ;;  %s27032_s5 = inlined_call_operand.vmem [shape: bf16[20,300,128], index: 5, kind: input, shape index: {}]   ;;  %s27033_s6 = inlined_call_operand.vmem [shape: f32[1,128], index: 6, kind: input, shape index: {}]   ;;  %s27034_s7 = inlined_call_operand.vmem [shape: bf16[128,50], index: 7, kind: input, shape index: {}]   ;;  %s27035_s8 = inlined_call_operand.vmem [shape: f32[1,50], index: 8, kind: input, shape index: {}]   ;;  %s27036_s9 = inlined_call_operand.vmem [shape: bf16[50,10], index: 9, kind: input, shape index: {}]   ;;  %s27037_s10 = inlined_call_operand.vmem [shape: f32[1,10], index: 10, kind: input, shape index: {}]   ;;  %s27038_s11 = inlined_call_operand.hbm [shape: f32[2,1,10], index: 11, kind: output, shape index: {}]  }
   0x1   :  { %18 = vsyncpa [#allocation3 + $0x1], 0  ;;  %s19648_s17 = smov 0   ;;  %s19650_s18 = smov 0  }
   0x2   :  { %s19652_s19 = smov 0   ;;  %s19654_s20 = smov 0  }
   0x3 LB: > { %27044 = sst [smem:[#allocation5_spill]] %s19582_s19  ;;  %s19669_s21 = sadd.s32 4294967295, %s19586_s20   ;;  %s19586_s20 = sphi %s19654_s20, %s27066_s20   ;;  %s19582_s19 = sphi %s19652_s19, %s27063_s19   ;;  %s19578_s18 = sphi %s19650_s18, %s27065_s18   ;;  %s19574_s17 = sphi %s19648_s17, %s27064_s17  }
   0x4   : > { %s12243_s22 = sadd.s32 4294967294, %s19586_s20   ;;  %s19673_s23 = sadd.s32 1, %s19586_s20  }
   0x5   : > { %s267_s24 = sadd.s32 1, %s19582_s19  ;;  %s264_s25 = ssub.s32 %s19586_s20, %s19673_s23 }
   0x6   : > { %p277_p0 = scmp.ne.s32.totalorder %s19582_s19, %s19578_s18  ;;  %p265_p1 = scmp.eq.s32.totalorder %s264_s25, 0 }
   0x7   : > { %p278_p2 = scmp.eq.s32.totalorder %s19669_s21, 1  ;;  %p283_p3 = scmp.ne.s32.totalorder %s19578_s18, %s19574_s17 }
   0x8   : > { %p284_p4 = scmp.eq.s32.totalorder %s12243_s22, 1  ;;  %p12246_p7 = scmp.ge.s32.totalorder %s19586_s20, 1 }
   0x9   : > { %s19684_s26 = scalar_select %p265_p1, %s19582_s19, %s267_s24  }
   0xa   : > { %p19686_p5 = por %p278_p2, %p277_p0  ;;  %p19690_p6 = por %p284_p4, %p283_p3 }
   0xb   : > { %27045 = sst [smem:[#allocation6_spill]] %s19684_s26  ;;  %p340_p8 = scmp.lt.s32.totalorder %s19586_s20, 3 }
   0xd   : > { %p341_p9 = pnand %p12246_p7, %p340_p8 }
   0xf   : > { %344 = sbr.rel (%p341_p9) target bundleno = 1978 (0x7ba), region = 64 }
  0x14   : > { %v12287_v0 = vld [vmem:[%s27028_s1 + $0x90] sm:$0xf]  ;;  %v18378_v1 = vld [vmem:[%s27028_s1 + $0xa4] sm:$0x30]  ;;  %vm494_vm0 = vcmask 1045504   ;;  %p379_p10 = scmp.lt.s32.totalorder %s19669_s21, 1 }
  0x15   : > { %v12288_v2 = vor.u32 %v18378_v1, %v12287_v0  ;;  %v18375_v3 = vld [vmem:[%s27028_s1 + $0x94] sm:$0xf]  ;;  %v12289_v4 = vld [vmem:[%s27028_s1 + $0xa8] sm:$0x30]  ;;  %v12295_v5 = vld [vmem:[%s27028_s1 + $0x98] sm:$0xf] }
  0x16   : > { %v12292_v6 = vor.u32 %v18375_v3, %v12289_v4  ;;  %v18379_v7 = vld [vmem:[%s27028_s1 + $0xac] sm:$0x30]  ;;  %v12263_v8 = vld [vmem:[%s27028_s1 + $0x60] sm:$0xf]  ;;  %v18372_v9 = vld [vmem:[%s27028_s1 + $0x74] sm:$0xf0] }
  0x17   : > { %v496_v10 = vsel %vm494_vm0, %v12288_v2, 0  ;;  %v12296_v11 = vor.u32 %v18379_v7, %v12295_v5  ;;  %v18369_v12 = vld [vmem:[%s27028_s1 + $0x64] sm:$0xf]  ;;  %v12265_v13 = vld [vmem:[%s27028_s1 + $0x78] sm:$0xf0]  ;;  %s380_s25 = scalar_select %p379_p10, %s19669_s21, 1  ;;  %v12264_v15 = vor.u32 %v18372_v9, %v12263_v8 }
  0x18   : > { %19483 = vmatpush.bf16.msra.mxu3 %v496_v10  ;;  %519 = vmatpush.bf16.msra.mxu0 %v496_v10  ;;  %v499_v14 = vsel %vm494_vm0, %v12292_v6, 0  ;;  %v12271_v16 = vld [vmem:[%s27028_s1 + $0x68] sm:$0xf]  ;;  %v18373_v17 = vld [vmem:[%s27028_s1 + $0x7c] sm:$0xf0]  ;;  %v12268_v19 = vor.u32 %v18369_v12, %v12265_v13  ;;  %vm487_vm2 = vcmask 228352  }
  0x19   : > { %537 = vmatpush.bf16.msra.mxu1 %v499_v14  ;;  %v502_v18 = vsel %vm494_vm0, %v12296_v11, 0  ;;  %s18356_s13 = sshll.u32 %s380_s25, 5  ;;  %v18376_v20 = vld [vmem:[%s27028_s1 + $0x9c] sm:$0xf]  ;;  %v12272_v21 = vor.u32 %v18373_v17, %v12271_v16  ;;  %v12297_v22 = vld [vmem:[%s27028_s1 + $0xb0] sm:$0x30]  ;;  %s12184_s25 = scalar_lea.hbm %s27038_s11, %s19669_s21 }
  0x1a   : > { %555 = vmatpush.bf16.msra.mxu2 %v502_v18  ;;  %s383_s24 = scalar_lea.vmem %s27027_s0, %s18356_s13  ;;  %v12303_v23 = vld [vmem:[%s27028_s1 + $0xa0] sm:$0xf]  ;;  %v18380_v24 = vld [vmem:[%s27028_s1 + $0xb4] sm:$0x30]  ;;  %vm417_vm1 = vsmask.f32 7424  ;;  %v12300_v28 = vor.u32 %v18376_v20, %v12297_v22 }
  0x1b   : > { %v385_v25 = vld [vmem:[%s383_s24] sm:$0xff]  ;;  %v386_v26 = vld [vmem:[%s383_s24 + $0x8] sm:$0xff]  ;;  %v19752_v27 = vld [vmem:[%s383_s24 + $0x10] sm:$0xff]  ;;  %v12304_v29 = vor.u32 %v18380_v24, %v12303_v23  ;;  %vm821_vm3 = vcmask 1046528   ;;  %vm1042_vm4 = vsmask.f32 6400 }
  0x1c   : > { %19484 = vmatpush.bf16.msra.mxu3 %v12264_v15  ;;  %520 = vmatpush.bf16.msra.mxu0 %v12264_v15  ;;  %v388_v30 = vld [vmem:[%s383_s24 + $0x18] sm:$0xf]  ;;  %v19754_v31 = vpack.c.bf16 %v386_v26, %v385_v25  ;;  %v18370_v32 = vld [vmem:[%s27028_s1 + $0x6c] sm:$0xf]  ;;  %v12273_v33 = vld [vmem:[%s27028_s1 + $0x80] sm:$0xf0] }
  0x1d   : > { %538 = vmatpush.bf16.msra.mxu1 %v12268_v19  ;;  %v19763_v34 = vpack.c.bf16 %v388_v30, %v19752_v27  ;;  %v505_v35 = vsel %vm494_vm0, %v12300_v28, 0  ;;  %v508_v36 = vsel %vm494_vm0, %v12304_v29, 0  ;;  %v12279_v37 = vld [vmem:[%s27028_s1 + $0x70] sm:$0xf]  ;;  %v18374_v38 = vld [vmem:[%s27028_s1 + $0x84] sm:$0xf0]  ;;  %v12276_v41 = vor.u32 %v18370_v32, %v12273_v33 }
  0x1e   : > { %556 = vmatpush.bf16.msra.mxu2 %v12272_v21  ;;  %v419_v39 = vshrl.u32 %v19754_v31, 16  ;;  %v421_v40 = vshll.u32 %v19754_v31, 16  ;;  %v18377_v42 = vld [vmem:[%s27028_s1 + $0xa4] sm:$0xf]  ;;  %v12305_v43 = vld [vmem:[%s27028_s1 + $0xb8] sm:$0x30]  ;;  %v12280_v46 = vor.u32 %v18374_v38, %v12279_v37 }
  0x1f   : > { %v426_v44 = vshll.u32 %v19763_v34, 16  ;;  %v430_v45 = vshrl.u32 %v19763_v34, 16  ;;  %v12308_v47 = vor.u32 %v18377_v42, %v12305_v43  ;;  %v12347_v48 = vld [vmem:[%s27028_s1 + $0x30] sm:$0xf]  ;;  %v18366_v49 = vld [vmem:[%s27028_s1 + $0x44] sm:$0x30] }
  0x20   : > { %573 = vmatpush.bf16.msrb.mxu3 %v505_v35  ;;  %591 = vmatpush.bf16.msrb.mxu0 %v508_v36  ;;  %v423_v50 = vrot.slane %v421_v40, 1  ;;  %v12348_v51 = vor.u32 %v18366_v49, %v12347_v48  ;;  %v18371_v52 = vld [vmem:[%s27028_s1 + $0x74] sm:$0xf]  ;;  %v12281_v53 = vld [vmem:[%s27028_s1 + $0x88] sm:$0xf0]  ;;  %vm2718_vm5 = vcmask 654336  }
  0x21   : > { %v428_v54 = vrot.slane %v426_v44, 1  ;;  %v1046_v55 = vrot.slane %v430_v45, 1  ;;  %v1047_v56 = vrot.slane %v426_v44, 2  ;;  %v511_v57 = vsel %vm494_vm0, %v12308_v47, 0  ;;  %v12323_v58 = vld [vmem:[%s27028_s1] sm:$0xf] }
  0x22   : > { %v424_v59 = vor.u32 %v423_v50, %v419_v39  ;;  %609 = vmatpush.bf16.msrb.mxu1 %v511_v57  ;;  %v681_v60 = vsel %vm494_vm0, %v12348_v51, 0  ;;  %v12284_v61 = vor.u32 %v18371_v52, %v12281_v53  ;;  %v18360_v62 = vld [vmem:[%s27028_s1 + $0x14] sm:$0xf0]  ;;  %v18363_v3 = vld [vmem:[%s27028_s1 + $0x34] sm:$0xf]  ;;  %v19910_v50 = vpack.c.bf16 %v19752_v27, %v19752_v27  ;;  %s377_s26 = sand.u32 1, %s19578_s18  }
  0x23   : > { %v19807_v63 = vor.u32 %v430_v45, %v428_v54  ;;  %v19809_v0 = vor.u32 %v1047_v56, %v1046_v55  ;;  %704 = vmatpush.bf16.msrb.mxu2 %v681_v60  ;;  %v12324_v1 = vor.u32 %v18360_v62, %v12323_v58  ;;  %v12349_v4 = vld [vmem:[%s27028_s1 + $0x48] sm:$0x30]  ;;  %v12355_v5 = vld [vmem:[%s27028_s1 + $0x38] sm:$0xf]  ;;  %v18367_v7 = vld [vmem:[%s27028_s1 + $0x4c] sm:$0x30] }
  0x24   : > { %574 = vmatpush.bf16.msrb.mxu3 %v12276_v41  ;;  %592 = vmatpush.bf16.msrb.mxu0 %v12280_v46  ;;  %v429_v2 = vsel %vm417_vm1, %v424_v59, %v428_v54  ;;  %v12352_v6 = vor.u32 %v18363_v3, %v12349_v4  ;;  %v18357_v8 = vld [vmem:[%s27028_s1 + $0x4] sm:$0xf]  ;;  %v12325_v9 = vld [vmem:[%s27028_s1 + $0x18] sm:$0xf0]  ;;  %v12356_v10 = vor.u32 %v18367_v7, %v12355_v5  ;;  %v12331_v11 = vld [vmem:[%s27028_s1 + $0x8] sm:$0xf] }
  0x25   : > { %12310 = vmatmul.msk.bf16.vlgmr.msra.gmra.mxu3 %vm487_vm2, %v19807_v63  ;;  %12309 = vmatmul.msk.bf16.vlgmr.msra.gmra.mxu0 %vm487_vm2, %v429_v2  ;;  %v18361_v12 = vld [vmem:[%s27028_s1 + $0x1c] sm:$0xf0]  ;;  %v12328_v15 = vor.u32 %v18357_v8, %v12325_v9  ;;  %v18364_v17 = vld [vmem:[%s27028_s1 + $0x3c] sm:$0xf]  ;;  %v12357_v18 = vld [vmem:[%s27028_s1 + $0x50] sm:$0x30] }
  0x26   : > { %12311 = vmatmul.msk.bf16.vlgmr.msra.gmra.mxu1 %vm487_vm2, %v429_v2  ;;  %12313 = vmatmul.msk.bf16.vlgmr.msra.gmra.mxu2 %vm487_vm2, %v429_v2  ;;  %v684_v13 = vsel %vm494_vm0, %v12352_v6, 0  ;;  %v687_v14 = vsel %vm494_vm0, %v12356_v10, 0  ;;  %v12332_v16 = vor.u32 %v18361_v12, %v12331_v11  ;;  %v12363_v19 = vld [vmem:[%s27028_s1 + $0x40] sm:$0xf]  ;;  %v12360_v20 = vor.u32 %v18364_v17, %v12357_v18  ;;  %v18368_v21 = vld [vmem:[%s27028_s1 + $0x54] sm:$0x30] }
  0x27   : > { %610 = vmatpush.bf16.msrb.mxu1 %v12284_v61  ;;  %705 = vmatpush.bf16.msrb.mxu2 %v12324_v1  ;;  %v18358_v22 = vld [vmem:[%s27028_s1 + $0xc] sm:$0xf]  ;;  %v12333_v23 = vld [vmem:[%s27028_s1 + $0x20] sm:$0xf0]  ;;  %v12364_v24 = vor.u32 %v18368_v21, %v12363_v19  ;;  %v12339_v25 = vld [vmem:[%s27028_s1 + $0x10] sm:$0xf] }
  0x28   : > { %722 = vmatpush.bf16.msra.mxu3 %v684_v13  ;;  %740 = vmatpush.bf16.msra.mxu0 %v687_v14  ;;  %v18362_v26 = vld [vmem:[%s27028_s1 + $0x24] sm:$0xf0]  ;;  %v690_v28 = vsel %vm494_vm0, %v12360_v20, 0  ;;  %v12336_v30 = vor.u32 %v18358_v22, %v12333_v23  ;;  %v18365_v33 = vld [vmem:[%s27028_s1 + $0x44] sm:$0xf]  ;;  %vm8167_vm6 = vcmask 359424  }
  0x29   : > { %v693_v29 = vsel %vm494_vm0, %v12364_v24, 0  ;;  %v12340_v32 = vor.u32 %v18362_v26, %v12339_v25  ;;  %v12365_v35 = vld [vmem:[%s27028_s1 + $0x58] sm:$0x30]  ;;  %v12419_v36 = vld [vmem:[%s27028_s1 + $0xf0] sm:$0xf]  ;;  %vm12156_vm7 = vcmask 1040384  }
  0x2a   : > { %v12368_v37 = vor.u32 %v18365_v33, %v12365_v35  ;;  %v18390_v38 = vld [vmem:[%s27028_s1 + $0x104] sm:$0x30]  ;;  %v18359_v41 = vld [vmem:[%s27028_s1 + $0x14] sm:$0xf]  ;;  %v12341_v42 = vld [vmem:[%s27028_s1 + $0x28] sm:$0xf0] }
  0x2b   : > { %758 = vmatpush.bf16.msra.mxu1 %v690_v28  ;;  %776 = vmatpush.bf16.msra.mxu2 %v693_v29  ;;  %v12420_v43 = vor.u32 %v18390_v38, %v12419_v36  ;;  %v12395_v44 = vld [vmem:[%s27028_s1 + $0xc0] sm:$0xf]  ;;  %v18384_v45 = vld [vmem:[%s27028_s1 + $0xd4] sm:$0xf0]  ;;  %v12344_v48 = vor.u32 %v18359_v41, %v12341_v42  ;;  %v18387_v51 = vld [vmem:[%s27028_s1 + $0xf4] sm:$0xf] }
  0x2c   : > { %723 = vmatpush.bf16.msra.mxu3 %v12328_v15  ;;  %741 = vmatpush.bf16.msra.mxu0 %v12332_v16  ;;  %v696_v46 = vsel %vm494_vm0, %v12368_v37, 0  ;;  %v12396_v49 = vor.u32 %v18384_v45, %v12395_v44  ;;  %v12421_v27 = vld [vmem:[%s27028_s1 + $0x108] sm:$0x30]  ;;  %v12427_v52 = vld [vmem:[%s27028_s1 + $0xf8] sm:$0xf]  ;;  %v822_v15 = vrot.slane %v19754_v31, 1 }
  0x2d   : > { %v886_v47 = vsel %vm494_vm0, %v12420_v43, 0  ;;  %v12424_v53 = vor.u32 %v18387_v51, %v12421_v27  ;;  %v18391_v54 = vld [vmem:[%s27028_s1 + $0x10c] sm:$0x30]  ;;  %v18381_v55 = vld [vmem:[%s27028_s1 + $0xc4] sm:$0xf]  ;;  %v19982_v16 = vrot.slane %v19763_v34, 1 }
  0x2e   : > { %v12397_v56 = vld [vmem:[%s27028_s1 + $0xd8] sm:$0xf0]  ;;  %v12428_v57 = vor.u32 %v18391_v54, %v12427_v52  ;;  %v12403_v58 = vld [vmem:[%s27028_s1 + $0xc8] sm:$0xf]  ;;  %v18385_v59 = vld [vmem:[%s27028_s1 + $0xdc] sm:$0xf0] }
  0x2f   : > { %759 = vmatpush.bf16.msra.mxu1 %v12336_v30  ;;  %777 = vmatpush.bf16.msra.mxu2 %v12340_v32  ;;  %v889_v60 = vsel %vm494_vm0, %v12424_v53, 0  ;;  %v12400_v62 = vor.u32 %v18381_v55, %v12397_v56  ;;  %v18388_v1 = vld [vmem:[%s27028_s1 + $0xfc] sm:$0xf]  ;;  %v12435_v3 = vld [vmem:[%s27028_s1 + $0x100] sm:$0xf]  ;;  %v19986_v17 = vsel %vm821_vm3, %v822_v15, %v19982_v16  ;;  %v1043_v51 = vrot.slane %v419_v39, 1 }
  0x30   : > { %v892_v61 = vsel %vm494_vm0, %v12428_v57, 0  ;;  %v18392_v5 = vld [vmem:[%s27028_s1 + $0x114] sm:$0x30]  ;;  %v18382_v6 = vld [vmem:[%s27028_s1 + $0xcc] sm:$0xf]  ;;  %v1044_v27 = vrot.slane %v421_v40, 2 }
  0x31   : > { %v12405_v7 = vld [vmem:[%s27028_s1 + $0xe0] sm:$0xf0]  ;;  %v12436_v8 = vor.u32 %v18392_v5, %v12435_v3  ;;  %v12411_v9 = vld [vmem:[%s27028_s1 + $0xd0] sm:$0xf]  ;;  %v18386_v10 = vld [vmem:[%s27028_s1 + $0xe4] sm:$0xf0] }
  0x32   : > { %v12408_v13 = vor.u32 %v18382_v6, %v12405_v7  ;;  %v12412_v14 = vor.u32 %v18386_v10, %v12411_v9  ;;  %v18389_v18 = vld [vmem:[%s27028_s1 + $0x104] sm:$0xf]  ;;  %v12437_v19 = vld [vmem:[%s27028_s1 + $0x118] sm:$0x30]  ;;  %v12491_v20 = vld [vmem:[%s27028_s1 + $0x150] sm:$0xf]  ;;  %v1045_v57 = vor.u32 %v1044_v27, %v1043_v51 }
  0x33   : > { %v898_v12 = vsel %vm494_vm0, %v12436_v8, 0  ;;  %v12440_v21 = vor.u32 %v18389_v18, %v12437_v19  ;;  %v18402_v22 = vld [vmem:[%s27028_s1 + $0x164] sm:$0x30]  ;;  %v18383_v26 = vld [vmem:[%s27028_s1 + $0xd4] sm:$0xf]  ;;  %vm12152_vm8 = vcmask 408576  }
  0x34   : > { %v12492_v23 = vor.u32 %v18402_v22, %v12491_v20  ;;  %v12413_v28 = vld [vmem:[%s27028_s1 + $0xe8] sm:$0xf0]  ;;  %v12467_v29 = vld [vmem:[%s27028_s1 + $0x120] sm:$0xf]  ;;  %v18396_v32 = vld [vmem:[%s27028_s1 + $0x134] sm:$0xf0] }
  0x35   : > { %12315 = vmatmul.msk.bf16.vlgmr.msrb.gmra.mxu3 %vm487_vm2, %v429_v2  ;;  %12317 = vmatmul.msk.bf16.vlgmr.msrb.gmra.mxu0 %vm487_vm2, %v429_v2  ;;  %v901_v24 = vsel %vm494_vm0, %v12440_v21, 0  ;;  %v12416_v30 = vor.u32 %v18383_v26, %v12413_v28  ;;  %v12468_v33 = vor.u32 %v18396_v32, %v12467_v29  ;;  %v18399_v35 = vld [vmem:[%s27028_s1 + $0x154] sm:$0xf]  ;;  %v12493_v36 = vld [vmem:[%s27028_s1 + $0x168] sm:$0x30]  ;;  %s378_s15 = scalar_lea.vmem [#allocation2], %s377_s26 }
  0x36   : > { %12312 = vmatmul.msk.bf16.gmra.mxu1 %vm487_vm2, %v19807_v63  ;;  %12314 = vmatmul.msk.bf16.gmra.mxu2 %vm487_vm2, %v19807_v63  ;;  %v1111_v25 = vsel %vm494_vm0, %v12492_v23, 0  ;;  %v12496_v37 = vor.u32 %v18399_v35, %v12493_v36  ;;  %v12499_v38 = vld [vmem:[%s27028_s1 + $0x158] sm:$0xf]  ;;  %v18403_v41 = vld [vmem:[%s27028_s1 + $0x16c] sm:$0x30]  ;;  %s12186_s16 = sshll.u32 %s378_s15, 4  ;;  %s12187_s16 = int_to_ptr.vmem [resolvable:$true] %s12186_s16 }
  0x37   : > { %794 = vmatpush.bf16.msrb.mxu3 %v696_v46  ;;  %909 = vmatpush.bf16.msrb.mxu0 %v886_v47  ;;  %v12500_v42 = vor.u32 %v18403_v41, %v12499_v38  ;;  %v18393_v45 = vld [vmem:[%s27028_s1 + $0x124] sm:$0xf]  ;;  %v12469_v46 = vld [vmem:[%s27028_s1 + $0x138] sm:$0xf0]  ;;  %v12501_v53 = vld [vmem:[%s27028_s1 + $0x170] sm:$0x30] }
  0x38   : > { %v1114_v43 = vsel %vm494_vm0, %v12496_v37, 0  ;;  %v12472_v47 = vor.u32 %v18393_v45, %v12469_v46  ;;  %v18400_v52 = vld [vmem:[%s27028_s1 + $0x15c] sm:$0xf]  ;;  %v12507_v54 = vld [vmem:[%s27028_s1 + $0x160] sm:$0xf]  ;;  %s12188_s19 = sshll.u32 %s12184_s25, 4  ;;  %s12189_s19 = int_to_ptr.hbm [resolvable:$true] %s12188_s19 }
  0x39   : > { %v1117_v44 = vsel %vm494_vm0, %v12500_v42, 0  ;;  %v12504_v55 = vor.u32 %v18400_v52, %v12501_v53  ;;  %v18404_v39 = vld [vmem:[%s27028_s1 + $0x174] sm:$0x30]  ;;  %v18401_v8 = vld [vmem:[%s27028_s1 + $0x164] sm:$0xf]  ;;  %vm12173_vm9 = vcmask 73728  }
  0x3a   : > { %v12508_v56 = vor.u32 %v18404_v39, %v12507_v54  ;;  %v12509_v9 = vld [vmem:[%s27028_s1 + $0x178] sm:$0x30]  ;;  %v18395_v18 = vld [vmem:[%s27028_s1 + $0x134] sm:$0xf]  ;;  %v12485_v19 = vld [vmem:[%s27028_s1 + $0x148] sm:$0xf0] }
  0x3b   : > { %795 = vmatpush.bf16.msrb.mxu3 %v12344_v48  ;;  %910 = vmatpush.bf16.msrb.mxu0 %v12396_v49  ;;  %v12475_v48 = vld [vmem:[%s27028_s1 + $0x128] sm:$0xf]  ;;  %v18397_v49 = vld [vmem:[%s27028_s1 + $0x13c] sm:$0xf0]  ;;  %v1120_v40 = vsel %vm494_vm0, %v12504_v55, 0  ;;  %v12488_v21 = vor.u32 %v18395_v18, %v12485_v19  ;;  %s12176_s22 = scalar_lea.sflag [#allocation3], %s377_s26 }
  0x3c   : > { %v12539_v22 = vld [vmem:[%s27028_s1 + $0x180] sm:$0xf]  ;;  %v18408_v23 = vld [vmem:[%s27028_s1 + $0x194] sm:$0xf0]  ;;  %v18411_v35 = vld [vmem:[%s27028_s1 + $0x1b4] sm:$0xf] }
  0x3d   : > { %v12565_v36 = vld [vmem:[%s27028_s1 + $0x1c8] sm:$0x30]  ;;  %v18415_v38 = vld [vmem:[%s27028_s1 + $0x1cc] sm:$0x30]  ;;  %v18405_v45 = vld [vmem:[%s27028_s1 + $0x184] sm:$0xf] }
  0x3e   : > { %v12568_v37 = vor.u32 %v18411_v35, %v12565_v36  ;;  %v12541_v46 = vld [vmem:[%s27028_s1 + $0x198] sm:$0xf0]  ;;  %s19538_s24 = sshra.s32 %s12189_s19, 4  ;;  %s19544_s12 = scalar_lea.hbm %s27038_s11, 2  ;;  %s19539_s24 = int_to_ptr.hbm [resolvable:$true] %s19538_s24 }
  0x3f   : > { %s19540_s29 = scalar_lea.hbm %s19539_s24, 1  ;;  %p19545_p0 = scmp.lt.s32.totalorder %s19539_s24, %s27038_s11 }
  0x40   : > { %v1335_v42 = vsel %vm494_vm0, %v12568_v37, 0  ;;  %p19541_p11 = scmp.ne.s32.totalorder %s19539_s24, %s19540_s29  ;;  %p19546_p1 = scmp.lt.s32.totalorder %s19544_s12, %s19540_s29 }
  0x42   : > { %p19542_p12 = pnand %p19541_p11, %p19686_p5  ;;  %p19547_p2 = por %p19546_p1, %p19545_p0 }
  0x44   : > { %p19543_p13 = pneg %p19542_p12 }
  0x45   : > { %12316 = vmatmul.msk.bf16.gmra.mxu3 %vm487_vm2, %v19807_v63  ;;  %12318 = vmatmul.msk.bf16.gmra.mxu0 %vm487_vm2, %v19807_v63 }
  0x46   : > { %12319 = vmatmul.msk.bf16.vlgmr.msrb.gmra.mxu1 %vm487_vm2, %v429_v2  ;;  %12369 = vmatmul.msk.bf16.vlgmr.msrb.gmra.mxu2 %vm487_vm2, %v19754_v31  ;;  %v12429_v2 = vld [vmem:[%s27028_s1 + $0x110] sm:$0x30]  ;;  %p19548_p3 = pnand %p19547_p2, %p19543_p13 }
  0x47   : > { %927 = vmatpush.bf16.msrb.mxu1 %v889_v60  ;;  %945 = vmatpush.bf16.msrb.mxu2 %v892_v61  ;;  %v12432_v4 = vor.u32 %v18388_v1, %v12429_v2  ;;  %v12477_v60 = vld [vmem:[%s27028_s1 + $0x140] sm:$0xf0]  ;;  %v12483_v61 = vld [vmem:[%s27028_s1 + $0x130] sm:$0xf] }
  0x49   : > { %v895_v11 = vsel %vm494_vm0, %v12432_v4, 0  ;;  %v20100_v4 = vsel %vm1042_vm4, %v1045_v57, %v19809_v0 }
  0x4b   : > { %928 = vmatpush.bf16.msrb.mxu1 %v12400_v62 }
  0x55   : > { %12371 = vmatmul.msk.bf16.vlgmr.msra.gmra.mxu3 %vm487_vm2, %v19754_v31  ;;  %12373 = vmatmul.msk.bf16.vlgmr.msra.gmra.mxu0 %vm487_vm2, %v19754_v31 }
  0x56   : > { %12320 = vmatmul.msk.bf16.gmra.mxu1 %vm487_vm2, %v19807_v63  ;;  %12370 = vmatmul.msk.bf16.gmra.mxu2 %vm487_vm2, %v19910_v50  ;;  %v12404_v63 = vor.u32 %v18385_v59, %v12403_v58  ;;  %v1123_v58 = vsel %vm494_vm0, %v12508_v56, 0  ;;  %v18394_v59 = vld [vmem:[%s27028_s1 + $0x12c] sm:$0xf]  ;;  %v18412_v56 = vld [vmem:[%s27028_s1 + $0x1bc] sm:$0xf] }
  0x57   : > { %963 = vmatpush.bf16.msra.mxu3 %v895_v11  ;;  %981 = vmatpush.bf16.msra.mxu0 %v898_v12  ;;  %v12480_v62 = vor.u32 %v18394_v59, %v12477_v60  ;;  %v12512_v11 = vor.u32 %v18401_v8, %v12509_v9  ;;  %v12563_v12 = vld [vmem:[%s27028_s1 + $0x1b0] sm:$0xf]  ;;  %v12579_v59 = vld [vmem:[%s27028_s1 + $0x1c0] sm:$0xf]  ;;  %v18416_v60 = vld [vmem:[%s27028_s1 + $0x1d4] sm:$0x30] }
  0x58   : > { %946 = vmatpush.bf16.msrb.mxu2 %v12404_v63  ;;  %v18398_v63 = vld [vmem:[%s27028_s1 + $0x144] sm:$0xf0]  ;;  %v18406_v8 = vld [vmem:[%s27028_s1 + $0x18c] sm:$0xf]  ;;  %v12549_v9 = vld [vmem:[%s27028_s1 + $0x1a0] sm:$0xf0] }
  0x59   : > { %v12484_v2 = vor.u32 %v18398_v63, %v12483_v61  ;;  %v1126_v15 = vsel %vm494_vm0, %v12512_v11, 0  ;;  %v12580_v61 = vor.u32 %v18416_v60, %v12579_v59  ;;  %v1268_v63 = vrot.slane %v19754_v31, 2 }
  0x5b   : > { %964 = vmatpush.bf16.msra.mxu3 %v12408_v13  ;;  %982 = vmatpush.bf16.msra.mxu0 %v12412_v14  ;;  %v18414_v13 = vld [vmem:[%s27028_s1 + $0x1c4] sm:$0x30] }
  0x5c   : > { %v12564_v14 = vor.u32 %v18414_v13, %v12563_v12  ;;  %v12552_v12 = vor.u32 %v18406_v8, %v12549_v9 }
  0x65   : > { %12372 = vmatmul.msk.bf16.gmra.mxu3 %vm487_vm2, %v19910_v50  ;;  %12374 = vmatmul.msk.bf16.gmra.mxu0 %vm487_vm2, %v19910_v50 }
  0x66   : > { %12375 = vmatmul.msk.bf16.vlgmr.msra.gmra.mxu1 %vm487_vm2, %v19754_v31  ;;  %12377 = vmatmul.msk.bf16.vlgmr.msra.gmra.mxu2 %vm487_vm2, %v19754_v31 }
  0x67   : > { %999 = vmatpush.bf16.msra.mxu1 %v901_v24  ;;  %1134 = vmatpush.bf16.msra.mxu2 %v1111_v25  ;;  %v12540_v25 = vor.u32 %v18408_v23, %v12539_v22 }
  0x6b   : > { %1000 = vmatpush.bf16.msra.mxu1 %v12416_v30  ;;  %1135 = vmatpush.bf16.msra.mxu2 %v12468_v33 }
  0x75   : > { %12379 = vmatmul.msk.bf16.vlgmr.msrb.gmra.mxu3 %vm487_vm2, %v19754_v31  ;;  %12441 = vmatmul.msk.bf16.vlgmr.msrb.gmra.mxu0 %vm487_vm2, %v19986_v17  ;;  %v12555_v31 = vld [vmem:[%s27028_s1 + $0x190] sm:$0xf] }
  0x76   : > { %12376 = vmatmul.msk.bf16.gmra.mxu1 %vm487_vm2, %v19910_v50  ;;  %12378 = vmatmul.msk.bf16.gmra.mxu2 %vm487_vm2, %v19910_v50 }
  0x77   : > { %1152 = vmatpush.bf16.msrb.mxu3 %v1114_v43  ;;  %1170 = vmatpush.bf16.msrb.mxu0 %v1117_v44 }
  0x7b   : > { %1153 = vmatpush.bf16.msrb.mxu3 %v12472_v47  ;;  %v12547_v47 = vld [vmem:[%s27028_s1 + $0x188] sm:$0xf] }
  0x85   : > { %12380 = vmatmul.msk.bf16.gmra.mxu3 %vm487_vm2, %v19910_v50  ;;  %12442 = vmatmul.msk.bf16.gmra.mxu0 %vm487_vm2, %v19982_v16  ;;  %v12476_v50 = vor.u32 %v18397_v49, %v12475_v48  ;;  %v12544_v49 = vor.u32 %v18405_v45, %v12541_v46 }
  0x86   : > { %12443 = vmatmul.msk.bf16.vlgmr.msrb.gmra.mxu1 %vm487_vm2, %v19986_v17  ;;  %12445 = vmatmul.msk.bf16.vlgmr.msrb.gmra.mxu2 %vm487_vm2, %v19986_v17 }
  0x87   : > { %1171 = vmatpush.bf16.msrb.mxu0 %v12476_v50  ;;  %1188 = vmatpush.bf16.msrb.mxu1 %v1120_v40  ;;  %v18409_v50 = vld [vmem:[%s27028_s1 + $0x19c] sm:$0xf0]  ;;  %v12573_v40 = vld [vmem:[%s27028_s1 + $0x1d0] sm:$0x30] }
  0x88   : > { %1206 = vmatpush.bf16.msrb.mxu2 %v1123_v58  ;;  %v12548_v27 = vor.u32 %v18409_v50, %v12547_v47  ;;  %v12576_v58 = vor.u32 %v18412_v56, %v12573_v40 }
  0x8b   : > { %1189 = vmatpush.bf16.msrb.mxu1 %v12480_v62  ;;  %v1341_v62 = vsel %vm494_vm0, %v12576_v58, 0 }
  0x8c   : > { %1207 = vmatpush.bf16.msrb.mxu2 %v12484_v2  ;;  %v1344_v2 = vsel %vm494_vm0, %v12580_v61, 0 }
  0x95   : > { %12447 = vmatmul.msk.bf16.vlgmr.msra.gmra.mxu3 %vm487_vm2, %v19986_v17  ;;  %12449 = vmatmul.msk.bf16.vlgmr.msra.gmra.mxu0 %vm487_vm2, %v19986_v17 }
  0x96   : > { %12444 = vmatmul.msk.bf16.gmra.mxu1 %vm487_vm2, %v19982_v16  ;;  %12446 = vmatmul.msk.bf16.gmra.mxu2 %vm487_vm2, %v19982_v16 }
  0x97   : > { %1224 = vmatpush.bf16.msra.mxu3 %v1126_v15 }
  0x9b   : > { %1225 = vmatpush.bf16.msra.mxu3 %v12488_v21 }
  0xa2   : > { %v20094_v1 = vpop.f32.mrf.mxu0 }
  0xa3   : > { %v20096_v3 = vpop.f32.mrf.mxu1 }
  0xa5   : > { %12448 = vmatmul.msk.bf16.gmra.mxu3 %vm487_vm2, %v19982_v16  ;;  %12450 = vmatmul.msk.bf16.gmra.mxu0 %vm487_vm2, %v19982_v16 }
  0xa6   : > { %12451 = vmatmul.msk.bf16.vlgmr.msra.gmra.mxu1 %vm487_vm2, %v19986_v17  ;;  %12513 = vmatmul.msk.bf16.vlgmr.msra.gmra.mxu2 %vm487_vm2, %v20100_v4  ;;  %v1332_v17 = vsel %vm494_vm0, %v12564_v14, 0 }
  0xa7   : > { %1355 = vmatpush.bf16.msra.mxu0 %v1332_v17  ;;  %1373 = vmatpush.bf16.msra.mxu1 %v1335_v42 }
  0xa8   : > { %v20110_v5 = vpop.f32.mrf.mxu3 }
  0xa9   : > { %v20112_v6 = vpop.f32.mrf.mxu2 }
  0xaa   : > { %v20114_v7 = vpop.f32.mrf.mxu0 }
  0xab   : > { %v20122_v10 = vpop.f32.mrf.mxu1  ;;  %1356 = vmatpush.bf16.msra.mxu0 %v12540_v25  ;;  %1374 = vmatpush.bf16.msra.mxu1 %v12544_v49 }
  0xb0   : > { %v529_v20 = vpop.f32.mrf.mxu3 }
  0xb1   : > { %v20144_v24 = vpop.f32.mrf.mxu2 }
  0xb2   : > { %v20146_v26 = vpop.f32.mrf.mxu0 }
  0xb3   : > { %v20148_v28 = vpop.f32.mrf.mxu1 }
  0xb5   : > { %12515 = vmatmul.msk.bf16.vlgmr.msrb.gmra.mxu3 %vm487_vm2, %v20100_v4  ;;  %12517 = vmatmul.msk.bf16.vlgmr.msrb.gmra.mxu0 %vm487_vm2, %v20100_v4 }
  0xb6   : > { %12452 = vmatmul.msk.bf16.gmra.mxu1 %vm487_vm2, %v19982_v16  ;;  %12514 = vmatmul.msk.bf16.gmra.mxu2 %vm487_vm2, %v19809_v0  ;;  %v12571_v16 = vld [vmem:[%s27028_s1 + $0x1b8] sm:$0xf] }
  0xb7   : > { %v12572_v41 = vor.u32 %v18415_v38, %v12571_v16  ;;  %1409 = vmatpush.bf16.msrb.mxu3 %v1341_v62  ;;  %1427 = vmatpush.bf16.msrb.mxu0 %v1344_v2 }
  0xb8   : > { %v20158_v29 = vpop.f32.mrf.mxu3 }
  0xb9   : > { %v20160_v30 = vpop.f32.mrf.mxu2  ;;  %v1338_v43 = vsel %vm494_vm0, %v12572_v41, 0 }
  0xba   : > { %v20162_v32 = vpop.f32.mrf.mxu0  ;;  %1391 = vmatpush.bf16.msra.mxu2 %v1338_v43 }
  0xbb   : > { %v547_v33 = vpop.f32.mrf.mxu1  ;;  %1410 = vmatpush.bf16.msrb.mxu3 %v12552_v12 }
  0xbc   : > { %v12581_v33 = vld [vmem:[%s27028_s1 + $0x1d8] sm:$0x30] }
  0xbe   : > { %1392 = vmatpush.bf16.msra.mxu2 %v12548_v27 }
  0xc0   : > { %v20178_v44 = vpop.f32.mrf.mxu3 }
  0xc1   : > { %v565_v48 = vpop.f32.mrf.mxu2 }
  0xc2   : > { %v20192_v51 = vpop.f32.mrf.mxu0 }
  0xc3   : > { %v20194_v52 = vpop.f32.mrf.mxu1 }
  0xc5   : > { %12516 = vmatmul.msk.bf16.gmra.mxu3 %vm487_vm2, %v19809_v0  ;;  %12518 = vmatmul.msk.bf16.gmra.mxu0 %vm487_vm2, %v19809_v0 }
  0xc6   : > { %12519 = vmatmul.msk.bf16.vlgmr.msrb.gmra.mxu1 %vm487_vm2, %v20100_v4  ;;  %12521 = vmatmul.msk.bf16.vlgmr.msrb.gmra.mxu2 %vm487_vm2, %v20100_v4 }
  0xc8   : > { %v20204_v53 = vpop.f32.mrf.mxu3 }
  0xc9   : > { %v707_v54 = vpop.f32.mrf.mxu2 }
  0xca   : > { %v20207_v55 = vadd.f32 %v707_v54, %v20094_v1  ;;  %v601_v39 = vpop.f32.mrf.mxu0  ;;  %v20226_v1 = vrot.slane %v19763_v34, 2  ;;  %v18410_v34 = vld [vmem:[%s27028_s1 + $0x1a4] sm:$0xf0] }
  0xcb   : > { %v20215_v57 = vpop.f32.mrf.mxu1  ;;  %v12556_v14 = vor.u32 %v18410_v34, %v12555_v31 }
  0xcc   : > { %v20245_v17 = vsel %vm494_vm0, %v1268_v63, %v20226_v1 }
  0xcd   : > { %1428 = vmatpush.bf16.msrb.mxu0 %v12556_v14 }
  0xd0   : > { %v583_v11 = vpop.f32.mrf.mxu3 }
  0xd1   : > { %v20241_v13 = vpop.f32.mrf.mxu2 }
  0xd2   : > { %v743_v15 = vpop.f32.mrf.mxu0 }
  0xd3   : > { %v20247_v18 = vpop.f32.mrf.mxu1  ;;  %v20250_v19 = vadd.f32 %v743_v15, %v20112_v6 }
  0xd5   : > { %12523 = vmatmul.msk.bf16.vlgmr.msra.gmra.mxu3 %vm487_vm2, %v20100_v4  ;;  %12585 = vmatmul.msk.bf16.vlgmr.msra.gmra.mxu0 %vm487_vm2, %v20245_v17  ;;  %v18413_v4 = vld [vmem:[%s27028_s1 + $0x1c4] sm:$0xf] }
  0xd6   : > { %12520 = vmatmul.msk.bf16.gmra.mxu1 %vm487_vm2, %v19809_v0  ;;  %12522 = vmatmul.msk.bf16.gmra.mxu2 %vm487_vm2, %v19809_v0  ;;  %v12584_v35 = vor.u32 %v18413_v4, %v12581_v33 }
  0xd8   : > { %v725_v20 = vpop.f32.mrf.mxu3  ;;  %v1347_v36 = vsel %vm494_vm0, %v12584_v35, 0 }
  0xd9   : > { %v726_v21 = vadd.f32 %v725_v20, %v20096_v3  ;;  %v712_v22 = vpop.f32.mrf.mxu2  ;;  %1445 = vmatpush.bf16.msrb.mxu1 %v1347_v36  ;;  %v18407_v3 = vld [vmem:[%s27028_s1 + $0x194] sm:$0xf] }
  0xda   : > { %v713_v6 = vadd.f32 %v712_v22, %v20110_v5  ;;  %v20262_v23 = vpop.f32.mrf.mxu0  ;;  %v12557_v5 = vld [vmem:[%s27028_s1 + $0x1a8] sm:$0xf0] }
  0xdb   : > { %v619_v25 = vpop.f32.mrf.mxu1  ;;  %v12560_v38 = vor.u32 %v18407_v3, %v12557_v5 }
  0xdd   : > { %1446 = vmatpush.bf16.msrb.mxu1 %v12560_v38 }
  0xe0   : > { %v20271_v16 = vpop.f32.mrf.mxu3 }
  0xe1   : > { %v714_v37 = vpop.f32.mrf.mxu2 }
  0xe2   : > { %v748_v41 = vpop.f32.mrf.mxu0 }
  0xe3   : > { %v749_v42 = vadd.f32 %v748_v41, %v20160_v30  ;;  %v761_v43 = vpop.f32.mrf.mxu1 }
  0xe4   : > { %v762_v45 = vadd.f32 %v761_v43, %v20158_v29  ;;  %v12863_v43 = vld [vmem:[%s27030_s3 + $0x4e0] sm:$0xf] }
  0xe5   : > { %12524 = vmatmul.msk.bf16.gmra.mxu3 %vm487_vm2, %v19809_v0  ;;  %12586 = vmatmul.msk.bf16.gmra.mxu0 %vm487_vm2, %v20226_v1 }
  0xe6   : > { %12587 = vmatmul.msk.bf16.vlgmr.msra.gmra.mxu1 %vm487_vm2, %v20245_v17  ;;  %12589 = vmatmul.msk.bf16.vlgmr.msra.gmra.mxu2 %vm487_vm2, %v20245_v17 }
  0xe8   : > { %v730_v46 = vpop.f32.mrf.mxu3 }
  0xe9   : > { %v731_v47 = vadd.f32 %v730_v46, %v20148_v28  ;;  %v779_v30 = vpop.f32.mrf.mxu2 }
  0xea   : > { %v780_v48 = vadd.f32 %v779_v30, %v20146_v26  ;;  %v750_v49 = vpop.f32.mrf.mxu0 }
  0xeb   : > { %v20291_v29 = vpop.f32.mrf.mxu1 }
  0xf0   : > { %v732_v50 = vpop.f32.mrf.mxu3 }
  0xf1   : > { %v20293_v0 = vpop.f32.mrf.mxu2 }
  0xf2   : > { %v912_v27 = vpop.f32.mrf.mxu0 }
  0xf3   : > { %v766_v54 = vpop.f32.mrf.mxu1  ;;  %v20296_v39 = vadd.f32 %v912_v27, %v20207_v55  ;;  %v12851_v27 = vld [vmem:[%s27030_s3 + $0x4c8] sm:$0xf] }
  0xf4   : > { %v767_v56 = vadd.f32 %v766_v54, %v20204_v53  ;;  %v18571_v54 = vld [vmem:[%s27030_s3 + $0x4d0] sm:$0xf0] }
  0xf5   : > { %12591 = vmatmul.msk.bf16.vlgmr.msrb.gmra.mxu3 %vm487_vm2, %v20245_v17  ;;  %12593 = vmatmul.msk.bf16.vlgmr.msrb.gmra.mxu0 %vm487_vm2, %v20245_v17 }
  0xf6   : > { %12588 = vmatmul.msk.bf16.gmra.mxu1 %vm487_vm2, %v20226_v1  ;;  %12590 = vmatmul.msk.bf16.gmra.mxu2 %vm487_vm2, %v20226_v1 }
  0xf8   : > { %v797_v26 = vpop.f32.mrf.mxu3 }
  0xf9   : > { %v798_v28 = vadd.f32 %v797_v26, %v20194_v52  ;;  %v784_v40 = vpop.f32.mrf.mxu2  ;;  %v12852_v26 = vor.u32 %v18571_v54, %v12851_v27  ;;  %v18556_v54 = vld [vmem:[%s27030_s3 + $0x458] sm:$0xf0] }
  0xfa   : > { %v785_v55 = vadd.f32 %v784_v40, %v20192_v51  ;;  %v20309_v58 = vpop.f32.mrf.mxu0  ;;  %v18568_v40 = vld [vmem:[%s27030_s3 + $0x4b8] sm:$0xf0] }
  0xfb   : > { %v768_v53 = vpop.f32.mrf.mxu1 }
 0x100   : > { %v20311_v59 = vpop.f32.mrf.mxu3 }
 0x101   : > { %v786_v60 = vpop.f32.mrf.mxu2 }
 0x102   : > { %v917_v61 = vpop.f32.mrf.mxu0 }
 0x103   : > { %v20313_v62 = vadd.f32 %v917_v61, %v713_v6  ;;  %v930_v63 = vpop.f32.mrf.mxu1 }
 0x104   : > { %v20315_v2 = vadd.f32 %v930_v63, %v726_v21 }
 0x105   : > { %12592 = vmatmul.msk.bf16.gmra.mxu3 %vm487_vm2, %v20226_v1  ;;  %12594 = vmatmul.msk.bf16.gmra.mxu0 %vm487_vm2, %v20226_v1 }
 0x106   : > { %12595 = vmatmul.msk.bf16.vlgmr.msrb.gmra.mxu1 %vm487_vm2, %v20245_v17 }
 0x108   : > { %v802_v51 = vpop.f32.mrf.mxu3 }
 0x109   : > { %v803_v52 = vadd.f32 %v802_v51, %v20247_v18  ;;  %v948_v8 = vpop.f32.mrf.mxu2  ;;  %v12827_v51 = vld [vmem:[%s27030_s3 + $0x498] sm:$0xf] }
 0x10a   : > { %v1013_v9 = vadd.f32 %v948_v8, %v20250_v19  ;;  %v919_v11 = vpop.f32.mrf.mxu0 }
 0x10b   : > { %v20325_v12 = vpop.f32.mrf.mxu1  ;;  %v18562_v11 = vld [vmem:[%s27030_s3 + $0x488] sm:$0xf0] }
 0x110   : > { %v804_v31 = vpop.f32.mrf.mxu3 }
 0x111   : > { %v20327_v34 = vpop.f32.mrf.mxu2  ;;  %v12959_v31 = vld [vmem:[%s27030_s3 + $0x5a0] sm:$0xf] }
 0x112   : > { %v984_v14 = vpop.f32.mrf.mxu0 }
 0x113   : > { %v935_v15 = vpop.f32.mrf.mxu1  ;;  %v20329_v20 = vadd.f32 %v984_v14, %v780_v48 }
 0x114   : > { %v20331_v21 = vadd.f32 %v935_v15, %v731_v47 }
 0x116   : > { %12596 = vmatmul.msk.bf16.gmra.mxu1 %vm487_vm2, %v20226_v1 }
 0x118   : > { %v966_v17 = vpop.f32.mrf.mxu3 }
 0x119   : > { %v1014_v18 = vadd.f32 %v966_v17, %v762_v45  ;;  %v953_v22 = vpop.f32.mrf.mxu2  ;;  %v18574_v45 = vld [vmem:[%s27030_s3 + $0x4e8] sm:$0xf0] }
 0x11a   : > { %v20335_v6 = vadd.f32 %v953_v22, %v749_v42  ;;  %v20337_v19 = vpop.f32.mrf.mxu0  ;;  %v12864_v47 = vor.u32 %v18574_v45, %v12863_v43  ;;  %v18598_v17 = vld [vmem:[%s27030_s3 + $0x5a8] sm:$0xf0] }
 0x11b   : > { %v937_v25 = vpop.f32.mrf.mxu1 }
 0x11c   : > { %2725 = vmatpush.bf16.msrb.mxu2 %v12864_v47  ;;  %v12960_v25 = vor.u32 %v18598_v17, %v12959_v31  ;;  %v18553_v17 = vld [vmem:[%s27030_s3 + $0x440] sm:$0xf0] }
 0x11e   : > { %2743 = vmatpush.bf16.msra.mxu3 %v12960_v25 }
 0x120   : > { %v20339_v4 = vpop.f32.mrf.mxu3  ;;  %2726 = vmatpush.bf16.msrb.mxu2 %v12852_v26  ;;  %v12935_v26 = vld [vmem:[%s27030_s3 + $0x570] sm:$0xf] }
 0x121   : > { %v955_v33 = vpop.f32.mrf.mxu2 }
 0x122   : > { %v989_v35 = vpop.f32.mrf.mxu0 }
 0x123   : > { %v20341_v36 = vadd.f32 %v989_v35, %v785_v55  ;;  %v1002_v3 = vpop.f32.mrf.mxu1 }
 0x124   : > { %v20343_v5 = vadd.f32 %v1002_v3, %v798_v28  ;;  %v12839_v28 = vld [vmem:[%s27030_s3 + $0x4b0] sm:$0xf]  ;;  %v12803_v3 = vld [vmem:[%s27030_s3 + $0x468] sm:$0xf] }
 0x125   : > { %v12840_v53 = vor.u32 %v18568_v40, %v12839_v28 }
 0x127   : > { %2727 = vmatpush.bf16.msrb.mxu2 %v12840_v53  ;;  %v18592_v53 = vld [vmem:[%s27030_s3 + $0x578] sm:$0xf0] }
 0x128   : > { %v971_v37 = vpop.f32.mrf.mxu3 }
 0x129   : > { %v20345_v38 = vadd.f32 %v971_v37, %v767_v56  ;;  %v20347_v1 = vpop.f32.mrf.mxu2  ;;  %v18559_v37 = vld [vmem:[%s27030_s3 + $0x470] sm:$0xf0] }
 0x12a   : > { %v991_v41 = vpop.f32.mrf.mxu0  ;;  %v12804_v45 = vor.u32 %v18559_v37, %v12803_v3  ;;  %v13031_v37 = vld [vmem:[%s27030_s3 + $0x630] sm:$0xf] }
 0x12b   : > { %v20349_v42 = vpop.f32.mrf.mxu1  ;;  %v12947_v41 = vld [vmem:[%s27030_s3 + $0x588] sm:$0xf] }
 0x130   : > { %v973_v46 = vpop.f32.mrf.mxu3 }
 0x131   : > { %v20357_v30 = vpop.f32.mrf.mxu2  ;;  %v18595_v46 = vld [vmem:[%s27030_s3 + $0x590] sm:$0xf0] }
 0x132   : > { %v1173_v48 = vpop.f32.mrf.mxu0  ;;  %v12948_v47 = vor.u32 %v18595_v46, %v12947_v41  ;;  %v18616_v41 = vld [vmem:[%s27030_s3 + $0x638] sm:$0xf0]  ;;  %v12911_v46 = vld [vmem:[%s27030_s3 + $0x540] sm:$0xf] }
 0x133   : > { %v1007_v49 = vpop.f32.mrf.mxu1  ;;  %v20359_v50 = vadd.f32 %v1173_v48, %v1013_v9  ;;  %v12815_v9 = vld [vmem:[%s27030_s3 + $0x480] sm:$0xf] }
 0x134   : > { %v20367_v56 = vadd.f32 %v1007_v49, %v803_v52  ;;  %v18565_v52 = vld [vmem:[%s27030_s3 + $0x4a0] sm:$0xf0]  ;;  %v12816_v15 = vor.u32 %v18562_v11, %v12815_v9  ;;  %v13055_v48 = vld [vmem:[%s27030_s3 + $0x660] sm:$0xf]  ;;  %v18622_v49 = vld [vmem:[%s27030_s3 + $0x668] sm:$0xf0]  ;;  %2744 = vmatpush.bf16.msra.mxu3 %v12948_v47 }
 0x135   : > { %v12828_v8 = vor.u32 %v18565_v52, %v12827_v51  ;;  %v13056_v27 = vor.u32 %v18622_v49, %v13055_v48  ;;  %v12936_v51 = vor.u32 %v18592_v53, %v12935_v26  ;;  %v13043_v52 = vld [vmem:[%s27030_s3 + $0x648] sm:$0xf]  ;;  %v18586_v47 = vld [vmem:[%s27030_s3 + $0x548] sm:$0xf0]  ;;  %v13247_v48 = vld [vmem:[%s27030_s3 + $0x7e0] sm:$0xf] }
 0x136   : > { %v18613_v53 = vld [vmem:[%s27030_s3 + $0x620] sm:$0xf0] }
 0x137   : > { %2728 = vmatpush.bf16.msrb.mxu2 %v12828_v8  ;;  %2761 = vmatpush.bf16.msra.mxu0 %v13056_v27  ;;  %v18619_v8 = vld [vmem:[%s27030_s3 + $0x650] sm:$0xf0]  ;;  %v12912_v27 = vor.u32 %v18586_v47, %v12911_v46  ;;  %v13007_v46 = vld [vmem:[%s27030_s3 + $0x600] sm:$0xf]  ;;  %v18610_v47 = vld [vmem:[%s27030_s3 + $0x608] sm:$0xf0] }
 0x138   : > { %v20375_v55 = vpop.f32.mrf.mxu3  ;;  %v13044_v11 = vor.u32 %v18619_v8, %v13043_v52  ;;  %2745 = vmatpush.bf16.msra.mxu3 %v12936_v51 }
 0x139   : > { %v20377_v60 = vpop.f32.mrf.mxu2 }
 0x13a   : > { %v20379_v61 = vpop.f32.mrf.mxu0 }
 0x13b   : > { %v1009_v63 = vpop.f32.mrf.mxu1  ;;  %2729 = vmatpush.bf16.msrb.mxu2 %v12816_v15  ;;  %v12779_v15 = vld [vmem:[%s27030_s3 + $0x438] sm:$0xf]  ;;  %2762 = vmatpush.bf16.msra.mxu0 %v13044_v11  ;;  %v18583_v11 = vld [vmem:[%s27030_s3 + $0x530] sm:$0xf0] }
 0x13c   : > { %v12780_v25 = vor.u32 %v18553_v17, %v12779_v15  ;;  %v13235_v15 = vld [vmem:[%s27030_s3 + $0x7c8] sm:$0xf]  ;;  %v20499_v17 = vld [vmem:[%s27029_s2] sm:$0x3f] }
 0x13f   : > { %2730 = vmatpush.bf16.msrb.mxu2 %v12804_v45  ;;  %v13032_v45 = vor.u32 %v18616_v41, %v13031_v37  ;;  %v1236_v37 = vadd.f32 %v20347_v1, %v20296_v39  ;;  %v20522_v39 = vperm.slane %v20499_v17, 0  ;;  %v12887_v1 = vld [vmem:[%s27030_s3 + $0x510] sm:$0xf] }
 0x140   : > { %v20396_v14 = vpop.f32.mrf.mxu3 }
 0x141   : > { %v1144_v22 = vpop.f32.mrf.mxu2  ;;  %2763 = vmatpush.bf16.msra.mxu0 %v13032_v45  ;;  %v18646_v45 = vld [vmem:[%s27030_s3 + $0x728] sm:$0xf0] }
 0x142   : > { %v20401_v33 = vpop.f32.mrf.mxu0  ;;  %v12923_v22 = vld [vmem:[%s27030_s3 + $0x558] sm:$0xf] }
 0x143   : > { %v1191_v35 = vpop.f32.mrf.mxu1 }
 0x144   : > { %v20412_v43 = vadd.f32 %v1191_v35, %v1014_v18  ;;  %v12791_v18 = vld [vmem:[%s27030_s3 + $0x450] sm:$0xf]  ;;  %v18589_v35 = vld [vmem:[%s27030_s3 + $0x560] sm:$0xf0] }
 0x145   : > { %v12792_v40 = vor.u32 %v18556_v54, %v12791_v18  ;;  %v12924_v3 = vor.u32 %v18589_v35, %v12923_v22  ;;  %v18670_v18 = vld [vmem:[%s27030_s3 + $0x7e8] sm:$0xf0]  ;;  %v13151_v35 = vld [vmem:[%s27030_s3 + $0x720] sm:$0xf] }
 0x146   : > { %v13248_v26 = vor.u32 %v18670_v18, %v13247_v48  ;;  %v13152_v48 = vor.u32 %v18646_v45, %v13151_v35  ;;  %v18607_v35 = vld [vmem:[%s27030_s3 + $0x5f0] sm:$0xf0]  ;;  %v12875_v45 = vld [vmem:[%s27030_s3 + $0x4f8] sm:$0xf] }
 0x147   : > { %2731 = vmatpush.bf16.msrb.mxu2 %v12792_v40  ;;  %2746 = vmatpush.bf16.msra.mxu3 %v12924_v3  ;;  %v13019_v40 = vld [vmem:[%s27030_s3 + $0x618] sm:$0xf]  ;;  %v710_v3 = vadd.f32 %v20241_v13, %v20114_v7 }
 0x148   : > { %v20432_v28 = vpop.f32.mrf.mxu3  ;;  %v13020_v52 = vor.u32 %v18613_v53, %v13019_v40  ;;  %2779 = vmatpush.bf16.msra.mxu1 %v13152_v48  ;;  %v18664_v40 = vld [vmem:[%s27030_s3 + $0x7b8] sm:$0xf0]  ;;  %v13139_v53 = vld [vmem:[%s27030_s3 + $0x708] sm:$0xf] }
 0x149   : > { %v20437_v63 = vpop.f32.mrf.mxu2  ;;  %v1017_v7 = vadd.f32 %v20309_v58, %v710_v3  ;;  %v13223_v58 = vld [vmem:[%s27030_s3 + $0x7b0] sm:$0xf] }
 0x14a   : > { %v1180_v9 = vpop.f32.mrf.mxu0  ;;  %2764 = vmatpush.bf16.msra.mxu0 %v13020_v52 }
 0x14b   : > { %v20445_v31 = vpop.f32.mrf.mxu1  ;;  %2732 = vmatpush.bf16.msrb.mxu2 %v12780_v25  ;;  %2747 = vmatpush.bf16.msra.mxu3 %v12912_v27  ;;  %v12899_v9 = vld [vmem:[%s27030_s3 + $0x528] sm:$0xf]  ;;  %v18667_v25 = vld [vmem:[%s27030_s3 + $0x7d0] sm:$0xf0]  ;;  %v18580_v27 = vld [vmem:[%s27030_s3 + $0x518] sm:$0xf0] }
 0x14c   : > { %v12900_v22 = vor.u32 %v18583_v11, %v12899_v9  ;;  %v13236_v41 = vor.u32 %v18667_v25, %v13235_v15  ;;  %v13224_v9 = vor.u32 %v18664_v40, %v13223_v58  ;;  %v18643_v11 = vld [vmem:[%s27030_s3 + $0x710] sm:$0xf0]  ;;  %v12995_v15 = vld [vmem:[%s27030_s3 + $0x5e8] sm:$0xf]  ;;  %v12983_v58 = vld [vmem:[%s27030_s3 + $0x5d0] sm:$0xf] }
 0x14d   : > { %v13140_v25 = vor.u32 %v18643_v11, %v13139_v53  ;;  %v18604_v40 = vld [vmem:[%s27030_s3 + $0x5d8] sm:$0xf0]  ;;  %v13199_v11 = vld [vmem:[%s27030_s3 + $0x780] sm:$0xf] }
 0x14e   : > { %v12984_v53 = vor.u32 %v18604_v40, %v12983_v58  ;;  %v13103_v58 = vld [vmem:[%s27030_s3 + $0x6c0] sm:$0xf]  ;;  %v18634_v40 = vld [vmem:[%s27030_s3 + $0x6c8] sm:$0xf0] }
 0x14f   : > { %2797 = vmatpush.bf16.msra.mxu2 %v13248_v26  ;;  %2748 = vmatpush.bf16.msra.mxu3 %v12900_v22  ;;  %v12888_v26 = vor.u32 %v18580_v27, %v12887_v1 }
 0x150   : > { %v1162_v49 = vpop.f32.mrf.mxu3  ;;  %2780 = vmatpush.bf16.msra.mxu1 %v13140_v25 }
 0x151   : > { %v20477_v54 = vpop.f32.mrf.mxu2  ;;  %v13008_v49 = vor.u32 %v18610_v47, %v13007_v46  ;;  %v18577_v46 = vld [vmem:[%s27030_s3 + $0x500] sm:$0xf0]  ;;  %v13211_v47 = vld [vmem:[%s27030_s3 + $0x798] sm:$0xf] }
 0x152   : > { %v1358_v51 = vpop.f32.mrf.mxu0  ;;  %v12876_v48 = vor.u32 %v18577_v46, %v12875_v45  ;;  %v12971_v46 = vld [vmem:[%s27030_s3 + $0x5b8] sm:$0xf] }
 0x153   : > { %v20485_v8 = vpop.f32.mrf.mxu1  ;;  %v1457_v13 = vadd.f32 %v1358_v51, %v1236_v37  ;;  %2798 = vmatpush.bf16.msra.mxu2 %v13236_v41  ;;  %2765 = vmatpush.bf16.msra.mxu0 %v13008_v49  ;;  %v1242_v51 = vadd.f32 %v20357_v30, %v1017_v7  ;;  %v12996_v41 = vor.u32 %v18607_v35, %v12995_v15  ;;  %v18661_v49 = vld [vmem:[%s27030_s3 + $0x7a0] sm:$0xf0]  ;;  %v13127_v7 = vld [vmem:[%s27030_s3 + $0x6f0] sm:$0xf]  ;;  %v18658_v15 = vld [vmem:[%s27030_s3 + $0x788] sm:$0xf0] }
 0x154   : > { %2749 = vmatpush.bf16.msra.mxu3 %v12888_v26  ;;  %v13212_v27 = vor.u32 %v18661_v49, %v13211_v47  ;;  %v13200_v25 = vor.u32 %v18658_v15, %v13199_v11  ;;  %v13115_v35 = vld [vmem:[%s27030_s3 + $0x6d8] sm:$0xf]  ;;  %v18601_v47 = vld [vmem:[%s27030_s3 + $0x5c0] sm:$0xf0]  ;;  %v12865_v15 = vld [vmem:[%s27030_s3 + $0x4ec] sm:$0xf0] }
 0x155   : > { %v1489_v3 = vadd.f32 %v20522_v39, %v1457_v13  ;;  %v18640_v13 = vld [vmem:[%s27030_s3 + $0x6f8] sm:$0xf0]  ;;  %v12972_v49 = vor.u32 %v18601_v47, %v12971_v46  ;;  %v18573_v11 = vld [vmem:[%s27030_s3 + $0x4e4] sm:$0xf] }
 0x156   : > { %v13128_v26 = vor.u32 %v18640_v13, %v13127_v7 }
 0x157   : > { %2799 = vmatpush.bf16.msra.mxu2 %v13224_v9  ;;  %2766 = vmatpush.bf16.msra.mxu0 %v12996_v41 }
 0x158   : > { %v20530_v18 = vpop.f32.mrf.mxu3  ;;  %2750 = vmatpush.bf16.msra.mxu3 %v12876_v48  ;;  %2781 = vmatpush.bf16.msra.mxu1 %v13128_v26 }
 0x159   : > { %v20542_v52 = vpop.f32.mrf.mxu2 }
 0x15a   : > { %v1360_v22 = vpop.f32.mrf.mxu0 }
 0x15b   : > { %v1198_v30 = vpop.f32.mrf.mxu1  ;;  %v1463_v37 = vadd.f32 %v1360_v22, %v1242_v51  ;;  %v1507_v51 = vmax.f32 %v1489_v3, 0.0  ;;  %2800 = vmatpush.bf16.msra.mxu2 %v13212_v27  ;;  %v18637_v3 = vld [vmem:[%s27030_s3 + $0x6e0] sm:$0xf0]  ;;  %2767 = vmatpush.bf16.msra.mxu0 %v12984_v53  ;;  %v18655_v27 = vld [vmem:[%s27030_s3 + $0x770] sm:$0xf0]  ;;  %v1237_v53 = vadd.f32 %v20375_v55, %v20315_v2 }
 0x15c   : > { %v1248_v30 = vadd.f32 %v20377_v60, %v20313_v62  ;;  %v13116_v45 = vor.u32 %v18637_v3, %v13115_v35  ;;  %v13187_v60 = vld [vmem:[%s27030_s3 + $0x768] sm:$0xf]  ;;  %v728_v35 = vadd.f32 %v20271_v16, %v20122_v10  ;;  %v12868_v3 = vor.u32 %v18573_v11, %v12865_v15 }
 0x15d   : > { %v1495_v1 = vadd.f32 %v20522_v39, %v1463_v37  ;;  %v13188_v26 = vor.u32 %v18655_v27, %v13187_v60 }
 0x15e   : > { %2782 = vmatpush.bf16.msra.mxu1 %v13116_v45  ;;  %v18652_v45 = vld [vmem:[%s27030_s3 + $0x758] sm:$0xf0]  ;;  %v1018_v46 = vadd.f32 %v20325_v12, %v728_v35  ;;  %v746_v12 = vadd.f32 %v20262_v23, %v20144_v24  ;;  %v800_v24 = vadd.f32 %v20311_v59, %v20215_v57  ;;  %v18649_v57 = vld [vmem:[%s27030_s3 + $0x740] sm:$0xf0] }
 0x15f   : > { %v1513_v9 = vmax.f32 %v1495_v1, 0.0  ;;  %2801 = vmatpush.bf16.msra.mxu2 %v13200_v25  ;;  %2768 = vmatpush.bf16.msra.mxu0 %v12972_v49  ;;  %v18631_v49 = vld [vmem:[%s27030_s3 + $0x6b0] sm:$0xf0]  ;;  %v18685_v35 = vld [vmem:[%s27030_s3 + $0x860] sm:$0xf0] }
 0x160   : > { %v20585_v22 = vpop.f32.mrf.mxu3 }
 0x161   : > { %v20595_v37 = vpack.c.bf16 %v1513_v9, %v1507_v51  ;;  %v1216_v41 = vpop.f32.mrf.mxu2  ;;  %v13104_v9 = vor.u32 %v18634_v40, %v13103_v58  ;;  %v12853_v58 = vld [vmem:[%s27030_s3 + $0x4d4] sm:$0xf0]  ;;  %v782_v40 = vadd.f32 %v20293_v0, %v20162_v32 }
 0x162   : > { %v1363_v48 = vpop.f32.mrf.mxu0  ;;  %v13175_v41 = vld [vmem:[%s27030_s3 + $0x750] sm:$0xf]  ;;  %v13163_v32 = vld [vmem:[%s27030_s3 + $0x738] sm:$0xf] }
 0x163   : > { %v1469_v7 = vadd.f32 %v1363_v48, %v1248_v30  ;;  %v1376_v13 = vpop.f32.mrf.mxu1  ;;  %v1899_v1 = vshrl.u32 %v20595_v37, 16  ;;  %v1901_v62 = vshll.u32 %v20595_v37, 16  ;;  %2802 = vmatpush.bf16.msra.mxu2 %v13188_v26  ;;  %2783 = vmatpush.bf16.msra.mxu1 %v13104_v9  ;;  %v13176_v47 = vor.u32 %v18652_v45, %v13175_v41  ;;  %v13091_v48 = vld [vmem:[%s27030_s3 + $0x6a8] sm:$0xf]  ;;  %v18570_v26 = vld [vmem:[%s27030_s3 + $0x4cc] sm:$0xf] }
 0x164   : > { %v1458_v55 = vadd.f32 %v1376_v13, %v1237_v53  ;;  %2833 = vmatpush.bf16.msrb.mxu0 %v12868_v3  ;;  %v764_v13 = vadd.f32 %v20291_v29, %v20178_v44  ;;  %v13092_v27 = vor.u32 %v18631_v49, %v13091_v48  ;;  %v1243_v44 = vadd.f32 %v20396_v14, %v1018_v46  ;;  %v13307_v14 = vld [vmem:[%s27030_s3 + $0x858] sm:$0xf]  ;;  %v13079_v3 = vld [vmem:[%s27030_s3 + $0x690] sm:$0xf]  ;;  %v18628_v45 = vld [vmem:[%s27030_s3 + $0x698] sm:$0xf0] }
 0x165   : > { %v1501_v51 = vadd.f32 %v20522_v39, %v1469_v7  ;;  %v20626_v25 = vrot.slane %v1899_v1, 1  ;;  %v20630_v30 = vrot.slane %v1901_v62, 2  ;;  %v20633_v39 = vperm.slane %v20499_v17, 1  ;;  %v18567_v49 = vld [vmem:[%s27030_s3 + $0x4b4] sm:$0xf] }
 0x166   : > { %v1903_v16 = vrot.slane %v1901_v62, 1  ;;  %v12856_v29 = vor.u32 %v18570_v26, %v12853_v58  ;;  %v1019_v53 = vadd.f32 %v20327_v34, %v746_v12  ;;  %v13164_v34 = vor.u32 %v18649_v57, %v13163_v32  ;;  %v12841_v12 = vld [vmem:[%s27030_s3 + $0x4bc] sm:$0xf0]  ;;  %v18621_v32 = vld [vmem:[%s27030_s3 + $0x664] sm:$0xf] }
 0x167   : > { %v1519_v2 = vmax.f32 %v1501_v51, 0.0  ;;  %v1490_v51 = vadd.f32 %v20633_v39, %v1458_v55  ;;  %2803 = vmatpush.bf16.msra.mxu2 %v13176_v47  ;;  %2784 = vmatpush.bf16.msra.mxu1 %v13092_v27  ;;  %v13308_v41 = vor.u32 %v18685_v35, %v13307_v14  ;;  %v13080_v48 = vor.u32 %v18628_v45, %v13079_v3  ;;  %v13057_v57 = vld [vmem:[%s27030_s3 + $0x66c] sm:$0xf0] }
 0x168   : > { %v20642_v10 = vpop.f32.mrf.mxu3  ;;  %v1904_v59 = vor.u32 %v1903_v16, %v1899_v1  ;;  %2834 = vmatpush.bf16.msrb.mxu0 %v12856_v29  ;;  %v20697_v16 = vperm.slane %v20499_v17, 2  ;;  %v1021_v27 = vadd.f32 %v20337_v19, %v782_v40  ;;  %v12844_v29 = vor.u32 %v18567_v49, %v12841_v12  ;;  %v13295_v19 = vld [vmem:[%s27030_s3 + $0x840] sm:$0xf]  ;;  %v18682_v40 = vld [vmem:[%s27030_s3 + $0x848] sm:$0xf0] }
 0x169   : > { %v20656_v62 = vpack.c.bf16 %v1519_v2, %v1519_v2  ;;  %v1394_v60 = vpop.f32.mrf.mxu2  ;;  %2818 = vmatpush.bf16.msrb.mxu3 %v13308_v41  ;;  %v1508_v58 = vmax.f32 %v1490_v51, 0.0  ;;  %v13296_v51 = vor.u32 %v18682_v40, %v13295_v19  ;;  %v1250_v14 = vadd.f32 %v20401_v33, %v20335_v6  ;;  %v13283_v6 = vld [vmem:[%s27030_s3 + $0x828] sm:$0xf]  ;;  %v18618_v12 = vld [vmem:[%s27030_s3 + $0x64c] sm:$0xf] }
 0x16a   : > { %v1365_v23 = vpop.f32.mrf.mxu0  ;;  %v1459_v46 = vadd.f32 %v1394_v60, %v20359_v50  ;;  %v1244_v60 = vadd.f32 %v20379_v61, %v1019_v53  ;;  %v1249_v61 = vadd.f32 %v20432_v28, %v20331_v21  ;;  %v13060_v28 = vor.u32 %v18621_v32, %v13057_v57 }
 0x16b   : > { %v1378_v9 = vpop.f32.mrf.mxu1  ;;  %v1906_v11 = vshll.u32 %v20656_v62, 16  ;;  %v1970_v15 = vshrl.u32 %v20656_v62, 16  ;;  %2804 = vmatpush.bf16.msra.mxu2 %v13164_v34  ;;  %2785 = vmatpush.bf16.msra.mxu1 %v13080_v48  ;;  %v12829_v34 = vld [vmem:[%s27030_s3 + $0x4a4] sm:$0xf0]  ;;  %v1240_v35 = vadd.f32 %v20437_v63, %v20329_v20  ;;  %v18679_v20 = vld [vmem:[%s27030_s3 + $0x830] sm:$0xf0]  ;;  %v1246_v63 = vadd.f32 %v20477_v54, %v1021_v27 }
 0x16c   : > { %v1464_v0 = vadd.f32 %v1378_v9, %v1243_v44  ;;  %v1020_v9 = vadd.f32 %v20339_v4, %v764_v13  ;;  %v13067_v4 = vld [vmem:[%s27030_s3 + $0x678] sm:$0xf]  ;;  %2835 = vmatpush.bf16.msrb.mxu0 %v12844_v29  ;;  %v13284_v49 = vor.u32 %v18679_v20, %v13283_v6  ;;  %v12961_v27 = vld [vmem:[%s27030_s3 + $0x5ac] sm:$0xf0]  ;;  %v18561_v29 = vld [vmem:[%s27030_s3 + $0x484] sm:$0xf]  ;;  %v20785_v19 = vadd.f32 %v20485_v8, %v20345_v38 }
 0x16d   : > { %v20688_v2 = vrot.slane %v1906_v11, 1  ;;  %v5561_v1 = vrot.slane %v1970_v15, 1  ;;  %v5562_v55 = vrot.slane %v1906_v11, 2  ;;  %v20723_v11 = vadd.f32 %v20349_v42, %v800_v24  ;;  %2819 = vmatpush.bf16.msrb.mxu3 %v13296_v51  ;;  %v13271_v8 = vld [vmem:[%s27030_s3 + $0x810] sm:$0xf] }
 0x16e   : > { %v1496_v47 = vadd.f32 %v20633_v39, %v1464_v0  ;;  %v1491_v42 = vadd.f32 %v20697_v16, %v1459_v46  ;;  %v18625_v0 = vld [vmem:[%s27030_s3 + $0x680] sm:$0xf0]  ;;  %v20754_v46 = vperm.slane %v20499_v17, 4  ;;  %v20764_v33 = vadd.f32 %v20445_v31, %v1020_v9  ;;  %v13259_v20 = vld [vmem:[%s27030_s3 + $0x7f8] sm:$0xf] }
 0x16f   : > { %v20709_v26 = vsel %vm417_vm1, %v1904_v59, %v20688_v2  ;;  %v20711_v50 = vor.u32 %v5562_v55, %v5561_v1  ;;  %v18564_v59 = vld [vmem:[%s27030_s3 + $0x49c] sm:$0xf]  ;;  %v13068_v1 = vor.u32 %v18625_v0, %v13067_v4  ;;  %v20788_v40 = vperm.slane %v20499_v17, 3 }
 0x170   : > { %v1514_v44 = vmax.f32 %v1496_v47, 0.0  ;;  %v1234_v23 = vpop.f32.mrf.mxu3  ;;  %2733 = vmatmul.bf16.vlgmr.msrb.gmra.mxu2 %v20709_v26  ;;  %v12832_v55 = vor.u32 %v18564_v59, %v12829_v34  ;;  %v18676_v4 = vld [vmem:[%s27030_s3 + $0x818] sm:$0xf0]  ;;  %v18615_v59 = vld [vmem:[%s27030_s3 + $0x634] sm:$0xf] }
 0x171   : > { %v1396_v53 = vpop.f32.mrf.mxu2  ;;  %2869 = vmatpush.bf16.msrb.mxu2 %v13060_v28  ;;  %2786 = vmatpush.bf16.msra.mxu1 %v13068_v1  ;;  %v13272_v0 = vor.u32 %v18676_v4, %v13271_v8  ;;  %v13033_v34 = vld [vmem:[%s27030_s3 + $0x63c] sm:$0xf0]  ;;  %v12949_v1 = vld [vmem:[%s27030_s3 + $0x594] sm:$0xf0]  ;;  %v18555_v4 = vld [vmem:[%s27030_s3 + $0x454] sm:$0xf] }
 0x172   : > { %v20737_v13 = vpack.c.bf16 %v1514_v44, %v1508_v58  ;;  %v1465_v24 = vadd.f32 %v1396_v53, %v1244_v60  ;;  %v1430_v21 = vpop.f32.mrf.mxu0  ;;  %v13045_v60 = vld [vmem:[%s27030_s3 + $0x654] sm:$0xf0]  ;;  %v18597_v58 = vld [vmem:[%s27030_s3 + $0x5a4] sm:$0xf]  ;;  %v1509_v44 = vmax.f32 %v1491_v42, 0.0  ;;  %2836 = vmatpush.bf16.msrb.mxu0 %v12832_v55  ;;  %2820 = vmatpush.bf16.msrb.mxu3 %v13284_v49  ;;  %v20806_v42 = vadd.f32 %v20530_v18, %v20343_v5 }
 0x173   : > { %v1381_v3 = vpop.f32.mrf.mxu1  ;;  %v1461_v48 = vadd.f32 %v1430_v21, %v1240_v35  ;;  %v13048_v54 = vor.u32 %v18618_v12, %v13045_v60  ;;  %v12964_v9 = vor.u32 %v18597_v58, %v12961_v27  ;;  %v18594_v5 = vld [vmem:[%s27030_s3 + $0x58c] sm:$0xf]  ;;  %v20827_v35 = vor.u32 %v1970_v15, %v20688_v2  ;;  %v12805_v2 = vld [vmem:[%s27030_s3 + $0x474] sm:$0xf0]  ;;  %v18612_v58 = vld [vmem:[%s27030_s3 + $0x61c] sm:$0xf] }
 0x174   : > { %v1497_v41 = vadd.f32 %v20697_v16, %v1465_v24  ;;  %v1470_v45 = vadd.f32 %v1381_v3, %v1249_v61  ;;  %v1913_v47 = vshll.u32 %v20737_v13, 16  ;;  %v12817_v61 = vld [vmem:[%s27030_s3 + $0x48c] sm:$0xf0]  ;;  %v1911_v57 = vshrl.u32 %v20737_v13, 16  ;;  %v18558_v55 = vld [vmem:[%s27030_s3 + $0x46c] sm:$0xf] }
 0x175   : > { %2870 = vmatpush.bf16.msrb.mxu2 %v13048_v54  ;;  %v12820_v38 = vor.u32 %v18561_v29, %v12817_v61  ;;  %v20810_v24 = vadd.f32 %v20542_v52, %v20341_v36  ;;  %v1493_v21 = vadd.f32 %v20754_v46, %v1461_v48  ;;  %2851 = vmatpush.bf16.msrb.mxu1 %v12964_v9  ;;  %v18673_v48 = vld [vmem:[%s27030_s3 + $0x800] sm:$0xf0]  ;;  %v12937_v61 = vld [vmem:[%s27030_s3 + $0x57c] sm:$0xf0] }
 0x176   : > { %v1515_v31 = vmax.f32 %v1497_v41, 0.0  ;;  %v1502_v23 = vadd.f32 %v20633_v39, %v1470_v45  ;;  %v1915_v39 = vrot.slane %v1913_v47, 1  ;;  %2821 = vmatpush.bf16.msrb.mxu3 %v13272_v0  ;;  %v13036_v6 = vor.u32 %v18615_v59, %v13033_v34 }
 0x177   : > { %2837 = vmatpush.bf16.msrb.mxu0 %v12820_v38  ;;  %v12952_v15 = vor.u32 %v18594_v5, %v12949_v1  ;;  %v13260_v54 = vor.u32 %v18673_v48, %v13259_v20  ;;  %v18645_v1 = vld [vmem:[%s27030_s3 + $0x724] sm:$0xf] }
 0x178   : > { %v20795_v53 = vpack.c.bf16 %v1515_v31, %v1509_v44  ;;  %v1520_v51 = vmax.f32 %v1502_v23, 0.0  ;;  %v1412_v32 = vpop.f32.mrf.mxu3  ;;  %v1511_v44 = vmax.f32 %v1493_v21, 0.0  ;;  %v12808_v23 = vor.u32 %v18558_v55, %v12805_v2  ;;  %v12793_v21 = vld [vmem:[%s27030_s3 + $0x45c] sm:$0xf0] }
 0x179   : > { %v1399_v28 = vpop.f32.mrf.mxu2  ;;  %2871 = vmatpush.bf16.msrb.mxu2 %v13036_v6  ;;  %2852 = vmatpush.bf16.msrb.mxu1 %v12952_v15  ;;  %v12796_v5 = vor.u32 %v18555_v4, %v12793_v21  ;;  %v13153_v15 = vld [vmem:[%s27030_s3 + $0x72c] sm:$0xf0]  ;;  %v18642_v4 = vld [vmem:[%s27030_s3 + $0x70c] sm:$0xf]  ;;  %v1247_v21 = vadd.f32 %v20585_v22, %v20723_v11 }
 0x17a   : > { %v20822_v18 = vpack.c.bf16 %v1520_v51, %v1520_v51  ;;  %v1471_v36 = vadd.f32 %v1399_v28, %v1250_v14  ;;  %v1432_v52 = vpop.f32.mrf.mxu0  ;;  %v1925_v3 = vshll.u32 %v20795_v53, 16  ;;  %v1916_v14 = vor.u32 %v1915_v39, %v1911_v57  ;;  %2822 = vmatpush.bf16.msrb.mxu3 %v13260_v54  ;;  %v12913_v22 = vld [vmem:[%s27030_s3 + $0x54c] sm:$0xf0] }
 0x17b   : > { %v1383_v41 = vpop.f32.mrf.mxu1  ;;  %v1467_v45 = vadd.f32 %v1432_v52, %v1246_v63  ;;  %v1460_v63 = vadd.f32 %v1412_v32, %v20412_v43  ;;  %v13021_v43 = vld [vmem:[%s27030_s3 + $0x624] sm:$0xf0]  ;;  %2838 = vmatpush.bf16.msrb.mxu0 %v12808_v23  ;;  %v13009_v52 = vld [vmem:[%s27030_s3 + $0x60c] sm:$0xf0]  ;;  %v20911_v23 = vperm.slane %v20499_v17, 5 }
 0x17c   : > { %v1503_v49 = vadd.f32 %v20697_v16, %v1471_v36  ;;  %v1918_v12 = vshll.u32 %v20822_v18, 16  ;;  %v1973_v60 = vshrl.u32 %v20822_v18, 16  ;;  %v18591_v16 = vld [vmem:[%s27030_s3 + $0x574] sm:$0xf]  ;;  %v1927_v39 = vrot.slane %v1925_v3, 1 }
 0x17d   : > { %v1499_v31 = vadd.f32 %v20754_v46, %v1467_v45  ;;  %v13024_v38 = vor.u32 %v18612_v58, %v13021_v43  ;;  %v12940_v8 = vor.u32 %v18591_v16, %v12937_v61  ;;  %v1492_v28 = vadd.f32 %v20788_v40, %v1460_v63  ;;  %v18609_v36 = vld [vmem:[%s27030_s3 + $0x604] sm:$0xf]  ;;  %v18552_v43 = vld [vmem:[%s27030_s3 + $0x43c] sm:$0xf]  ;;  %v12781_v16 = vld [vmem:[%s27030_s3 + $0x444] sm:$0xf0] }
 0x17e   : > { %v1521_v27 = vmax.f32 %v1503_v49, 0.0  ;;  %v1920_v29 = vrot.slane %v1918_v12, 1  ;;  %v5568_v9 = vrot.slane %v1973_v60, 1  ;;  %v5569_v32 = vrot.slane %v1918_v12, 2  ;;  %v18588_v49 = vld [vmem:[%s27030_s3 + $0x55c] sm:$0xf] }
 0x17f   : > { %v1517_v51 = vmax.f32 %v1499_v31, 0.0  ;;  %v1923_v45 = vshrl.u32 %v20795_v53, 16  ;;  %2872 = vmatpush.bf16.msrb.mxu2 %v13024_v38  ;;  %2853 = vmatpush.bf16.msrb.mxu1 %v12940_v8  ;;  %v13012_v63 = vor.u32 %v18609_v36, %v13009_v52  ;;  %v12925_v12 = vld [vmem:[%s27030_s3 + $0x564] sm:$0xf0]  ;;  %v1510_v61 = vmax.f32 %v1492_v28, 0.0 }
 0x180   : > { %v20875_v0 = vpack.c.bf16 %v1521_v27, %v1521_v27  ;;  %v1414_v59 = vpop.f32.mrf.mxu3  ;;  %2738 = vmatmul.bf16.gmra.mxu2 %v20827_v35  ;;  %v20879_v34 = vsel %vm417_vm1, %v1916_v14, %v1920_v29  ;;  %v20895_v14 = vor.u32 %v5569_v32, %v5568_v9  ;;  %2839 = vmatpush.bf16.msrb.mxu0 %v12796_v5  ;;  %v12997_v8 = vld [vmem:[%s27030_s3 + $0x5f4] sm:$0xf0]  ;;  %v18585_v36 = vld [vmem:[%s27030_s3 + $0x544] sm:$0xf] }
 0x181   : > { %v20890_v55 = vpack.c.bf16 %v1517_v51, %v1511_v44  ;;  %v1466_v41 = vadd.f32 %v1414_v59, %v20764_v33  ;;  %2751 = vmatmul.bf16.vlgmr.msra.gmra.mxu3 %v20879_v34  ;;  %v1401_v6 = vpop.f32.mrf.mxu2  ;;  %v13156_v33 = vor.u32 %v18645_v1, %v13153_v15  ;;  %v1928_v54 = vor.u32 %v1927_v39, %v1923_v45  ;;  %v18606_v39 = vld [vmem:[%s27030_s3 + $0x5ec] sm:$0xf]  ;;  %v13141_v5 = vld [vmem:[%s27030_s3 + $0x714] sm:$0xf0]  ;;  %v18669_v1 = vld [vmem:[%s27030_s3 + $0x7e4] sm:$0xf] }
 0x182   : > { %v1435_v2 = vpop.f32.mrf.mxu0  ;;  %v1930_v20 = vshll.u32 %v20875_v0, 16  ;;  %v1976_v48 = vshrl.u32 %v20875_v0, 16  ;;  %v12928_v38 = vor.u32 %v18588_v49, %v12925_v12 }
 0x183   : > { %27048 = vst [vmem:[#allocation7_spill] sm:$0xff] %v20890_v55  ;;  %v1498_v58 = vadd.f32 %v20788_v40, %v1466_v41  ;;  %v1473_v44 = vadd.f32 %v1435_v2, %v20810_v24  ;;  %v1448_v31 = vpop.f32.mrf.mxu1  ;;  %v1949_v24 = vshll.u32 %v20890_v55, 16  ;;  %2887 = vmatpush.bf16.msra.mxu3 %v13156_v33  ;;  %2873 = vmatpush.bf16.msrb.mxu2 %v13012_v63  ;;  %v13249_v41 = vld [vmem:[%s27030_s3 + $0x7ec] sm:$0xf0]  ;;  %v12985_v33 = vld [vmem:[%s27030_s3 + $0x5dc] sm:$0xf0] }
 0x184   : > { %v20921_v27 = vrot.slane %v1930_v20, 1  ;;  %v5575_v17 = vrot.slane %v1976_v48, 1  ;;  %v5576_v9 = vrot.slane %v1930_v20, 2  ;;  %2854 = vmatpush.bf16.msrb.mxu1 %v12928_v38  ;;  %v13000_v2 = vor.u32 %v18606_v39, %v12997_v8  ;;  %v12901_v39 = vld [vmem:[%s27030_s3 + $0x534] sm:$0xf0] }
 0x185   : > { %v1516_v51 = vmax.f32 %v1498_v58, 0.0  ;;  %v1505_v32 = vadd.f32 %v20754_v46, %v1473_v44  ;;  %v20944_v46 = vor.u32 %v1973_v60, %v1920_v29  ;;  %v1462_v60 = vadd.f32 %v1448_v31, %v20806_v42  ;;  %v18603_v42 = vld [vmem:[%s27030_s3 + $0x5d4] sm:$0xf] }
 0x186   : > { %v20940_v59 = vsel %vm417_vm1, %v1928_v54, %v20921_v27  ;;  %v20946_v28 = vor.u32 %v5576_v9, %v5575_v17  ;;  %v12784_v29 = vor.u32 %v18552_v43, %v12781_v16  ;;  %v1951_v15 = vrot.slane %v1949_v24, 1  ;;  %v18639_v31 = vld [vmem:[%s27030_s3 + $0x6f4] sm:$0xf]  ;;  %v13129_v54 = vld [vmem:[%s27030_s3 + $0x6fc] sm:$0xf0] }
 0x187   : > { %v20957_v11 = vpack.c.bf16 %v1516_v51, %v1510_v61  ;;  %v1523_v52 = vmax.f32 %v1505_v32, 0.0  ;;  %2769 = vmatmul.bf16.vlgmr.msra.gmra.mxu0 %v20940_v59  ;;  %v13144_v20 = vor.u32 %v18642_v4, %v13141_v5  ;;  %v12916_v63 = vor.u32 %v18585_v36, %v12913_v22  ;;  %2874 = vmatpush.bf16.msrb.mxu2 %v13000_v2  ;;  %v18666_v61 = vld [vmem:[%s27030_s3 + $0x7cc] sm:$0xf]  ;;  %v13237_v5 = vld [vmem:[%s27030_s3 + $0x7d4] sm:$0xf0] }
 0x188   : > { %v1417_v6 = vpop.f32.mrf.mxu3  ;;  %v1947_v58 = vshrl.u32 %v20890_v55, 16  ;;  %2840 = vmatpush.bf16.msrb.mxu0 %v12784_v29  ;;  %v13252_v16 = vor.u32 %v18669_v1, %v13249_v41  ;;  %v12988_v17 = vor.u32 %v18603_v42, %v12985_v33  ;;  %v13132_v9 = vor.u32 %v18639_v31, %v13129_v54  ;;  %v18636_v1 = vld [vmem:[%s27030_s3 + $0x6dc] sm:$0xf]  ;;  %v13117_v2 = vld [vmem:[%s27030_s3 + $0x6e4] sm:$0xf0] }
 0x189   : > { %v20975_v49 = vpack.c.bf16 %v1523_v52, %v1523_v52  ;;  %v1472_v12 = vadd.f32 %v1417_v6, %v20785_v19  ;;  %v1937_v44 = vshll.u32 %v20957_v11, 16  ;;  %2888 = vmatpush.bf16.msra.mxu3 %v13144_v20  ;;  %v18582_v19 = vld [vmem:[%s27030_s3 + $0x52c] sm:$0xf]  ;;  %v1494_v51 = vadd.f32 %v20911_v23, %v1462_v60  ;;  %2855 = vmatpush.bf16.msrb.mxu1 %v12916_v63  ;;  %v12973_v60 = vld [vmem:[%s27030_s3 + $0x5c4] sm:$0xf0] }
 0x18a   : > { %v1437_v43 = vpop.f32.mrf.mxu0  ;;  %v1952_v22 = vor.u32 %v1951_v15, %v1947_v58  ;;  %v12904_v52 = vor.u32 %v18582_v19, %v12901_v39  ;;  %v13240_v29 = vor.u32 %v18666_v61, %v13237_v5  ;;  %v13120_v33 = vor.u32 %v18636_v1, %v13117_v2  ;;  %v12889_v31 = vld [vmem:[%s27030_s3 + $0x51c] sm:$0xf0]  ;;  %v18633_v5 = vld [vmem:[%s27030_s3 + $0x6c4] sm:$0xf] }
 0x18b   : > { %v1504_v32 = vadd.f32 %v20788_v40, %v1472_v12  ;;  %v1450_v38 = vpop.f32.mrf.mxu1  ;;  %v1954_v8 = vshll.u32 %v20975_v49, 16  ;;  %v1982_v4 = vshrl.u32 %v20975_v49, 16  ;;  %v18600_v40 = vld [vmem:[%s27030_s3 + $0x5bc] sm:$0xf]  ;;  %v1939_v6 = vrot.slane %v1937_v44, 1  ;;  %2875 = vmatpush.bf16.msrb.mxu2 %v12988_v17 }
 0x18c   : > { %v1468_v36 = vadd.f32 %v1450_v38, %v1247_v21  ;;  %2905 = vmatpush.bf16.msra.mxu0 %v13252_v16  ;;  %v12976_v42 = vor.u32 %v18600_v40, %v12973_v60  ;;  %v18579_v12 = vld [vmem:[%s27030_s3 + $0x514] sm:$0xf]  ;;  %v1935_v16 = vshrl.u32 %v20957_v11, 16  ;;  %v13225_v19 = vld [vmem:[%s27030_s3 + $0x7bc] sm:$0xf0]  ;;  %v1512_v39 = vmax.f32 %v1494_v51, 0.0 }
 0x18d   : > { %v1522_v41 = vmax.f32 %v1504_v32, 0.0  ;;  %v21013_v21 = vrot.slane %v1954_v8, 1  ;;  %v5589_v15 = vrot.slane %v1982_v4, 1  ;;  %v5590_v63 = vrot.slane %v1954_v8, 2  ;;  %2889 = vmatpush.bf16.msra.mxu3 %v13132_v9  ;;  %2856 = vmatpush.bf16.msrb.mxu1 %v12904_v52  ;;  %v18663_v9 = vld [vmem:[%s27030_s3 + $0x7b4] sm:$0xf] }
 0x18e   : > { %v1500_v20 = vadd.f32 %v20911_v23, %v1468_v36  ;;  %v12892_v17 = vor.u32 %v18579_v12, %v12889_v31  ;;  %v13228_v8 = vor.u32 %v18663_v9, %v13225_v19  ;;  %v13105_v36 = vld [vmem:[%s27030_s3 + $0x6cc] sm:$0xf0]  ;;  %v1940_v51 = vor.u32 %v1939_v6, %v1935_v16  ;;  %v12871_v40 = vld [vmem:[%s27030_s3 + $0x4e8] sm:$0xf]  ;;  %v18575_v60 = vld [vmem:[%s27030_s3 + $0x4f0] sm:$0xf0] }
 0x18f   : > { %v21029_v54 = vpack.c.bf16 %v1522_v41, %v1522_v41  ;;  %v21033_v43 = vsel %vm417_vm1, %v1952_v22, %v21013_v21  ;;  %v21043_v38 = vor.u32 %v5590_v63, %v5589_v15  ;;  %v1253_v22 = vadd.f32 %v20642_v10, %v20367_v56  ;;  %2876 = vmatpush.bf16.msrb.mxu2 %v12976_v42  ;;  %v18576_v41 = vld [vmem:[%s27030_s3 + $0x4fc] sm:$0xf]  ;;  %v12877_v6 = vld [vmem:[%s27030_s3 + $0x504] sm:$0xf0]  ;;  %v18630_v19 = vld [vmem:[%s27030_s3 + $0x6ac] sm:$0xf] }
 0x190   : > { %v1518_v61 = vmax.f32 %v1500_v20, 0.0  ;;  %2805 = vmatmul.bf16.vlgmr.msra.gmra.mxu2 %v21033_v43  ;;  %v1419_v32 = vpop.f32.mrf.mxu3  ;;  %2906 = vmatpush.bf16.msra.mxu0 %v13240_v29  ;;  %v13108_v56 = vor.u32 %v18633_v5, %v13105_v36  ;;  %v12872_v10 = vor.u32 %v18575_v60, %v12871_v40  ;;  %v18660_v15 = vld [vmem:[%s27030_s3 + $0x79c] sm:$0xf]  ;;  %v13213_v12 = vld [vmem:[%s27030_s3 + $0x7a4] sm:$0xf0] }
 0x191   : > { %27049 = vst [vmem:[#allocation8_spill] sm:$0xff] %v21029_v54  ;;  %2756 = vmatmul.bf16.gmra.mxu3 %v20944_v46  ;;  %v1942_v52 = vshll.u32 %v21029_v54, 16  ;;  %v1979_v29 = vshrl.u32 %v21029_v54, 16  ;;  %2857 = vmatpush.bf16.msrb.mxu1 %v12892_v17  ;;  %v13216_v9 = vor.u32 %v18660_v15, %v13213_v12  ;;  %v12859_v5 = vld [vmem:[%s27030_s3 + $0x4d0] sm:$0xf] }
 0x192   : > { %v21064_v1 = vpack.c.bf16 %v1518_v61, %v1512_v39  ;;  %2890 = vmatpush.bf16.msra.mxu3 %v13120_v33  ;;  %v12880_v33 = vor.u32 %v18576_v41, %v12877_v6  ;;  %v13093_v39 = vld [vmem:[%s27030_s3 + $0x6b4] sm:$0xf0]  ;;  %v21095_v61 = vor.u32 %v1976_v48, %v20921_v27  ;;  %v18572_v36 = vld [vmem:[%s27030_s3 + $0x4d8] sm:$0xf0]  ;;  %v18657_v27 = vld [vmem:[%s27030_s3 + $0x784] sm:$0xf] }
 0x193   : > { %v1453_v2 = vpop.f32.mrf.mxu1  ;;  %v21075_v20 = vrot.slane %v1942_v52, 1  ;;  %v5582_v63 = vrot.slane %v1979_v29, 1  ;;  %v5583_v42 = vrot.slane %v1942_v52, 2  ;;  %2941 = vmatpush.bf16.msra.mxu2 %v12872_v10  ;;  %v12860_v48 = vor.u32 %v18572_v36, %v12859_v5  ;;  %v13201_v52 = vld [vmem:[%s27030_s3 + $0x78c] sm:$0xf0] }
 0x194   : > { %27050 = vst [vmem:[#allocation9_spill] sm:$0xff] %v21064_v1  ;;  %v1474_v31 = vadd.f32 %v1453_v2, %v1253_v22  ;;  %2907 = vmatpush.bf16.msra.mxu0 %v13228_v8  ;;  %v1961_v32 = vshll.u32 %v21064_v1, 16  ;;  %v13081_v40 = vld [vmem:[%s27030_s3 + $0x69c] sm:$0xf0]  ;;  %v12847_v60 = vld [vmem:[%s27030_s3 + $0x4b8] sm:$0xf]  ;;  %v13204_v10 = vor.u32 %v18657_v27, %v13201_v52 }
 0x195   : > { %v21090_v17 = vsel %vm417_vm1, %v1940_v51, %v21075_v20  ;;  %v21098_v8 = vor.u32 %v5583_v42, %v5582_v63  ;;  %v13096_v51 = vor.u32 %v18630_v19, %v13093_v39  ;;  %2858 = vmatpush.bf16.msrb.mxu1 %v12880_v33  ;;  %v18569_v41 = vld [vmem:[%s27030_s3 + $0x4c0] sm:$0xf0]  ;;  %v18654_v2 = vld [vmem:[%s27030_s3 + $0x76c] sm:$0xf]  ;;  %v13189_v63 = vld [vmem:[%s27030_s3 + $0x774] sm:$0xf0] }
 0x196   : > { %v1506_v22 = vadd.f32 %v20911_v23, %v1474_v31  ;;  %2787 = vmatmul.bf16.vlgmr.msra.gmra.mxu1 %v21090_v17  ;;  %2891 = vmatpush.bf16.msra.mxu3 %v13108_v56  ;;  %v18627_v23 = vld [vmem:[%s27030_s3 + $0x694] sm:$0xf]  ;;  %v1963_v6 = vrot.slane %v1961_v32, 1  ;;  %v12848_v15 = vor.u32 %v18569_v41, %v12847_v60  ;;  %v12835_v12 = vld [vmem:[%s27030_s3 + $0x4a0] sm:$0xf]  ;;  %v1959_v19 = vshrl.u32 %v21064_v1, 16 }
 0x197   : > { %2774 = vmatmul.bf16.gmra.mxu0 %v21095_v61  ;;  %2942 = vmatpush.bf16.msra.mxu2 %v12860_v48  ;;  %v13084_v33 = vor.u32 %v18627_v23, %v13081_v40  ;;  %v18566_v31 = vld [vmem:[%s27030_s3 + $0x4a8] sm:$0xf0]  ;;  %v18624_v39 = vld [vmem:[%s27030_s3 + $0x67c] sm:$0xf]  ;;  %v13069_v5 = vld [vmem:[%s27030_s3 + $0x684] sm:$0xf0]  ;;  %v21155_v48 = vor.u32 %v1982_v4, %v21013_v21 }
 0x198   : > { %v1524_v56 = vmax.f32 %v1506_v22, 0.0  ;;  %2908 = vmatpush.bf16.msra.mxu0 %v13216_v9  ;;  %v1964_v27 = vor.u32 %v1963_v6, %v1959_v19  ;;  %v12836_v52 = vor.u32 %v18566_v31, %v12835_v12  ;;  %v18651_v23 = vld [vmem:[%s27030_s3 + $0x754] sm:$0xf]  ;;  %v13177_v40 = vld [vmem:[%s27030_s3 + $0x75c] sm:$0xf0]  ;;  %v21167_v60 = vrot.slane %v1923_v45, 1 }
 0x199   : > { %v21175_v41 = vrot.slane %v1925_v3, 2  ;;  %v21179_v6 = vrot.slane %v1911_v57, 1  ;;  %v21183_v45 = vrot.slane %v1913_v47, 2  ;;  %v12823_v3 = vld [vmem:[%s27030_s3 + $0x488] sm:$0xf] }
 0x19a   : > { %v21135_v42 = vpack.c.bf16 %v1524_v56, %v1524_v56  ;;  %2892 = vmatpush.bf16.msra.mxu3 %v13096_v51  ;;  %v13192_v51 = vor.u32 %v18654_v2, %v13189_v63  ;;  %v13180_v63 = vor.u32 %v18651_v23, %v13177_v40  ;;  %v18563_v57 = vld [vmem:[%s27030_s3 + $0x490] sm:$0xf0]  ;;  %v12967_v47 = vld [vmem:[%s27030_s3 + $0x5a8] sm:$0xf]  ;;  %v18684_v31 = vld [vmem:[%s27030_s3 + $0x85c] sm:$0xf] }
 0x19b   : > { %v1455_v9 = vpop.f32.mrf.mxu1  ;;  %2943 = vmatpush.bf16.msra.mxu2 %v12848_v15  ;;  %v18599_v12 = vld [vmem:[%s27030_s3 + $0x5b0] sm:$0xf0]  ;;  %v21224_v23 = vrot.slane %v1935_v16, 1  ;;  %v21228_v40 = vrot.slane %v1937_v44, 2  ;;  %v12811_v16 = vld [vmem:[%s27030_s3 + $0x470] sm:$0xf] }
 0x19c   : > { %27051 = vst [vmem:[#allocation10_spill] sm:$0xff] %v21135_v42  ;;  %v1966_v36 = vshll.u32 %v21135_v42, 16  ;;  %v1985_v22 = vshrl.u32 %v21135_v42, 16  ;;  %2909 = vmatpush.bf16.msra.mxu0 %v13204_v10  ;;  %v13072_v10 = vor.u32 %v18624_v39, %v13069_v5  ;;  %v13309_v9 = vld [vmem:[%s27030_s3 + $0x864] sm:$0xf0]  ;;  %v22953_v39 = vrot.slane %v21029_v54, 1 }
 0x19d   : > { %v18560_v44 = vld [vmem:[%s27030_s3 + $0x478] sm:$0xf0] }
 0x19e   : > { %v21169_v56 = vrot.slane %v1966_v36, 1  ;;  %v5596_v4 = vrot.slane %v1985_v22, 1  ;;  %v5597_v21 = vrot.slane %v1966_v36, 2  ;;  %2893 = vmatpush.bf16.msra.mxu3 %v13084_v33  ;;  %v12824_v33 = vor.u32 %v18563_v57, %v12823_v3  ;;  %v13297_v57 = vld [vmem:[%s27030_s3 + $0x84c] sm:$0xf0] }
 0x19f   : > { %2944 = vmatpush.bf16.msra.mxu2 %v12836_v52  ;;  %v12968_v36 = vor.u32 %v18599_v12, %v12967_v47  ;;  %v13165_v52 = vld [vmem:[%s27030_s3 + $0x744] sm:$0xf0] }
 0x1a0   : > { %2810 = vmatmul.bf16.gmra.mxu2 %v21155_v48  ;;  %v21188_v15 = vsel %vm417_vm1, %v1964_v27, %v21169_v56  ;;  %v21190_v2 = vor.u32 %v5597_v21, %v5596_v4  ;;  %2910 = vmatpush.bf16.msra.mxu0 %v13192_v51  ;;  %v13312_v51 = vor.u32 %v18684_v31, %v13309_v9  ;;  %v18648_v27 = vld [vmem:[%s27030_s3 + $0x73c] sm:$0xf]  ;;  %v21232_v4 = vrot.slane %v1947_v58, 1  ;;  %v12955_v58 = vld [vmem:[%s27030_s3 + $0x590] sm:$0xf] }
 0x1a1   : > { %13317 = vmatmul.msk.bf16.vlgmr.msrb.gmra.mxu3 %vm2718_vm5, %v21188_v15  ;;  %v21237_v21 = vor.u32 %v1979_v29, %v21075_v20  ;;  %v12812_v29 = vor.u32 %v18560_v44, %v12811_v16  ;;  %v18596_v20 = vld [vmem:[%s27030_s3 + $0x598] sm:$0xf0]  ;;  %v18623_v31 = vld [vmem:[%s27030_s3 + $0x670] sm:$0xf0]  ;;  %v21268_v9 = vrot.slane %v1949_v24, 2 }
 0x1a2   : > { %2894 = vmatpush.bf16.msra.mxu3 %v13072_v10  ;;  %v13168_v10 = vor.u32 %v18648_v27, %v13165_v52  ;;  %2926 = vmatpush.bf16.msra.mxu1 %v13312_v51  ;;  %v12956_v47 = vor.u32 %v18596_v20, %v12955_v58  ;;  %v12799_v51 = vld [vmem:[%s27030_s3 + $0x458] sm:$0xf]  ;;  %v18557_v27 = vld [vmem:[%s27030_s3 + $0x460] sm:$0xf0]  ;;  %v18678_v16 = vld [vmem:[%s27030_s3 + $0x82c] sm:$0xf] }
 0x1a3   : > { %2945 = vmatpush.bf16.msra.mxu2 %v12824_v33  ;;  %v13063_v33 = vld [vmem:[%s27030_s3 + $0x668] sm:$0xf]  ;;  %v12943_v52 = vld [vmem:[%s27030_s3 + $0x578] sm:$0xf]  ;;  %v18593_v24 = vld [vmem:[%s27030_s3 + $0x580] sm:$0xf0]  ;;  %v12800_v20 = vor.u32 %v18557_v27, %v12799_v51 }
 0x1a4   : > { %2911 = vmatpush.bf16.msra.mxu0 %v13180_v63  ;;  %v18681_v63 = vld [vmem:[%s27030_s3 + $0x844] sm:$0xf]  ;;  %v13285_v44 = vld [vmem:[%s27030_s3 + $0x834] sm:$0xf0]  ;;  %v18590_v51 = vld [vmem:[%s27030_s3 + $0x568] sm:$0xf0] }
 0x1a5   : > { %v13300_v12 = vor.u32 %v18681_v63, %v13297_v57  ;;  %v13288_v63 = vor.u32 %v18678_v16, %v13285_v44  ;;  %v13051_v57 = vld [vmem:[%s27030_s3 + $0x650] sm:$0xf]  ;;  %v18675_v27 = vld [vmem:[%s27030_s3 + $0x814] sm:$0xf]  ;;  %v18617_v16 = vld [vmem:[%s27030_s3 + $0x640] sm:$0xf0] }
 0x1a6   : > { %2959 = vmatpush.bf16.msrb.mxu3 %v12968_v36  ;;  %2792 = vmatmul.bf16.gmra.mxu1 %v21237_v21  ;;  %v13064_v36 = vor.u32 %v18623_v31, %v13063_v33  ;;  %v12787_v33 = vld [vmem:[%s27030_s3 + $0x440] sm:$0xf]  ;;  %v21323_v44 = vrot.slane %v1959_v19, 1  ;;  %v18587_v19 = vld [vmem:[%s27030_s3 + $0x550] sm:$0xf0] }
 0x1a7   : > { %2841 = vmatmul.bf16.vlgmr.msrb.gmra.mxu0 %v20709_v26  ;;  %2946 = vmatpush.bf16.msra.mxu2 %v12812_v29  ;;  %v18554_v29 = vld [vmem:[%s27030_s3 + $0x448] sm:$0xf0] }
 0x1a8   : > { %2912 = vmatpush.bf16.msra.mxu0 %v13168_v10  ;;  %2927 = vmatpush.bf16.msra.mxu1 %v13300_v12  ;;  %v12944_v10 = vor.u32 %v18593_v24, %v12943_v52  ;;  %v12931_v12 = vld [vmem:[%s27030_s3 + $0x560] sm:$0xf]  ;;  %v13039_v52 = vld [vmem:[%s27030_s3 + $0x638] sm:$0xf] }
 0x1a9   : > { %v12932_v24 = vor.u32 %v18590_v51, %v12931_v12  ;;  %v13040_v3 = vor.u32 %v18617_v16, %v13039_v52  ;;  %v21334_v12 = vor.u32 %v1985_v22, %v21169_v56  ;;  %v18671_v56 = vld [vmem:[%s27030_s3 + $0x7f0] sm:$0xf0]  ;;  %v18614_v51 = vld [vmem:[%s27030_s3 + $0x628] sm:$0xf0]  ;;  %v12907_v52 = vld [vmem:[%s27030_s3 + $0x530] sm:$0xf] }
 0x1aa   : > { %2960 = vmatpush.bf16.msrb.mxu3 %v12956_v47  ;;  %v18620_v47 = vld [vmem:[%s27030_s3 + $0x658] sm:$0xf0] }
 0x1ab   : > { %v13052_v31 = vor.u32 %v18620_v47, %v13051_v57  ;;  %v21327_v57 = vrot.slane %v1961_v32, 2  ;;  %2947 = vmatpush.bf16.msra.mxu2 %v12800_v20  ;;  %v12788_v47 = vor.u32 %v18554_v29, %v12787_v33  ;;  %v12919_v32 = vld [vmem:[%s27030_s3 + $0x548] sm:$0xf]  ;;  %v13027_v29 = vld [vmem:[%s27030_s3 + $0x620] sm:$0xf] }
 0x1ac   : > { %2977 = vmatpush.bf16.msrb.mxu0 %v13064_v36  ;;  %v13273_v36 = vld [vmem:[%s27030_s3 + $0x81c] sm:$0xf0]  ;;  %2928 = vmatpush.bf16.msra.mxu1 %v13288_v63  ;;  %v13255_v20 = vld [vmem:[%s27030_s3 + $0x7e8] sm:$0xf]  ;;  %v12920_v22 = vor.u32 %v18587_v19, %v12919_v32  ;;  %v18672_v63 = vld [vmem:[%s27030_s3 + $0x7fc] sm:$0xf] }
 0x1ad   : > { %v13276_v58 = vor.u32 %v18675_v27, %v13273_v36  ;;  %v13261_v33 = vld [vmem:[%s27030_s3 + $0x804] sm:$0xf0]  ;;  %v13028_v36 = vor.u32 %v18614_v51, %v13027_v29  ;;  %v18668_v16 = vld [vmem:[%s27030_s3 + $0x7d8] sm:$0xf0]  ;;  %v18647_v32 = vld [vmem:[%s27030_s3 + $0x730] sm:$0xf0] }
 0x1ae   : > { %2961 = vmatpush.bf16.msrb.mxu3 %v12944_v10  ;;  %v13264_v27 = vor.u32 %v18672_v63, %v13261_v33  ;;  %v12895_v33 = vld [vmem:[%s27030_s3 + $0x518] sm:$0xf]  ;;  %v14197_v10 = vld [vmem:[%s27030_s3 + $0x99c] sm:$0xf0] }
 0x1af   : > { %2948 = vmatpush.bf16.msra.mxu2 %v12788_v47  ;;  %v13159_v47 = vld [vmem:[%s27030_s3 + $0x728] sm:$0xf]  ;;  %v13231_v29 = vld [vmem:[%s27030_s3 + $0x7b8] sm:$0xf] }
 0x1b0   : > { %2978 = vmatpush.bf16.msrb.mxu0 %v13052_v31  ;;  %2877 = vmatmul.bf16.vlgmr.msrb.gmra.mxu2 %v20940_v59  ;;  %v13256_v31 = vor.u32 %v18671_v56, %v13255_v20  ;;  %v13160_v20 = vor.u32 %v18647_v32, %v13159_v47  ;;  %v18611_v56 = vld [vmem:[%s27030_s3 + $0x610] sm:$0xf0]  ;;  %v12883_v47 = vld [vmem:[%s27030_s3 + $0x500] sm:$0xf] }
 0x1b1   : > { %13318 = vmatmul.msk.bf16.gmra.mxu3 %vm2718_vm5, %v21334_v12  ;;  %2929 = vmatpush.bf16.msra.mxu1 %v13276_v58  ;;  %v13243_v58 = vld [vmem:[%s27030_s3 + $0x7d0] sm:$0xf] }
 0x1b2   : > { %2962 = vmatpush.bf16.msrb.mxu3 %v12932_v24  ;;  %v13244_v19 = vor.u32 %v18668_v16, %v13243_v58  ;;  %v18608_v16 = vld [vmem:[%s27030_s3 + $0x5f8] sm:$0xf0] }
 0x1b3   : > { %3013 = vmatpush.bf16.msrb.mxu2 %v13256_v31  ;;  %v18581_v31 = vld [vmem:[%s27030_s3 + $0x520] sm:$0xf0] }
 0x1b4   : > { %2979 = vmatpush.bf16.msrb.mxu0 %v13040_v3  ;;  %v18584_v3 = vld [vmem:[%s27030_s3 + $0x538] sm:$0xf0]  ;;  %v12896_v51 = vor.u32 %v18581_v31, %v12895_v33  ;;  %v12991_v33 = vld [vmem:[%s27030_s3 + $0x5d8] sm:$0xf] }
 0x1b5   : > { %v12908_v24 = vor.u32 %v18584_v3, %v12907_v52  ;;  %2930 = vmatpush.bf16.msra.mxu1 %v13264_v27  ;;  %v18665_v27 = vld [vmem:[%s27030_s3 + $0x7c0] sm:$0xf0]  ;;  %v18644_v52 = vld [vmem:[%s27030_s3 + $0x718] sm:$0xf0] }
 0x1b6   : > { %2963 = vmatpush.bf16.msrb.mxu3 %v12920_v22  ;;  %2859 = vmatmul.bf16.vlgmr.msrb.gmra.mxu1 %v20879_v34  ;;  %v13015_v22 = vld [vmem:[%s27030_s3 + $0x608] sm:$0xf]  ;;  %v13232_v3 = vor.u32 %v18665_v27, %v13231_v29  ;;  %v18605_v29 = vld [vmem:[%s27030_s3 + $0x5e0] sm:$0xf0] }
 0x1b7   : > { %2846 = vmatmul.bf16.gmra.mxu0 %v20827_v35  ;;  %v13016_v63 = vor.u32 %v18611_v56, %v13015_v22  ;;  %3014 = vmatpush.bf16.msrb.mxu2 %v13244_v19  ;;  %v18578_v19 = vld [vmem:[%s27030_s3 + $0x508] sm:$0xf0]  ;;  %v13135_v56 = vld [vmem:[%s27030_s3 + $0x6f8] sm:$0xf] }
 0x1b8   : > { %2980 = vmatpush.bf16.msrb.mxu0 %v13028_v36  ;;  %v13147_v36 = vld [vmem:[%s27030_s3 + $0x710] sm:$0xf]  ;;  %v18662_v22 = vld [vmem:[%s27030_s3 + $0x7a8] sm:$0xf0]  ;;  %v12884_v31 = vor.u32 %v18578_v19, %v12883_v47  ;;  %v12979_v47 = vld [vmem:[%s27030_s3 + $0x5c0] sm:$0xf] }
 0x1b9   : > { %2995 = vmatpush.bf16.msrb.mxu1 %v13160_v20  ;;  %v13148_v58 = vor.u32 %v18644_v52, %v13147_v36  ;;  %v13219_v20 = vld [vmem:[%s27030_s3 + $0x7a0] sm:$0xf]  ;;  %v12992_v52 = vor.u32 %v18605_v29, %v12991_v33  ;;  %v13111_v33 = vld [vmem:[%s27030_s3 + $0x6c8] sm:$0xf] }
 0x1ba   : > { %2964 = vmatpush.bf16.msrb.mxu3 %v12908_v24  ;;  %v13003_v24 = vld [vmem:[%s27030_s3 + $0x5f0] sm:$0xf]  ;;  %v13220_v27 = vor.u32 %v18662_v22, %v13219_v20  ;;  %v13409_v29 = vld [vmem:[%s27030_s3 + $0xa8] sm:$0xf] }
 0x1bb   : > { %v13004_v32 = vor.u32 %v18608_v16, %v13003_v24  ;;  %3015 = vmatpush.bf16.msrb.mxu2 %v13232_v3  ;;  %v13207_v24 = vld [vmem:[%s27030_s3 + $0x788] sm:$0xf]  ;;  %v18638_v16 = vld [vmem:[%s27030_s3 + $0x6e8] sm:$0xf0]  ;;  %v13195_v22 = vld [vmem:[%s27030_s3 + $0x770] sm:$0xf] }
 0x1bc   : > { %2981 = vmatpush.bf16.msrb.mxu0 %v13016_v63  ;;  %v18641_v63 = vld [vmem:[%s27030_s3 + $0x700] sm:$0xf0] }
 0x1bd   : > { %2996 = vmatpush.bf16.msrb.mxu1 %v13148_v58  ;;  %v13136_v36 = vor.u32 %v18641_v63, %v13135_v56  ;;  %v13123_v58 = vld [vmem:[%s27030_s3 + $0x6e0] sm:$0xf]  ;;  %v18656_v56 = vld [vmem:[%s27030_s3 + $0x778] sm:$0xf0] }
 0x1be   : > { %2965 = vmatpush.bf16.msrb.mxu3 %v12896_v51  ;;  %v18659_v51 = vld [vmem:[%s27030_s3 + $0x790] sm:$0xf0]  ;;  %v13124_v19 = vor.u32 %v18638_v16, %v13123_v58  ;;  %v13196_v63 = vor.u32 %v18656_v56, %v13195_v22  ;;  %v18632_v58 = vld [vmem:[%s27030_s3 + $0x6b8] sm:$0xf0]  ;;  %v13397_v16 = vld [vmem:[%s27030_s3 + $0x90] sm:$0xf] }
 0x1bf   : > { %3016 = vmatpush.bf16.msrb.mxu2 %v13220_v27  ;;  %v13208_v3 = vor.u32 %v18659_v51, %v13207_v24  ;;  %v18439_v27 = vld [vmem:[%s27030_s3 + $0xb0] sm:$0xf0]  ;;  %v13183_v24 = vld [vmem:[%s27030_s3 + $0x758] sm:$0xf]  ;;  %v18653_v51 = vld [vmem:[%s27030_s3 + $0x760] sm:$0xf0] }
 0x1c0   : > { %2982 = vmatpush.bf16.msrb.mxu0 %v13004_v32  ;;  %2882 = vmatmul.bf16.gmra.mxu2 %v21095_v61  ;;  %v18602_v32 = vld [vmem:[%s27030_s3 + $0x5c8] sm:$0xf0]  ;;  %v13171_v22 = vld [vmem:[%s27030_s3 + $0x740] sm:$0xf] }
 0x1c1   : > { %2895 = vmatmul.bf16.vlgmr.msra.gmra.mxu3 %v21090_v17  ;;  %2997 = vmatpush.bf16.msrb.mxu1 %v13136_v36  ;;  %v12980_v20 = vor.u32 %v18602_v32, %v12979_v47  ;;  %v18436_v47 = vld [vmem:[%s27030_s3 + $0x98] sm:$0xf0]  ;;  %v13184_v32 = vor.u32 %v18653_v51, %v13183_v24  ;;  %v18650_v56 = vld [vmem:[%s27030_s3 + $0x748] sm:$0xf0]  ;;  %v18629_v24 = vld [vmem:[%s27030_s3 + $0x6a0] sm:$0xf0] }
 0x1c2   : > { %2966 = vmatpush.bf16.msrb.mxu3 %v12884_v31  ;;  %v18635_v31 = vld [vmem:[%s27030_s3 + $0x6d0] sm:$0xf0] }
 0x1c3   : > { %3017 = vmatpush.bf16.msrb.mxu2 %v13208_v3  ;;  %v13112_v36 = vor.u32 %v18635_v31, %v13111_v33  ;;  %v13099_v3 = vld [vmem:[%s27030_s3 + $0x6b0] sm:$0xf]  ;;  %v18686_v33 = vld [vmem:[%s27030_s3 + $0x868] sm:$0xf0] }
 0x1c4   : > { %2983 = vmatpush.bf16.msrb.mxu0 %v12992_v52  ;;  %v13410_v52 = vor.u32 %v18439_v27, %v13409_v29  ;;  %v13385_v29 = vld [vmem:[%s27030_s3 + $0x78] sm:$0xf]  ;;  %v18433_v27 = vld [vmem:[%s27030_s3 + $0x80] sm:$0xf0] }
 0x1c5   : > { %2998 = vmatpush.bf16.msrb.mxu1 %v13124_v19  ;;  %v13398_v19 = vor.u32 %v18436_v47, %v13397_v16  ;;  %v13386_v51 = vor.u32 %v18433_v27, %v13385_v29  ;;  %v18683_v16 = vld [vmem:[%s27030_s3 + $0x850] sm:$0xf0]  ;;  %v13601_v47 = vld [vmem:[%s27030_s3 + $0x228] sm:$0xf]  ;;  %v13291_v29 = vld [vmem:[%s27030_s3 + $0x830] sm:$0xf] }
 0x1c6   : > { %2864 = vmatmul.bf16.gmra.mxu1 %v20944_v46  ;;  %v18680_v27 = vld [vmem:[%s27030_s3 + $0x838] sm:$0xf0] }
 0x1c7   : > { %2913 = vmatmul.bf16.vlgmr.msra.gmra.mxu0 %v21033_v43  ;;  %3018 = vmatpush.bf16.msrb.mxu2 %v13196_v63  ;;  %v13100_v63 = vor.u32 %v18632_v58, %v13099_v3  ;;  %v13303_v58 = vld [vmem:[%s27030_s3 + $0x848] sm:$0xf] }
 0x1c8   : > { %2984 = vmatpush.bf16.msrb.mxu0 %v12980_v20  ;;  %v13315_v20 = vld [vmem:[%s27030_s3 + $0x860] sm:$0xf] }
 0x1c9   : > { %2999 = vmatpush.bf16.msrb.mxu1 %v13112_v36  ;;  %v13316_v31 = vor.u32 %v18686_v33, %v13315_v20  ;;  %v13172_v36 = vor.u32 %v18650_v56, %v13171_v22  ;;  %v18626_v20 = vld [vmem:[%s27030_s3 + $0x688] sm:$0xf0]  ;;  %v13373_v56 = vld [vmem:[%s27030_s3 + $0x60] sm:$0xf] }
 0x1ca   : > { %v18430_v33 = vld [vmem:[%s27030_s3 + $0x68] sm:$0xf0] }
 0x1cb   : > { %3019 = vmatpush.bf16.msrb.mxu2 %v13184_v32  ;;  %3034 = vmatpush.bf16.msra.mxu3 %v13316_v31  ;;  %v13304_v32 = vor.u32 %v18683_v16, %v13303_v58  ;;  %v13374_v31 = vor.u32 %v18430_v33, %v13373_v56  ;;  %v18481_v33 = vld [vmem:[%s27030_s3 + $0x200] sm:$0xf0] }
 0x1cc   : > { %3773 = vmatpush.bf16.msra.mxu0 %v13410_v52  ;;  %v13087_v52 = vld [vmem:[%s27030_s3 + $0x698] sm:$0xf] }
 0x1cd   : > { %3000 = vmatpush.bf16.msrb.mxu1 %v13100_v63  ;;  %v13088_v3 = vor.u32 %v18629_v24, %v13087_v52  ;;  %v13589_v52 = vld [vmem:[%s27030_s3 + $0x210] sm:$0xf]  ;;  %v13292_v24 = vor.u32 %v18680_v27, %v13291_v29 }
 0x1cf   : > { %3020 = vmatpush.bf16.msrb.mxu2 %v13172_v36  ;;  %3035 = vmatpush.bf16.msra.mxu3 %v13304_v32  ;;  %v18484_v36 = vld [vmem:[%s27030_s3 + $0x218] sm:$0xf0]  ;;  %v18427_v32 = vld [vmem:[%s27030_s3 + $0x50] sm:$0xf0] }
 0x1d0   : > { %3774 = vmatpush.bf16.msra.mxu0 %v13398_v19  ;;  %2949 = vmatmul.bf16.vlgmr.msra.gmra.mxu2 %v20709_v26  ;;  %v18487_v26 = vld [vmem:[%s27030_s3 + $0x230] sm:$0xf0]  ;;  %v13075_v19 = vld [vmem:[%s27030_s3 + $0x680] sm:$0xf]  ;;  %v13590_v58 = vor.u32 %v18484_v36, %v13589_v52  ;;  %v13349_v52 = vld [vmem:[%s27030_s3 + $0x30] sm:$0xf] }
 0x1d1   : > { %2900 = vmatmul.bf16.gmra.mxu3 %v21237_v21  ;;  %v13602_v22 = vor.u32 %v18487_v26, %v13601_v47  ;;  %3001 = vmatpush.bf16.msrb.mxu1 %v13088_v3  ;;  %v13076_v63 = vor.u32 %v18626_v20, %v13075_v19  ;;  %v18463_v3 = vld [vmem:[%s27030_s3 + $0x170] sm:$0xf0]  ;;  %v13361_v47 = vld [vmem:[%s27030_s3 + $0x48] sm:$0xf]  ;;  %v13279_v19 = vld [vmem:[%s27030_s3 + $0x818] sm:$0xf] }
 0x1d2   : > { %v13362_v26 = vor.u32 %v18427_v32, %v13361_v47  ;;  %v18677_v20 = vld [vmem:[%s27030_s3 + $0x820] sm:$0xf0]  ;;  %v18478_v47 = vld [vmem:[%s27030_s3 + $0x1e8] sm:$0xf0]  ;;  %v13481_v32 = vld [vmem:[%s27030_s3 + $0x138] sm:$0xf] }
 0x1d3   : > { %3809 = vmatpush.bf16.msra.mxu2 %v13602_v22  ;;  %v13577_v22 = vld [vmem:[%s27030_s3 + $0x1f8] sm:$0xf]  ;;  %3036 = vmatpush.bf16.msra.mxu3 %v13292_v24  ;;  %v13280_v56 = vor.u32 %v18677_v20, %v13279_v19  ;;  %v18424_v24 = vld [vmem:[%s27030_s3 + $0x38] sm:$0xf0] }
 0x1d4   : > { %3775 = vmatpush.bf16.msra.mxu0 %v13386_v51  ;;  %v13505_v51 = vld [vmem:[%s27030_s3 + $0x168] sm:$0xf]  ;;  %v13578_v29 = vor.u32 %v18481_v33, %v13577_v22  ;;  %v13350_v36 = vor.u32 %v18424_v24, %v13349_v52  ;;  %v13337_v20 = vld [vmem:[%s27030_s3 + $0x18] sm:$0xf]  ;;  %v18421_v22 = vld [vmem:[%s27030_s3 + $0x20] sm:$0xf0] }
 0x1d5   : > { %v13506_v16 = vor.u32 %v18463_v3, %v13505_v51  ;;  %3002 = vmatpush.bf16.msrb.mxu1 %v13076_v63  ;;  %v13493_v63 = vld [vmem:[%s27030_s3 + $0x150] sm:$0xf]  ;;  %v13267_v51 = vld [vmem:[%s27030_s3 + $0x800] sm:$0xf]  ;;  %v18674_v3 = vld [vmem:[%s27030_s3 + $0x808] sm:$0xf0]  ;;  %v13338_v33 = vor.u32 %v18421_v22, %v13337_v20 }
 0x1d6   : > { %13319 = vmatmul.msk.bf16.vlgmr.msra.gmra.mxu1 %vm2718_vm5, %v21188_v15  ;;  %v13469_v52 = vld [vmem:[%s27030_s3 + $0x120] sm:$0xf]  ;;  %v18454_v24 = vld [vmem:[%s27030_s3 + $0x128] sm:$0xf0]  ;;  %v13457_v20 = vld [vmem:[%s27030_s3 + $0x108] sm:$0xf] }
 0x1d7   : > { %2918 = vmatmul.bf16.gmra.mxu0 %v21155_v48  ;;  %3810 = vmatpush.bf16.msra.mxu2 %v13590_v58  ;;  %v13565_v58 = vld [vmem:[%s27030_s3 + $0x1e0] sm:$0xf]  ;;  %v18451_v22 = vld [vmem:[%s27030_s3 + $0x110] sm:$0xf0] }
 0x1d8   : > { %3776 = vmatpush.bf16.msra.mxu0 %v13374_v31  ;;  %v18460_v31 = vld [vmem:[%s27030_s3 + $0x158] sm:$0xf0]  ;;  %3037 = vmatpush.bf16.msra.mxu3 %v13280_v56  ;;  %v13566_v19 = vor.u32 %v18478_v47, %v13565_v58 }
 0x1d9   : > { %3791 = vmatpush.bf16.msra.mxu1 %v13506_v16  ;;  %v13494_v27 = vor.u32 %v18460_v31, %v13493_v63  ;;  %v13268_v16 = vor.u32 %v18674_v3, %v13267_v51  ;;  %v13553_v63 = vld [vmem:[%s27030_s3 + $0x1c8] sm:$0xf]  ;;  %v18475_v31 = vld [vmem:[%s27030_s3 + $0x1d0] sm:$0xf0]  ;;  %v18418_v51 = vld [vmem:[%s27030_s3 + $0x8] sm:$0xf0]  ;;  %v13470_v3 = vor.u32 %v18454_v24, %v13469_v52 }
 0x1da   : > { %v18472_v47 = vld [vmem:[%s27030_s3 + $0x1b8] sm:$0xf0]  ;;  %v13673_v52 = vld [vmem:[%s27030_s3 + $0x2b8] sm:$0xf]  ;;  %v13445_v24 = vld [vmem:[%s27030_s3 + $0xf0] sm:$0xf] }
 0x1db   : > { %3811 = vmatpush.bf16.msra.mxu2 %v13578_v29  ;;  %v13697_v29 = vld [vmem:[%s27030_s3 + $0x2e8] sm:$0xf] }
 0x1dc   : > { %3777 = vmatpush.bf16.msra.mxu0 %v13362_v26  ;;  %v18457_v26 = vld [vmem:[%s27030_s3 + $0x140] sm:$0xf0]  ;;  %3038 = vmatpush.bf16.msra.mxu3 %v13268_v16  ;;  %v13541_v16 = vld [vmem:[%s27030_s3 + $0x1b0] sm:$0xf] }
 0x1dd   : > { %3792 = vmatpush.bf16.msra.mxu1 %v13494_v27  ;;  %v13482_v56 = vor.u32 %v18457_v26, %v13481_v32  ;;  %v13554_v27 = vor.u32 %v18475_v31, %v13553_v63  ;;  %v13685_v32 = vld [vmem:[%s27030_s3 + $0x2d0] sm:$0xf]  ;;  %v13542_v26 = vor.u32 %v18472_v47, %v13541_v16  ;;  %v18535_v63 = vld [vmem:[%s27030_s3 + $0x3b0] sm:$0xf0]  ;;  %v13458_v31 = vor.u32 %v18451_v22, %v13457_v20  ;;  %v18502_v22 = vld [vmem:[%s27030_s3 + $0x2a8] sm:$0xf0] }
 0x1df   : > { %3812 = vmatpush.bf16.msra.mxu2 %v13566_v19  ;;  %v18508_v19 = vld [vmem:[%s27030_s3 + $0x2d8] sm:$0xf0] }
 0x1e0   : > { %3778 = vmatpush.bf16.msra.mxu0 %v13350_v36  ;;  %2954 = vmatmul.bf16.gmra.mxu2 %v20827_v35  ;;  %v18511_v35 = vld [vmem:[%s27030_s3 + $0x2f0] sm:$0xf0] }
 0x1e1   : > { %2967 = vmatmul.bf16.vlgmr.msrb.gmra.mxu3 %v20879_v34  ;;  %3793 = vmatpush.bf16.msra.mxu1 %v13482_v56  ;;  %v13698_v36 = vor.u32 %v18511_v35, %v13697_v29  ;;  %v13325_v34 = vld [vmem:[%s27030_s3] sm:$0xf]  ;;  %v13686_v56 = vor.u32 %v18508_v19, %v13685_v32  ;;  %v18469_v35 = vld [vmem:[%s27030_s3 + $0x1a0] sm:$0xf0] }
 0x1e2   : > { %v13326_v58 = vor.u32 %v18418_v51, %v13325_v34  ;;  %v13517_v32 = vld [vmem:[%s27030_s3 + $0x180] sm:$0xf] }
 0x1e3   : > { %3827 = vmatpush.bf16.msrb.mxu3 %v13698_v36  ;;  %3813 = vmatpush.bf16.msra.mxu2 %v13554_v27  ;;  %v13529_v27 = vld [vmem:[%s27030_s3 + $0x198] sm:$0xf]  ;;  %v18448_v36 = vld [vmem:[%s27030_s3 + $0xf8] sm:$0xf0]  ;;  %v13661_v19 = vld [vmem:[%s27030_s3 + $0x2a0] sm:$0xf] }
 0x1e4   : > { %3779 = vmatpush.bf16.msra.mxu0 %v13338_v33  ;;  %v13793_v33 = vld [vmem:[%s27030_s3 + $0x3a8] sm:$0xf]  ;;  %v13530_v34 = vor.u32 %v18469_v35, %v13529_v27  ;;  %v13446_v16 = vor.u32 %v18448_v36, %v13445_v24  ;;  %v18438_v24 = vld [vmem:[%s27030_s3 + $0xac] sm:$0xf] }
 0x1e5   : > { %3794 = vmatpush.bf16.msra.mxu1 %v13470_v3  ;;  %v13794_v29 = vor.u32 %v18535_v63, %v13793_v33  ;;  %v13781_v3 = vld [vmem:[%s27030_s3 + $0x390] sm:$0xf]  ;;  %v18445_v33 = vld [vmem:[%s27030_s3 + $0xe0] sm:$0xf0]  ;;  %v13662_v63 = vor.u32 %v18502_v22, %v13661_v19  ;;  %v18496_v19 = vld [vmem:[%s27030_s3 + $0x278] sm:$0xf0] }
 0x1e6   : > { %13320 = vmatmul.msk.bf16.gmra.mxu1 %vm2718_vm5, %v21334_v12 }
 0x1e7   : > { %2985 = vmatmul.bf16.vlgmr.msrb.gmra.mxu0 %v20940_v59  ;;  %3828 = vmatpush.bf16.msrb.mxu3 %v13686_v56  ;;  %v18505_v59 = vld [vmem:[%s27030_s3 + $0x2c0] sm:$0xf0]  ;;  %v13433_v56 = vld [vmem:[%s27030_s3 + $0xd8] sm:$0xf] }
 0x1e8   : > { %3780 = vmatpush.bf16.msra.mxu0 %v13326_v58  ;;  %3814 = vmatpush.bf16.msra.mxu2 %v13542_v26  ;;  %v13674_v51 = vor.u32 %v18505_v59, %v13673_v52  ;;  %v18532_v58 = vld [vmem:[%s27030_s3 + $0x398] sm:$0xf0]  ;;  %v18466_v26 = vld [vmem:[%s27030_s3 + $0x188] sm:$0xf0]  ;;  %v13434_v27 = vor.u32 %v18445_v33, %v13433_v56  ;;  %v13649_v52 = vld [vmem:[%s27030_s3 + $0x288] sm:$0xf] }
 0x1e9   : > { %3795 = vmatpush.bf16.msra.mxu1 %v13458_v31  ;;  %v13782_v47 = vor.u32 %v18532_v58, %v13781_v3  ;;  %v13518_v20 = vor.u32 %v18466_v26, %v13517_v32  ;;  %v13769_v31 = vld [vmem:[%s27030_s3 + $0x378] sm:$0xf]  ;;  %v18499_v59 = vld [vmem:[%s27030_s3 + $0x290] sm:$0xf0]  ;;  %v18526_v58 = vld [vmem:[%s27030_s3 + $0x368] sm:$0xf0] }
 0x1ea   : > { %v13650_v36 = vor.u32 %v18499_v59, %v13649_v52  ;;  %v13637_v26 = vld [vmem:[%s27030_s3 + $0x270] sm:$0xf]  ;;  %v13399_v56 = vld [vmem:[%s27030_s3 + $0x9c] sm:$0xf0] }
 0x1eb   : > { %3829 = vmatpush.bf16.msrb.mxu3 %v13674_v51  ;;  %v18442_v51 = vld [vmem:[%s27030_s3 + $0xc8] sm:$0xf0]  ;;  %v13638_v22 = vor.u32 %v18496_v19, %v13637_v26  ;;  %v13721_v26 = vld [vmem:[%s27030_s3 + $0x318] sm:$0xf]  ;;  %v18517_v19 = vld [vmem:[%s27030_s3 + $0x320] sm:$0xf0] }
 0x1ec   : > { %3845 = vmatpush.bf16.msrb.mxu0 %v13794_v29  ;;  %3815 = vmatpush.bf16.msra.mxu2 %v13530_v34  ;;  %v18529_v29 = vld [vmem:[%s27030_s3 + $0x380] sm:$0xf0]  ;;  %v13421_v34 = vld [vmem:[%s27030_s3 + $0xc0] sm:$0xf] }
 0x1ed   : > { %3796 = vmatpush.bf16.msra.mxu1 %v13446_v16  ;;  %v13770_v35 = vor.u32 %v18529_v29, %v13769_v31  ;;  %v18523_v31 = vld [vmem:[%s27030_s3 + $0x350] sm:$0xf0] }
 0x1ef   : > { %3830 = vmatpush.bf16.msrb.mxu3 %v13662_v63  ;;  %v13745_v63 = vld [vmem:[%s27030_s3 + $0x348] sm:$0xf] }
 0x1f0   : > { %3846 = vmatpush.bf16.msrb.mxu0 %v13782_v47  ;;  %3021 = vmatmul.bf16.vlgmr.msrb.gmra.mxu2 %v21033_v43  ;;  %v13411_v43 = vld [vmem:[%s27030_s3 + $0xb4] sm:$0xf0]  ;;  %v13422_v47 = vor.u32 %v18442_v51, %v13421_v34  ;;  %v13746_v29 = vor.u32 %v18523_v31, %v13745_v63  ;;  %v13613_v51 = vld [vmem:[%s27030_s3 + $0x240] sm:$0xf] }
 0x1f1   : > { %2972 = vmatmul.bf16.gmra.mxu3 %v20944_v46  ;;  %3816 = vmatpush.bf16.msra.mxu2 %v13518_v20  ;;  %v13414_v3 = vor.u32 %v18438_v24, %v13411_v43  ;;  %v13757_v46 = vld [vmem:[%s27030_s3 + $0x360] sm:$0xf]  ;;  %v18435_v20 = vld [vmem:[%s27030_s3 + $0x94] sm:$0xf]  ;;  %v13733_v24 = vld [vmem:[%s27030_s3 + $0x330] sm:$0xf] }
 0x1f2   : > { %3797 = vmatpush.bf16.msra.mxu1 %v13434_v27  ;;  %v13758_v32 = vor.u32 %v18526_v58, %v13757_v46  ;;  %v13402_v33 = vor.u32 %v18435_v20, %v13399_v56  ;;  %v13625_v27 = vld [vmem:[%s27030_s3 + $0x258] sm:$0xf]  ;;  %v18429_v46 = vld [vmem:[%s27030_s3 + $0x64] sm:$0xf]  ;;  %v13722_v20 = vor.u32 %v18517_v19, %v13721_v26  ;;  %v13853_v31 = vld [vmem:[%s27030_s3 + $0x420] sm:$0xf] }
 0x1f3   : > { %v21747_v16 = vpop.f32.mrf.mxu2  ;;  %3831 = vmatpush.bf16.msrb.mxu3 %v13650_v36  ;;  %v18520_v36 = vld [vmem:[%s27030_s3 + $0x338] sm:$0xf0]  ;;  %v13363_v56 = vld [vmem:[%s27030_s3 + $0x54] sm:$0xf0] }
 0x1f4   : > { %3847 = vmatpush.bf16.msrb.mxu0 %v13770_v35  ;;  %v18432_v35 = vld [vmem:[%s27030_s3 + $0x7c] sm:$0xf]  ;;  %v13734_v34 = vor.u32 %v18520_v36, %v13733_v24  ;;  %v18423_v36 = vld [vmem:[%s27030_s3 + $0x34] sm:$0xf] }
 0x1f5   : > { %3881 = vmatpush.bf16.msrb.mxu2 %v13414_v3  ;;  %v18490_v3 = vld [vmem:[%s27030_s3 + $0x248] sm:$0xf0] }
 0x1f6   : > { %3003 = vmatmul.bf16.vlgmr.msrb.gmra.mxu1 %v21090_v17  ;;  %v18493_v17 = vld [vmem:[%s27030_s3 + $0x260] sm:$0xf0]  ;;  %v13614_v58 = vor.u32 %v18490_v3, %v13613_v51  ;;  %v18459_v51 = vld [vmem:[%s27030_s3 + $0x154] sm:$0xf] }
 0x1f7   : > { %2990 = vmatmul.bf16.gmra.mxu0 %v21095_v61  ;;  %3798 = vmatpush.bf16.msra.mxu1 %v13422_v47  ;;  %v13626_v52 = vor.u32 %v18493_v17, %v13625_v27  ;;  %v13387_v61 = vld [vmem:[%s27030_s3 + $0x84] sm:$0xf0]  ;;  %v13375_v47 = vld [vmem:[%s27030_s3 + $0x6c] sm:$0xf0] }
 0x1f8   : > { %3848 = vmatpush.bf16.msrb.mxu0 %v13758_v32  ;;  %3832 = vmatpush.bf16.msrb.mxu3 %v13638_v22  ;;  %v13390_v59 = vor.u32 %v18432_v35, %v13387_v61  ;;  %v13378_v32 = vor.u32 %v18429_v46, %v13375_v47  ;;  %v18426_v22 = vld [vmem:[%s27030_s3 + $0x4c] sm:$0xf]  ;;  %v13841_v47 = vld [vmem:[%s27030_s3 + $0x408] sm:$0xf] }
 0x1f9   : > { %3882 = vmatpush.bf16.msrb.mxu2 %v13402_v33  ;;  %v18462_v33 = vld [vmem:[%s27030_s3 + $0x16c] sm:$0xf]  ;;  %v13366_v63 = vor.u32 %v18426_v22, %v13363_v56 }
 0x1fa   : > { %v18514_v35 = vld [vmem:[%s27030_s3 + $0x308] sm:$0xf0] }
 0x1fb   : > { %v21787_v43 = vpop.f32.mrf.mxu2 }
 0x1fc   : > { %3849 = vmatpush.bf16.msrb.mxu0 %v13746_v29  ;;  %3833 = vmatpush.bf16.msrb.mxu3 %v13626_v52  ;;  %v18550_v29 = vld [vmem:[%s27030_s3 + $0x428] sm:$0xf0] }
 0x1fd   : > { %3883 = vmatpush.bf16.msrb.mxu2 %v13390_v59  ;;  %v13854_v17 = vor.u32 %v18550_v29, %v13853_v31 }
 0x1ff   : > { %3866 = vmatpush.bf16.msrb.mxu1 %v13854_v17  ;;  %v18544_v17 = vld [vmem:[%s27030_s3 + $0x3f8] sm:$0xf0] }
 0x200   : > { %3850 = vmatpush.bf16.msrb.mxu0 %v13734_v34  ;;  %3026 = vmatmul.bf16.gmra.mxu2 %v21155_v48  ;;  %v13507_v48 = vld [vmem:[%s27030_s3 + $0x174] sm:$0xf0]  ;;  %v13351_v34 = vld [vmem:[%s27030_s3 + $0x3c] sm:$0xf0] }
 0x201   : > { %3834 = vmatpush.bf16.msrb.mxu3 %v13614_v58  ;;  %3884 = vmatpush.bf16.msrb.mxu2 %v13378_v32  ;;  %v13510_v27 = vor.u32 %v18462_v33, %v13507_v48  ;;  %v13354_v46 = vor.u32 %v18423_v36, %v13351_v34  ;;  %v13495_v58 = vld [vmem:[%s27030_s3 + $0x15c] sm:$0xf0]  ;;  %v18547_v32 = vld [vmem:[%s27030_s3 + $0x410] sm:$0xf0]  ;;  %v18420_v33 = vld [vmem:[%s27030_s3 + $0x1c] sm:$0xf] }
 0x202   : > { %13321 = vmatmul.msk.bf16.vlgmr.msra.gmra.mxu3 %vm2718_vm5, %v21188_v15  ;;  %v13709_v15 = vld [vmem:[%s27030_s3 + $0x300] sm:$0xf]  ;;  %v13498_v26 = vor.u32 %v18459_v51, %v13495_v58  ;;  %v13842_v19 = vor.u32 %v18547_v32, %v13841_v47  ;;  %v13483_v48 = vld [vmem:[%s27030_s3 + $0x144] sm:$0xf0]  ;;  %v18417_v51 = vld [vmem:[%s27030_s3 + $0x4] sm:$0xf] }
 0x203   : > { %v21834_v52 = vpop.f32.mrf.mxu2  ;;  %v13710_v61 = vor.u32 %v18514_v35, %v13709_v15  ;;  %v18483_v35 = vld [vmem:[%s27030_s3 + $0x214] sm:$0xf]  ;;  %v13471_v32 = vld [vmem:[%s27030_s3 + $0x12c] sm:$0xf0] }
 0x204   : > { %3851 = vmatpush.bf16.msrb.mxu0 %v13722_v20  ;;  %v2752_v59 = vpop.f32.mrf.mxu3  ;;  %v2770_v24 = vpop.f32.mrf.mxu0  ;;  %v13603_v20 = vld [vmem:[%s27030_s3 + $0x234] sm:$0xf0]  ;;  %3867 = vmatpush.bf16.msrb.mxu1 %v13842_v19  ;;  %v18541_v19 = vld [vmem:[%s27030_s3 + $0x3e0] sm:$0xf0] }
 0x205   : > { %3899 = vmatpush.bf16.msra.mxu3 %v13510_v27  ;;  %v2753_v3 = vadd.f32 %v2752_v59, %v21747_v16  ;;  %3885 = vmatpush.bf16.msrb.mxu2 %v13366_v63  ;;  %v18486_v16 = vld [vmem:[%s27030_s3 + $0x22c] sm:$0xf]  ;;  %v18456_v63 = vld [vmem:[%s27030_s3 + $0x13c] sm:$0xf]  ;;  %v13829_v27 = vld [vmem:[%s27030_s3 + $0x3f0] sm:$0xf] }
 0x206   : > { %3008 = vmatmul.bf16.gmra.mxu1 %v21237_v21  ;;  %v13606_v56 = vor.u32 %v18486_v16, %v13603_v20  ;;  %v13339_v21 = vld [vmem:[%s27030_s3 + $0x24] sm:$0xf0]  ;;  %v13486_v29 = vor.u32 %v18456_v63, %v13483_v48  ;;  %v13830_v15 = vor.u32 %v18544_v17, %v13829_v27  ;;  %v18450_v63 = vld [vmem:[%s27030_s3 + $0x10c] sm:$0xf]  ;;  %v13459_v48 = vld [vmem:[%s27030_s3 + $0x114] sm:$0xf0] }
 0x207   : > { %v2771_v22 = vadd.f32 %v2770_v24, %v2753_v3  ;;  %3781 = vmatmul.bf16.vlgmr.msra.gmra.mxu0 %v20595_v37  ;;  %v13342_v31 = vor.u32 %v18420_v33, %v13339_v21  ;;  %v13327_v3 = vld [vmem:[%s27030_s3 + $0xc] sm:$0xf0]  ;;  %v13795_v27 = vld [vmem:[%s27030_s3 + $0x3b4] sm:$0xf0]  ;;  %v13805_v17 = vld [vmem:[%s27030_s3 + $0x3c0] sm:$0xf] }
 0x208   : > { %3852 = vmatpush.bf16.msrb.mxu0 %v13710_v61  ;;  %v13591_v61 = vld [vmem:[%s27030_s3 + $0x21c] sm:$0xf0]  ;;  %3868 = vmatpush.bf16.msrb.mxu1 %v13830_v15  ;;  %v13330_v47 = vor.u32 %v18417_v51, %v13327_v3  ;;  %v18538_v15 = vld [vmem:[%s27030_s3 + $0x3c8] sm:$0xf0] }
 0x209   : > { %3900 = vmatpush.bf16.msra.mxu3 %v13498_v26  ;;  %3886 = vmatpush.bf16.msrb.mxu2 %v13354_v46  ;;  %v13594_v24 = vor.u32 %v18483_v35, %v13591_v61  ;;  %v18453_v46 = vld [vmem:[%s27030_s3 + $0x124] sm:$0xf]  ;;  %v13817_v26 = vld [vmem:[%s27030_s3 + $0x3d8] sm:$0xf]  ;;  %v13567_v61 = vld [vmem:[%s27030_s3 + $0x1ec] sm:$0xf0] }
 0x20a   : > { %v13474_v16 = vor.u32 %v18453_v46, %v13471_v32  ;;  %v13818_v20 = vor.u32 %v18541_v19, %v13817_v26  ;;  %v18531_v32 = vld [vmem:[%s27030_s3 + $0x394] sm:$0xf] }
 0x20b   : > { %v2741_v59 = vpop.f32.mrf.mxu2 }
 0x20c   : > { %3917 = vmatpush.bf16.msra.mxu0 %v13606_v56  ;;  %v2754_v36 = vpop.f32.mrf.mxu3  ;;  %v2772_v34 = vpop.f32.mrf.mxu0  ;;  %v13579_v56 = vld [vmem:[%s27030_s3 + $0x204] sm:$0xf0]  ;;  %3869 = vmatpush.bf16.msrb.mxu1 %v13818_v20  ;;  %v13699_v20 = vld [vmem:[%s27030_s3 + $0x2f4] sm:$0xf0] }
 0x20d   : > { %3901 = vmatpush.bf16.msra.mxu3 %v13486_v29  ;;  %v2755_v58 = vadd.f32 %v2754_v36, %v21787_v43  ;;  %3887 = vmatpush.bf16.msrb.mxu2 %v13342_v31  ;;  %v18480_v43 = vld [vmem:[%s27030_s3 + $0x1fc] sm:$0xf]  ;;  %v18534_v31 = vld [vmem:[%s27030_s3 + $0x3ac] sm:$0xf]  ;;  %v13462_v29 = vor.u32 %v18450_v63, %v13459_v48  ;;  %v13806_v36 = vor.u32 %v18538_v15, %v13805_v17  ;;  %v13555_v63 = vld [vmem:[%s27030_s3 + $0x1d4] sm:$0xf0] }
 0x20e   : > { %v13582_v21 = vor.u32 %v18480_v43, %v13579_v56  ;;  %v13798_v35 = vor.u32 %v18534_v31, %v13795_v27  ;;  %v13435_v27 = vld [vmem:[%s27030_s3 + $0xe4] sm:$0xf0]  ;;  %v18528_v17 = vld [vmem:[%s27030_s3 + $0x37c] sm:$0xf] }
 0x20f   : > { %v21912_v33 = vadd.f32 %v2772_v34, %v2755_v58  ;;  %v18447_v58 = vld [vmem:[%s27030_s3 + $0xf4] sm:$0xf] }
 0x210   : > { %3918 = vmatpush.bf16.msra.mxu0 %v13594_v24  ;;  %3817 = vmatmul.bf16.vlgmr.msra.gmra.mxu2 %v20795_v53 }
 0x211   : > { %3902 = vmatpush.bf16.msra.mxu3 %v13474_v16  ;;  %3888 = vmatpush.bf16.msrb.mxu2 %v13330_v47  ;;  %v13447_v47 = vld [vmem:[%s27030_s3 + $0xfc] sm:$0xf0]  ;;  %v18510_v16 = vld [vmem:[%s27030_s3 + $0x2ec] sm:$0xf] }
 0x212   : > { %13322 = vmatmul.msk.bf16.gmra.mxu3 %vm2718_vm5, %v21334_v12  ;;  %v18477_v12 = vld [vmem:[%s27030_s3 + $0x1e4] sm:$0xf]  ;;  %v13450_v19 = vor.u32 %v18447_v58, %v13447_v47  ;;  %3870 = vmatpush.bf16.msrb.mxu1 %v13806_v36  ;;  %v18471_v36 = vld [vmem:[%s27030_s3 + $0x1b4] sm:$0xf] }
 0x213   : > { %v2788_v59 = vpop.f32.mrf.mxu1  ;;  %v2806_v24 = vpop.f32.mrf.mxu2  ;;  %v13570_v34 = vor.u32 %v18477_v12, %v13567_v61  ;;  %v18507_v61 = vld [vmem:[%s27030_s3 + $0x2d4] sm:$0xf] }
 0x214   : > { %3919 = vmatpush.bf16.msra.mxu0 %v13582_v21  ;;  %v2789_v51 = vadd.f32 %v2788_v59, %v2771_v22  ;;  %v2757_v3 = vpop.f32.mrf.mxu3  ;;  %v2775_v46 = vpop.f32.mrf.mxu0  ;;  %v13783_v22 = vld [vmem:[%s27030_s3 + $0x39c] sm:$0xf0]  ;;  %v18474_v21 = vld [vmem:[%s27030_s3 + $0x1cc] sm:$0xf] }
 0x215   : > { %3903 = vmatpush.bf16.msra.mxu3 %v13462_v29  ;;  %3953 = vmatpush.bf16.msra.mxu2 %v13798_v35  ;;  %v2758_v26 = vadd.f32 %v2757_v3, %v21834_v52  ;;  %v13786_v56 = vor.u32 %v18531_v32, %v13783_v22  ;;  %v13702_v52 = vor.u32 %v18510_v16, %v13699_v20  ;;  %v18444_v29 = vld [vmem:[%s27030_s3 + $0xdc] sm:$0xf]  ;;  %v13771_v35 = vld [vmem:[%s27030_s3 + $0x384] sm:$0xf0]  ;;  %v13687_v59 = vld [vmem:[%s27030_s3 + $0x2dc] sm:$0xf0] }
 0x216   : > { %v21960_v43 = vadd.f32 %v2806_v24, %v2789_v51  ;;  %3799 = vmatmul.bf16.vlgmr.msra.gmra.mxu1 %v20737_v13  ;;  %v13558_v31 = vor.u32 %v18474_v21, %v13555_v63  ;;  %v13438_v15 = vor.u32 %v18444_v29, %v13435_v27  ;;  %v13774_v12 = vor.u32 %v18528_v17, %v13771_v35  ;;  %v18525_v22 = vld [vmem:[%s27030_s3 + $0x364] sm:$0xf]  ;;  %v18504_v20 = vld [vmem:[%s27030_s3 + $0x2bc] sm:$0xf]  ;;  %v13531_v29 = vld [vmem:[%s27030_s3 + $0x1a4] sm:$0xf0] }
 0x217   : > { %v2776_v48 = vadd.f32 %v2775_v46, %v2758_v26  ;;  %3786 = vmatmul.bf16.gmra.mxu0 %v20656_v62  ;;  %3935 = vmatpush.bf16.msra.mxu1 %v13702_v52  ;;  %v13690_v24 = vor.u32 %v18507_v61, %v13687_v59  ;;  %v18441_v26 = vld [vmem:[%s27030_s3 + $0xc4] sm:$0xf]  ;;  %v18522_v17 = vld [vmem:[%s27030_s3 + $0x34c] sm:$0xf]  ;;  %v13663_v61 = vld [vmem:[%s27030_s3 + $0x2ac] sm:$0xf0] }
 0x218   : > { %3920 = vmatpush.bf16.msra.mxu0 %v13570_v34  ;;  %v13543_v34 = vld [vmem:[%s27030_s3 + $0x1bc] sm:$0xf0]  ;;  %v18465_v59 = vld [vmem:[%s27030_s3 + $0x184] sm:$0xf] }
 0x219   : > { %3904 = vmatpush.bf16.msra.mxu3 %v13450_v19  ;;  %3954 = vmatpush.bf16.msra.mxu2 %v13786_v56  ;;  %v13546_v46 = vor.u32 %v18471_v36, %v13543_v34  ;;  %v13423_v19 = vld [vmem:[%s27030_s3 + $0xcc] sm:$0xf0]  ;;  %v13675_v56 = vld [vmem:[%s27030_s3 + $0x2c4] sm:$0xf0] }
 0x21a   : > { %v13426_v16 = vor.u32 %v18441_v26, %v13423_v19  ;;  %v13678_v63 = vor.u32 %v18504_v20, %v13675_v56  ;;  %v13735_v26 = vld [vmem:[%s27030_s3 + $0x33c] sm:$0xf0]  ;;  %v18440_v20 = vld [vmem:[%s27030_s3 + $0xb8] sm:$0xf0] }
 0x21b   : > { %v2790_v51 = vpop.f32.mrf.mxu1  ;;  %v2808_v3 = vpop.f32.mrf.mxu2  ;;  %3936 = vmatpush.bf16.msra.mxu1 %v13690_v24  ;;  %v13519_v24 = vld [vmem:[%s27030_s3 + $0x18c] sm:$0xf0] }
 0x21c   : > { %3921 = vmatpush.bf16.msra.mxu0 %v13558_v31  ;;  %v2791_v58 = vadd.f32 %v2790_v51, %v21912_v33  ;;  %v2759_v47 = vpop.f32.mrf.mxu3  ;;  %v2777_v32 = vpop.f32.mrf.mxu0  ;;  %v13759_v33 = vld [vmem:[%s27030_s3 + $0x36c] sm:$0xf0]  ;;  %v18468_v31 = vld [vmem:[%s27030_s3 + $0x19c] sm:$0xf] }
 0x21d   : > { %3905 = vmatpush.bf16.msra.mxu3 %v13438_v15  ;;  %3955 = vmatpush.bf16.msra.mxu2 %v13774_v12  ;;  %v13762_v21 = vor.u32 %v18525_v22, %v13759_v33  ;;  %v13534_v27 = vor.u32 %v18468_v31, %v13531_v29  ;;  %v13747_v15 = vld [vmem:[%s27030_s3 + $0x354] sm:$0xf0]  ;;  %v18501_v12 = vld [vmem:[%s27030_s3 + $0x2a4] sm:$0xf]  ;;  %v18519_v32 = vld [vmem:[%s27030_s3 + $0x334] sm:$0xf] }
 0x21e   : > { %v2809_v52 = vadd.f32 %v2808_v3, %v2791_v58  ;;  %v13750_v35 = vor.u32 %v18522_v17, %v13747_v15  ;;  %v13666_v51 = vor.u32 %v18501_v12, %v13663_v61  ;;  %v13522_v3 = vor.u32 %v18465_v59, %v13519_v24  ;;  %v13723_v31 = vld [vmem:[%s27030_s3 + $0x324] sm:$0xf0]  ;;  %v13639_v17 = vld [vmem:[%s27030_s3 + $0x27c] sm:$0xf0]  ;;  %v13405_v15 = vld [vmem:[%s27030_s3 + $0x98] sm:$0xf] }
 0x21f   : > { %3937 = vmatpush.bf16.msra.mxu1 %v13678_v63  ;;  %v13738_v22 = vor.u32 %v18519_v32, %v13735_v26  ;;  %v18516_v63 = vld [vmem:[%s27030_s3 + $0x31c] sm:$0xf]  ;;  %v13855_v26 = vld [vmem:[%s27030_s3 + $0x42c] sm:$0xf0] }
 0x220   : > { %3922 = vmatpush.bf16.msra.mxu0 %v13546_v46  ;;  %3822 = vmatmul.bf16.gmra.mxu2 %v20875_v0  ;;  %v13726_v29 = vor.u32 %v18516_v63, %v13723_v31  ;;  %v13843_v63 = vld [vmem:[%s27030_s3 + $0x414] sm:$0xf0]  ;;  %v13609_v31 = vld [vmem:[%s27030_s3 + $0x230] sm:$0xf] }
 0x221   : > { %3906 = vmatpush.bf16.msra.mxu3 %v13426_v16  ;;  %3956 = vmatpush.bf16.msra.mxu2 %v13762_v21  ;;  %v13651_v16 = vld [vmem:[%s27030_s3 + $0x294] sm:$0xf0] }
 0x222   : > { %3835 = vmatmul.bf16.vlgmr.msrb.gmra.mxu3 %v20957_v11 }
 0x223   : > { %v2793_v36 = vpop.f32.mrf.mxu1  ;;  %v2811_v34 = vpop.f32.mrf.mxu2  ;;  %3938 = vmatpush.bf16.msra.mxu1 %v13666_v51  ;;  %v18513_v51 = vld [vmem:[%s27030_s3 + $0x304] sm:$0xf] }
 0x224   : > { %3923 = vmatpush.bf16.msra.mxu0 %v13534_v27  ;;  %v2794_v46 = vadd.f32 %v2793_v36, %v2776_v48  ;;  %v2824_v58 = vpop.f32.mrf.mxu3  ;;  %v22039_v47 = vpop.f32.mrf.mxu0  ;;  %v18498_v48 = vld [vmem:[%s27030_s3 + $0x28c] sm:$0xf]  ;;  %v18495_v27 = vld [vmem:[%s27030_s3 + $0x274] sm:$0xf] }
 0x225   : > { %v22048_v19 = vadd.f32 %v2824_v58, %v21960_v43  ;;  %3957 = vmatpush.bf16.msra.mxu2 %v13750_v35  ;;  %v13417_v43 = vld [vmem:[%s27030_s3 + $0xb0] sm:$0xf]  ;;  %v13654_v56 = vor.u32 %v18498_v48, %v13651_v16  ;;  %v18437_v35 = vld [vmem:[%s27030_s3 + $0xa0] sm:$0xf0]  ;;  %v13642_v59 = vor.u32 %v18495_v27, %v13639_v17  ;;  %v13627_v48 = vld [vmem:[%s27030_s3 + $0x264] sm:$0xf0] }
 0x226   : > { %v22056_v33 = vadd.f32 %v2811_v34, %v2794_v46  ;;  %3804 = vmatmul.bf16.gmra.mxu1 %v20822_v18  ;;  %v13418_v21 = vor.u32 %v18440_v20, %v13417_v43  ;;  %v13406_v24 = vor.u32 %v18437_v35, %v13405_v15  ;;  %v18549_v46 = vld [vmem:[%s27030_s3 + $0x424] sm:$0xf]  ;;  %v18434_v43 = vld [vmem:[%s27030_s3 + $0x88] sm:$0xf0]  ;;  %v18488_v27 = vld [vmem:[%s27030_s3 + $0x238] sm:$0xf0] }
 0x227   : > { %3853 = vmatmul.bf16.vlgmr.msrb.gmra.mxu0 %v20890_v55  ;;  %3939 = vmatpush.bf16.msra.mxu1 %v13654_v56  ;;  %v13858_v16 = vor.u32 %v18549_v46, %v13855_v26  ;;  %v18489_v17 = vld [vmem:[%s27030_s3 + $0x244] sm:$0xf]  ;;  %v13615_v15 = vld [vmem:[%s27030_s3 + $0x24c] sm:$0xf0]  ;;  %v13610_v35 = vor.u32 %v18488_v27, %v13609_v31  ;;  %v18543_v26 = vld [vmem:[%s27030_s3 + $0x3f4] sm:$0xf] }
 0x228   : > { %3924 = vmatpush.bf16.msra.mxu0 %v13522_v3  ;;  %v13711_v3 = vld [vmem:[%s27030_s3 + $0x30c] sm:$0xf0]  ;;  %v18428_v31 = vld [vmem:[%s27030_s3 + $0x58] sm:$0xf0] }
 0x229   : > { %3958 = vmatpush.bf16.msra.mxu2 %v13738_v22  ;;  %v13714_v32 = vor.u32 %v18513_v51, %v13711_v3  ;;  %v18492_v22 = vld [vmem:[%s27030_s3 + $0x25c] sm:$0xf]  ;;  %3974 = vmatpush.bf16.msrb.mxu3 %v13858_v16 }
 0x22a   : > { %v13630_v20 = vor.u32 %v18492_v22, %v13627_v48  ;;  %v13831_v22 = vld [vmem:[%s27030_s3 + $0x3fc] sm:$0xf0]  ;;  %v13597_v48 = vld [vmem:[%s27030_s3 + $0x218] sm:$0xf]  ;;  %v18540_v27 = vld [vmem:[%s27030_s3 + $0x3dc] sm:$0xf] }
 0x22b   : > { %v2795_v12 = vpop.f32.mrf.mxu1  ;;  %v2813_v61 = vpop.f32.mrf.mxu2  ;;  %3940 = vmatpush.bf16.msra.mxu1 %v13642_v59 }
 0x22c   : > { %3989 = vmatpush.bf16.msrb.mxu0 %v13418_v21  ;;  %v2826_v36 = vpop.f32.mrf.mxu3  ;;  %v22084_v34 = vpop.f32.mrf.mxu0  ;;  %v18546_v21 = vld [vmem:[%s27030_s3 + $0x40c] sm:$0xf]  ;;  %v13381_v12 = vld [vmem:[%s27030_s3 + $0x68] sm:$0xf]  ;;  %v18431_v61 = vld [vmem:[%s27030_s3 + $0x70] sm:$0xf0] }
 0x22d   : > { %v22095_v58 = vadd.f32 %v2826_v36, %v2809_v52  ;;  %3959 = vmatpush.bf16.msra.mxu2 %v13726_v29  ;;  %v13393_v52 = vld [vmem:[%s27030_s3 + $0x80] sm:$0xf]  ;;  %v13846_v29 = vor.u32 %v18546_v21, %v13843_v63  ;;  %v13618_v36 = vor.u32 %v18489_v17, %v13615_v15  ;;  %v13382_v51 = vor.u32 %v18431_v61, %v13381_v12  ;;  %v13369_v63 = vld [vmem:[%s27030_s3 + $0x50] sm:$0xf]  ;;  %v13819_v17 = vld [vmem:[%s27030_s3 + $0x3e4] sm:$0xf0] }
 0x22e   : > { %v13394_v56 = vor.u32 %v18434_v43, %v13393_v52  ;;  %v18485_v52 = vld [vmem:[%s27030_s3 + $0x220] sm:$0xf0]  ;;  %v13513_v43 = vld [vmem:[%s27030_s3 + $0x170] sm:$0xf]  ;;  %v13585_v15 = vld [vmem:[%s27030_s3 + $0x200] sm:$0xf] }
 0x22f   : > { %3941 = vmatpush.bf16.msra.mxu1 %v13630_v20  ;;  %3975 = vmatpush.bf16.msrb.mxu3 %v13846_v29  ;;  %v18464_v20 = vld [vmem:[%s27030_s3 + $0x178] sm:$0xf0]  ;;  %v13370_v29 = vor.u32 %v18428_v31, %v13369_v63  ;;  %v18482_v12 = vld [vmem:[%s27030_s3 + $0x208] sm:$0xf0]  ;;  %v13489_v63 = vld [vmem:[%s27030_s3 + $0x140] sm:$0xf] }
 0x230   : > { %3990 = vmatpush.bf16.msrb.mxu0 %v13406_v24  ;;  %3889 = vmatmul.bf16.vlgmr.msrb.gmra.mxu2 %v20595_v37  ;;  %v13514_v21 = vor.u32 %v18464_v20, %v13513_v43  ;;  %v13586_v61 = vor.u32 %v18482_v12, %v13585_v15  ;;  %v18537_v43 = vld [vmem:[%s27030_s3 + $0x3c4] sm:$0xf]  ;;  %v13807_v20 = vld [vmem:[%s27030_s3 + $0x3cc] sm:$0xf0]  ;;  %v18458_v31 = vld [vmem:[%s27030_s3 + $0x148] sm:$0xf0] }
 0x231   : > { %3960 = vmatpush.bf16.msra.mxu2 %v13714_v32  ;;  %v13345_v15 = vld [vmem:[%s27030_s3 + $0x20] sm:$0xf] }
 0x232   : > { %3840 = vmatmul.bf16.gmra.mxu3 %v21029_v54 }
 0x233   : > { %v2860_v59 = vpop.f32.mrf.mxu1  ;;  %v2878_v24 = vpop.f32.mrf.mxu2  ;;  %3942 = vmatpush.bf16.msra.mxu1 %v13618_v36 }
 0x234   : > { %3991 = vmatpush.bf16.msrb.mxu0 %v13394_v56  ;;  %v2861_v3 = vadd.f32 %v2860_v59, %v22039_v47  ;;  %v2829_v46 = vpop.f32.mrf.mxu3  ;;  %v22139_v32 = vpop.f32.mrf.mxu0  ;;  %v13834_v47 = vor.u32 %v18543_v26, %v13831_v22  ;;  %v13501_v59 = vld [vmem:[%s27030_s3 + $0x158] sm:$0xf] }
 0x235   : > { %4025 = vmatpush.bf16.msrb.mxu2 %v13610_v35  ;;  %v22151_v16 = vadd.f32 %v2829_v46, %v22056_v33  ;;  %v13598_v33 = vor.u32 %v18485_v52, %v13597_v48  ;;  %v13822_v35 = vor.u32 %v18540_v27, %v13819_v17  ;;  %v13490_v17 = vor.u32 %v18458_v31, %v13489_v63  ;;  %v13549_v63 = vld [vmem:[%s27030_s3 + $0x1b8] sm:$0xf]  ;;  %v18473_v31 = vld [vmem:[%s27030_s3 + $0x1c0] sm:$0xf0] }
 0x236   : > { %v22162_v56 = vadd.f32 %v2878_v24, %v2861_v3  ;;  %13863 = vmatmul.msk.bf16.vlgmr.msrb.gmra.mxu1 %vm2718_vm5, %v21064_v1  ;;  %3976 = vmatpush.bf16.msrb.mxu3 %v13834_v47  ;;  %v18461_v24 = vld [vmem:[%s27030_s3 + $0x160] sm:$0xf0] }
 0x237   : > { %3858 = vmatmul.bf16.gmra.mxu0 %v20975_v49  ;;  %4007 = vmatpush.bf16.msrb.mxu1 %v13514_v21  ;;  %v13502_v36 = vor.u32 %v18461_v24, %v13501_v59  ;;  %v18425_v3 = vld [vmem:[%s27030_s3 + $0x40] sm:$0xf0]  ;;  %v13810_v21 = vor.u32 %v18537_v43, %v13807_v20  ;;  %v18476_v59 = vld [vmem:[%s27030_s3 + $0x1d8] sm:$0xf0]  ;;  %v13705_v24 = vld [vmem:[%s27030_s3 + $0x2f0] sm:$0xf] }
 0x238   : > { %3992 = vmatpush.bf16.msrb.mxu0 %v13382_v51  ;;  %v13357_v51 = vld [vmem:[%s27030_s3 + $0x38] sm:$0xf] }
 0x239   : > { %4026 = vmatpush.bf16.msrb.mxu2 %v13598_v33  ;;  %v13358_v22 = vor.u32 %v18425_v3, %v13357_v51  ;;  %v13573_v33 = vld [vmem:[%s27030_s3 + $0x1e8] sm:$0xf]  ;;  %v18512_v51 = vld [vmem:[%s27030_s3 + $0x2f8] sm:$0xf0] }
 0x23a   : > { %3977 = vmatpush.bf16.msrb.mxu3 %v13822_v35  ;;  %v18422_v35 = vld [vmem:[%s27030_s3 + $0x28] sm:$0xf0]  ;;  %v13477_v3 = vld [vmem:[%s27030_s3 + $0x128] sm:$0xf] }
 0x23b   : > { %v2862_v46 = vpop.f32.mrf.mxu1  ;;  %v2880_v26 = vpop.f32.mrf.mxu2  ;;  %4008 = vmatpush.bf16.msrb.mxu1 %v13502_v36  ;;  %v13346_v12 = vor.u32 %v18422_v35, %v13345_v15  ;;  %v13550_v15 = vor.u32 %v18473_v31, %v13549_v63  ;;  %v13465_v35 = vld [vmem:[%s27030_s3 + $0x110] sm:$0xf] }
 0x23c   : > { %3993 = vmatpush.bf16.msrb.mxu0 %v13370_v29  ;;  %v2863_v48 = vadd.f32 %v2862_v46, %v22084_v34  ;;  %v2831_v47 = vpop.f32.mrf.mxu3  ;;  %v2849_v52 = vpop.f32.mrf.mxu0  ;;  %v18479_v34 = vld [vmem:[%s27030_s3 + $0x1f0] sm:$0xf0] }
 0x23d   : > { %4027 = vmatpush.bf16.msrb.mxu2 %v13586_v61  ;;  %v13574_v27 = vor.u32 %v18479_v34, %v13573_v33  ;;  %v13561_v61 = vld [vmem:[%s27030_s3 + $0x1d0] sm:$0xf]  ;;  %v18455_v46 = vld [vmem:[%s27030_s3 + $0x130] sm:$0xf0] }
 0x23e   : > { %v22216_v29 = vadd.f32 %v2880_v26, %v2863_v48  ;;  %3978 = vmatpush.bf16.msrb.mxu3 %v13810_v21  ;;  %v13562_v36 = vor.u32 %v18476_v59, %v13561_v61  ;;  %v13706_v26 = vor.u32 %v18512_v51, %v13705_v24  ;;  %v18419_v48 = vld [vmem:[%s27030_s3 + $0x10] sm:$0xf0]  ;;  %v13478_v43 = vor.u32 %v18455_v46, %v13477_v3  ;;  %v13801_v59 = vld [vmem:[%s27030_s3 + $0x3b0] sm:$0xf]  ;;  %v18536_v24 = vld [vmem:[%s27030_s3 + $0x3b8] sm:$0xf0] }
 0x23f   : > { %4009 = vmatpush.bf16.msrb.mxu1 %v13490_v17  ;;  %v13802_v3 = vor.u32 %v18536_v24, %v13801_v59  ;;  %v13537_v46 = vld [vmem:[%s27030_s3 + $0x1a0] sm:$0xf]  ;;  %v18503_v24 = vld [vmem:[%s27030_s3 + $0x2b0] sm:$0xf0] }
 0x240   : > { %3994 = vmatpush.bf16.msrb.mxu0 %v13358_v22  ;;  %3894 = vmatmul.bf16.gmra.mxu2 %v20656_v62  ;;  %v13333_v22 = vld [vmem:[%s27030_s3 + $0x8] sm:$0xf] }
 0x241   : > { %4028 = vmatpush.bf16.msrb.mxu2 %v13574_v27  ;;  %v13334_v20 = vor.u32 %v18419_v48, %v13333_v22  ;;  %v13693_v27 = vld [vmem:[%s27030_s3 + $0x2d8] sm:$0xf]  ;;  %v13681_v22 = vld [vmem:[%s27030_s3 + $0x2c0] sm:$0xf]  ;;  %v18506_v48 = vld [vmem:[%s27030_s3 + $0x2c8] sm:$0xf0] }
 0x242   : > { %3907 = vmatmul.bf16.vlgmr.msra.gmra.mxu3 %v20737_v13 }
 0x243   : > { %v2865_v47 = vpop.f32.mrf.mxu1  ;;  %v2883_v52 = vpop.f32.mrf.mxu2  ;;  %4043 = vmatpush.bf16.msra.mxu3 %v13706_v26  ;;  %4010 = vmatpush.bf16.msrb.mxu1 %v13478_v43  ;;  %v18470_v26 = vld [vmem:[%s27030_s3 + $0x1a8] sm:$0xf0]  ;;  %v13453_v43 = vld [vmem:[%s27030_s3 + $0xf8] sm:$0xf] }
 0x244   : > { %3995 = vmatpush.bf16.msrb.mxu0 %v13346_v12  ;;  %v2866_v33 = vadd.f32 %v2865_v47, %v22139_v32  ;;  %v2896_v21 = vpop.f32.mrf.mxu3  ;;  %v2914_v34 = vpop.f32.mrf.mxu0  ;;  %v18509_v32 = vld [vmem:[%s27030_s3 + $0x2e0] sm:$0xf0]  ;;  %v18452_v12 = vld [vmem:[%s27030_s3 + $0x118] sm:$0xf0]  ;;  %v13538_v47 = vor.u32 %v18470_v26, %v13537_v46  ;;  %v18530_v26 = vld [vmem:[%s27030_s3 + $0x388] sm:$0xf0] }
 0x245   : > { %v2897_v17 = vadd.f32 %v2896_v21, %v22162_v56  ;;  %4029 = vmatpush.bf16.msrb.mxu2 %v13562_v36  ;;  %v13694_v56 = vor.u32 %v18509_v32, %v13693_v27  ;;  %v13466_v51 = vor.u32 %v18452_v12, %v13465_v35  ;;  %v18533_v21 = vld [vmem:[%s27030_s3 + $0x3a0] sm:$0xf0]  ;;  %v13525_v32 = vld [vmem:[%s27030_s3 + $0x188] sm:$0xf]  ;;  %v18467_v35 = vld [vmem:[%s27030_s3 + $0x190] sm:$0xf0] }
 0x246   : > { %v22270_v61 = vadd.f32 %v2883_v52, %v2866_v33  ;;  %13864 = vmatmul.msk.bf16.gmra.mxu1 %vm2718_vm5, %v21135_v42  ;;  %v13682_v52 = vor.u32 %v18506_v48, %v13681_v22  ;;  %v13789_v33 = vld [vmem:[%s27030_s3 + $0x398] sm:$0xf]  ;;  %v13669_v12 = vld [vmem:[%s27030_s3 + $0x2a8] sm:$0xf]  ;;  %v13526_v59 = vor.u32 %v18467_v35, %v13525_v32 }
 0x247   : > { %v22280_v36 = vadd.f32 %v2914_v34, %v2897_v17  ;;  %3925 = vmatmul.bf16.vlgmr.msra.gmra.mxu0 %v20795_v53  ;;  %4044 = vmatpush.bf16.msra.mxu3 %v13694_v56  ;;  %v13790_v27 = vor.u32 %v18533_v21, %v13789_v33  ;;  %v13670_v46 = vor.u32 %v18503_v24, %v13669_v12  ;;  %v18709_v21 = vld [vmem:[%s27030_s3 + $0x920] sm:$0xf0] }
 0x248   : > { %3996 = vmatpush.bf16.msrb.mxu0 %v13334_v20  ;;  %v18449_v20 = vld [vmem:[%s27030_s3 + $0x100] sm:$0xf0]  ;;  %4011 = vmatpush.bf16.msrb.mxu1 %v13466_v51  ;;  %v13441_v51 = vld [vmem:[%s27030_s3 + $0xe0] sm:$0xf] }
 0x249   : > { %4030 = vmatpush.bf16.msrb.mxu2 %v13550_v15  ;;  %v13454_v31 = vor.u32 %v18449_v20, %v13453_v43  ;;  %v18500_v43 = vld [vmem:[%s27030_s3 + $0x298] sm:$0xf0]  ;;  %v14135_v20 = vld [vmem:[%s27030_s3 + $0x918] sm:$0xf] }
 0x24b   : > { %v2867_v34 = vpop.f32.mrf.mxu1  ;;  %v2885_v63 = vpop.f32.mrf.mxu2  ;;  %4045 = vmatpush.bf16.msra.mxu3 %v13682_v52  ;;  %v13657_v52 = vld [vmem:[%s27030_s3 + $0x290] sm:$0xf] }
 0x24c   : > { %4061 = vmatpush.bf16.msra.mxu0 %v13802_v3  ;;  %v2898_v17 = vpop.f32.mrf.mxu3  ;;  %v2916_v15 = vpop.f32.mrf.mxu0  ;;  %v18446_v3 = vld [vmem:[%s27030_s3 + $0xe8] sm:$0xf0]  ;;  %4012 = vmatpush.bf16.msrb.mxu1 %v13454_v31  ;;  %v13658_v33 = vor.u32 %v18500_v43, %v13657_v52  ;;  %v13429_v34 = vld [vmem:[%s27030_s3 + $0xc8] sm:$0xf]  ;;  %v18443_v63 = vld [vmem:[%s27030_s3 + $0xd0] sm:$0xf0]  ;;  %v14136_v31 = vor.u32 %v18709_v21, %v14135_v20 }
 0x24d   : > { %v2899_v56 = vadd.f32 %v2898_v17, %v22216_v29  ;;  %4031 = vmatpush.bf16.msrb.mxu2 %v13538_v47  ;;  %v13777_v29 = vld [vmem:[%s27030_s3 + $0x380] sm:$0xf]  ;;  %v13442_v48 = vor.u32 %v18446_v3, %v13441_v51  ;;  %v18527_v17 = vld [vmem:[%s27030_s3 + $0x370] sm:$0xf0]  ;;  %v13430_v35 = vor.u32 %v18443_v63, %v13429_v34  ;;  %v13645_v51 = vld [vmem:[%s27030_s3 + $0x278] sm:$0xf] }
 0x24e   : > { %v13778_v47 = vor.u32 %v18530_v26, %v13777_v29  ;;  %v18497_v3 = vld [vmem:[%s27030_s3 + $0x280] sm:$0xf0]  ;;  %v18706_v26 = vld [vmem:[%s27030_s3 + $0x908] sm:$0xf0]  ;;  %v18524_v52 = vld [vmem:[%s27030_s3 + $0x358] sm:$0xf0] }
 0x24f   : > { %v2917_v22 = vadd.f32 %v2916_v15, %v2899_v56  ;;  %4046 = vmatpush.bf16.msra.mxu3 %v13670_v46  ;;  %v14123_v46 = vld [vmem:[%s27030_s3 + $0x900] sm:$0xf]  ;;  %v14111_v21 = vld [vmem:[%s27030_s3 + $0x8e8] sm:$0xf]  ;;  %v18703_v63 = vld [vmem:[%s27030_s3 + $0x8f0] sm:$0xf0] }
 0x250   : > { %4062 = vmatpush.bf16.msra.mxu0 %v13790_v27  ;;  %3961 = vmatmul.bf16.vlgmr.msra.gmra.mxu2 %v20890_v55  ;;  %v13765_v27 = vld [vmem:[%s27030_s3 + $0x368] sm:$0xf]  ;;  %v13633_v20 = vld [vmem:[%s27030_s3 + $0x260] sm:$0xf] }
 0x251   : > { %4032 = vmatpush.bf16.msrb.mxu2 %v13526_v59  ;;  %4013 = vmatpush.bf16.msrb.mxu1 %v13442_v48  ;;  %v13766_v12 = vor.u32 %v18527_v17, %v13765_v27  ;;  %v14124_v48 = vor.u32 %v18706_v26, %v14123_v46  ;;  %v13741_v27 = vld [vmem:[%s27030_s3 + $0x338] sm:$0xf]  ;;  %v18521_v17 = vld [vmem:[%s27030_s3 + $0x340] sm:$0xf0]  ;;  %v18491_v46 = vld [vmem:[%s27030_s3 + $0x250] sm:$0xf0] }
 0x252   : > { %3912 = vmatmul.bf16.gmra.mxu3 %v20822_v18 }
 0x253   : > { %v2932_v15 = vpop.f32.mrf.mxu1  ;;  %v22358_v32 = vpop.f32.mrf.mxu2  ;;  %4047 = vmatpush.bf16.msra.mxu3 %v13658_v33  ;;  %v18494_v33 = vld [vmem:[%s27030_s3 + $0x268] sm:$0xf0] }
 0x254   : > { %4063 = vmatpush.bf16.msra.mxu0 %v13778_v47  ;;  %v22361_v56 = vadd.f32 %v2932_v15, %v22280_v36  ;;  %v2901_v59 = vpop.f32.mrf.mxu3  ;;  %v2919_v24 = vpop.f32.mrf.mxu0  ;;  %v13646_v36 = vor.u32 %v18497_v3, %v13645_v51  ;;  %v13753_v47 = vld [vmem:[%s27030_s3 + $0x350] sm:$0xf]  ;;  %v13634_v34 = vor.u32 %v18494_v33, %v13633_v20  ;;  %v13621_v3 = vld [vmem:[%s27030_s3 + $0x248] sm:$0xf]  ;;  %v18697_v20 = vld [vmem:[%s27030_s3 + $0x8c0] sm:$0xf0] }
 0x255   : > { %5044 = vmatpush.bf16.msra.mxu2 %v14136_v31  ;;  %v2902_v29 = vadd.f32 %v2901_v59, %v22270_v61  ;;  %4014 = vmatpush.bf16.msrb.mxu1 %v13430_v35  ;;  %v13754_v61 = vor.u32 %v18524_v52, %v13753_v47  ;;  %v14112_v31 = vor.u32 %v18703_v63, %v14111_v21  ;;  %v18518_v47 = vld [vmem:[%s27030_s3 + $0x328] sm:$0xf0]  ;;  %v14231_v33 = vld [vmem:[%s27030_s3 + $0x9d8] sm:$0xf]  ;;  %v13861_v63 = vld [vmem:[%s27030_s3 + $0x428] sm:$0xf] }
 0x256   : > { %3943 = vmatmul.bf16.vlgmr.msra.gmra.mxu1 %v20957_v11 }
 0x257   : > { %v2920_v43 = vadd.f32 %v2919_v24, %v2902_v29  ;;  %3930 = vmatmul.bf16.gmra.mxu0 %v20875_v0  ;;  %4048 = vmatpush.bf16.msra.mxu3 %v13646_v36  ;;  %v14099_v29 = vld [vmem:[%s27030_s3 + $0x8d0] sm:$0xf]  ;;  %v13622_v36 = vor.u32 %v18491_v46, %v13621_v3 }
 0x258   : > { %4064 = vmatpush.bf16.msra.mxu0 %v13766_v12  ;;  %v13742_v12 = vor.u32 %v18521_v17, %v13741_v27 }
 0x259   : > { %5045 = vmatpush.bf16.msra.mxu2 %v14124_v48  ;;  %v13729_v48 = vld [vmem:[%s27030_s3 + $0x320] sm:$0xf] }
 0x25a   : > { %v13730_v52 = vor.u32 %v18518_v47, %v13729_v48  ;;  %v14219_v48 = vld [vmem:[%s27030_s3 + $0x9c0] sm:$0xf] }
 0x25b   : > { %v2934_v15 = vpop.f32.mrf.mxu1  ;;  %v22402_v35 = vpop.f32.mrf.mxu2  ;;  %4049 = vmatpush.bf16.msra.mxu3 %v13634_v34  ;;  %v18733_v34 = vld [vmem:[%s27030_s3 + $0x9e0] sm:$0xf0] }
 0x25c   : > { %4065 = vmatpush.bf16.msra.mxu0 %v13754_v61  ;;  %v22404_v59 = vadd.f32 %v2934_v15, %v2917_v22  ;;  %v2903_v24 = vpop.f32.mrf.mxu3  ;;  %v2921_v51 = vpop.f32.mrf.mxu0  ;;  %v18700_v22 = vld [vmem:[%s27030_s3 + $0x8d8] sm:$0xf0]  ;;  %v14087_v61 = vld [vmem:[%s27030_s3 + $0x8b8] sm:$0xf]  ;;  %v14232_v27 = vor.u32 %v18733_v34, %v14231_v33  ;;  %v13717_v15 = vld [vmem:[%s27030_s3 + $0x308] sm:$0xf] }
 0x25d   : > { %5046 = vmatpush.bf16.msra.mxu2 %v14112_v31  ;;  %v14100_v26 = vor.u32 %v18700_v22, %v14099_v29  ;;  %v14088_v21 = vor.u32 %v18697_v20, %v14087_v61  ;;  %v18551_v31 = vld [vmem:[%s27030_s3 + $0x430] sm:$0xf0]  ;;  %v14075_v22 = vld [vmem:[%s27030_s3 + $0x8a0] sm:$0xf]  ;;  %v13849_v61 = vld [vmem:[%s27030_s3 + $0x410] sm:$0xf] }
 0x25e   : > { %v13862_v17 = vor.u32 %v18551_v31, %v13861_v63  ;;  %v18548_v20 = vld [vmem:[%s27030_s3 + $0x418] sm:$0xf0] }
 0x25f   : > { %4050 = vmatpush.bf16.msra.mxu3 %v13622_v36  ;;  %v13850_v34 = vor.u32 %v18548_v20, %v13849_v61 }
 0x260   : > { %4066 = vmatpush.bf16.msra.mxu0 %v13742_v12  ;;  %3966 = vmatmul.bf16.gmra.mxu2 %v20975_v49  ;;  %v18515_v12 = vld [vmem:[%s27030_s3 + $0x310] sm:$0xf0] }
 0x261   : > { %5047 = vmatpush.bf16.msra.mxu2 %v14100_v26  ;;  %v13718_v3 = vor.u32 %v18515_v12, %v13717_v15  ;;  %4082 = vmatpush.bf16.msra.mxu1 %v13862_v17  ;;  %v18694_v26 = vld [vmem:[%s27030_s3 + $0x8a8] sm:$0xf0]  ;;  %v18691_v17 = vld [vmem:[%s27030_s3 + $0x890] sm:$0xf0]  ;;  %v14207_v15 = vld [vmem:[%s27030_s3 + $0x9a8] sm:$0xf] }
 0x262   : > { %13865 = vmatmul.msk.bf16.vlgmr.msrb.gmra.mxu3 %vm2718_vm5, %v21064_v1  ;;  %v18727_v12 = vld [vmem:[%s27030_s3 + $0x9b0] sm:$0xf0] }
 0x263   : > { %v2937_v24 = vpop.f32.mrf.mxu1  ;;  %v22451_v51 = vpop.f32.mrf.mxu2  ;;  %5062 = vmatpush.bf16.msrb.mxu3 %v14232_v27  ;;  %v14063_v27 = vld [vmem:[%s27030_s3 + $0x888] sm:$0xf] }
 0x264   : > { %4067 = vmatpush.bf16.msra.mxu0 %v13730_v52  ;;  %v22453_v46 = vadd.f32 %v2937_v24, %v2920_v43  ;;  %v2968_v29 = vpop.f32.mrf.mxu3  ;;  %v2986_v36 = vpop.f32.mrf.mxu0  ;;  %v14076_v43 = vor.u32 %v18694_v26, %v14075_v22  ;;  %v18730_v52 = vld [vmem:[%s27030_s3 + $0x9c8] sm:$0xf0]  ;;  %v14064_v24 = vor.u32 %v18691_v17, %v14063_v27  ;;  %v14315_v26 = vld [vmem:[%s27030_s3 + $0xa80] sm:$0xf]  ;;  %v18724_v27 = vld [vmem:[%s27030_s3 + $0x998] sm:$0xf0] }
 0x265   : > { %v2969_v47 = vadd.f32 %v2968_v29, %v22358_v32  ;;  %5048 = vmatpush.bf16.msra.mxu2 %v14088_v21  ;;  %v14220_v33 = vor.u32 %v18730_v52, %v14219_v48  ;;  %v14327_v32 = vld [vmem:[%s27030_s3 + $0xa98] sm:$0xf]  ;;  %v18757_v21 = vld [vmem:[%s27030_s3 + $0xaa0] sm:$0xf0]  ;;  %4083 = vmatpush.bf16.msra.mxu1 %v13850_v34  ;;  %v18754_v48 = vld [vmem:[%s27030_s3 + $0xa88] sm:$0xf0] }
 0x266   : > { %3948 = vmatmul.bf16.gmra.mxu1 %v21029_v54  ;;  %v14328_v31 = vor.u32 %v18757_v21, %v14327_v32  ;;  %v13837_v29 = vld [vmem:[%s27030_s3 + $0x3f8] sm:$0xf]  ;;  %v14316_v52 = vor.u32 %v18754_v48, %v14315_v26  ;;  %v18688_v34 = vld [vmem:[%s27030_s3 + $0x878] sm:$0xf0]  ;;  %v14195_v32 = vld [vmem:[%s27030_s3 + $0x990] sm:$0xf] }
 0x267   : > { %v2987_v63 = vadd.f32 %v2986_v36, %v2969_v47  ;;  %3997 = vmatmul.bf16.vlgmr.msrb.gmra.mxu0 %v20595_v37  ;;  %5063 = vmatpush.bf16.msrb.mxu3 %v14220_v33  ;;  %v18545_v36 = vld [vmem:[%s27030_s3 + $0x400] sm:$0xf0]  ;;  %v14051_v33 = vld [vmem:[%s27030_s3 + $0x870] sm:$0xf]  ;;  %v13825_v17 = vld [vmem:[%s27030_s3 + $0x3e0] sm:$0xf] }
 0x268   : > { %4068 = vmatpush.bf16.msra.mxu0 %v13718_v3  ;;  %v14208_v3 = vor.u32 %v18727_v12, %v14207_v15  ;;  %v13838_v22 = vor.u32 %v18545_v36, %v13837_v29  ;;  %v18542_v15 = vld [vmem:[%s27030_s3 + $0x3e8] sm:$0xf0]  ;;  %v14196_v12 = vor.u32 %v18724_v27, %v14195_v32  ;;  %v18721_v26 = vld [vmem:[%s27030_s3 + $0x980] sm:$0xf0]  ;;  %v14519_v48 = vld [vmem:[%s27030_s3 + $0xc18] sm:$0xf] }
 0x269   : > { %5049 = vmatpush.bf16.msra.mxu2 %v14076_v43 }
 0x26a   : > { %4084 = vmatpush.bf16.msra.mxu1 %v13838_v22  ;;  %v14183_v22 = vld [vmem:[%s27030_s3 + $0x978] sm:$0xf] }
 0x26b   : > { %v2939_v47 = vpop.f32.mrf.mxu1  ;;  %v2957_v43 = vpop.f32.mrf.mxu2  ;;  %5064 = vmatpush.bf16.msrb.mxu3 %v14208_v3  ;;  %v13826_v3 = vor.u32 %v18542_v15, %v13825_v17 }
 0x26c   : > { %5080 = vmatpush.bf16.msrb.mxu0 %v14328_v31  ;;  %v2970_v61 = vpop.f32.mrf.mxu3  ;;  %v2988_v20 = vpop.f32.mrf.mxu0  ;;  %v14052_v31 = vor.u32 %v18688_v34, %v14051_v33  ;;  %v14184_v47 = vor.u32 %v18721_v26, %v14183_v22  ;;  %v18805_v43 = vld [vmem:[%s27030_s3 + $0xc20] sm:$0xf0]  ;;  %v14423_v26 = vld [vmem:[%s27030_s3 + $0xb58] sm:$0xf] }
 0x26d   : > { %v2971_v21 = vadd.f32 %v2970_v61, %v22402_v35  ;;  %5050 = vmatpush.bf16.msra.mxu2 %v14064_v24  ;;  %v14303_v35 = vld [vmem:[%s27030_s3 + $0xa68] sm:$0xf]  ;;  %v18751_v24 = vld [vmem:[%s27030_s3 + $0xa70] sm:$0xf0]  ;;  %v14520_v34 = vor.u32 %v18805_v43, %v14519_v48  ;;  %v18781_v48 = vld [vmem:[%s27030_s3 + $0xb60] sm:$0xf0] }
 0x26e   : > { %v14304_v36 = vor.u32 %v18751_v24, %v14303_v35  ;;  %4085 = vmatpush.bf16.msra.mxu1 %v13826_v3  ;;  %v18539_v61 = vld [vmem:[%s27030_s3 + $0x3d0] sm:$0xf0]  ;;  %v14171_v35 = vld [vmem:[%s27030_s3 + $0x960] sm:$0xf]  ;;  %v18718_v24 = vld [vmem:[%s27030_s3 + $0x968] sm:$0xf0] }
 0x26f   : > { %v22531_v29 = vadd.f32 %v2988_v20, %v2971_v21  ;;  %5065 = vmatpush.bf16.msrb.mxu3 %v14196_v12  ;;  %v14291_v21 = vld [vmem:[%s27030_s3 + $0xa50] sm:$0xf]  ;;  %v14172_v22 = vor.u32 %v18718_v24, %v14171_v35 }
 0x270   : > { %5081 = vmatpush.bf16.msrb.mxu0 %v14316_v52  ;;  %4033 = vmatmul.bf16.vlgmr.msrb.gmra.mxu2 %v20795_v53  ;;  %v13813_v52 = vld [vmem:[%s27030_s3 + $0x3c8] sm:$0xf] }
 0x271   : > { %5051 = vmatpush.bf16.msra.mxu2 %v14052_v31  ;;  %v13814_v32 = vor.u32 %v18539_v61, %v13813_v52  ;;  %v18748_v31 = vld [vmem:[%s27030_s3 + $0xa58] sm:$0xf0]  ;;  %v14424_v52 = vor.u32 %v18781_v48, %v14423_v26  ;;  %v14279_v61 = vld [vmem:[%s27030_s3 + $0xa38] sm:$0xf] }
 0x272   : > { %13866 = vmatmul.msk.bf16.gmra.mxu3 %vm2718_vm5, %v21135_v42  ;;  %v14292_v12 = vor.u32 %v18748_v31, %v14291_v21  ;;  %v14495_v21 = vld [vmem:[%s27030_s3 + $0xbe8] sm:$0xf]  ;;  %v18799_v31 = vld [vmem:[%s27030_s3 + $0xbf0] sm:$0xf0] }
 0x273   : > { %v3004_v20 = vpop.f32.mrf.mxu1  ;;  %v3022_v33 = vpop.f32.mrf.mxu2  ;;  %5066 = vmatpush.bf16.msrb.mxu3 %v14184_v47  ;;  %4086 = vmatpush.bf16.msra.mxu1 %v13814_v32  ;;  %v18715_v32 = vld [vmem:[%s27030_s3 + $0x950] sm:$0xf0] }
 0x274   : > { %5082 = vmatpush.bf16.msrb.mxu0 %v14304_v36  ;;  %v3005_v27 = vadd.f32 %v3004_v20, %v2987_v63  ;;  %v2973_v17 = vpop.f32.mrf.mxu3  ;;  %v2991_v15 = vpop.f32.mrf.mxu0  ;;  %v14507_v36 = vld [vmem:[%s27030_s3 + $0xc00] sm:$0xf]  ;;  %v18745_v20 = vld [vmem:[%s27030_s3 + $0xa40] sm:$0xf0] }
 0x275   : > { %v2974_v3 = vadd.f32 %v2973_v17, %v22451_v51  ;;  %5116 = vmatpush.bf16.msrb.mxu2 %v14520_v34  ;;  %v18802_v51 = vld [vmem:[%s27030_s3 + $0xc08] sm:$0xf0]  ;;  %v14280_v34 = vor.u32 %v18745_v20, %v14279_v61  ;;  %v14496_v17 = vor.u32 %v18799_v31, %v14495_v21  ;;  %v18712_v61 = vld [vmem:[%s27030_s3 + $0x938] sm:$0xf0]  ;;  %v14483_v20 = vld [vmem:[%s27030_s3 + $0xbd0] sm:$0xf] }
 0x276   : > { %v22570_v63 = vadd.f32 %v3022_v33, %v3005_v27  ;;  %4015 = vmatmul.bf16.vlgmr.msrb.gmra.mxu1 %v20737_v13  ;;  %v14508_v43 = vor.u32 %v18802_v51, %v14507_v36  ;;  %v14159_v33 = vld [vmem:[%s27030_s3 + $0x948] sm:$0xf]  ;;  %v14267_v36 = vld [vmem:[%s27030_s3 + $0xa20] sm:$0xf]  ;;  %v18775_v21 = vld [vmem:[%s27030_s3 + $0xb30] sm:$0xf0] }
 0x277   : > { %v2992_v47 = vadd.f32 %v2991_v15, %v2974_v3  ;;  %4002 = vmatmul.bf16.gmra.mxu0 %v20656_v62  ;;  %5067 = vmatpush.bf16.msrb.mxu3 %v14172_v22  ;;  %v14160_v27 = vor.u32 %v18715_v32, %v14159_v33  ;;  %v14411_v15 = vld [vmem:[%s27030_s3 + $0xb40] sm:$0xf]  ;;  %v18742_v22 = vld [vmem:[%s27030_s3 + $0xa28] sm:$0xf0]  ;;  %v14399_v32 = vld [vmem:[%s27030_s3 + $0xb28] sm:$0xf] }
 0x278   : > { %5083 = vmatpush.bf16.msrb.mxu0 %v14292_v12  ;;  %5098 = vmatpush.bf16.msrb.mxu1 %v14424_v52  ;;  %v18778_v12 = vld [vmem:[%s27030_s3 + $0xb48] sm:$0xf0]  ;;  %v14147_v52 = vld [vmem:[%s27030_s3 + $0x930] sm:$0xf] }
 0x279   : > { %5117 = vmatpush.bf16.msrb.mxu2 %v14508_v43  ;;  %v14412_v24 = vor.u32 %v18778_v12, %v14411_v15  ;;  %v14268_v43 = vor.u32 %v18742_v22, %v14267_v36  ;;  %v18739_v15 = vld [vmem:[%s27030_s3 + $0xa10] sm:$0xf0] }
 0x27b   : > { %v3006_v3 = vpop.f32.mrf.mxu1  ;;  %v3024_v35 = vpop.f32.mrf.mxu2  ;;  %5068 = vmatpush.bf16.msrb.mxu3 %v14160_v27  ;;  %v14400_v27 = vor.u32 %v18775_v21, %v14399_v32  ;;  %v18790_v21 = vld [vmem:[%s27030_s3 + $0xba8] sm:$0xf0] }
 0x27c   : > { %5084 = vmatpush.bf16.msrb.mxu0 %v14280_v34  ;;  %v3007_v51 = vadd.f32 %v3006_v3, %v22531_v29  ;;  %v2975_v26 = vpop.f32.mrf.mxu3  ;;  %v2993_v48 = vpop.f32.mrf.mxu0  ;;  %5099 = vmatpush.bf16.msrb.mxu1 %v14412_v24  ;;  %v14148_v29 = vor.u32 %v18712_v61, %v14147_v52  ;;  %v18796_v34 = vld [vmem:[%s27030_s3 + $0xbd8] sm:$0xf0]  ;;  %v14471_v3 = vld [vmem:[%s27030_s3 + $0xbb8] sm:$0xf] }
 0x27d   : > { %5118 = vmatpush.bf16.msrb.mxu2 %v14496_v17  ;;  %v14484_v31 = vor.u32 %v18796_v34, %v14483_v20  ;;  %v14255_v17 = vld [vmem:[%s27030_s3 + $0xa08] sm:$0xf]  ;;  %v18772_v52 = vld [vmem:[%s27030_s3 + $0xb18] sm:$0xf0] }
 0x27e   : > { %v3025_v33 = vadd.f32 %v3024_v35, %v3007_v51  ;;  %v14256_v12 = vor.u32 %v18739_v15, %v14255_v17  ;;  %v18793_v35 = vld [vmem:[%s27030_s3 + $0xbc0] sm:$0xf0] }
 0x27f   : > { %5069 = vmatpush.bf16.msrb.mxu3 %v14148_v29  ;;  %v14472_v24 = vor.u32 %v18793_v35, %v14471_v3  ;;  %v14137_v3 = vld [vmem:[%s27030_s3 + $0x924] sm:$0xf0] }
 0x280   : > { %5085 = vmatpush.bf16.msrb.mxu0 %v14268_v43  ;;  %4038 = vmatmul.bf16.gmra.mxu2 %v20875_v0  ;;  %v14387_v43 = vld [vmem:[%s27030_s3 + $0xb10] sm:$0xf]  ;;  %v14447_v35 = vld [vmem:[%s27030_s3 + $0xb88] sm:$0xf] }
 0x281   : > { %5119 = vmatpush.bf16.msrb.mxu2 %v14484_v31  ;;  %5100 = vmatpush.bf16.msrb.mxu1 %v14400_v27  ;;  %v14388_v29 = vor.u32 %v18772_v52, %v14387_v43  ;;  %v14375_v31 = vld [vmem:[%s27030_s3 + $0xaf8] sm:$0xf]  ;;  %v18769_v27 = vld [vmem:[%s27030_s3 + $0xb00] sm:$0xf0]  ;;  %v14363_v43 = vld [vmem:[%s27030_s3 + $0xae0] sm:$0xf] }
 0x282   : > { %4051 = vmatmul.bf16.vlgmr.msra.gmra.mxu3 %v20957_v11  ;;  %v14376_v15 = vor.u32 %v18769_v27, %v14375_v31  ;;  %v18766_v52 = vld [vmem:[%s27030_s3 + $0xae8] sm:$0xf0]  ;;  %v18705_v27 = vld [vmem:[%s27030_s3 + $0x904] sm:$0xf] }
 0x283   : > { %v3009_v36 = vpop.f32.mrf.mxu1  ;;  %v3027_v22 = vpop.f32.mrf.mxu2 }
 0x284   : > { %5086 = vmatpush.bf16.msrb.mxu0 %v14256_v12  ;;  %v3010_v51 = vadd.f32 %v3009_v36, %v2992_v47  ;;  %v3782_v48 = vpop.f32.mrf.mxu0  ;;  %v14243_v47 = vld [vmem:[%s27030_s3 + $0x9f0] sm:$0xf]  ;;  %v18708_v12 = vld [vmem:[%s27030_s3 + $0x91c] sm:$0xf]  ;;  %v18787_v36 = vld [vmem:[%s27030_s3 + $0xb90] sm:$0xf0] }
 0x285   : > { %v3040_v26 = vpop.f32.mrf.mxu3  ;;  %v22656_v20 = vadd.f32 %v3782_v48, %v22048_v19  ;;  %5120 = vmatpush.bf16.msrb.mxu2 %v14472_v24  ;;  %5101 = vmatpush.bf16.msrb.mxu1 %v14388_v29  ;;  %v14459_v19 = vld [vmem:[%s27030_s3 + $0xba0] sm:$0xf]  ;;  %v14140_v24 = vor.u32 %v18708_v12, %v14137_v3  ;;  %v14448_v48 = vor.u32 %v18787_v36, %v14447_v35  ;;  %v14579_v12 = vld [vmem:[%s27030_s3 + $0xc90] sm:$0xf]  ;;  %v18820_v3 = vld [vmem:[%s27030_s3 + $0xc98] sm:$0xf0] }
 0x286   : > { %v22653_v61 = vadd.f32 %v3040_v26, %v22570_v63  ;;  %v22658_v34 = vadd.f32 %v3027_v22, %v3010_v51  ;;  %4020 = vmatmul.bf16.gmra.mxu1 %v20822_v18  ;;  %v18736_v63 = vld [vmem:[%s27030_s3 + $0x9f8] sm:$0xf0]  ;;  %v14460_v17 = vor.u32 %v18790_v21, %v14459_v19  ;;  %v22693_v26 = vrot.slane %v20656_v62, 1  ;;  %v14351_v36 = vld [vmem:[%s27030_s3 + $0xac8] sm:$0xf] }
 0x287   : > { %4069 = vmatmul.bf16.vlgmr.msra.gmra.mxu0 %v20890_v55  ;;  %v14244_v32 = vor.u32 %v18736_v63, %v14243_v47  ;;  %v14364_v63 = vor.u32 %v18766_v52, %v14363_v43  ;;  %v4290_v21 = vrot.slane %v20595_v37, 1  ;;  %v14113_v43 = vld [vmem:[%s27030_s3 + $0x8f4] sm:$0xf0] }
 0x288   : > { %v14567_v52 = vld [vmem:[%s27030_s3 + $0xc78] sm:$0xf] }
 0x289   : > { %5087 = vmatpush.bf16.msrb.mxu0 %v14244_v32  ;;  %5121 = vmatpush.bf16.msrb.mxu2 %v14460_v17  ;;  %v22709_v31 = vsel %vm821_vm3, %v4290_v21, %v22693_v26 }
 0x28a   : > { %5102 = vmatpush.bf16.msrb.mxu1 %v14376_v15  ;;  %v18784_v15 = vld [vmem:[%s27030_s3 + $0xb78] sm:$0xf0] }
 0x28b   : > { %v3011_v22 = vpop.f32.mrf.mxu1  ;;  %v3029_v51 = vpop.f32.mrf.mxu2 }
 0x28c   : > { %v3784_v47 = vpop.f32.mrf.mxu0  ;;  %v18763_v22 = vld [vmem:[%s27030_s3 + $0xad0] sm:$0xf0]  ;;  %v18702_v51 = vld [vmem:[%s27030_s3 + $0x8ec] sm:$0xf] }
 0x28d   : > { %v3042_v29 = vpop.f32.mrf.mxu3  ;;  %5152 = vmatpush.bf16.msra.mxu0 %v14140_v24  ;;  %v22704_v32 = vadd.f32 %v3784_v47, %v22095_v58  ;;  %5122 = vmatpush.bf16.msrb.mxu2 %v14448_v48  ;;  %v14435_v58 = vld [vmem:[%s27030_s3 + $0xb70] sm:$0xf]  ;;  %v14580_v24 = vor.u32 %v18820_v3, %v14579_v12  ;;  %v14352_v48 = vor.u32 %v18763_v22, %v14351_v36 }
 0x28e   : > { %v22701_v19 = vadd.f32 %v3042_v29, %v3025_v33  ;;  %5103 = vmatpush.bf16.msrb.mxu1 %v14364_v63  ;;  %v14125_v33 = vld [vmem:[%s27030_s3 + $0x90c] sm:$0xf0]  ;;  %v14436_v35 = vor.u32 %v18784_v15, %v14435_v58  ;;  %v18817_v29 = vld [vmem:[%s27030_s3 + $0xc80] sm:$0xf0]  ;;  %v14116_v21 = vor.u32 %v18702_v51, %v14113_v43  ;;  %v14329_v58 = vld [vmem:[%s27030_s3 + $0xaa4] sm:$0xf0] }
 0x28f   : > { %v14128_v17 = vor.u32 %v18705_v27, %v14125_v33  ;;  %5137 = vmatpush.bf16.msra.mxu3 %v14580_v24  ;;  %v14568_v27 = vor.u32 %v18817_v29, %v14567_v52  ;;  %v18756_v33 = vld [vmem:[%s27030_s3 + $0xa9c] sm:$0xf]  ;;  %v18814_v52 = vld [vmem:[%s27030_s3 + $0xc68] sm:$0xf0]  ;;  %v18753_v29 = vld [vmem:[%s27030_s3 + $0xa84] sm:$0xf] }
 0x290   : > { %5052 = vmatmul.bf16.vlgmr.msra.gmra.mxu2 %v22709_v31  ;;  %v14332_v3 = vor.u32 %v18756_v33, %v14329_v58  ;;  %v18760_v24 = vld [vmem:[%s27030_s3 + $0xab8] sm:$0xf0]  ;;  %v14233_v33 = vld [vmem:[%s27030_s3 + $0x9e4] sm:$0xf0] }
 0x291   : > { %5153 = vmatpush.bf16.msra.mxu0 %v14128_v17  ;;  %5123 = vmatpush.bf16.msrb.mxu2 %v14436_v35  ;;  %v14339_v35 = vld [vmem:[%s27030_s3 + $0xab0] sm:$0xf]  ;;  %v18696_v58 = vld [vmem:[%s27030_s3 + $0x8bc] sm:$0xf] }
 0x292   : > { %4056 = vmatmul.bf16.gmra.mxu3 %v21029_v54  ;;  %5104 = vmatpush.bf16.msrb.mxu1 %v14352_v48  ;;  %v14340_v51 = vor.u32 %v18760_v24, %v14339_v35  ;;  %v18699_v48 = vld [vmem:[%s27030_s3 + $0x8d4] sm:$0xf] }
 0x293   : > { %v3800_v47 = vpop.f32.mrf.mxu1  ;;  %v3818_v63 = vpop.f32.mrf.mxu2  ;;  %5138 = vmatpush.bf16.msra.mxu3 %v14568_v27  ;;  %v18732_v27 = vld [vmem:[%s27030_s3 + $0x9dc] sm:$0xf] }
 0x294   : > { %v3801_v17 = vadd.f32 %v3800_v47, %v22656_v20  ;;  %v3787_v12 = vpop.f32.mrf.mxu0  ;;  %v14317_v47 = vld [vmem:[%s27030_s3 + $0xa8c] sm:$0xf0] }
 0x295   : > { %v3045_v15 = vpop.f32.mrf.mxu3  ;;  %v22766_v22 = vadd.f32 %v3787_v12, %v22151_v16  ;;  %5154 = vmatpush.bf16.msra.mxu0 %v14116_v21  ;;  %v14555_v16 = vld [vmem:[%s27030_s3 + $0xc60] sm:$0xf]  ;;  %5188 = vmatpush.bf16.msra.mxu2 %v14332_v3  ;;  %v14320_v21 = vor.u32 %v18753_v29, %v14317_v47  ;;  %v14543_v12 = vld [vmem:[%s27030_s3 + $0xc48] sm:$0xf]  ;;  %v18811_v3 = vld [vmem:[%s27030_s3 + $0xc50] sm:$0xf0] }
 0x296   : > { %v22763_v36 = vadd.f32 %v3045_v15, %v22658_v34  ;;  %v22768_v20 = vadd.f32 %v3818_v63, %v3801_v17  ;;  %13867 = vmatmul.msk.bf16.vlgmr.msra.gmra.mxu1 %vm2718_vm5, %v21064_v1  ;;  %v14101_v34 = vld [vmem:[%s27030_s3 + $0x8dc] sm:$0xf0]  ;;  %v14556_v63 = vor.u32 %v18814_v52, %v14555_v16  ;;  %v14236_v17 = vor.u32 %v18732_v27, %v14233_v33  ;;  %v14089_v15 = vld [vmem:[%s27030_s3 + $0x8c4] sm:$0xf0]  ;;  %v14305_v52 = vld [vmem:[%s27030_s3 + $0xa74] sm:$0xf0] }
 0x297   : > { %4074 = vmatmul.bf16.gmra.mxu0 %v20975_v49  ;;  %5105 = vmatpush.bf16.msrb.mxu1 %v14340_v51  ;;  %v14104_v43 = vor.u32 %v18699_v48, %v14101_v34  ;;  %v4293_v51 = vrot.slane %v20737_v13, 1  ;;  %v22811_v48 = vrot.slane %v20822_v18, 1  ;;  %v14092_v34 = vor.u32 %v18696_v58, %v14089_v15  ;;  %v14221_v33 = vld [vmem:[%s27030_s3 + $0x9cc] sm:$0xf0]  ;;  %v18693_v58 = vld [vmem:[%s27030_s3 + $0x8a4] sm:$0xf] }
 0x298   : > { %5139 = vmatpush.bf16.msra.mxu3 %v14556_v63  ;;  %v14544_v16 = vor.u32 %v18811_v3, %v14543_v12  ;;  %v18729_v63 = vld [vmem:[%s27030_s3 + $0x9c4] sm:$0xf] }
 0x299   : > { %5155 = vmatpush.bf16.msra.mxu0 %v14104_v43  ;;  %v18750_v43 = vld [vmem:[%s27030_s3 + $0xa6c] sm:$0xf]  ;;  %5189 = vmatpush.bf16.msra.mxu2 %v14320_v21  ;;  %v14224_v12 = vor.u32 %v18729_v63, %v14221_v33  ;;  %v14531_v21 = vld [vmem:[%s27030_s3 + $0xc30] sm:$0xf]  ;;  %v22861_v63 = vsel %vm821_vm3, %v4293_v51, %v22811_v48  ;;  %v22865_v33 = vrot.slane %v20875_v0, 1 }
 0x29a   : > { %v14308_v15 = vor.u32 %v18750_v43, %v14305_v52  ;;  %v18747_v43 = vld [vmem:[%s27030_s3 + $0xa54] sm:$0xf]  ;;  %v14293_v52 = vld [vmem:[%s27030_s3 + $0xa5c] sm:$0xf0]  ;;  %v18744_v51 = vld [vmem:[%s27030_s3 + $0xa3c] sm:$0xf] }
 0x29b   : > { %v3802_v35 = vpop.f32.mrf.mxu1  ;;  %v3820_v24 = vpop.f32.mrf.mxu2  ;;  %5170 = vmatpush.bf16.msra.mxu1 %v14236_v17  ;;  %v18808_v17 = vld [vmem:[%s27030_s3 + $0xc38] sm:$0xf0] }
 0x29c   : > { %v3803_v29 = vadd.f32 %v3802_v35, %v22704_v32  ;;  %v3789_v27 = vpop.f32.mrf.mxu0  ;;  %v14077_v32 = vld [vmem:[%s27030_s3 + $0x8ac] sm:$0xf0]  ;;  %5140 = vmatpush.bf16.msra.mxu3 %v14544_v16 }
 0x29d   : > { %v3047_v47 = vpop.f32.mrf.mxu3  ;;  %5156 = vmatpush.bf16.msra.mxu0 %v14092_v34  ;;  %v14080_v35 = vor.u32 %v18693_v58, %v14077_v32  ;;  %v14532_v27 = vor.u32 %v18808_v17, %v14531_v21  ;;  %v18690_v34 = vld [vmem:[%s27030_s3 + $0x88c] sm:$0xf]  ;;  %5190 = vmatpush.bf16.msra.mxu2 %v14308_v15  ;;  %v14296_v58 = vor.u32 %v18747_v43, %v14293_v52  ;;  %v18780_v32 = vld [vmem:[%s27030_s3 + $0xb5c] sm:$0xf]  ;;  %v14425_v17 = vld [vmem:[%s27030_s3 + $0xb64] sm:$0xf0] }
 0x29e   : > { %v22838_v3 = vadd.f32 %v3820_v24, %v3803_v29  ;;  %v18726_v47 = vld [vmem:[%s27030_s3 + $0x9ac] sm:$0xf]  ;;  %v14209_v24 = vld [vmem:[%s27030_s3 + $0x9b4] sm:$0xf0]  ;;  %v14428_v52 = vor.u32 %v18780_v32, %v14425_v17  ;;  %v22897_v17 = vrot.slane %v20975_v49, 1 }
 0x29f   : > { %v14065_v29 = vld [vmem:[%s27030_s3 + $0x894] sm:$0xf0]  ;;  %5171 = vmatpush.bf16.msra.mxu1 %v14224_v12  ;;  %v14212_v16 = vor.u32 %v18726_v47, %v14209_v24  ;;  %v14281_v12 = vld [vmem:[%s27030_s3 + $0xa44] sm:$0xf0] }
 0x2a0   : > { %5057 = vmatmul.bf16.gmra.mxu2 %v22693_v26  ;;  %v14068_v21 = vor.u32 %v18690_v34, %v14065_v29  ;;  %5141 = vmatpush.bf16.msra.mxu3 %v14532_v27  ;;  %v4296_v34 = vrot.slane %v20795_v53, 1  ;;  %v18723_v29 = vld [vmem:[%s27030_s3 + $0x994] sm:$0xf]  ;;  %v14284_v27 = vor.u32 %v18744_v51, %v14281_v12  ;;  %v14413_v12 = vld [vmem:[%s27030_s3 + $0xb4c] sm:$0xf0] }
 0x2a1   : > { %5157 = vmatpush.bf16.msra.mxu0 %v14080_v35  ;;  %5191 = vmatpush.bf16.msra.mxu2 %v14296_v58  ;;  %v14200_v32 = vor.u32 %v18723_v29, %v14197_v10  ;;  %v18687_v10 = vld [vmem:[%s27030_s3 + $0x874] sm:$0xf]  ;;  %v18741_v58 = vld [vmem:[%s27030_s3 + $0xa24] sm:$0xf]  ;;  %v14521_v29 = vld [vmem:[%s27030_s3 + $0xc24] sm:$0xf0] }
 0x2a2   : > { %5070 = vmatmul.bf16.vlgmr.msrb.gmra.mxu3 %v22861_v63 }
 0x2a3   : > { %v3805_v15 = vpop.f32.mrf.mxu1  ;;  %v3823_v43 = vpop.f32.mrf.mxu2  ;;  %5172 = vmatpush.bf16.msra.mxu1 %v14212_v16  ;;  %v22894_v16 = vsel %vm821_vm3, %v4296_v34, %v22865_v33 }
 0x2a4   : > { %v3806_v47 = vadd.f32 %v3805_v15, %v22766_v22  ;;  %v3854_v24 = vpop.f32.mrf.mxu0  ;;  %5206 = vmatpush.bf16.msrb.mxu3 %v14428_v52 }
 0x2a5   : > { %v3836_v35 = vpop.f32.mrf.mxu3  ;;  %5158 = vmatpush.bf16.msra.mxu0 %v14068_v21  ;;  %v18777_v21 = vld [vmem:[%s27030_s3 + $0xb44] sm:$0xf]  ;;  %5192 = vmatpush.bf16.msra.mxu2 %v14284_v27  ;;  %v18738_v27 = vld [vmem:[%s27030_s3 + $0xa0c] sm:$0xf] }
 0x2a6   : > { %v3837_v5 = vadd.f32 %v3836_v35, %v22768_v20  ;;  %v22888_v22 = vadd.f32 %v3823_v43, %v3806_v47  ;;  %13868 = vmatmul.msk.bf16.gmra.mxu1 %vm2718_vm5, %v21135_v42  ;;  %v14053_v20 = vld [vmem:[%s27030_s3 + $0x87c] sm:$0xf0]  ;;  %v14416_v52 = vor.u32 %v18777_v21, %v14413_v12  ;;  %v18720_v47 = vld [vmem:[%s27030_s3 + $0x97c] sm:$0xf]  ;;  %v14185_v35 = vld [vmem:[%s27030_s3 + $0x984] sm:$0xf0] }
 0x2a7   : > { %5088 = vmatmul.bf16.vlgmr.msrb.gmra.mxu0 %v22894_v16  ;;  %5173 = vmatpush.bf16.msra.mxu1 %v14200_v32  ;;  %v14056_v51 = vor.u32 %v18687_v10, %v14053_v20  ;;  %v14188_v34 = vor.u32 %v18720_v47, %v14185_v35  ;;  %v14257_v32 = vld [vmem:[%s27030_s3 + $0xa14] sm:$0xf0]  ;;  %v18717_v21 = vld [vmem:[%s27030_s3 + $0x964] sm:$0xf] }
 0x2a8   : > { %v22899_v15 = vadd.f32 %v3854_v24, %v3837_v5  ;;  %v14269_v5 = vld [vmem:[%s27030_s3 + $0xa2c] sm:$0xf0]  ;;  %v18804_v24 = vld [vmem:[%s27030_s3 + $0xc1c] sm:$0xf]  ;;  %5207 = vmatpush.bf16.msrb.mxu3 %v14416_v52 }
 0x2a9   : > { %v14272_v43 = vor.u32 %v18741_v58, %v14269_v5  ;;  %5159 = vmatpush.bf16.msra.mxu0 %v14056_v51  ;;  %v14524_v58 = vor.u32 %v18804_v24, %v14521_v29  ;;  %v18774_v51 = vld [vmem:[%s27030_s3 + $0xb2c] sm:$0xf]  ;;  %v14401_v5 = vld [vmem:[%s27030_s3 + $0xb34] sm:$0xf0]  ;;  %v14173_v52 = vld [vmem:[%s27030_s3 + $0x96c] sm:$0xf0] }
 0x2aa   : > { %v14404_v35 = vor.u32 %v18774_v51, %v14401_v5  ;;  %v4302_v29 = vrot.slane %v20890_v55, 1  ;;  %v18771_v51 = vld [vmem:[%s27030_s3 + $0xb14] sm:$0xf]  ;;  %v14389_v5 = vld [vmem:[%s27030_s3 + $0xb1c] sm:$0xf0] }
 0x2ab   : > { %v3807_v10 = vpop.f32.mrf.mxu1  ;;  %v3825_v20 = vpop.f32.mrf.mxu2  ;;  %5174 = vmatpush.bf16.msra.mxu1 %v14188_v34  ;;  %5193 = vmatpush.bf16.msra.mxu2 %v14272_v43  ;;  %v14509_v43 = vld [vmem:[%s27030_s3 + $0xc0c] sm:$0xf0] }
 0x2ac   : > { %v3856_v47 = vpop.f32.mrf.mxu0  ;;  %v14260_v10 = vor.u32 %v18738_v27, %v14257_v32  ;;  %v14176_v20 = vor.u32 %v18717_v21, %v14173_v52  ;;  %v22959_v34 = vsel %vm821_vm3, %v4302_v29, %v22897_v17  ;;  %5208 = vmatpush.bf16.msrb.mxu3 %v14404_v35  ;;  %v18735_v27 = vld [vmem:[%s27030_s3 + $0x9f4] sm:$0xf]  ;;  %v14161_v35 = vld [vmem:[%s27030_s3 + $0x954] sm:$0xf0]  ;;  %v18798_v52 = vld [vmem:[%s27030_s3 + $0xbec] sm:$0xf] }
 0x2ad   : > { %v3838_v12 = vpop.f32.mrf.mxu3  ;;  %5224 = vmatpush.bf16.msrb.mxu0 %v14524_v58  ;;  %v14245_v58 = vld [vmem:[%s27030_s3 + $0x9fc] sm:$0xf0]  ;;  %v14497_v29 = vld [vmem:[%s27030_s3 + $0xbf4] sm:$0xf0] }
 0x2ae   : > { %v3839_v24 = vadd.f32 %v3838_v12, %v22838_v3  ;;  %v18801_v3 = vld [vmem:[%s27030_s3 + $0xc04] sm:$0xf]  ;;  %v14248_v21 = vor.u32 %v18735_v27, %v14245_v58  ;;  %v14392_v12 = vor.u32 %v18771_v51, %v14389_v5  ;;  %v4299_v27 = vrot.slane %v20957_v11, 1  ;;  %v14143_v51 = vld [vmem:[%s27030_s3 + $0x920] sm:$0xf] }
 0x2af   : > { %5175 = vmatpush.bf16.msra.mxu1 %v14176_v20  ;;  %v14512_v32 = vor.u32 %v18801_v3, %v14509_v43  ;;  %5194 = vmatpush.bf16.msra.mxu2 %v14260_v10  ;;  %v18768_v10 = vld [vmem:[%s27030_s3 + $0xafc] sm:$0xf]  ;;  %v14377_v20 = vld [vmem:[%s27030_s3 + $0xb04] sm:$0xf0]  ;;  %v14500_v58 = vor.u32 %v18798_v52, %v14497_v29  ;;  %v18710_v5 = vld [vmem:[%s27030_s3 + $0x928] sm:$0xf0] }
 0x2b0   : > { %v22955_v7 = vadd.f32 %v3856_v47, %v3839_v24  ;;  %5124 = vmatmul.bf16.vlgmr.msrb.gmra.mxu2 %v22959_v34  ;;  %v18714_v47 = vld [vmem:[%s27030_s3 + $0x94c] sm:$0xf]  ;;  %5209 = vmatpush.bf16.msrb.mxu3 %v14392_v12  ;;  %v14144_v12 = vor.u32 %v18710_v5, %v14143_v51  ;;  %v18711_v52 = vld [vmem:[%s27030_s3 + $0x934] sm:$0xf]  ;;  %v14149_v29 = vld [vmem:[%s27030_s3 + $0x93c] sm:$0xf0] }
 0x2b1   : > { %5225 = vmatpush.bf16.msrb.mxu0 %v14512_v32  ;;  %v14164_v24 = vor.u32 %v18714_v47, %v14161_v35  ;;  %v14380_v32 = vor.u32 %v18768_v10, %v14377_v20  ;;  %v14152_v20 = vor.u32 %v18711_v52, %v14149_v29  ;;  %v18792_v51 = vld [vmem:[%s27030_s3 + $0xbbc] sm:$0xf]  ;;  %v14473_v5 = vld [vmem:[%s27030_s3 + $0xbc4] sm:$0xf0]  ;;  %v14353_v52 = vld [vmem:[%s27030_s3 + $0xad4] sm:$0xf0] }
 0x2b2   : > { %5075 = vmatmul.bf16.gmra.mxu3 %v22811_v48  ;;  %v14119_v29 = vld [vmem:[%s27030_s3 + $0x8f0] sm:$0xf] }
 0x2b3   : > { %v3872_v3 = vpop.f32.mrf.mxu1  ;;  %v3890_v43 = vpop.f32.mrf.mxu2  ;;  %5176 = vmatpush.bf16.msra.mxu1 %v14164_v24  ;;  %5195 = vmatpush.bf16.msra.mxu2 %v14248_v21  ;;  %v18795_v24 = vld [vmem:[%s27030_s3 + $0xbd4] sm:$0xf]  ;;  %v18765_v21 = vld [vmem:[%s27030_s3 + $0xae4] sm:$0xf] }
 0x2b4   : > { %v23007_v47 = vadd.f32 %v3872_v3, %v22899_v15  ;;  %v3859_v54 = vpop.f32.mrf.mxu0  ;;  %v23010_v55 = vadd.f32 %v3890_v43, %v22361_v56  ;;  %v23021_v15 = vsel %vm821_vm3, %v4299_v27, %v22953_v39  ;;  %5210 = vmatpush.bf16.msrb.mxu3 %v14380_v32  ;;  %v14131_v43 = vld [vmem:[%s27030_s3 + $0x908] sm:$0xf]  ;;  %v18707_v27 = vld [vmem:[%s27030_s3 + $0x910] sm:$0xf0] }
 0x2b5   : > { %v3841_v35 = vpop.f32.mrf.mxu3  ;;  %5226 = vmatpush.bf16.msrb.mxu0 %v14500_v58  ;;  %v14132_v32 = vor.u32 %v18707_v27, %v14131_v43  ;;  %v23068_v27 = vrot.slane %v21135_v42, 1 }
 0x2b6   : > { %v3842_v10 = vadd.f32 %v3841_v35, %v22888_v22  ;;  %5106 = vmatmul.bf16.vlgmr.msrb.gmra.mxu1 %v23021_v15  ;;  %v14485_v22 = vld [vmem:[%s27030_s3 + $0xbdc] sm:$0xf0]  ;;  %v18762_v35 = vld [vmem:[%s27030_s3 + $0xacc] sm:$0xf] }
 0x2b7   : > { %5093 = vmatmul.bf16.gmra.mxu0 %v22865_v33  ;;  %5260 = vmatpush.bf16.msrb.mxu2 %v14144_v12  ;;  %v14488_v3 = vor.u32 %v18795_v24, %v14485_v22  ;;  %v14476_v12 = vor.u32 %v18792_v51, %v14473_v5  ;;  %v14356_v22 = vor.u32 %v18762_v35, %v14353_v52  ;;  %v4305_v51 = vrot.slane %v21064_v1, 1  ;;  %v18701_v52 = vld [vmem:[%s27030_s3 + $0x8e0] sm:$0xf0]  ;;  %v14581_v1 = vld [vmem:[%s27030_s3 + $0xc9c] sm:$0xf0] }
 0x2b8   : > { %v3860_v56 = vadd.f32 %v3859_v54, %v3842_v10  ;;  %5177 = vmatpush.bf16.msra.mxu1 %v14152_v20  ;;  %v14365_v54 = vld [vmem:[%s27030_s3 + $0xaec] sm:$0xf0]  ;;  %v18704_v10 = vld [vmem:[%s27030_s3 + $0x8f8] sm:$0xf0] }
 0x2b9   : > { %v14368_v58 = vor.u32 %v18765_v21, %v14365_v54  ;;  %5227 = vmatpush.bf16.msrb.mxu0 %v14488_v3  ;;  %v14120_v5 = vor.u32 %v18704_v10, %v14119_v29  ;;  %v23092_v29 = vsel %vm821_vm3, %v4305_v51, %v23068_v27  ;;  %v14095_v51 = vld [vmem:[%s27030_s3 + $0x8c0] sm:$0xf] }
 0x2bb   : > { %v3874_v20 = vpop.f32.mrf.mxu1  ;;  %v3892_v24 = vpop.f32.mrf.mxu2  ;;  %5211 = vmatpush.bf16.msrb.mxu3 %v14368_v58  ;;  %5261 = vmatpush.bf16.msrb.mxu2 %v14132_v32  ;;  %v18789_v58 = vld [vmem:[%s27030_s3 + $0xba4] sm:$0xf]  ;;  %v14341_v32 = vld [vmem:[%s27030_s3 + $0xabc] sm:$0xf0] }
 0x2bc   : > { %v23062_v21 = vadd.f32 %v3874_v20, %v22955_v7  ;;  %v3861_v54 = vpop.f32.mrf.mxu0  ;;  %v23065_v43 = vadd.f32 %v3892_v24, %v22404_v59  ;;  %v14461_v7 = vld [vmem:[%s27030_s3 + $0xbac] sm:$0xf0]  ;;  %v18759_v59 = vld [vmem:[%s27030_s3 + $0xab4] sm:$0xf]  ;;  %v18786_v20 = vld [vmem:[%s27030_s3 + $0xb8c] sm:$0xf] }
 0x2bd   : > { %v3843_v3 = vpop.f32.mrf.mxu3  ;;  %5228 = vmatpush.bf16.msrb.mxu0 %v14476_v12  ;;  %v14464_v35 = vor.u32 %v18789_v58, %v14461_v7  ;;  %v14107_v12 = vld [vmem:[%s27030_s3 + $0x8d8] sm:$0xf]  ;;  %v14344_v10 = vor.u32 %v18759_v59, %v14341_v32  ;;  %v18698_v58 = vld [vmem:[%s27030_s3 + $0x8c8] sm:$0xf0] }
 0x2be   : > { %v14449_v24 = vld [vmem:[%s27030_s3 + $0xb94] sm:$0xf0]  ;;  %v14239_v3 = vld [vmem:[%s27030_s3 + $0x9e0] sm:$0xf]  ;;  %v18734_v7 = vld [vmem:[%s27030_s3 + $0x9e8] sm:$0xf0] }
 0x2bf   : > { %5212 = vmatpush.bf16.msrb.mxu3 %v14356_v22  ;;  %5262 = vmatpush.bf16.msrb.mxu2 %v14120_v5  ;;  %v14108_v22 = vor.u32 %v18701_v52, %v14107_v12  ;;  %v14452_v54 = vor.u32 %v18786_v20, %v14449_v24  ;;  %v14240_v32 = vor.u32 %v18734_v7, %v14239_v3  ;;  %v18819_v24 = vld [vmem:[%s27030_s3 + $0xc94] sm:$0xf]  ;;  %v14437_v3 = vld [vmem:[%s27030_s3 + $0xb7c] sm:$0xf0]  ;;  %v14083_v7 = vld [vmem:[%s27030_s3 + $0x8a8] sm:$0xf] }
 0x2c0   : > { %5129 = vmatmul.bf16.gmra.mxu2 %v22897_v17 }
 0x2c1   : > { %5229 = vmatpush.bf16.msrb.mxu0 %v14464_v35 }
 0x2c2   : > { %14589 = vmatmul.msk.bf16.vlgmr.msra.gmra.mxu3 %vm2718_vm5, %v23092_v29 }
 0x2c3   : > { %v3877_v5 = vpop.f32.mrf.mxu1  ;;  %v3895_v59 = vpop.f32.mrf.mxu2  ;;  %5213 = vmatpush.bf16.msrb.mxu3 %v14344_v10  ;;  %5263 = vmatpush.bf16.msrb.mxu2 %v14108_v22  ;;  %v14096_v10 = vor.u32 %v18698_v58, %v14095_v51  ;;  %v18695_v22 = vld [vmem:[%s27030_s3 + $0x8b0] sm:$0xf0] }
 0x2c4   : > { %v23114_v12 = vadd.f32 %v3877_v5, %v3860_v56  ;;  %v23117_v35 = vadd.f32 %v3895_v59, %v22453_v46  ;;  %v3926_v20 = vpop.f32.mrf.mxu0  ;;  %v14584_v56 = vor.u32 %v18819_v24, %v14581_v1  ;;  %v18783_v46 = vld [vmem:[%s27030_s3 + $0xb74] sm:$0xf]  ;;  %v14569_v5 = vld [vmem:[%s27030_s3 + $0xc84] sm:$0xf0]  ;;  %v14335_v59 = vld [vmem:[%s27030_s3 + $0xaa0] sm:$0xf] }
 0x2c5   : > { %v3908_v52 = vpop.f32.mrf.mxu3  ;;  %5230 = vmatpush.bf16.msrb.mxu0 %v14452_v54  ;;  %v14440_v1 = vor.u32 %v18783_v46, %v14437_v3  ;;  %v14227_v54 = vld [vmem:[%s27030_s3 + $0x9c8] sm:$0xf]  ;;  %v18731_v51 = vld [vmem:[%s27030_s3 + $0x9d0] sm:$0xf0]  ;;  %v14071_v24 = vld [vmem:[%s27030_s3 + $0x890] sm:$0xf] }
 0x2c6   : > { %v3909_v42 = vadd.f32 %v3908_v52, %v23010_v55  ;;  %5111 = vmatmul.bf16.gmra.mxu1 %v22953_v39  ;;  %v14228_v58 = vor.u32 %v18731_v51, %v14227_v54  ;;  %v18692_v46 = vld [vmem:[%s27030_s3 + $0x898] sm:$0xf0]  ;;  %v14557_v51 = vld [vmem:[%s27030_s3 + $0xc6c] sm:$0xf0] }
 0x2c7   : > { %5278 = vmatpush.bf16.msra.mxu3 %v14240_v32  ;;  %5160 = vmatmul.bf16.vlgmr.msra.gmra.mxu0 %v22709_v31  ;;  %v14084_v32 = vor.u32 %v18695_v22, %v14083_v7  ;;  %v18728_v3 = vld [vmem:[%s27030_s3 + $0x9b8] sm:$0xf0] }
 0x2c8   : > { %v23136_v55 = vadd.f32 %v3926_v20, %v3909_v42  ;;  %5245 = vmatpush.bf16.msrb.mxu1 %v14584_v56  ;;  %v18816_v42 = vld [vmem:[%s27030_s3 + $0xc7c] sm:$0xf]  ;;  %5264 = vmatpush.bf16.msrb.mxu2 %v14096_v10  ;;  %v18758_v20 = vld [vmem:[%s27030_s3 + $0xaa8] sm:$0xf0]  ;;  %v14215_v10 = vld [vmem:[%s27030_s3 + $0x9b0] sm:$0xf] }
 0x2c9   : > { %v14572_v52 = vor.u32 %v18816_v42, %v14569_v5  ;;  %5231 = vmatpush.bf16.msrb.mxu0 %v14440_v1  ;;  %v14336_v56 = vor.u32 %v18758_v20, %v14335_v59  ;;  %v14216_v54 = vor.u32 %v18728_v3, %v14215_v10  ;;  %v18813_v1 = vld [vmem:[%s27030_s3 + $0xc64] sm:$0xf]  ;;  %v14072_v20 = vor.u32 %v18692_v46, %v14071_v24  ;;  %v18755_v10 = vld [vmem:[%s27030_s3 + $0xa90] sm:$0xf0]  ;;  %v14059_v3 = vld [vmem:[%s27030_s3 + $0x878] sm:$0xf] }
 0x2ca   : > { %v14560_v5 = vor.u32 %v18813_v1, %v14557_v51  ;;  %v18725_v24 = vld [vmem:[%s27030_s3 + $0x9a0] sm:$0xf0]  ;;  %v14311_v1 = vld [vmem:[%s27030_s3 + $0xa70] sm:$0xf] }
 0x2cb   : > { %5279 = vmatpush.bf16.msra.mxu3 %v14228_v58  ;;  %v3879_v7 = vpop.f32.mrf.mxu1  ;;  %v3897_v22 = vpop.f32.mrf.mxu2 }
 0x2cc   : > { %5246 = vmatpush.bf16.msrb.mxu1 %v14572_v52  ;;  %v3928_v42 = vpop.f32.mrf.mxu0  ;;  %5265 = vmatpush.bf16.msrb.mxu2 %v14084_v32  ;;  %v14323_v52 = vld [vmem:[%s27030_s3 + $0xa88] sm:$0xf]  ;;  %v14203_v32 = vld [vmem:[%s27030_s3 + $0x998] sm:$0xf]  ;;  %v18810_v22 = vld [vmem:[%s27030_s3 + $0xc4c] sm:$0xf] }
 0x2cd   : > { %v3910_v58 = vpop.f32.mrf.mxu3  ;;  %5296 = vmatpush.bf16.msra.mxu0 %v14336_v56  ;;  %v14324_v7 = vor.u32 %v18755_v10, %v14323_v52  ;;  %v14204_v46 = vor.u32 %v18725_v24, %v14203_v32  ;;  %v18722_v52 = vld [vmem:[%s27030_s3 + $0x988] sm:$0xf0]  ;;  %v14527_v10 = vld [vmem:[%s27030_s3 + $0xc20] sm:$0xf] }
 0x2ce   : > { %v3911_v59 = vadd.f32 %v3910_v58, %v23065_v43  ;;  %v18689_v43 = vld [vmem:[%s27030_s3 + $0x880] sm:$0xf0]  ;;  %v18752_v58 = vld [vmem:[%s27030_s3 + $0xa78] sm:$0xf0] }
 0x2cf   : > { %5280 = vmatpush.bf16.msra.mxu3 %v14216_v54  ;;  %v14545_v54 = vld [vmem:[%s27030_s3 + $0xc54] sm:$0xf0] }
 0x2d0   : > { %v23197_v56 = vadd.f32 %v3928_v42, %v3911_v59  ;;  %5247 = vmatpush.bf16.msrb.mxu1 %v14560_v5  ;;  %5196 = vmatmul.bf16.vlgmr.msra.gmra.mxu2 %v22894_v16  ;;  %v14548_v51 = vor.u32 %v18810_v22, %v14545_v54  ;;  %v14060_v42 = vor.u32 %v18689_v43, %v14059_v3  ;;  %v14191_v59 = vld [vmem:[%s27030_s3 + $0x980] sm:$0xf] }
 0x2d1   : > { %5297 = vmatpush.bf16.msra.mxu0 %v14324_v7  ;;  %5266 = vmatpush.bf16.msrb.mxu2 %v14072_v20  ;;  %v14312_v5 = vor.u32 %v18752_v58, %v14311_v1  ;;  %v14192_v7 = vor.u32 %v18722_v52, %v14191_v59  ;;  %v18806_v20 = vld [vmem:[%s27030_s3 + $0xc28] sm:$0xf0]  ;;  %v18807_v1 = vld [vmem:[%s27030_s3 + $0xc34] sm:$0xf] }
 0x2d2   : > { %14590 = vmatmul.msk.bf16.gmra.mxu3 %vm2718_vm5, %v23068_v27  ;;  %v14528_v32 = vor.u32 %v18806_v20, %v14527_v10  ;;  %v18719_v10 = vld [vmem:[%s27030_s3 + $0x970] sm:$0xf0] }
 0x2d3   : > { %5281 = vmatpush.bf16.msra.mxu3 %v14204_v46  ;;  %v3944_v3 = vpop.f32.mrf.mxu1  ;;  %v3962_v43 = vpop.f32.mrf.mxu2  ;;  %v14533_v46 = vld [vmem:[%s27030_s3 + $0xc3c] sm:$0xf0]  ;;  %v18803_v20 = vld [vmem:[%s27030_s3 + $0xc10] sm:$0xf0] }
 0x2d4   : > { %5248 = vmatpush.bf16.msrb.mxu1 %v14548_v51  ;;  %v3945_v24 = vadd.f32 %v3944_v3, %v23136_v55  ;;  %v3931_v54 = vpop.f32.mrf.mxu0  ;;  %v14536_v59 = vor.u32 %v18807_v1, %v14533_v46  ;;  %v14299_v55 = vld [vmem:[%s27030_s3 + $0xa58] sm:$0xf]  ;;  %v18749_v51 = vld [vmem:[%s27030_s3 + $0xa60] sm:$0xf0]  ;;  %v18746_v1 = vld [vmem:[%s27030_s3 + $0xa48] sm:$0xf0] }
 0x2d5   : > { %v3913_v22 = vpop.f32.mrf.mxu3  ;;  %5298 = vmatpush.bf16.msra.mxu0 %v14312_v5  ;;  %5267 = vmatpush.bf16.msrb.mxu2 %v14060_v42  ;;  %v14179_v5 = vld [vmem:[%s27030_s3 + $0x968] sm:$0xf]  ;;  %v14300_v42 = vor.u32 %v18749_v51, %v14299_v55  ;;  %v14167_v46 = vld [vmem:[%s27030_s3 + $0x950] sm:$0xf] }
 0x2d6   : > { %v3914_v58 = vadd.f32 %v3913_v22, %v23117_v35  ;;  %v23234_v52 = vadd.f32 %v3962_v43, %v3945_v24  ;;  %5178 = vmatmul.bf16.vlgmr.msra.gmra.mxu1 %v22861_v63  ;;  %v14180_v3 = vor.u32 %v18719_v10, %v14179_v5  ;;  %v18782_v24 = vld [vmem:[%s27030_s3 + $0xb68] sm:$0xf0]  ;;  %v14287_v22 = vld [vmem:[%s27030_s3 + $0xa40] sm:$0xf]  ;;  %v14503_v51 = vld [vmem:[%s27030_s3 + $0xbf0] sm:$0xf] }
 0x2d7   : > { %5282 = vmatpush.bf16.msra.mxu3 %v14192_v7  ;;  %5165 = vmatmul.bf16.gmra.mxu0 %v22693_v26  ;;  %v14515_v7 = vld [vmem:[%s27030_s3 + $0xc08] sm:$0xf]  ;;  %v18800_v5 = vld [vmem:[%s27030_s3 + $0xbf8] sm:$0xf0] }
 0x2d8   : > { %v23246_v35 = vadd.f32 %v3931_v54, %v3914_v58  ;;  %5249 = vmatpush.bf16.msrb.mxu1 %v14536_v59  ;;  %v14516_v43 = vor.u32 %v18803_v20, %v14515_v7  ;;  %v18716_v58 = vld [vmem:[%s27030_s3 + $0x958] sm:$0xf0]  ;;  %v14288_v59 = vor.u32 %v18746_v1, %v14287_v22  ;;  %v14504_v7 = vor.u32 %v18800_v5, %v14503_v51  ;;  %v18779_v22 = vld [vmem:[%s27030_s3 + $0xb50] sm:$0xf0]  ;;  %v18797_v51 = vld [vmem:[%s27030_s3 + $0xbe0] sm:$0xf0] }
 0x2d9   : > { %5332 = vmatpush.bf16.msra.mxu2 %v14528_v32  ;;  %v14431_v32 = vld [vmem:[%s27030_s3 + $0xb60] sm:$0xf]  ;;  %5299 = vmatpush.bf16.msra.mxu0 %v14300_v42  ;;  %v14168_v55 = vor.u32 %v18716_v58, %v14167_v46 }
 0x2da   : > { %v14432_v54 = vor.u32 %v18782_v24, %v14431_v32 }
 0x2db   : > { %5283 = vmatpush.bf16.msra.mxu3 %v14180_v3  ;;  %v3946_v42 = vpop.f32.mrf.mxu1  ;;  %v3964_v10 = vpop.f32.mrf.mxu2  ;;  %v14419_v3 = vld [vmem:[%s27030_s3 + $0xb48] sm:$0xf] }
 0x2dc   : > { %5314 = vmatpush.bf16.msra.mxu1 %v14432_v54  ;;  %v3947_v20 = vadd.f32 %v3946_v42, %v23197_v56  ;;  %v3933_v24 = vpop.f32.mrf.mxu0  ;;  %v14420_v1 = vor.u32 %v18779_v22, %v14419_v3  ;;  %v18743_v56 = vld [vmem:[%s27030_s3 + $0xa30] sm:$0xf0]  ;;  %v14155_v54 = vld [vmem:[%s27030_s3 + $0x938] sm:$0xf]  ;;  %v14479_v3 = vld [vmem:[%s27030_s3 + $0xbc0] sm:$0xf] }
 0x2dd   : > { %5333 = vmatpush.bf16.msra.mxu2 %v14516_v43  ;;  %v3915_v32 = vpop.f32.mrf.mxu3  ;;  %5300 = vmatpush.bf16.msra.mxu0 %v14288_v59  ;;  %v14275_v43 = vld [vmem:[%s27030_s3 + $0xa28] sm:$0xf]  ;;  %v18713_v59 = vld [vmem:[%s27030_s3 + $0x940] sm:$0xf0]  ;;  %v18740_v24 = vld [vmem:[%s27030_s3 + $0xa18] sm:$0xf0] }
 0x2de   : > { %v23289_v46 = vadd.f32 %v3964_v10, %v3947_v20  ;;  %v14276_v58 = vor.u32 %v18743_v56, %v14275_v43  ;;  %v14156_v5 = vor.u32 %v18713_v59, %v14155_v54  ;;  %v14407_v10 = vld [vmem:[%s27030_s3 + $0xb30] sm:$0xf]  ;;  %v18794_v22 = vld [vmem:[%s27030_s3 + $0xbc8] sm:$0xf0] }
 0x2df   : > { %5284 = vmatpush.bf16.msra.mxu3 %v14168_v55  ;;  %v14491_v55 = vld [vmem:[%s27030_s3 + $0xbd8] sm:$0xf]  ;;  %v14263_v20 = vld [vmem:[%s27030_s3 + $0xa10] sm:$0xf]  ;;  %v14480_v54 = vor.u32 %v18794_v22, %v14479_v3  ;;  %v14383_v3 = vld [vmem:[%s27030_s3 + $0xb00] sm:$0xf] }
 0x2e0   : > { %5315 = vmatpush.bf16.msra.mxu1 %v14420_v1  ;;  %5201 = vmatmul.bf16.gmra.mxu2 %v22865_v33  ;;  %v14492_v42 = vor.u32 %v18797_v51, %v14491_v55  ;;  %v14264_v1 = vor.u32 %v18740_v24, %v14263_v20  ;;  %v14395_v51 = vld [vmem:[%s27030_s3 + $0xb18] sm:$0xf]  ;;  %v18791_v24 = vld [vmem:[%s27030_s3 + $0xbb0] sm:$0xf0]  ;;  %v18770_v22 = vld [vmem:[%s27030_s3 + $0xb08] sm:$0xf0] }
 0x2e1   : > { %5334 = vmatpush.bf16.msra.mxu2 %v14504_v7  ;;  %v18776_v7 = vld [vmem:[%s27030_s3 + $0xb38] sm:$0xf0]  ;;  %5301 = vmatpush.bf16.msra.mxu0 %v14276_v58 }
 0x2e2   : > { %5214 = vmatmul.bf16.vlgmr.msrb.gmra.mxu3 %v23021_v15  ;;  %v14408_v32 = vor.u32 %v18776_v7, %v14407_v10  ;;  %v18773_v10 = vld [vmem:[%s27030_s3 + $0xb20] sm:$0xf0] }
 0x2e3   : > { %5285 = vmatpush.bf16.msra.mxu3 %v14156_v5  ;;  %v3949_v43 = vpop.f32.mrf.mxu1  ;;  %v3967_v56 = vpop.f32.mrf.mxu2 }
 0x2e4   : > { %5316 = vmatpush.bf16.msra.mxu1 %v14408_v32  ;;  %v3950_v58 = vadd.f32 %v3949_v43, %v23246_v35  ;;  %v3998_v55 = vpop.f32.mrf.mxu0  ;;  %v14251_v35 = vld [vmem:[%s27030_s3 + $0x9f8] sm:$0xf]  ;;  %v14384_v43 = vor.u32 %v18770_v22, %v14383_v3 }
 0x2e5   : > { %5335 = vmatpush.bf16.msra.mxu2 %v14492_v42  ;;  %v3980_v59 = vpop.f32.mrf.mxu3  ;;  %v23340_v7 = vadd.f32 %v3998_v55, %v22653_v61  ;;  %5302 = vmatpush.bf16.msra.mxu0 %v14264_v1  ;;  %v14396_v42 = vor.u32 %v18773_v10, %v14395_v51  ;;  %v14467_v61 = vld [vmem:[%s27030_s3 + $0xba8] sm:$0xf]  ;;  %v18788_v55 = vld [vmem:[%s27030_s3 + $0xb98] sm:$0xf0] }
 0x2e6   : > { %v23337_v5 = vadd.f32 %v3980_v59, %v23234_v52  ;;  %v23342_v20 = vadd.f32 %v3967_v56, %v3950_v58  ;;  %5183 = vmatmul.bf16.gmra.mxu1 %v22811_v48  ;;  %v18737_v52 = vld [vmem:[%s27030_s3 + $0xa00] sm:$0xf0]  ;;  %v14468_v1 = vor.u32 %v18791_v24, %v14467_v61  ;;  %v14861_v56 = vld [vmem:[%s27030_s3 + $0xd50] sm:$0xf] }
 0x2e7   : > { %5232 = vmatmul.bf16.vlgmr.msrb.gmra.mxu0 %v22959_v34  ;;  %v14252_v32 = vor.u32 %v18737_v52, %v14251_v35  ;;  %v14455_v58 = vld [vmem:[%s27030_s3 + $0xb90] sm:$0xf]  ;;  %v14371_v35 = vld [vmem:[%s27030_s3 + $0xae8] sm:$0xf]  ;;  %v18767_v52 = vld [vmem:[%s27030_s3 + $0xaf0] sm:$0xf0] }
 0x2e8   : > { %5317 = vmatpush.bf16.msra.mxu1 %v14396_v42  ;;  %v14456_v42 = vor.u32 %v18788_v55, %v14455_v58  ;;  %v18821_v58 = vld [vmem:[%s27030_s3 + $0xca0] sm:$0xf0] }
 0x2e9   : > { %5336 = vmatpush.bf16.msra.mxu2 %v14480_v54  ;;  %v18844_v54 = vld [vmem:[%s27030_s3 + $0xd58] sm:$0xf0]  ;;  %5303 = vmatpush.bf16.msra.mxu0 %v14252_v32  ;;  %v14372_v32 = vor.u32 %v18767_v52, %v14371_v35  ;;  %v18838_v35 = vld [vmem:[%s27030_s3 + $0xd28] sm:$0xf0]  ;;  %v14575_v52 = vld [vmem:[%s27030_s3 + $0xc80] sm:$0xf] }
 0x2ea   : > { %v14862_v59 = vor.u32 %v18844_v54, %v14861_v56  ;;  %v18841_v56 = vld [vmem:[%s27030_s3 + $0xd40] sm:$0xf0]  ;;  %v14587_v54 = vld [vmem:[%s27030_s3 + $0xc98] sm:$0xf] }
 0x2eb   : > { %v3951_v51 = vpop.f32.mrf.mxu1  ;;  %v3969_v10 = vpop.f32.mrf.mxu2  ;;  %v14588_v55 = vor.u32 %v18821_v58, %v14587_v54 }
 0x2ec   : > { %v4000_v24 = vpop.f32.mrf.mxu0  ;;  %5318 = vmatpush.bf16.msra.mxu1 %v14384_v43  ;;  %v14443_v43 = vld [vmem:[%s27030_s3 + $0xb78] sm:$0xf]  ;;  %v18764_v51 = vld [vmem:[%s27030_s3 + $0xad8] sm:$0xf0]  ;;  %v14837_v10 = vld [vmem:[%s27030_s3 + $0xd20] sm:$0xf] }
 0x2ed   : > { %5337 = vmatpush.bf16.msra.mxu2 %v14468_v1  ;;  %v3982_v61 = vpop.f32.mrf.mxu3  ;;  %6336 = vmatpush.bf16.msrb.mxu0 %v14862_v59  ;;  %v23386_v22 = vadd.f32 %v4000_v24, %v22701_v19  ;;  %v14849_v1 = vld [vmem:[%s27030_s3 + $0xd38] sm:$0xf]  ;;  %v18785_v19 = vld [vmem:[%s27030_s3 + $0xb80] sm:$0xf0] }
 0x2ee   : > { %v23383_v3 = vadd.f32 %v3982_v61, %v23289_v46  ;;  %v14850_v46 = vor.u32 %v18841_v56, %v14849_v1  ;;  %v14444_v59 = vor.u32 %v18785_v19, %v14443_v43  ;;  %v18818_v61 = vld [vmem:[%s27030_s3 + $0xc88] sm:$0xf0]  ;;  %5353 = vmatpush.bf16.msrb.mxu3 %v14588_v55  ;;  %v14838_v1 = vor.u32 %v18838_v35, %v14837_v10  ;;  %v15053_v43 = vld [vmem:[%s27030_s3 + $0xed0] sm:$0xf]  ;;  %v18761_v55 = vld [vmem:[%s27030_s3 + $0xac0] sm:$0xf0] }
 0x2ef   : > { %v14576_v56 = vor.u32 %v18818_v61, %v14575_v52  ;;  %v18815_v61 = vld [vmem:[%s27030_s3 + $0xc70] sm:$0xf0] }
 0x2f0   : > { %5268 = vmatmul.bf16.vlgmr.msrb.gmra.mxu2 %v22709_v31  ;;  %5319 = vmatpush.bf16.msra.mxu1 %v14372_v32  ;;  %v14359_v31 = vld [vmem:[%s27030_s3 + $0xad0] sm:$0xf] }
 0x2f1   : > { %5338 = vmatpush.bf16.msra.mxu2 %v14456_v42  ;;  %6337 = vmatpush.bf16.msrb.mxu0 %v14850_v46  ;;  %v14360_v42 = vor.u32 %v18764_v51, %v14359_v31  ;;  %v18892_v46 = vld [vmem:[%s27030_s3 + $0xed8] sm:$0xf0] }
 0x2f2   : > { %5219 = vmatmul.bf16.gmra.mxu3 %v22953_v39  ;;  %v15054_v31 = vor.u32 %v18892_v46, %v15053_v43  ;;  %v14957_v43 = vld [vmem:[%s27030_s3 + $0xe10] sm:$0xf]  ;;  %v18868_v46 = vld [vmem:[%s27030_s3 + $0xe18] sm:$0xf0] }
 0x2f3   : > { %v4016_v24 = vpop.f32.mrf.mxu1  ;;  %v4034_v32 = vpop.f32.mrf.mxu2  ;;  %5354 = vmatpush.bf16.msrb.mxu3 %v14576_v56 }
 0x2f4   : > { %v4017_v19 = vadd.f32 %v4016_v24, %v23340_v7  ;;  %v4003_v58 = vpop.f32.mrf.mxu0  ;;  %5320 = vmatpush.bf16.msra.mxu1 %v14360_v42  ;;  %v14825_v42 = vld [vmem:[%s27030_s3 + $0xd08] sm:$0xf]  ;;  %v15041_v24 = vld [vmem:[%s27030_s3 + $0xeb8] sm:$0xf] }
 0x2f5   : > { %5339 = vmatpush.bf16.msra.mxu2 %v14444_v59  ;;  %v3985_v54 = vpop.f32.mrf.mxu3  ;;  %v14347_v59 = vld [vmem:[%s27030_s3 + $0xab8] sm:$0xf]  ;;  %v23443_v10 = vadd.f32 %v4003_v58, %v22763_v36  ;;  %6338 = vmatpush.bf16.msrb.mxu0 %v14838_v1  ;;  %v14563_v36 = vld [vmem:[%s27030_s3 + $0xc68] sm:$0xf]  ;;  %v18832_v58 = vld [vmem:[%s27030_s3 + $0xcf8] sm:$0xf0] }
 0x2f6   : > { %v23440_v51 = vadd.f32 %v3985_v54, %v23342_v20  ;;  %v14348_v35 = vor.u32 %v18761_v55, %v14347_v59  ;;  %v23445_v7 = vadd.f32 %v4034_v32, %v4017_v19  ;;  %14591 = vmatmul.msk.bf16.vlgmr.msrb.gmra.mxu1 %vm2718_vm5, %v23092_v29  ;;  %v18835_v20 = vld [vmem:[%s27030_s3 + $0xd10] sm:$0xf0]  ;;  %v18889_v32 = vld [vmem:[%s27030_s3 + $0xec0] sm:$0xf0]  ;;  %v14564_v1 = vor.u32 %v18815_v61, %v14563_v36  ;;  %v14813_v19 = vld [vmem:[%s27030_s3 + $0xcf0] sm:$0xf] }
 0x2f7   : > { %5237 = vmatmul.bf16.gmra.mxu0 %v22897_v17  ;;  %v14826_v52 = vor.u32 %v18835_v20, %v14825_v42  ;;  %v15042_v56 = vor.u32 %v18889_v32, %v15041_v24  ;;  %v14958_v54 = vor.u32 %v18868_v46, %v14957_v43  ;;  %v18812_v59 = vld [vmem:[%s27030_s3 + $0xc58] sm:$0xf0]  ;;  %v14814_v42 = vor.u32 %v18832_v58, %v14813_v19  ;;  %v15029_v36 = vld [vmem:[%s27030_s3 + $0xea0] sm:$0xf]  ;;  %v18865_v43 = vld [vmem:[%s27030_s3 + $0xe00] sm:$0xf0] }
 0x2f8   : > { %5321 = vmatpush.bf16.msra.mxu1 %v14348_v35  ;;  %5355 = vmatpush.bf16.msrb.mxu3 %v14564_v1  ;;  %v14945_v1 = vld [vmem:[%s27030_s3 + $0xdf8] sm:$0xf] }
 0x2f9   : > { %6372 = vmatpush.bf16.msrb.mxu2 %v15054_v31  ;;  %6339 = vmatpush.bf16.msrb.mxu0 %v14826_v52  ;;  %v14551_v31 = vld [vmem:[%s27030_s3 + $0xc50] sm:$0xf]  ;;  %v18886_v52 = vld [vmem:[%s27030_s3 + $0xea8] sm:$0xf0]  ;;  %v14801_v46 = vld [vmem:[%s27030_s3 + $0xcd8] sm:$0xf]  ;;  %v14946_v58 = vor.u32 %v18865_v43, %v14945_v1 }
 0x2fa   : > { %v14552_v20 = vor.u32 %v18812_v59, %v14551_v31  ;;  %v15030_v19 = vor.u32 %v18886_v52, %v15029_v36  ;;  %v18883_v36 = vld [vmem:[%s27030_s3 + $0xe90] sm:$0xf0]  ;;  %v14933_v52 = vld [vmem:[%s27030_s3 + $0xde0] sm:$0xf]  ;;  %v15149_v1 = vld [vmem:[%s27030_s3 + $0xf90] sm:$0xf] }
 0x2fb   : > { %v4018_v55 = vpop.f32.mrf.mxu1  ;;  %v4036_v35 = vpop.f32.mrf.mxu2 }
 0x2fc   : > { %v4019_v61 = vadd.f32 %v4018_v55, %v23386_v22  ;;  %v4005_v32 = vpop.f32.mrf.mxu0  ;;  %6354 = vmatpush.bf16.msrb.mxu1 %v14958_v54  ;;  %v18829_v22 = vld [vmem:[%s27030_s3 + $0xce0] sm:$0xf0]  ;;  %v15017_v55 = vld [vmem:[%s27030_s3 + $0xe88] sm:$0xf]  ;;  %5356 = vmatpush.bf16.msrb.mxu3 %v14552_v20 }
 0x2fd   : > { %v3987_v24 = vpop.f32.mrf.mxu3  ;;  %6373 = vmatpush.bf16.msrb.mxu2 %v15042_v56  ;;  %v14539_v56 = vld [vmem:[%s27030_s3 + $0xc38] sm:$0xf]  ;;  %v18809_v54 = vld [vmem:[%s27030_s3 + $0xc40] sm:$0xf0]  ;;  %6340 = vmatpush.bf16.msrb.mxu0 %v14814_v42  ;;  %v14802_v59 = vor.u32 %v18829_v22, %v14801_v46  ;;  %v14789_v42 = vld [vmem:[%s27030_s3 + $0xcc0] sm:$0xf]  ;;  %v15018_v20 = vor.u32 %v18883_v36, %v15017_v55 }
 0x2fe   : > { %v23511_v31 = vadd.f32 %v4036_v35, %v4019_v61  ;;  %v14540_v24 = vor.u32 %v18809_v54, %v14539_v56  ;;  %v18862_v35 = vld [vmem:[%s27030_s3 + $0xde8] sm:$0xf0]  ;;  %v15005_v46 = vld [vmem:[%s27030_s3 + $0xe70] sm:$0xf]  ;;  %v14921_v55 = vld [vmem:[%s27030_s3 + $0xdc8] sm:$0xf] }
 0x2ff   : > { %v18826_v61 = vld [vmem:[%s27030_s3 + $0xcc8] sm:$0xf0]  ;;  %v14934_v32 = vor.u32 %v18862_v35, %v14933_v52  ;;  %v18859_v36 = vld [vmem:[%s27030_s3 + $0xdd0] sm:$0xf0] }
 0x300   : > { %5273 = vmatmul.bf16.gmra.mxu2 %v22693_v26  ;;  %6355 = vmatpush.bf16.msrb.mxu1 %v14946_v58  ;;  %v14790_v43 = vor.u32 %v18826_v61, %v14789_v42  ;;  %v18880_v26 = vld [vmem:[%s27030_s3 + $0xe78] sm:$0xf0]  ;;  %v14777_v61 = vld [vmem:[%s27030_s3 + $0xca8] sm:$0xf] }
 0x301   : > { %6374 = vmatpush.bf16.msrb.mxu2 %v15030_v19  ;;  %6341 = vmatpush.bf16.msrb.mxu0 %v14802_v59  ;;  %v15006_v35 = vor.u32 %v18880_v26, %v15005_v46 }
 0x302   : > { %5286 = vmatmul.bf16.vlgmr.msra.gmra.mxu3 %v22861_v63  ;;  %v18916_v63 = vld [vmem:[%s27030_s3 + $0xf98] sm:$0xf0] }
 0x303   : > { %v4021_v19 = vpop.f32.mrf.mxu1  ;;  %v4039_v58 = vpop.f32.mrf.mxu2  ;;  %5357 = vmatpush.bf16.msrb.mxu3 %v14540_v24  ;;  %v15150_v22 = vor.u32 %v18916_v63, %v15149_v1  ;;  %v14922_v24 = vor.u32 %v18859_v36, %v14921_v55  ;;  %v18877_v1 = vld [vmem:[%s27030_s3 + $0xe60] sm:$0xf0]  ;;  %v14909_v63 = vld [vmem:[%s27030_s3 + $0xdb0] sm:$0xf] }
 0x304   : > { %v4022_v56 = vadd.f32 %v4021_v19, %v23443_v10  ;;  %v4070_v59 = vpop.f32.mrf.mxu0  ;;  %6356 = vmatpush.bf16.msrb.mxu1 %v14934_v32  ;;  %v14993_v32 = vld [vmem:[%s27030_s3 + $0xe58] sm:$0xf]  ;;  %v18856_v19 = vld [vmem:[%s27030_s3 + $0xdb8] sm:$0xf0] }
 0x305   : > { %v4052_v54 = vpop.f32.mrf.mxu3  ;;  %6375 = vmatpush.bf16.msrb.mxu2 %v15018_v20  ;;  %6342 = vmatpush.bf16.msrb.mxu0 %v14790_v43  ;;  %v18913_v43 = vld [vmem:[%s27030_s3 + $0xf80] sm:$0xf0]  ;;  %v14994_v46 = vor.u32 %v18877_v1, %v14993_v32 }
 0x306   : > { %v4053_v52 = vadd.f32 %v4052_v54, %v23445_v7  ;;  %v23553_v42 = vadd.f32 %v4039_v58, %v4022_v56  ;;  %14592 = vmatmul.msk.bf16.gmra.mxu1 %vm2718_vm5, %v23068_v27  ;;  %v18823_v7 = vld [vmem:[%s27030_s3 + $0xcb0] sm:$0xf0]  ;;  %v15245_v58 = vld [vmem:[%s27030_s3 + $0x1050] sm:$0xf]  ;;  %v18940_v56 = vld [vmem:[%s27030_s3 + $0x1058] sm:$0xf0] }
 0x307   : > { %6390 = vmatpush.bf16.msra.mxu3 %v15150_v22  ;;  %5304 = vmatmul.bf16.vlgmr.msra.gmra.mxu0 %v22894_v16  ;;  %v14778_v20 = vor.u32 %v18823_v7, %v14777_v61  ;;  %v15137_v16 = vld [vmem:[%s27030_s3 + $0xf78] sm:$0xf]  ;;  %v14910_v22 = vor.u32 %v18856_v19, %v14909_v63  ;;  %v14981_v54 = vld [vmem:[%s27030_s3 + $0xe40] sm:$0xf]  ;;  %v18853_v1 = vld [vmem:[%s27030_s3 + $0xda0] sm:$0xf0] }
 0x308   : > { %v23557_v10 = vadd.f32 %v4070_v59, %v4053_v52  ;;  %6357 = vmatpush.bf16.msrb.mxu1 %v14922_v24  ;;  %v15138_v26 = vor.u32 %v18913_v43, %v15137_v16  ;;  %v18874_v59 = vld [vmem:[%s27030_s3 + $0xe48] sm:$0xf0]  ;;  %v15246_v52 = vor.u32 %v18940_v56, %v15245_v58  ;;  %v14897_v61 = vld [vmem:[%s27030_s3 + $0xd98] sm:$0xf]  ;;  %v18937_v58 = vld [vmem:[%s27030_s3 + $0x1040] sm:$0xf0] }
 0x309   : > { %6376 = vmatpush.bf16.msrb.mxu2 %v15006_v35  ;;  %6343 = vmatpush.bf16.msrb.mxu0 %v14778_v20  ;;  %v15125_v35 = vld [vmem:[%s27030_s3 + $0xf60] sm:$0xf]  ;;  %v18910_v24 = vld [vmem:[%s27030_s3 + $0xf68] sm:$0xf0]  ;;  %v14982_v43 = vor.u32 %v18874_v59, %v14981_v54  ;;  %v15233_v19 = vld [vmem:[%s27030_s3 + $0x1038] sm:$0xf] }
 0x30a   : > { %v15126_v20 = vor.u32 %v18910_v24, %v15125_v35  ;;  %v15113_v56 = vld [vmem:[%s27030_s3 + $0xf48] sm:$0xf]  ;;  %v18907_v54 = vld [vmem:[%s27030_s3 + $0xf50] sm:$0xf0]  ;;  %v15101_v24 = vld [vmem:[%s27030_s3 + $0xf30] sm:$0xf] }
 0x30b   : > { %v4023_v55 = vpop.f32.mrf.mxu1  ;;  %v4041_v36 = vpop.f32.mrf.mxu2  ;;  %6391 = vmatpush.bf16.msra.mxu3 %v15138_v26  ;;  %v14898_v26 = vor.u32 %v18853_v1, %v14897_v61  ;;  %v18904_v61 = vld [vmem:[%s27030_s3 + $0xf38] sm:$0xf0] }
 0x30c   : > { %v4072_v32 = vpop.f32.mrf.mxu0  ;;  %6358 = vmatpush.bf16.msrb.mxu1 %v14910_v22  ;;  %v14969_v22 = vld [vmem:[%s27030_s3 + $0xe28] sm:$0xf]  ;;  %v15114_v55 = vor.u32 %v18907_v54, %v15113_v56  ;;  %v18850_v36 = vld [vmem:[%s27030_s3 + $0xd88] sm:$0xf0]  ;;  %v15102_v1 = vor.u32 %v18904_v61, %v15101_v24  ;;  %v18928_v24 = vld [vmem:[%s27030_s3 + $0xff8] sm:$0xf0] }
 0x30d   : > { %v4054_v7 = vpop.f32.mrf.mxu3  ;;  %6377 = vmatpush.bf16.msrb.mxu2 %v14994_v46  ;;  %6408 = vmatpush.bf16.msra.mxu0 %v15246_v52  ;;  %v18871_v46 = vld [vmem:[%s27030_s3 + $0xe30] sm:$0xf0]  ;;  %v15221_v52 = vld [vmem:[%s27030_s3 + $0x1020] sm:$0xf] }
 0x30e   : > { %v4055_v16 = vadd.f32 %v4054_v7, %v23511_v31  ;;  %v15234_v31 = vor.u32 %v18937_v58, %v15233_v19  ;;  %v14970_v59 = vor.u32 %v18871_v46, %v14969_v22  ;;  %v18847_v46 = vld [vmem:[%s27030_s3 + $0xd70] sm:$0xf0]  ;;  %v15077_v61 = vld [vmem:[%s27030_s3 + $0xf00] sm:$0xf] }
 0x30f   : > { %6392 = vmatpush.bf16.msra.mxu3 %v15126_v20 }
 0x310   : > { %v23609_v63 = vadd.f32 %v4072_v32, %v4055_v16  ;;  %5340 = vmatmul.bf16.vlgmr.msra.gmra.mxu2 %v22959_v34  ;;  %6359 = vmatpush.bf16.msrb.mxu1 %v14898_v26  ;;  %v14885_v34 = vld [vmem:[%s27030_s3 + $0xd80] sm:$0xf]  ;;  %v18843_v16 = vld [vmem:[%s27030_s3 + $0xd54] sm:$0xf] }
 0x311   : > { %6378 = vmatpush.bf16.msrb.mxu2 %v14982_v43  ;;  %6409 = vmatpush.bf16.msra.mxu0 %v15234_v31  ;;  %v14886_v35 = vor.u32 %v18850_v36, %v14885_v34  ;;  %v14863_v43 = vld [vmem:[%s27030_s3 + $0xd5c] sm:$0xf0]  ;;  %v14873_v31 = vld [vmem:[%s27030_s3 + $0xd68] sm:$0xf]  ;;  %v18931_v34 = vld [vmem:[%s27030_s3 + $0x1010] sm:$0xf0] }
 0x312   : > { %5291 = vmatmul.bf16.gmra.mxu3 %v22811_v48  ;;  %v18934_v48 = vld [vmem:[%s27030_s3 + $0x1028] sm:$0xf0]  ;;  %v14866_v22 = vor.u32 %v18843_v16, %v14863_v43  ;;  %v14874_v54 = vor.u32 %v18847_v46, %v14873_v31  ;;  %v14851_v36 = vld [vmem:[%s27030_s3 + $0xd44] sm:$0xf0]  ;;  %v14839_v16 = vld [vmem:[%s27030_s3 + $0xd2c] sm:$0xf0] }
 0x313   : > { %v4088_v7 = vpop.f32.mrf.mxu1  ;;  %v23649_v32 = vpop.f32.mrf.mxu2  ;;  %6393 = vmatpush.bf16.msra.mxu3 %v15114_v55  ;;  %v15222_v20 = vor.u32 %v18934_v48, %v15221_v52  ;;  %v15209_v55 = vld [vmem:[%s27030_s3 + $0x1008] sm:$0xf]  ;;  %v15197_v48 = vld [vmem:[%s27030_s3 + $0xff0] sm:$0xf] }
 0x314   : > { %v23658_v26 = vadd.f32 %v4088_v7, %v23557_v10  ;;  %v4075_v58 = vpop.f32.mrf.mxu0  ;;  %6360 = vmatpush.bf16.msrb.mxu1 %v14886_v35  ;;  %v15198_v7 = vor.u32 %v18928_v24, %v15197_v48  ;;  %v18867_v48 = vld [vmem:[%s27030_s3 + $0xe14] sm:$0xf] }
 0x315   : > { %v4057_v19 = vpop.f32.mrf.mxu3  ;;  %6379 = vmatpush.bf16.msrb.mxu2 %v14970_v59  ;;  %6410 = vmatpush.bf16.msra.mxu0 %v15222_v20  ;;  %v18840_v59 = vld [vmem:[%s27030_s3 + $0xd3c] sm:$0xf]  ;;  %v18898_v20 = vld [vmem:[%s27030_s3 + $0xf08] sm:$0xf0]  ;;  %v18831_v24 = vld [vmem:[%s27030_s3 + $0xcf4] sm:$0xf] }
 0x316   : > { %v4058_v56 = vadd.f32 %v4057_v19, %v23553_v42  ;;  %5322 = vmatmul.bf16.vlgmr.msra.gmra.mxu1 %v23021_v15  ;;  %v15089_v42 = vld [vmem:[%s27030_s3 + $0xf18] sm:$0xf]  ;;  %v15210_v15 = vor.u32 %v18931_v34, %v15209_v55  ;;  %v14854_v35 = vor.u32 %v18840_v59, %v14851_v36  ;;  %v18925_v55 = vld [vmem:[%s27030_s3 + $0xfe0] sm:$0xf0]  ;;  %v15065_v34 = vld [vmem:[%s27030_s3 + $0xee8] sm:$0xf] }
 0x317   : > { %5309 = vmatmul.bf16.gmra.mxu0 %v22865_v33  ;;  %6394 = vmatpush.bf16.msra.mxu3 %v15102_v1  ;;  %v18901_v33 = vld [vmem:[%s27030_s3 + $0xf20] sm:$0xf0]  ;;  %v15173_v36 = vld [vmem:[%s27030_s3 + $0xfc0] sm:$0xf] }
 0x318   : > { %v4076_v10 = vadd.f32 %v4075_v58, %v4058_v56  ;;  %6361 = vmatpush.bf16.msrb.mxu1 %v14874_v54  ;;  %v15090_v52 = vor.u32 %v18901_v33, %v15089_v42  ;;  %v18837_v1 = vld [vmem:[%s27030_s3 + $0xd24] sm:$0xf]  ;;  %v15078_v58 = vor.u32 %v18898_v20, %v15077_v61  ;;  %v15185_v54 = vld [vmem:[%s27030_s3 + $0xfd8] sm:$0xf]  ;;  %v18895_v42 = vld [vmem:[%s27030_s3 + $0xef0] sm:$0xf0] }
 0x319   : > { %6444 = vmatpush.bf16.msra.mxu2 %v14866_v22  ;;  %6411 = vmatpush.bf16.msra.mxu0 %v15210_v15  ;;  %v14842_v56 = vor.u32 %v18837_v1, %v14839_v16  ;;  %v18834_v15 = vld [vmem:[%s27030_s3 + $0xd0c] sm:$0xf]  ;;  %v14827_v33 = vld [vmem:[%s27030_s3 + $0xd14] sm:$0xf0]  ;;  %v15066_v59 = vor.u32 %v18895_v42, %v15065_v34  ;;  %v14815_v61 = vld [vmem:[%s27030_s3 + $0xcfc] sm:$0xf0] }
 0x31a   : > { %v14803_v42 = vld [vmem:[%s27030_s3 + $0xce4] sm:$0xf0] }
 0x31b   : > { %v4090_v43 = vpop.f32.mrf.mxu1  ;;  %v23705_v19 = vpop.f32.mrf.mxu2  ;;  %6395 = vmatpush.bf16.msra.mxu3 %v15090_v52  ;;  %v18922_v52 = vld [vmem:[%s27030_s3 + $0xfc8] sm:$0xf0] }
 0x31c   : > { %v23708_v22 = vadd.f32 %v4090_v43, %v23609_v63  ;;  %v4077_v46 = vpop.f32.mrf.mxu0  ;;  %v15186_v63 = vor.u32 %v18925_v55, %v15185_v54  ;;  %v14818_v54 = vor.u32 %v18831_v24, %v14815_v61  ;;  %v15055_v24 = vld [vmem:[%s27030_s3 + $0xedc] sm:$0xf0]  ;;  %v18825_v61 = vld [vmem:[%s27030_s3 + $0xcc4] sm:$0xf] }
 0x31d   : > { %v4059_v31 = vpop.f32.mrf.mxu3  ;;  %6445 = vmatpush.bf16.msra.mxu2 %v14854_v35  ;;  %6412 = vmatpush.bf16.msra.mxu0 %v15198_v7  ;;  %v14830_v35 = vor.u32 %v18834_v15, %v14827_v33  ;;  %v18955_v46 = vld [vmem:[%s27030_s3 + $0x10d0] sm:$0xf0]  ;;  %v18864_v15 = vld [vmem:[%s27030_s3 + $0xdfc] sm:$0xf]  ;;  %v14947_v33 = vld [vmem:[%s27030_s3 + $0xe04] sm:$0xf0] }
 0x31e   : > { %v15305_v31 = vld [vmem:[%s27030_s3 + $0x10c8] sm:$0xf] }
 0x31f   : > { %6396 = vmatpush.bf16.msra.mxu3 %v15078_v58  ;;  %v15306_v55 = vor.u32 %v18955_v46, %v15305_v31  ;;  %v14935_v31 = vld [vmem:[%s27030_s3 + $0xdec] sm:$0xf0]  ;;  %v15281_v46 = vld [vmem:[%s27030_s3 + $0x1098] sm:$0xf] }
 0x320   : > { %5345 = vmatmul.bf16.gmra.mxu2 %v22897_v17  ;;  %v15174_v17 = vor.u32 %v18922_v52, %v15173_v36  ;;  %v14950_v36 = vor.u32 %v18864_v15, %v14947_v33  ;;  %v15293_v52 = vld [vmem:[%s27030_s3 + $0x10b0] sm:$0xf]  ;;  %v18888_v33 = vld [vmem:[%s27030_s3 + $0xebc] sm:$0xf] }
 0x321   : > { %6446 = vmatpush.bf16.msra.mxu2 %v14842_v56  ;;  %6413 = vmatpush.bf16.msra.mxu0 %v15186_v63 }
 0x322   : > { %14593 = vmatmul.msk.bf16.vlgmr.msrb.gmra.mxu3 %vm2718_vm5, %v23092_v29  ;;  %v14959_v29 = vld [vmem:[%s27030_s3 + $0xe1c] sm:$0xf0]  ;;  %6429 = vmatpush.bf16.msra.mxu1 %v15306_v55 }
 0x323   : > { %v4093_v7 = vpop.f32.mrf.mxu1  ;;  %v23749_v20 = vpop.f32.mrf.mxu2  ;;  %6397 = vmatpush.bf16.msra.mxu3 %v15066_v59  ;;  %v14962_v1 = vor.u32 %v18867_v48, %v14959_v29  ;;  %v18891_v48 = vld [vmem:[%s27030_s3 + $0xed4] sm:$0xf]  ;;  %v14791_v29 = vld [vmem:[%s27030_s3 + $0xccc] sm:$0xf0] }
 0x324   : > { %v23751_v16 = vadd.f32 %v4093_v7, %v4076_v10  ;;  %v5089_v58 = vpop.f32.mrf.mxu0  ;;  %v27052_v10 = vor.u32 %v20630_v30, %v20626_v25  ;;  %v18828_v25 = vld [vmem:[%s27030_s3 + $0xcdc] sm:$0xf] }
 0x325   : > { %v5071_v43 = vpop.f32.mrf.mxu3  ;;  %6447 = vmatpush.bf16.msra.mxu2 %v14830_v35  ;;  %6414 = vmatpush.bf16.msra.mxu0 %v15174_v17  ;;  %v14806_v59 = vor.u32 %v18828_v25, %v14803_v42  ;;  %v18952_v35 = vld [vmem:[%s27030_s3 + $0x10b8] sm:$0xf0]  ;;  %v27053_v42 = vor.u32 %v21175_v41, %v21167_v60  ;;  %v14779_v41 = vld [vmem:[%s27030_s3 + $0xcb4] sm:$0xf0] }
 0x326   : > { %v5072_v56 = vadd.f32 %v5071_v43, %v23649_v32  ;;  %5327 = vmatmul.bf16.gmra.mxu1 %v22953_v39  ;;  %v23766_v34 = vsel %vm1042_vm4, %v27052_v10, %v20711_v50  ;;  %v15161_v32 = vld [vmem:[%s27030_s3 + $0xfa8] sm:$0xf]  ;;  %v18919_v39 = vld [vmem:[%s27030_s3 + $0xfb0] sm:$0xf0]  ;;  %v15294_v17 = vor.u32 %v18952_v35, %v15293_v52  ;;  %v15058_v43 = vor.u32 %v18891_v48, %v15055_v24  ;;  %v18949_v10 = vld [vmem:[%s27030_s3 + $0x10a0] sm:$0xf0] }
 0x327   : > { %6462 = vmatpush.bf16.msrb.mxu3 %v14962_v1  ;;  %6344 = vmatmul.bf16.vlgmr.msrb.gmra.mxu0 %v23766_v34  ;;  %v15162_v30 = vor.u32 %v18919_v39, %v15161_v32  ;;  %v14794_v39 = vor.u32 %v18825_v61, %v14791_v29  ;;  %v15282_v25 = vor.u32 %v18949_v10, %v15281_v46  ;;  %v14923_v52 = vld [vmem:[%s27030_s3 + $0xdd4] sm:$0xf0]  ;;  %v18946_v24 = vld [vmem:[%s27030_s3 + $0x1088] sm:$0xf0]  ;;  %v18885_v61 = vld [vmem:[%s27030_s3 + $0xea4] sm:$0xf] }
 0x328   : > { %v23768_v63 = vadd.f32 %v5089_v58, %v5072_v56  ;;  %v18861_v58 = vld [vmem:[%s27030_s3 + $0xde4] sm:$0xf]  ;;  %6430 = vmatpush.bf16.msra.mxu1 %v15294_v17  ;;  %v23827_v15 = vsel %vm1042_vm4, %v27053_v42, %v20946_v28  ;;  %v15269_v17 = vld [vmem:[%s27030_s3 + $0x1080] sm:$0xf]  ;;  %v18943_v42 = vld [vmem:[%s27030_s3 + $0x1070] sm:$0xf0] }
 0x329   : > { %6448 = vmatpush.bf16.msra.mxu2 %v14818_v54  ;;  %6415 = vmatpush.bf16.msra.mxu0 %v15162_v30  ;;  %v14938_v55 = vor.u32 %v18861_v58, %v14935_v31  ;;  %v15270_v29 = vor.u32 %v18946_v24, %v15269_v17 }
 0x32b   : > { %v4095_v7 = vpop.f32.mrf.mxu1  ;;  %v5060_v1 = vpop.f32.mrf.mxu2  ;;  %6463 = vmatpush.bf16.msrb.mxu3 %v14950_v36  ;;  %v18858_v36 = vld [vmem:[%s27030_s3 + $0xdcc] sm:$0xf] }
 0x32c   : > { %v5091_v54 = vpop.f32.mrf.mxu0  ;;  %6431 = vmatpush.bf16.msra.mxu1 %v15282_v25  ;;  %v14926_v48 = vor.u32 %v18858_v36, %v14923_v52  ;;  %v18855_v7 = vld [vmem:[%s27030_s3 + $0xdb4] sm:$0xf]  ;;  %v14911_v1 = vld [vmem:[%s27030_s3 + $0xdbc] sm:$0xf0]  ;;  %v15257_v25 = vld [vmem:[%s27030_s3 + $0x1068] sm:$0xf] }
 0x32d   : > { %v5073_v56 = vpop.f32.mrf.mxu3  ;;  %6449 = vmatpush.bf16.msra.mxu2 %v14806_v59  ;;  %6480 = vmatpush.bf16.msrb.mxu0 %v15058_v43  ;;  %v18822_v59 = vld [vmem:[%s27030_s3 + $0xcac] sm:$0xf]  ;;  %v14914_v46 = vor.u32 %v18855_v7, %v14911_v1  ;;  %v14899_v52 = vld [vmem:[%s27030_s3 + $0xda4] sm:$0xf0]  ;;  %v15007_v1 = vld [vmem:[%s27030_s3 + $0xe7c] sm:$0xf0] }
 0x32e   : > { %v5074_v32 = vadd.f32 %v5073_v56, %v23705_v19  ;;  %v15043_v19 = vld [vmem:[%s27030_s3 + $0xec4] sm:$0xf0]  ;;  %v14782_v35 = vor.u32 %v18822_v59, %v14779_v41  ;;  %v18939_v56 = vld [vmem:[%s27030_s3 + $0x1054] sm:$0xf]  ;;  %v15258_v59 = vor.u32 %v18943_v42, %v15257_v25  ;;  %v18912_v42 = vld [vmem:[%s27030_s3 + $0xf7c] sm:$0xf] }
 0x32f   : > { %6464 = vmatpush.bf16.msrb.mxu3 %v14938_v55  ;;  %v15046_v60 = vor.u32 %v18888_v33, %v15043_v19  ;;  %v27054_v19 = vor.u32 %v21183_v45, %v21179_v6  ;;  %v15019_v6 = vld [vmem:[%s27030_s3 + $0xe94] sm:$0xf0]  ;;  %v18852_v45 = vld [vmem:[%s27030_s3 + $0xd9c] sm:$0xf] }
 0x330   : > { %v23820_v30 = vadd.f32 %v5091_v54, %v5074_v32  ;;  %6380 = vmatmul.bf16.vlgmr.msrb.gmra.mxu2 %v23827_v15  ;;  %v15247_v54 = vld [vmem:[%s27030_s3 + $0x105c] sm:$0xf0]  ;;  %6432 = vmatpush.bf16.msra.mxu1 %v15270_v29  ;;  %v14902_v17 = vor.u32 %v18852_v45, %v14899_v52  ;;  %v18846_v45 = vld [vmem:[%s27030_s3 + $0xd6c] sm:$0xf]  ;;  %v14875_v52 = vld [vmem:[%s27030_s3 + $0xd74] sm:$0xf0] }
 0x331   : > { %6450 = vmatpush.bf16.msra.mxu2 %v14794_v39  ;;  %6481 = vmatpush.bf16.msrb.mxu0 %v15046_v60  ;;  %v15250_v39 = vor.u32 %v18939_v56, %v15247_v54  ;;  %v15151_v29 = vld [vmem:[%s27030_s3 + $0xf9c] sm:$0xf0] }
 0x332   : > { %14594 = vmatmul.msk.bf16.gmra.mxu3 %vm2718_vm5, %v23068_v27  ;;  %v15031_v27 = vld [vmem:[%s27030_s3 + $0xeac] sm:$0xf0] }
 0x333   : > { %v5107_v43 = vpop.f32.mrf.mxu1  ;;  %v5125_v58 = vpop.f32.mrf.mxu2  ;;  %6465 = vmatpush.bf16.msrb.mxu3 %v14926_v48  ;;  %v15034_v31 = vor.u32 %v18885_v61, %v15031_v27  ;;  %v15235_v48 = vld [vmem:[%s27030_s3 + $0x1044] sm:$0xf0]  ;;  %v18915_v61 = vld [vmem:[%s27030_s3 + $0xf94] sm:$0xf] }
 0x334   : > { %v5108_v55 = vadd.f32 %v5107_v43, %v23768_v63  ;;  %v5094_v32 = vpop.f32.mrf.mxu0  ;;  %v23887_v63 = vsel %vm1042_vm4, %v27054_v19, %v20895_v14  ;;  %6433 = vmatpush.bf16.msra.mxu1 %v15258_v59  ;;  %v18879_v27 = vld [vmem:[%s27030_s3 + $0xe74] sm:$0xf]  ;;  %v15154_v7 = vor.u32 %v18915_v61, %v15151_v29  ;;  %v18849_v43 = vld [vmem:[%s27030_s3 + $0xd84] sm:$0xf]  ;;  %v14878_v61 = vor.u32 %v18846_v45, %v14875_v52 }
 0x335   : > { %v5076_v10 = vpop.f32.mrf.mxu3  ;;  %6451 = vmatpush.bf16.msra.mxu2 %v14782_v35  ;;  %6482 = vmatpush.bf16.msrb.mxu0 %v15034_v31  ;;  %v18936_v35 = vld [vmem:[%s27030_s3 + $0x103c] sm:$0xf]  ;;  %v15010_v56 = vor.u32 %v18879_v27, %v15007_v1  ;;  %v18909_v29 = vld [vmem:[%s27030_s3 + $0xf64] sm:$0xf]  ;;  %v15127_v27 = vld [vmem:[%s27030_s3 + $0xf6c] sm:$0xf0] }
 0x336   : > { %v5077_v33 = vadd.f32 %v5076_v10, %v23749_v20  ;;  %v23889_v60 = vadd.f32 %v5125_v58, %v5108_v55  ;;  %6362 = vmatmul.bf16.vlgmr.msrb.gmra.mxu1 %v23887_v63  ;;  %v18882_v20 = vld [vmem:[%s27030_s3 + $0xe8c] sm:$0xf]  ;;  %v15238_v24 = vor.u32 %v18936_v35, %v15235_v48  ;;  %v14887_v58 = vld [vmem:[%s27030_s3 + $0xd8c] sm:$0xf0]  ;;  %v18933_v55 = vld [vmem:[%s27030_s3 + $0x1024] sm:$0xf] }
 0x337   : > { %6349 = vmatmul.bf16.gmra.mxu0 %v20711_v50  ;;  %6466 = vmatpush.bf16.msrb.mxu3 %v14914_v46  ;;  %v15022_v36 = vor.u32 %v18882_v20, %v15019_v6  ;;  %v14890_v54 = vor.u32 %v18849_v43, %v14887_v58  ;;  %v15223_v10 = vld [vmem:[%s27030_s3 + $0x102c] sm:$0xf0]  ;;  %v14995_v6 = vld [vmem:[%s27030_s3 + $0xe64] sm:$0xf0]  ;;  %v18930_v35 = vld [vmem:[%s27030_s3 + $0x100c] sm:$0xf] }
 0x338   : > { %v23892_v41 = vadd.f32 %v5094_v32, %v5077_v33  ;;  %6498 = vmatpush.bf16.msrb.mxu1 %v15154_v7  ;;  %v15139_v33 = vld [vmem:[%s27030_s3 + $0xf84] sm:$0xf0]  ;;  %v15226_v19 = vor.u32 %v18933_v55, %v15223_v10  ;;  %v15211_v48 = vld [vmem:[%s27030_s3 + $0x1014] sm:$0xf0]  ;;  %v18873_v7 = vld [vmem:[%s27030_s3 + $0xe44] sm:$0xf] }
 0x339   : > { %6516 = vmatpush.bf16.msrb.mxu2 %v15250_v39  ;;  %6483 = vmatpush.bf16.msrb.mxu0 %v15022_v36  ;;  %v15142_v59 = vor.u32 %v18912_v42, %v15139_v33  ;;  %v14983_v1 = vld [vmem:[%s27030_s3 + $0xe4c] sm:$0xf0]  ;;  %v18927_v58 = vld [vmem:[%s27030_s3 + $0xff4] sm:$0xf] }
 0x33a   : > { %v14986_v43 = vor.u32 %v18873_v7, %v14983_v1  ;;  %v18903_v45 = vld [vmem:[%s27030_s3 + $0xf34] sm:$0xf]  ;;  %v15091_v1 = vld [vmem:[%s27030_s3 + $0xf24] sm:$0xf0] }
 0x33b   : > { %v5109_v31 = vpop.f32.mrf.mxu1  ;;  %v5127_v46 = vpop.f32.mrf.mxu2  ;;  %6467 = vmatpush.bf16.msrb.mxu3 %v14902_v17  ;;  %v27055_v17 = vor.u32 %v21228_v40, %v21224_v23  ;;  %v15214_v23 = vor.u32 %v18930_v35, %v15211_v48  ;;  %v15130_v40 = vor.u32 %v18909_v29, %v15127_v27  ;;  %v14869_v48 = vld [vmem:[%s27030_s3 + $0xd58] sm:$0xf]  ;;  %v18921_v29 = vld [vmem:[%s27030_s3 + $0xfc4] sm:$0xf]  ;;  %v15175_v27 = vld [vmem:[%s27030_s3 + $0xfcc] sm:$0xf0] }
 0x33c   : > { %v5110_v32 = vadd.f32 %v5109_v31, %v23820_v30  ;;  %v5096_v25 = vpop.f32.mrf.mxu0  ;;  %v18876_v30 = vld [vmem:[%s27030_s3 + $0xe5c] sm:$0xf]  ;;  %6499 = vmatpush.bf16.msrb.mxu1 %v15142_v59  ;;  %v15199_v31 = vld [vmem:[%s27030_s3 + $0xffc] sm:$0xf0] }
 0x33d   : > { %v5078_v39 = vpop.f32.mrf.mxu3  ;;  %6517 = vmatpush.bf16.msrb.mxu2 %v15238_v24  ;;  %6484 = vmatpush.bf16.msrb.mxu0 %v15010_v56  ;;  %v14998_v36 = vor.u32 %v18876_v30, %v14995_v6  ;;  %v23970_v24 = vsel %vm1042_vm4, %v27055_v17, %v21098_v8  ;;  %v15202_v42 = vor.u32 %v18927_v58, %v15199_v31  ;;  %v14971_v6 = vld [vmem:[%s27030_s3 + $0xe34] sm:$0xf0]  ;;  %v18845_v17 = vld [vmem:[%s27030_s3 + $0xd60] sm:$0xf0] }
 0x33e   : > { %v23944_v20 = vadd.f32 %v5127_v46, %v5110_v32  ;;  %v18906_v32 = vld [vmem:[%s27030_s3 + $0xf4c] sm:$0xf]  ;;  %v15115_v39 = vld [vmem:[%s27030_s3 + $0xf54] sm:$0xf0] }
 0x33f   : > { %6468 = vmatpush.bf16.msrb.mxu3 %v14890_v54  ;;  %v15118_v33 = vor.u32 %v18906_v32, %v15115_v39  ;;  %v18842_v32 = vld [vmem:[%s27030_s3 + $0xd48] sm:$0xf0] }
 0x340   : > { %6385 = vmatmul.bf16.gmra.mxu2 %v20946_v28  ;;  %6500 = vmatpush.bf16.msrb.mxu1 %v15130_v40  ;;  %v18900_v40 = vld [vmem:[%s27030_s3 + $0xf1c] sm:$0xf]  ;;  %v18918_v39 = vld [vmem:[%s27030_s3 + $0xfac] sm:$0xf] }
 0x341   : > { %6518 = vmatpush.bf16.msrb.mxu2 %v15226_v19  ;;  %6485 = vmatpush.bf16.msrb.mxu0 %v14998_v36  ;;  %v15103_v36 = vld [vmem:[%s27030_s3 + $0xf3c] sm:$0xf0]  ;;  %v15094_v31 = vor.u32 %v18900_v40, %v15091_v1 }
 0x342   : > { %6398 = vmatmul.bf16.vlgmr.msra.gmra.mxu3 %v23970_v24  ;;  %v15106_v35 = vor.u32 %v18903_v45, %v15103_v36  ;;  %v18951_v45 = vld [vmem:[%s27030_s3 + $0x10b4] sm:$0xf]  ;;  %v15295_v36 = vld [vmem:[%s27030_s3 + $0x10bc] sm:$0xf0] }
 0x343   : > { %v5112_v46 = vpop.f32.mrf.mxu1  ;;  %v5130_v56 = vpop.f32.mrf.mxu2  ;;  %6469 = vmatpush.bf16.msrb.mxu3 %v14878_v61  ;;  %v14870_v61 = vor.u32 %v18845_v17, %v14869_v48  ;;  %v15298_v17 = vor.u32 %v18951_v45, %v15295_v36 }
 0x344   : > { %v5113_v54 = vadd.f32 %v5112_v46, %v23892_v41  ;;  %v23992_v10 = vpop.f32.mrf.mxu0  ;;  %v27056_v41 = vor.u32 %v21268_v9, %v21232_v4  ;;  %v18924_v4 = vld [vmem:[%s27030_s3 + $0xfdc] sm:$0xf]  ;;  %6501 = vmatpush.bf16.msrb.mxu1 %v15118_v33 }
 0x345   : > { %v5143_v55 = vpop.f32.mrf.mxu3  ;;  %6519 = vmatpush.bf16.msrb.mxu2 %v15214_v23  ;;  %6486 = vmatpush.bf16.msrb.mxu0 %v14986_v43 }
 0x346   : > { %v5144_v25 = vadd.f32 %v5143_v55, %v23889_v60  ;;  %v24001_v19 = vadd.f32 %v5130_v56, %v5113_v54  ;;  %6367 = vmatmul.bf16.gmra.mxu1 %v20895_v14  ;;  %v24009_v59 = vsel %vm1042_vm4, %v27056_v41, %v21043_v38  ;;  %v18870_v60 = vld [vmem:[%s27030_s3 + $0xe2c] sm:$0xf]  ;;  %v15178_v56 = vor.u32 %v18921_v29, %v15175_v27  ;;  %v14857_v55 = vld [vmem:[%s27030_s3 + $0xd40] sm:$0xf]  ;;  %v18893_v29 = vld [vmem:[%s27030_s3 + $0xee0] sm:$0xf0] }
 0x347   : > { %6416 = vmatmul.bf16.vlgmr.msra.gmra.mxu0 %v24009_v59  ;;  %v14974_v9 = vor.u32 %v18870_v60, %v14971_v6  ;;  %v18897_v60 = vld [vmem:[%s27030_s3 + $0xf04] sm:$0xf]  ;;  %v15079_v6 = vld [vmem:[%s27030_s3 + $0xf0c] sm:$0xf0] }
 0x348   : > { %v24012_v30 = vadd.f32 %v5144_v25, %v23007_v47  ;;  %v15187_v47 = vld [vmem:[%s27030_s3 + $0xfe4] sm:$0xf0]  ;;  %6502 = vmatpush.bf16.msrb.mxu1 %v15106_v35  ;;  %v18954_v25 = vld [vmem:[%s27030_s3 + $0x10cc] sm:$0xf] }
 0x349   : > { %6520 = vmatpush.bf16.msrb.mxu2 %v15202_v42  ;;  %v15190_v52 = vor.u32 %v18924_v4, %v15187_v47  ;;  %6487 = vmatpush.bf16.msrb.mxu0 %v14974_v9  ;;  %v15307_v42 = vld [vmem:[%s27030_s3 + $0x10d4] sm:$0xf0]  ;;  %v14845_v4 = vld [vmem:[%s27030_s3 + $0xd28] sm:$0xf]  ;;  %v15082_v9 = vor.u32 %v18897_v60, %v15079_v6  ;;  %v18839_v47 = vld [vmem:[%s27030_s3 + $0xd30] sm:$0xf0] }
 0x34a   : > { %v15310_v41 = vor.u32 %v18954_v25, %v15307_v42  ;;  %v14846_v48 = vor.u32 %v18839_v47, %v14845_v4  ;;  %v14821_v60 = vld [vmem:[%s27030_s3 + $0xcf8] sm:$0xf]  ;;  %v18833_v4 = vld [vmem:[%s27030_s3 + $0xd00] sm:$0xf0]  ;;  %v15271_v47 = vld [vmem:[%s27030_s3 + $0x108c] sm:$0xf0] }
 0x34b   : > { %v5114_v7 = vpop.f32.mrf.mxu1  ;;  %v5132_v23 = vpop.f32.mrf.mxu2 }
 0x34c   : > { %v24051_v58 = vpop.f32.mrf.mxu0  ;;  %6503 = vmatpush.bf16.msrb.mxu1 %v15094_v31  ;;  %6537 = vmatpush.bf16.msra.mxu3 %v15310_v41  ;;  %v18869_v41 = vld [vmem:[%s27030_s3 + $0xe20] sm:$0xf0] }
 0x34d   : > { %v5145_v43 = vpop.f32.mrf.mxu3  ;;  %6552 = vmatpush.bf16.msra.mxu0 %v14870_v61  ;;  %6521 = vmatpush.bf16.msrb.mxu2 %v15190_v52  ;;  %v15061_v61 = vld [vmem:[%s27030_s3 + $0xed8] sm:$0xf] }
 0x34e   : > { %v5146_v46 = vadd.f32 %v5145_v43, %v23944_v20  ;;  %v14858_v20 = vor.u32 %v18842_v32, %v14857_v55  ;;  %v15062_v40 = vor.u32 %v18893_v29, %v15061_v61  ;;  %v27057_v43 = vor.u32 %v21327_v57, %v21323_v44  ;;  %v18836_v55 = vld [vmem:[%s27030_s3 + $0xd18] sm:$0xf0] }
 0x34f   : > { %v18948_v32 = vld [vmem:[%s27030_s3 + $0x109c] sm:$0xf] }
 0x350   : > { %v24055_v54 = vadd.f32 %v5146_v46, %v23062_v21  ;;  %6452 = vmatmul.bf16.vlgmr.msra.gmra.mxu2 %v23766_v34  ;;  %v15163_v21 = vld [vmem:[%s27030_s3 + $0xfb4] sm:$0xf0]  ;;  %6504 = vmatpush.bf16.msrb.mxu1 %v15082_v9  ;;  %v24110_v31 = vsel %vm1042_vm4, %v27057_v43, %v21190_v2  ;;  %v18945_v9 = vld [vmem:[%s27030_s3 + $0x1084] sm:$0xf]  ;;  %v18866_v43 = vld [vmem:[%s27030_s3 + $0xe08] sm:$0xf0] }
 0x351   : > { %6522 = vmatpush.bf16.msrb.mxu2 %v15178_v56  ;;  %v15166_v33 = vor.u32 %v18918_v39, %v15163_v21  ;;  %6553 = vmatpush.bf16.msra.mxu0 %v14858_v20  ;;  %v14833_v56 = vld [vmem:[%s27030_s3 + $0xd10] sm:$0xf]  ;;  %v15049_v20 = vld [vmem:[%s27030_s3 + $0xec0] sm:$0xf]  ;;  %v18890_v21 = vld [vmem:[%s27030_s3 + $0xec8] sm:$0xf0] }
 0x352   : > { %6403 = vmatmul.bf16.gmra.mxu3 %v21098_v8  ;;  %v14834_v39 = vor.u32 %v18836_v55, %v14833_v56  ;;  %v15050_v42 = vor.u32 %v18890_v21, %v15049_v20  ;;  %v15259_v56 = vld [vmem:[%s27030_s3 + $0x1074] sm:$0xf0]  ;;  %v14941_v20 = vld [vmem:[%s27030_s3 + $0xde8] sm:$0xf] }
 0x353   : > { %v5179_v52 = vpop.f32.mrf.mxu1  ;;  %v5197_v35 = vpop.f32.mrf.mxu2  ;;  %6538 = vmatpush.bf16.msra.mxu3 %v15298_v17  ;;  %v18887_v17 = vld [vmem:[%s27030_s3 + $0xeb0] sm:$0xf0] }
 0x354   : > { %v5180_v27 = vadd.f32 %v5179_v52, %v23992_v10  ;;  %v24102_v23 = vpop.f32.mrf.mxu0  ;;  %v18894_v10 = vld [vmem:[%s27030_s3 + $0xeec] sm:$0xf]  ;;  %v14822_v52 = vor.u32 %v18833_v4, %v14821_v60  ;;  %v15013_v60 = vld [vmem:[%s27030_s3 + $0xe78] sm:$0xf] }
 0x355   : > { %v5148_v7 = vpop.f32.mrf.mxu3  ;;  %6523 = vmatpush.bf16.msrb.mxu2 %v15166_v33  ;;  %6554 = vmatpush.bf16.msra.mxu0 %v14846_v48  ;;  %v14965_v33 = vld [vmem:[%s27030_s3 + $0xe18] sm:$0xf]  ;;  %v15037_v48 = vld [vmem:[%s27030_s3 + $0xea8] sm:$0xf] }
 0x356   : > { %v5149_v1 = vadd.f32 %v5148_v7, %v24001_v19  ;;  %v24112_v46 = vadd.f32 %v5197_v35, %v5180_v27  ;;  %15315 = vmatmul.msk.bf16.vlgmr.msra.gmra.mxu1 %vm2718_vm5, %v24110_v31  ;;  %v15067_v19 = vld [vmem:[%s27030_s3 + $0xef4] sm:$0xf0]  ;;  %v14966_v6 = vor.u32 %v18869_v41, %v14965_v33  ;;  %v15274_v35 = vor.u32 %v18945_v9, %v15271_v47  ;;  %v18827_v33 = vld [vmem:[%s27030_s3 + $0xcd0] sm:$0xf0] }
 0x357   : > { %6421 = vmatmul.bf16.gmra.mxu0 %v21043_v38  ;;  %v15070_v57 = vor.u32 %v18894_v10, %v15067_v19  ;;  %v15038_v7 = vor.u32 %v18887_v17, %v15037_v48  ;;  %v18830_v19 = vld [vmem:[%s27030_s3 + $0xce8] sm:$0xf0]  ;;  %v15157_v4 = vld [vmem:[%s27030_s3 + $0xf98] sm:$0xf] }
 0x358   : > { %v24123_v44 = vadd.f32 %v5149_v1, %v23114_v12  ;;  %v15283_v12 = vld [vmem:[%s27030_s3 + $0x10a4] sm:$0xf0]  ;;  %v14953_v1 = vld [vmem:[%s27030_s3 + $0xe00] sm:$0xf] }
 0x359   : > { %6588 = vmatpush.bf16.msra.mxu2 %v15062_v40  ;;  %6505 = vmatpush.bf16.msrb.mxu1 %v15070_v57  ;;  %v15286_v25 = vor.u32 %v18948_v32, %v15283_v12  ;;  %v14954_v10 = vor.u32 %v18866_v43, %v14953_v1  ;;  %v18942_v57 = vld [vmem:[%s27030_s3 + $0x106c] sm:$0xf]  ;;  %v18884_v12 = vld [vmem:[%s27030_s3 + $0xe98] sm:$0xf0]  ;;  %v14785_v43 = vld [vmem:[%s27030_s3 + $0xcb0] sm:$0xf] }
 0x35a   : > { %6555 = vmatpush.bf16.msra.mxu0 %v14834_v39  ;;  %v15262_v32 = vor.u32 %v18942_v57, %v15259_v56  ;;  %v15025_v39 = vld [vmem:[%s27030_s3 + $0xe90] sm:$0xf]  ;;  %v18878_v57 = vld [vmem:[%s27030_s3 + $0xe68] sm:$0xf0]  ;;  %v15145_v56 = vld [vmem:[%s27030_s3 + $0xf80] sm:$0xf] }
 0x35b   : > { %v5181_v45 = vpop.f32.mrf.mxu1  ;;  %v5199_v36 = vpop.f32.mrf.mxu2  ;;  %6539 = vmatpush.bf16.msra.mxu3 %v15286_v25  ;;  %v15026_v21 = vor.u32 %v18884_v12, %v15025_v39  ;;  %v18863_v25 = vld [vmem:[%s27030_s3 + $0xdf0] sm:$0xf0]  ;;  %v14917_v12 = vld [vmem:[%s27030_s3 + $0xdb8] sm:$0xf] }
 0x35c   : > { %v5182_v61 = vadd.f32 %v5181_v45, %v24051_v58  ;;  %v5168_v27 = vpop.f32.mrf.mxu0  ;;  %v14809_v58 = vld [vmem:[%s27030_s3 + $0xce0] sm:$0xf]  ;;  %v14942_v45 = vor.u32 %v18863_v25, %v14941_v20  ;;  %v18857_v20 = vld [vmem:[%s27030_s3 + $0xdc0] sm:$0xf0] }
 0x35d   : > { %v5150_v29 = vpop.f32.mrf.mxu3  ;;  %6589 = vmatpush.bf16.msra.mxu2 %v15050_v42  ;;  %6570 = vmatpush.bf16.msra.mxu1 %v14966_v6  ;;  %v14810_v55 = vor.u32 %v18830_v19, %v14809_v58  ;;  %v14797_v42 = vld [vmem:[%s27030_s3 + $0xcc8] sm:$0xf]  ;;  %v18881_v6 = vld [vmem:[%s27030_s3 + $0xe80] sm:$0xf0]  ;;  %v18824_v58 = vld [vmem:[%s27030_s3 + $0xcb8] sm:$0xf0] }
 0x35e   : > { %v24169_v40 = vadd.f32 %v5199_v36, %v5182_v61  ;;  %6556 = vmatpush.bf16.msra.mxu0 %v14822_v52  ;;  %v14798_v41 = vor.u32 %v18827_v33, %v14797_v42  ;;  %v18917_v36 = vld [vmem:[%s27030_s3 + $0xfa0] sm:$0xf0]  ;;  %v15014_v29 = vor.u32 %v18881_v6, %v15013_v60  ;;  %v14786_v19 = vor.u32 %v18824_v58, %v14785_v43  ;;  %v14989_v42 = vld [vmem:[%s27030_s3 + $0xe48] sm:$0xf]  ;;  %v18875_v33 = vld [vmem:[%s27030_s3 + $0xe50] sm:$0xf0] }
 0x35f   : > { %6540 = vmatpush.bf16.msra.mxu3 %v15274_v35  ;;  %v15158_v17 = vor.u32 %v18917_v36, %v15157_v4  ;;  %v18941_v25 = vld [vmem:[%s27030_s3 + $0x1060] sm:$0xf0]  ;;  %v14918_v6 = vor.u32 %v18857_v20, %v14917_v12  ;;  %v14977_v43 = vld [vmem:[%s27030_s3 + $0xe30] sm:$0xf]  ;;  %v18872_v58 = vld [vmem:[%s27030_s3 + $0xe38] sm:$0xf0] }
 0x360   : > { %6457 = vmatmul.bf16.gmra.mxu2 %v20711_v50  ;;  %v18935_v12 = vld [vmem:[%s27030_s3 + $0x1030] sm:$0xf0]  ;;  %v15109_v20 = vld [vmem:[%s27030_s3 + $0xf38] sm:$0xf] }
 0x361   : > { %6590 = vmatpush.bf16.msra.mxu2 %v15038_v7  ;;  %6571 = vmatpush.bf16.msra.mxu1 %v14954_v10  ;;  %v14929_v7 = vld [vmem:[%s27030_s3 + $0xdd0] sm:$0xf]  ;;  %v15001_v10 = vld [vmem:[%s27030_s3 + $0xe60] sm:$0xf] }
 0x362   : > { %6470 = vmatmul.bf16.vlgmr.msrb.gmra.mxu3 %v23887_v63  ;;  %6557 = vmatpush.bf16.msra.mxu0 %v14810_v55  ;;  %v18914_v55 = vld [vmem:[%s27030_s3 + $0xf88] sm:$0xf0] }
 0x363   : > { %v5184_v9 = vpop.f32.mrf.mxu1  ;;  %v5202_v47 = vpop.f32.mrf.mxu2  ;;  %6541 = vmatpush.bf16.msra.mxu3 %v15262_v32  ;;  %v15002_v32 = vor.u32 %v18878_v57, %v15001_v10  ;;  %v15146_v39 = vor.u32 %v18914_v55, %v15145_v56  ;;  %v15121_v10 = vld [vmem:[%s27030_s3 + $0xf50] sm:$0xf]  ;;  %v14978_v57 = vor.u32 %v18872_v58, %v14977_v43  ;;  %v14893_v55 = vld [vmem:[%s27030_s3 + $0xd88] sm:$0xf] }
 0x364   : > { %v5185_v52 = vadd.f32 %v5184_v9, %v24102_v23  ;;  %v5233_v48 = vpop.f32.mrf.mxu0  ;;  %v18860_v23 = vld [vmem:[%s27030_s3 + $0xdd8] sm:$0xf0]  ;;  %v15133_v9 = vld [vmem:[%s27030_s3 + $0xf68] sm:$0xf]  ;;  %v15575_v43 = vld [vmem:[%s27030_s3 + $0x1170] sm:$0xf] }
 0x365   : > { %v5215_v35 = vpop.f32.mrf.mxu3  ;;  %6591 = vmatpush.bf16.msra.mxu2 %v15026_v21  ;;  %6572 = vmatpush.bf16.msra.mxu1 %v14942_v45  ;;  %v15253_v21 = vld [vmem:[%s27030_s3 + $0x1058] sm:$0xf] }
 0x366   : > { %v5216_v61 = vadd.f32 %v5215_v35, %v24112_v46  ;;  %v24223_v27 = vadd.f32 %v5202_v47, %v5185_v52  ;;  %15316 = vmatmul.msk.bf16.gmra.mxu1 %vm2718_vm5, %v21190_v2  ;;  %6558 = vmatpush.bf16.msra.mxu0 %v14798_v41  ;;  %v14930_v46 = vor.u32 %v18860_v23, %v14929_v7  ;;  %v18911_v47 = vld [vmem:[%s27030_s3 + $0xf70] sm:$0xf0]  ;;  %v14905_v35 = vld [vmem:[%s27030_s3 + $0xda0] sm:$0xf] }
 0x367   : > { %6488 = vmatmul.bf16.vlgmr.msrb.gmra.mxu0 %v23827_v15  ;;  %6606 = vmatpush.bf16.msrb.mxu3 %v15158_v17  ;;  %v15254_v4 = vor.u32 %v18941_v25, %v15253_v21  ;;  %v15134_v52 = vor.u32 %v18911_v47, %v15133_v9  ;;  %v15241_v23 = vld [vmem:[%s27030_s3 + $0x1040] sm:$0xf]  ;;  %v18905_v21 = vld [vmem:[%s27030_s3 + $0xf40] sm:$0xf0] }
 0x368   : > { %v24233_v1 = vadd.f32 %v5233_v48, %v5216_v61  ;;  %v18854_v48 = vld [vmem:[%s27030_s3 + $0xda8] sm:$0xf0]  ;;  %v14990_v61 = vor.u32 %v18875_v33, %v14989_v42 }
 0x369   : > { %6592 = vmatpush.bf16.msra.mxu2 %v15014_v29  ;;  %6573 = vmatpush.bf16.msra.mxu1 %v14930_v46  ;;  %v14906_v7 = vor.u32 %v18854_v48, %v14905_v35  ;;  %v18938_v46 = vld [vmem:[%s27030_s3 + $0x1048] sm:$0xf0]  ;;  %v18848_v35 = vld [vmem:[%s27030_s3 + $0xd78] sm:$0xf0] }
 0x36a   : > { %6559 = vmatpush.bf16.msra.mxu0 %v14786_v19  ;;  %v18908_v19 = vld [vmem:[%s27030_s3 + $0xf58] sm:$0xf0] }
 0x36b   : > { %v5186_v41 = vpop.f32.mrf.mxu1  ;;  %v5204_v60 = vpop.f32.mrf.mxu2  ;;  %6607 = vmatpush.bf16.msrb.mxu3 %v15146_v39  ;;  %v15122_v56 = vor.u32 %v18908_v19, %v15121_v10  ;;  %v15229_v39 = vld [vmem:[%s27030_s3 + $0x1028] sm:$0xf]  ;;  %v15205_v19 = vld [vmem:[%s27030_s3 + $0xff8] sm:$0xf] }
 0x36c   : > { %v5235_v36 = vpop.f32.mrf.mxu0  ;;  %v15230_v41 = vor.u32 %v18935_v12, %v15229_v39  ;;  %v15587_v60 = vld [vmem:[%s27030_s3 + $0x1188] sm:$0xf]  ;;  %v15563_v39 = vld [vmem:[%s27030_s3 + $0x1158] sm:$0xf]  ;;  %v18973_v12 = vld [vmem:[%s27030_s3 + $0x1160] sm:$0xf0] }
 0x36d   : > { %v5217_v45 = vpop.f32.mrf.mxu3  ;;  %6593 = vmatpush.bf16.msra.mxu2 %v15002_v32  ;;  %6574 = vmatpush.bf16.msra.mxu1 %v14918_v6  ;;  %v18851_v32 = vld [vmem:[%s27030_s3 + $0xd90] sm:$0xf0] }
 0x36e   : > { %v5218_v17 = vadd.f32 %v5217_v45, %v24169_v40  ;;  %6624 = vmatpush.bf16.msrb.mxu0 %v15254_v4  ;;  %v15242_v40 = vor.u32 %v18938_v46, %v15241_v23  ;;  %v14894_v33 = vor.u32 %v18851_v32, %v14893_v55  ;;  %v18979_v6 = vld [vmem:[%s27030_s3 + $0x1190] sm:$0xf0]  ;;  %v15110_v45 = vor.u32 %v18905_v21, %v15109_v20  ;;  %v18902_v46 = vld [vmem:[%s27030_s3 + $0xf28] sm:$0xf0] }
 0x36f   : > { %6608 = vmatpush.bf16.msrb.mxu3 %v15134_v52  ;;  %v14881_v52 = vld [vmem:[%s27030_s3 + $0xd70] sm:$0xf]  ;;  %v18899_v32 = vld [vmem:[%s27030_s3 + $0xf10] sm:$0xf0] }
 0x370   : > { %v24285_v29 = vadd.f32 %v5235_v36, %v5218_v17  ;;  %6524 = vmatmul.bf16.vlgmr.msrb.gmra.mxu2 %v24009_v59  ;;  %v15588_v36 = vor.u32 %v18979_v6, %v15587_v60  ;;  %v15564_v6 = vor.u32 %v18973_v12, %v15563_v39 }
 0x371   : > { %6594 = vmatpush.bf16.msra.mxu2 %v14990_v61  ;;  %6575 = vmatpush.bf16.msra.mxu1 %v14906_v7  ;;  %v14882_v61 = vor.u32 %v18848_v35, %v14881_v52  ;;  %v15217_v7 = vld [vmem:[%s27030_s3 + $0x1010] sm:$0xf]  ;;  %v18970_v52 = vld [vmem:[%s27030_s3 + $0x1148] sm:$0xf0] }
 0x372   : > { %6475 = vmatmul.bf16.gmra.mxu3 %v20895_v14  ;;  %6625 = vmatpush.bf16.msrb.mxu0 %v15242_v40  ;;  %v18976_v40 = vld [vmem:[%s27030_s3 + $0x1178] sm:$0xf0] }
 0x373   : > { %v5251_v25 = vpop.f32.mrf.mxu1  ;;  %v24325_v42 = vpop.f32.mrf.mxu2  ;;  %6609 = vmatpush.bf16.msrb.mxu3 %v15122_v56  ;;  %v15576_v10 = vor.u32 %v18976_v40, %v15575_v43  ;;  %v15085_v56 = vld [vmem:[%s27030_s3 + $0xf08] sm:$0xf]  ;;  %v19003_v43 = vld [vmem:[%s27030_s3 + $0x1250] sm:$0xf0] }
 0x374   : > { %v5252_v4 = vadd.f32 %v5251_v25, %v24233_v1  ;;  %v5238_v47 = vpop.f32.mrf.mxu0  ;;  %v15086_v60 = vor.u32 %v18899_v32, %v15085_v56  ;;  %v18956_v32 = vld [vmem:[%s27030_s3 + $0x10d8] sm:$0xf0] }
 0x375   : > { %v5220_v9 = vpop.f32.mrf.mxu3  ;;  %6595 = vmatpush.bf16.msra.mxu2 %v14978_v57  ;;  %6576 = vmatpush.bf16.msra.mxu1 %v14894_v33  ;;  %v18929_v57 = vld [vmem:[%s27030_s3 + $0x1000] sm:$0xf0] }
 0x376   : > { %v5221_v48 = vadd.f32 %v5220_v9, %v24223_v27  ;;  %v24342_v17 = vadd.f32 %v5252_v4, %v23337_v5  ;;  %6506 = vmatmul.bf16.vlgmr.msrb.gmra.mxu1 %v23970_v24  ;;  %6626 = vmatpush.bf16.msrb.mxu0 %v15230_v41  ;;  %v18932_v27 = vld [vmem:[%s27030_s3 + $0x1018] sm:$0xf0]  ;;  %v15097_v5 = vld [vmem:[%s27030_s3 + $0xf20] sm:$0xf]  ;;  %v15206_v55 = vor.u32 %v18929_v57, %v15205_v19 }
 0x377   : > { %6493 = vmatmul.bf16.gmra.mxu0 %v20946_v28  ;;  %6610 = vmatpush.bf16.msrb.mxu3 %v15110_v45  ;;  %v15218_v23 = vor.u32 %v18932_v27, %v15217_v7  ;;  %v15098_v58 = vor.u32 %v18902_v46, %v15097_v5  ;;  %v15193_v9 = vld [vmem:[%s27030_s3 + $0xfe0] sm:$0xf]  ;;  %v15683_v27 = vld [vmem:[%s27030_s3 + $0x1248] sm:$0xf]  ;;  %v18967_v46 = vld [vmem:[%s27030_s3 + $0x1130] sm:$0xf0] }
 0x378   : > { %v5239_v1 = vadd.f32 %v5238_v47, %v5221_v48  ;;  %v18926_v47 = vld [vmem:[%s27030_s3 + $0xfe8] sm:$0xf0]  ;;  %v15181_v48 = vld [vmem:[%s27030_s3 + $0xfc8] sm:$0xf] }
 0x379   : > { %7604 = vmatpush.bf16.msrb.mxu2 %v15588_v36  ;;  %6577 = vmatpush.bf16.msra.mxu1 %v14882_v61  ;;  %v15194_v45 = vor.u32 %v18926_v47, %v15193_v9  ;;  %v18896_v36 = vld [vmem:[%s27030_s3 + $0xef8] sm:$0xf0]  ;;  %v18923_v61 = vld [vmem:[%s27030_s3 + $0xfd0] sm:$0xf0] }
 0x37a   : > { %6627 = vmatpush.bf16.msrb.mxu0 %v15218_v23  ;;  %v15182_v5 = vor.u32 %v18923_v61, %v15181_v48  ;;  %v15539_v23 = vld [vmem:[%s27030_s3 + $0x1128] sm:$0xf]  ;;  %v18961_v48 = vld [vmem:[%s27030_s3 + $0x1100] sm:$0xf0] }
 0x37b   : > { %v5253_v20 = vpop.f32.mrf.mxu1  ;;  %v24382_v21 = vpop.f32.mrf.mxu2  ;;  %6611 = vmatpush.bf16.msrb.mxu3 %v15098_v58  ;;  %v15540_v12 = vor.u32 %v18967_v46, %v15539_v23  ;;  %v18997_v23 = vld [vmem:[%s27030_s3 + $0x1220] sm:$0xf0]  ;;  %v15289_v46 = vld [vmem:[%s27030_s3 + $0x10a0] sm:$0xf] }
 0x37c   : > { %v5254_v25 = vadd.f32 %v5253_v20, %v24285_v29  ;;  %v5240_v41 = vpop.f32.mrf.mxu0  ;;  %v15073_v29 = vld [vmem:[%s27030_s3 + $0xef0] sm:$0xf] }
 0x37d   : > { %v5222_v33 = vpop.f32.mrf.mxu3  ;;  %7605 = vmatpush.bf16.msrb.mxu2 %v15576_v10  ;;  %v15074_v35 = vor.u32 %v18896_v36, %v15073_v29  ;;  %v15684_v10 = vor.u32 %v19003_v43, %v15683_v27  ;;  %v15301_v29 = vld [vmem:[%s27030_s3 + $0x10b8] sm:$0xf]  ;;  %v15779_v36 = vld [vmem:[%s27030_s3 + $0x1308] sm:$0xf] }
 0x37e   : > { %v24386_v4 = vadd.f32 %v5254_v25, %v23383_v3  ;;  %6628 = vmatpush.bf16.msrb.mxu0 %v15206_v55  ;;  %v15551_v3 = vld [vmem:[%s27030_s3 + $0x1140] sm:$0xf]  ;;  %v15313_v55 = vld [vmem:[%s27030_s3 + $0x10d0] sm:$0xf] }
 0x37f   : > { %6612 = vmatpush.bf16.msrb.mxu3 %v15086_v60  ;;  %v15552_v7 = vor.u32 %v18970_v52, %v15551_v3  ;;  %v15314_v20 = vor.u32 %v18956_v32, %v15313_v55  ;;  %v15169_v33 = vld [vmem:[%s27030_s3 + $0xfb0] sm:$0xf]  ;;  %v18964_v60 = vld [vmem:[%s27030_s3 + $0x1118] sm:$0xf0]  ;;  %v19027_v52 = vld [vmem:[%s27030_s3 + $0x1310] sm:$0xf0] }
 0x380   : > { %6529 = vmatmul.bf16.gmra.mxu2 %v21043_v38  ;;  %v15780_v27 = vor.u32 %v19027_v52, %v15779_v36 }
 0x381   : > { %7606 = vmatpush.bf16.msrb.mxu2 %v15564_v6  ;;  %6645 = vmatpush.bf16.msrb.mxu1 %v15314_v20  ;;  %v19000_v6 = vld [vmem:[%s27030_s3 + $0x1238] sm:$0xf0]  ;;  %v15503_v20 = vld [vmem:[%s27030_s3 + $0x10e0] sm:$0xf] }
 0x382   : > { %15317 = vmatmul.msk.bf16.vlgmr.msra.gmra.mxu3 %vm2718_vm5, %v24110_v31  ;;  %6629 = vmatpush.bf16.msrb.mxu0 %v15194_v45  ;;  %v18953_v45 = vld [vmem:[%s27030_s3 + $0x10c0] sm:$0xf0] }
 0x383   : > { %v5256_v40 = vpop.f32.mrf.mxu1  ;;  %v24427_v58 = vpop.f32.mrf.mxu2  ;;  %6613 = vmatpush.bf16.msrb.mxu3 %v15074_v35  ;;  %v15302_v3 = vor.u32 %v18953_v45, %v15301_v29  ;;  %v15515_v35 = vld [vmem:[%s27030_s3 + $0x10f8] sm:$0xf]  ;;  %v15635_v29 = vld [vmem:[%s27030_s3 + $0x11e8] sm:$0xf]  ;;  %v18991_v45 = vld [vmem:[%s27030_s3 + $0x11f0] sm:$0xf0] }
 0x384   : > { %v5257_v19 = vadd.f32 %v5256_v40, %v5239_v1  ;;  %v5305_v56 = vpop.f32.mrf.mxu0 }
 0x385   : > { %v5287_v57 = vpop.f32.mrf.mxu3  ;;  %7607 = vmatpush.bf16.msrb.mxu2 %v15552_v7  ;;  %6646 = vmatpush.bf16.msrb.mxu1 %v15302_v3 }
 0x386   : > { %v5288_v39 = vadd.f32 %v5287_v57, %v24325_v42  ;;  %v24437_v25 = vadd.f32 %v5257_v19, %v23440_v51  ;;  %6511 = vmatmul.bf16.gmra.mxu1 %v21098_v8  ;;  %6630 = vmatpush.bf16.msrb.mxu0 %v15182_v5  ;;  %v18920_v42 = vld [vmem:[%s27030_s3 + $0xfb8] sm:$0xf0]  ;;  %v15527_v51 = vld [vmem:[%s27030_s3 + $0x1110] sm:$0xf]  ;;  %v15659_v5 = vld [vmem:[%s27030_s3 + $0x1218] sm:$0xf] }
 0x387   : > { %7622 = vmatpush.bf16.msra.mxu3 %v15684_v10  ;;  %6560 = vmatmul.bf16.vlgmr.msra.gmra.mxu0 %v23766_v34  ;;  %v15170_v41 = vor.u32 %v18920_v42, %v15169_v33  ;;  %v15671_v34 = vld [vmem:[%s27030_s3 + $0x1230] sm:$0xf]  ;;  %v15528_v9 = vor.u32 %v18964_v60, %v15527_v51  ;;  %v15660_v10 = vor.u32 %v18997_v23, %v15659_v5  ;;  %v18950_v19 = vld [vmem:[%s27030_s3 + $0x10a8] sm:$0xf0]  ;;  %v15647_v42 = vld [vmem:[%s27030_s3 + $0x1200] sm:$0xf] }
 0x388   : > { %v24440_v1 = vadd.f32 %v5305_v56, %v5288_v39  ;;  %v15672_v47 = vor.u32 %v19000_v6, %v15671_v34  ;;  %v15516_v56 = vor.u32 %v18961_v48, %v15515_v35  ;;  %v15290_v55 = vor.u32 %v18950_v19, %v15289_v46  ;;  %v15767_v39 = vld [vmem:[%s27030_s3 + $0x12f0] sm:$0xf]  ;;  %v18958_v33 = vld [vmem:[%s27030_s3 + $0x10e8] sm:$0xf0]  ;;  %v15277_v60 = vld [vmem:[%s27030_s3 + $0x1088] sm:$0xf] }
 0x389   : > { %7608 = vmatpush.bf16.msrb.mxu2 %v15540_v12  ;;  %v19024_v12 = vld [vmem:[%s27030_s3 + $0x12f8] sm:$0xf0]  ;;  %v18994_v51 = vld [vmem:[%s27030_s3 + $0x1208] sm:$0xf0]  ;;  %v18947_v34 = vld [vmem:[%s27030_s3 + $0x1090] sm:$0xf0]  ;;  %v15636_v35 = vor.u32 %v18991_v45, %v15635_v29 }
 0x38a   : > { %6631 = vmatpush.bf16.msrb.mxu0 %v15170_v41  ;;  %6647 = vmatpush.bf16.msrb.mxu1 %v15290_v55  ;;  %v15504_v41 = vor.u32 %v18958_v33, %v15503_v20  ;;  %v15755_v6 = vld [vmem:[%s27030_s3 + $0x12d8] sm:$0xf]  ;;  %v15971_v48 = vld [vmem:[%s27030_s3 + $0x1488] sm:$0xf]  ;;  %v15265_v46 = vld [vmem:[%s27030_s3 + $0x1070] sm:$0xf] }
 0x38b   : > { %v5258_v61 = vpop.f32.mrf.mxu1  ;;  %v5276_v7 = vpop.f32.mrf.mxu2  ;;  %7623 = vmatpush.bf16.msra.mxu3 %v15672_v47  ;;  %v19021_v47 = vld [vmem:[%s27030_s3 + $0x12e0] sm:$0xf0]  ;;  %v15959_v55 = vld [vmem:[%s27030_s3 + $0x1470] sm:$0xf]  ;;  %v19051_v33 = vld [vmem:[%s27030_s3 + $0x13d0] sm:$0xf0] }
 0x38c   : > { %v5307_v40 = vpop.f32.mrf.mxu0  ;;  %v15756_v52 = vor.u32 %v19021_v47, %v15755_v6  ;;  %v19075_v61 = vld [vmem:[%s27030_s3 + $0x1490] sm:$0xf0]  ;;  %v15947_v29 = vld [vmem:[%s27030_s3 + $0x1458] sm:$0xf]  ;;  %v19069_v45 = vld [vmem:[%s27030_s3 + $0x1460] sm:$0xf0] }
 0x38d   : > { %v5289_v43 = vpop.f32.mrf.mxu3  ;;  %7609 = vmatpush.bf16.msrb.mxu2 %v15528_v9  ;;  %v15278_v9 = vor.u32 %v18947_v34, %v15277_v60  ;;  %v15972_v23 = vor.u32 %v19075_v61, %v15971_v48  ;;  %v18985_v60 = vld [vmem:[%s27030_s3 + $0x11c0] sm:$0xf0]  ;;  %v19048_v48 = vld [vmem:[%s27030_s3 + $0x13b8] sm:$0xf0]  ;;  %v15948_v61 = vor.u32 %v19069_v45, %v15947_v29  ;;  %v15911_v29 = vld [vmem:[%s27030_s3 + $0x1410] sm:$0xf] }
 0x38e   : > { %v5290_v57 = vadd.f32 %v5289_v43, %v24382_v21  ;;  %7640 = vmatpush.bf16.msra.mxu0 %v15780_v27  ;;  %v15768_v21 = vor.u32 %v19024_v12, %v15767_v39  ;;  %v18944_v43 = vld [vmem:[%s27030_s3 + $0x1078] sm:$0xf0]  ;;  %v19039_v45 = vld [vmem:[%s27030_s3 + $0x1370] sm:$0xf0] }
 0x38f   : > { %7624 = vmatpush.bf16.msra.mxu3 %v15660_v10  ;;  %6648 = vmatpush.bf16.msrb.mxu1 %v15278_v9  ;;  %v15266_v10 = vor.u32 %v18944_v43, %v15265_v46  ;;  %v19072_v39 = vld [vmem:[%s27030_s3 + $0x1478] sm:$0xf0]  ;;  %v18982_v43 = vld [vmem:[%s27030_s3 + $0x11a8] sm:$0xf0] }
 0x390   : > { %v24492_v32 = vadd.f32 %v5307_v40, %v5290_v57  ;;  %6596 = vmatmul.bf16.vlgmr.msra.gmra.mxu2 %v23827_v15  ;;  %v15648_v15 = vor.u32 %v18994_v51, %v15647_v42  ;;  %v15743_v57 = vld [vmem:[%s27030_s3 + $0x12c0] sm:$0xf]  ;;  %v15960_v20 = vor.u32 %v19072_v39, %v15959_v55  ;;  %v15731_v42 = vld [vmem:[%s27030_s3 + $0x12a8] sm:$0xf] }
 0x391   : > { %7610 = vmatpush.bf16.msrb.mxu2 %v15516_v56  ;;  %v15623_v56 = vld [vmem:[%s27030_s3 + $0x11d0] sm:$0xf] }
 0x392   : > { %15318 = vmatmul.msk.bf16.gmra.mxu3 %vm2718_vm5, %v21190_v2  ;;  %7641 = vmatpush.bf16.msra.mxu0 %v15768_v21  ;;  %v15875_v21 = vld [vmem:[%s27030_s3 + $0x13c8] sm:$0xf] }
 0x393   : > { %v5323_v36 = vpop.f32.mrf.mxu1  ;;  %v5341_v3 = vpop.f32.mrf.mxu2  ;;  %7625 = vmatpush.bf16.msra.mxu3 %v15648_v15  ;;  %6649 = vmatpush.bf16.msrb.mxu1 %v15266_v10  ;;  %v15876_v51 = vor.u32 %v19051_v33, %v15875_v21  ;;  %v15611_v15 = vld [vmem:[%s27030_s3 + $0x11b8] sm:$0xf]  ;;  %v19066_v10 = vld [vmem:[%s27030_s3 + $0x1448] sm:$0xf0] }
 0x394   : > { %v5324_v7 = vadd.f32 %v5323_v36, %v24440_v1  ;;  %v5310_v5 = vpop.f32.mrf.mxu0  ;;  %v15612_v47 = vor.u32 %v18985_v60, %v15611_v15  ;;  %v19042_v15 = vld [vmem:[%s27030_s3 + $0x1388] sm:$0xf0] }
 0x395   : > { %v5292_v27 = vpop.f32.mrf.mxu3  ;;  %7611 = vmatpush.bf16.msrb.mxu2 %v15504_v41  ;;  %v19015_v41 = vld [vmem:[%s27030_s3 + $0x12b0] sm:$0xf0] }
 0x396   : > { %v5293_v40 = vadd.f32 %v5292_v27, %v24427_v58  ;;  %v24547_v19 = vadd.f32 %v5341_v3, %v5324_v7  ;;  %6578 = vmatmul.bf16.vlgmr.msra.gmra.mxu1 %v23887_v63  ;;  %7642 = vmatpush.bf16.msra.mxu0 %v15756_v52  ;;  %v19018_v58 = vld [vmem:[%s27030_s3 + $0x12c8] sm:$0xf0]  ;;  %v15732_v9 = vor.u32 %v19015_v41, %v15731_v42  ;;  %v15839_v41 = vld [vmem:[%s27030_s3 + $0x1380] sm:$0xf] }
 0x397   : > { %6565 = vmatmul.bf16.gmra.mxu0 %v20711_v50  ;;  %7626 = vmatpush.bf16.msra.mxu3 %v15636_v35  ;;  %v15744_v63 = vor.u32 %v19018_v58, %v15743_v57  ;;  %v18988_v50 = vld [vmem:[%s27030_s3 + $0x11d8] sm:$0xf0]  ;;  %v15863_v35 = vld [vmem:[%s27030_s3 + $0x13b0] sm:$0xf]  ;;  %v15851_v58 = vld [vmem:[%s27030_s3 + $0x1398] sm:$0xf] }
 0x398   : > { %v24550_v1 = vadd.f32 %v5310_v5, %v5293_v40  ;;  %v15624_v12 = vor.u32 %v18988_v50, %v15623_v56  ;;  %7658 = vmatpush.bf16.msra.mxu1 %v15876_v51  ;;  %v15864_v7 = vor.u32 %v19048_v48, %v15863_v35  ;;  %v19012_v5 = vld [vmem:[%s27030_s3 + $0x1298] sm:$0xf0]  ;;  %v15935_v40 = vld [vmem:[%s27030_s3 + $0x1440] sm:$0xf]  ;;  %v19045_v56 = vld [vmem:[%s27030_s3 + $0x13a0] sm:$0xf0] }
 0x399   : > { %7676 = vmatpush.bf16.msra.mxu2 %v15972_v23  ;;  %v15599_v23 = vld [vmem:[%s27030_s3 + $0x11a0] sm:$0xf]  ;;  %v15936_v50 = vor.u32 %v19066_v10, %v15935_v40  ;;  %v15852_v55 = vor.u32 %v19045_v56, %v15851_v58  ;;  %v15589_v35 = vld [vmem:[%s27030_s3 + $0x1194] sm:$0xf0]  ;;  %v6850_v56 = vrot.slane %v20595_v37, 2 }
 0x39a   : > { %7643 = vmatpush.bf16.msra.mxu0 %v15744_v63  ;;  %v15600_v57 = vor.u32 %v18982_v43, %v15599_v23  ;;  %v15707_v63 = vld [vmem:[%s27030_s3 + $0x1278] sm:$0xf]  ;;  %v24690_v23 = vrot.slane %v20656_v62, 2  ;;  %v19036_v43 = vld [vmem:[%s27030_s3 + $0x1358] sm:$0xf0] }
 0x39b   : > { %v5325_v34 = vpop.f32.mrf.mxu1  ;;  %v5343_v6 = vpop.f32.mrf.mxu2  ;;  %7627 = vmatpush.bf16.msra.mxu3 %v15624_v12  ;;  %v15923_v12 = vld [vmem:[%s27030_s3 + $0x1428] sm:$0xf]  ;;  %v15887_v37 = vld [vmem:[%s27030_s3 + $0x13e0] sm:$0xf] }
 0x39c   : > { %v5326_v36 = vadd.f32 %v5325_v34, %v24492_v32  ;;  %v5312_v52 = vpop.f32.mrf.mxu0  ;;  %v15719_v32 = vld [vmem:[%s27030_s3 + $0x1290] sm:$0xf]  ;;  %7659 = vmatpush.bf16.msra.mxu1 %v15864_v7  ;;  %v19057_v7 = vld [vmem:[%s27030_s3 + $0x1400] sm:$0xf0] }
 0x39d   : > { %v5294_v3 = vpop.f32.mrf.mxu3  ;;  %7677 = vmatpush.bf16.msra.mxu2 %v15960_v20  ;;  %v15720_v46 = vor.u32 %v19012_v5, %v15719_v32  ;;  %v19063_v20 = vld [vmem:[%s27030_s3 + $0x1430] sm:$0xf0]  ;;  %v18978_v52 = vld [vmem:[%s27030_s3 + $0x118c] sm:$0xf] }
 0x39e   : > { %v24602_v27 = vadd.f32 %v5343_v6, %v5326_v36  ;;  %7644 = vmatpush.bf16.msra.mxu0 %v15732_v9  ;;  %v15924_v34 = vor.u32 %v19063_v20, %v15923_v12  ;;  %v15840_v6 = vor.u32 %v19042_v15, %v15839_v41  ;;  %v15592_v48 = vor.u32 %v18978_v52, %v15589_v35  ;;  %v19090_v12 = vld [vmem:[%s27030_s3 + $0x1508] sm:$0xf0]  ;;  %v16019_v15 = vld [vmem:[%s27030_s3 + $0x14e8] sm:$0xf]  ;;  %v15791_v35 = vld [vmem:[%s27030_s3 + $0x1320] sm:$0xf] }
 0x39f   : > { %7628 = vmatpush.bf16.msra.mxu3 %v15612_v47  ;;  %v15695_v47 = vld [vmem:[%s27030_s3 + $0x1260] sm:$0xf] }
 0x3a0   : > { %6601 = vmatmul.bf16.gmra.mxu2 %v20946_v28  ;;  %v19009_v28 = vld [vmem:[%s27030_s3 + $0x1280] sm:$0xf0]  ;;  %7660 = vmatpush.bf16.msra.mxu1 %v15852_v55  ;;  %v18975_v55 = vld [vmem:[%s27030_s3 + $0x1174] sm:$0xf] }
 0x3a1   : > { %7678 = vmatpush.bf16.msra.mxu2 %v15948_v61  ;;  %v15708_v39 = vor.u32 %v19009_v28, %v15707_v63  ;;  %v15899_v61 = vld [vmem:[%s27030_s3 + $0x13f8] sm:$0xf]  ;;  %v15577_v28 = vld [vmem:[%s27030_s3 + $0x117c] sm:$0xf0] }
 0x3a2   : > { %6614 = vmatmul.bf16.vlgmr.msrb.gmra.mxu3 %v23970_v24  ;;  %7645 = vmatpush.bf16.msra.mxu0 %v15720_v46  ;;  %v15815_v46 = vld [vmem:[%s27030_s3 + $0x1350] sm:$0xf]  ;;  %v15900_v62 = vor.u32 %v19057_v7, %v15899_v61 }
 0x3a3   : > { %v5328_v21 = vpop.f32.mrf.mxu1  ;;  %v5346_v33 = vpop.f32.mrf.mxu2  ;;  %7629 = vmatpush.bf16.msra.mxu3 %v15600_v57  ;;  %v15816_v57 = vor.u32 %v19036_v43, %v15815_v46  ;;  %v15553_v61 = vld [vmem:[%s27030_s3 + $0x114c] sm:$0xf0] }
 0x3a4   : > { %v5329_v24 = vadd.f32 %v5328_v21, %v24550_v1  ;;  %v24643_v51 = vpop.f32.mrf.mxu0  ;;  %7661 = vmatpush.bf16.msra.mxu1 %v15840_v6  ;;  %v16007_v7 = vld [vmem:[%s27030_s3 + $0x14d0] sm:$0xf] }
 0x3a5   : > { %v5359_v42 = vpop.f32.mrf.mxu3  ;;  %7679 = vmatpush.bf16.msra.mxu2 %v15936_v50  ;;  %v24707_v50 = vsel %vm494_vm0, %v6850_v56, %v24690_v23 }
 0x3a6   : > { %v5360_v60 = vadd.f32 %v5359_v42, %v24547_v19  ;;  %v24652_v9 = vadd.f32 %v5346_v33, %v5329_v24  ;;  %6583 = vmatmul.bf16.gmra.mxu1 %v20895_v14  ;;  %7646 = vmatpush.bf16.msra.mxu0 %v15708_v39  ;;  %v19006_v19 = vld [vmem:[%s27030_s3 + $0x1268] sm:$0xf0]  ;;  %v16031_v39 = vld [vmem:[%s27030_s3 + $0x1500] sm:$0xf]  ;;  %v15803_v33 = vld [vmem:[%s27030_s3 + $0x1338] sm:$0xf] }
 0x3a7   : > { %6632 = vmatmul.bf16.vlgmr.msrb.gmra.mxu0 %v24009_v59  ;;  %v15696_v14 = vor.u32 %v19006_v19, %v15695_v47  ;;  %v15827_v59 = vld [vmem:[%s27030_s3 + $0x1368] sm:$0xf]  ;;  %v16032_v21 = vor.u32 %v19090_v12, %v16031_v39  ;;  %v19033_v24 = vld [vmem:[%s27030_s3 + $0x1340] sm:$0xf0]  ;;  %v18972_v42 = vld [vmem:[%s27030_s3 + $0x115c] sm:$0xf] }
 0x3a8   : > { %v24656_v1 = vadd.f32 %v5360_v60, %v23658_v26  ;;  %v19060_v26 = vld [vmem:[%s27030_s3 + $0x1418] sm:$0xf0]  ;;  %v15828_v3 = vor.u32 %v19039_v45, %v15827_v59  ;;  %v15804_v41 = vor.u32 %v19033_v24, %v15803_v33  ;;  %v19087_v60 = vld [vmem:[%s27030_s3 + $0x14f0] sm:$0xf0] }
 0x3a9   : > { %7680 = vmatpush.bf16.msra.mxu2 %v15924_v34  ;;  %v15912_v36 = vor.u32 %v19060_v26, %v15911_v29  ;;  %7697 = vmatpush.bf16.msrb.mxu3 %v16032_v21  ;;  %v16020_v19 = vor.u32 %v19087_v60, %v16019_v15  ;;  %v19026_v29 = vld [vmem:[%s27030_s3 + $0x130c] sm:$0xf]  ;;  %v19020_v12 = vld [vmem:[%s27030_s3 + $0x12dc] sm:$0xf] }
 0x3aa   : > { %7647 = vmatpush.bf16.msra.mxu0 %v15696_v14  ;;  %7662 = vmatpush.bf16.msra.mxu1 %v15828_v3  ;;  %v15781_v14 = vld [vmem:[%s27030_s3 + $0x1314] sm:$0xf0] }
 0x3ab   : > { %v5330_v32 = vpop.f32.mrf.mxu1  ;;  %v5348_v5 = vpop.f32.mrf.mxu2 }
 0x3ac   : > { %v24698_v10 = vpop.f32.mrf.mxu0  ;;  %v15769_v5 = vld [vmem:[%s27030_s3 + $0x12fc] sm:$0xf0] }
 0x3ad   : > { %v5361_v40 = vpop.f32.mrf.mxu3  ;;  %7681 = vmatpush.bf16.msra.mxu2 %v15912_v36  ;;  %v15784_v36 = vor.u32 %v19026_v29, %v15781_v14  ;;  %7698 = vmatpush.bf16.msrb.mxu3 %v16020_v19 }
 0x3ae   : > { %7712 = vmatpush.bf16.msrb.mxu0 %v15592_v48  ;;  %v5362_v58 = vadd.f32 %v5361_v40, %v24602_v27  ;;  %7663 = vmatpush.bf16.msra.mxu1 %v15816_v57  ;;  %v19054_v27 = vld [vmem:[%s27030_s3 + $0x13e8] sm:$0xf0]  ;;  %v15685_v57 = vld [vmem:[%s27030_s3 + $0x1254] sm:$0xf0] }
 0x3af   : > { %v15888_v20 = vor.u32 %v19054_v27, %v15887_v37  ;;  %v19002_v40 = vld [vmem:[%s27030_s3 + $0x124c] sm:$0xf] }
 0x3b0   : > { %v24703_v63 = vadd.f32 %v5362_v58, %v23708_v22  ;;  %7612 = vmatmul.bf16.vlgmr.msrb.gmra.mxu2 %v24707_v50  ;;  %v15580_v22 = vor.u32 %v18975_v55, %v15577_v28  ;;  %v18966_v58 = vld [vmem:[%s27030_s3 + $0x112c] sm:$0xf]  ;;  %v15688_v56 = vor.u32 %v19002_v40, %v15685_v57  ;;  %v15995_v55 = vld [vmem:[%s27030_s3 + $0x14b8] sm:$0xf]  ;;  %v19081_v28 = vld [vmem:[%s27030_s3 + $0x14c0] sm:$0xf0] }
 0x3b1   : > { %7682 = vmatpush.bf16.msra.mxu2 %v15900_v62  ;;  %v15541_v62 = vld [vmem:[%s27030_s3 + $0x1134] sm:$0xf0]  ;;  %v15996_v39 = vor.u32 %v19081_v28, %v15995_v55 }
 0x3b2   : > { %6619 = vmatmul.bf16.gmra.mxu3 %v21098_v8  ;;  %7713 = vmatpush.bf16.msrb.mxu0 %v15580_v22  ;;  %v15565_v8 = vld [vmem:[%s27030_s3 + $0x1164] sm:$0xf0]  ;;  %v15544_v27 = vor.u32 %v18966_v58, %v15541_v62  ;;  %v6856_v58 = vrot.slane %v20795_v53, 2  ;;  %v15649_v53 = vld [vmem:[%s27030_s3 + $0x120c] sm:$0xf0] }
 0x3b3   : > { %v6363_v34 = vpop.f32.mrf.mxu1  ;;  %v6381_v6 = vpop.f32.mrf.mxu2  ;;  %v15568_v47 = vor.u32 %v18972_v42, %v15565_v8  ;;  %7664 = vmatpush.bf16.msra.mxu1 %v15804_v41  ;;  %v24815_v42 = vrot.slane %v20822_v18, 2  ;;  %v6853_v41 = vrot.slane %v20737_v13, 2  ;;  %v24819_v8 = vrot.slane %v20875_v0, 2  ;;  %v15673_v18 = vld [vmem:[%s27030_s3 + $0x123c] sm:$0xf0] }
 0x3b4   : > { %v6364_v26 = vadd.f32 %v6363_v34, %v24643_v51  ;;  %v24754_v45 = vpop.f32.mrf.mxu0  ;;  %v19030_v51 = vld [vmem:[%s27030_s3 + $0x1328] sm:$0xf0]  ;;  %v18963_v34 = vld [vmem:[%s27030_s3 + $0x1114] sm:$0xf]  ;;  %v15529_v0 = vld [vmem:[%s27030_s3 + $0x111c] sm:$0xf0] }
 0x3b5   : > { %v5364_v59 = vpop.f32.mrf.mxu3  ;;  %7683 = vmatpush.bf16.msra.mxu2 %v15888_v20  ;;  %v15757_v20 = vld [vmem:[%s27030_s3 + $0x12e4] sm:$0xf0]  ;;  %v24844_v19 = vsel %vm494_vm0, %v6853_v41, %v24815_v42  ;;  %v15532_v29 = vor.u32 %v18963_v34, %v15529_v0  ;;  %v15973_v34 = vld [vmem:[%s27030_s3 + $0x1494] sm:$0xf0] }
 0x3b6   : > { %v5365_v3 = vadd.f32 %v5364_v59, %v24652_v9  ;;  %v24757_v52 = vadd.f32 %v6381_v6, %v6364_v26  ;;  %15319 = vmatmul.msk.bf16.vlgmr.msrb.gmra.mxu1 %vm2718_vm5, %v24110_v31  ;;  %7714 = vmatpush.bf16.msrb.mxu0 %v15568_v47  ;;  %v15792_v9 = vor.u32 %v19030_v51, %v15791_v35  ;;  %v18969_v31 = vld [vmem:[%s27030_s3 + $0x1144] sm:$0xf]  ;;  %v15983_v6 = vld [vmem:[%s27030_s3 + $0x14a0] sm:$0xf]  ;;  %v19078_v47 = vld [vmem:[%s27030_s3 + $0x14a8] sm:$0xf0] }
 0x3b7   : > { %6637 = vmatmul.bf16.gmra.mxu0 %v21043_v38  ;;  %v15556_v32 = vor.u32 %v18969_v31, %v15553_v61  ;;  %v19084_v38 = vld [vmem:[%s27030_s3 + $0x14d8] sm:$0xf0]  ;;  %v15760_v15 = vor.u32 %v19020_v12, %v15757_v20  ;;  %v15984_v14 = vor.u32 %v19078_v47, %v15983_v6  ;;  %v19017_v26 = vld [vmem:[%s27030_s3 + $0x12c4] sm:$0xf]  ;;  %v15745_v59 = vld [vmem:[%s27030_s3 + $0x12cc] sm:$0xf0] }
 0x3b8   : > { %v24768_v48 = vadd.f32 %v5365_v3, %v23751_v16  ;;  %v19023_v16 = vld [vmem:[%s27030_s3 + $0x12f4] sm:$0xf]  ;;  %7665 = vmatpush.bf16.msra.mxu1 %v15792_v9  ;;  %v16008_v46 = vor.u32 %v19084_v38, %v16007_v7  ;;  %v15748_v3 = vor.u32 %v19017_v26, %v15745_v59  ;;  %v15661_v35 = vld [vmem:[%s27030_s3 + $0x1224] sm:$0xf0]  ;;  %v18960_v51 = vld [vmem:[%s27030_s3 + $0x10fc] sm:$0xf] }
 0x3b9   : > { %7748 = vmatpush.bf16.msrb.mxu2 %v15784_v36  ;;  %v15772_v43 = vor.u32 %v19023_v16, %v15769_v5  ;;  %v18996_v36 = vld [vmem:[%s27030_s3 + $0x121c] sm:$0xf]  ;;  %v15517_v9 = vld [vmem:[%s27030_s3 + $0x1104] sm:$0xf0]  ;;  %v19014_v61 = vld [vmem:[%s27030_s3 + $0x12ac] sm:$0xf] }
 0x3ba   : > { %7715 = vmatpush.bf16.msrb.mxu0 %v15556_v32  ;;  %7699 = vmatpush.bf16.msrb.mxu3 %v16008_v46  ;;  %v15520_v31 = vor.u32 %v18960_v51, %v15517_v9  ;;  %v15733_v7 = vld [vmem:[%s27030_s3 + $0x12b4] sm:$0xf0]  ;;  %v19050_v32 = vld [vmem:[%s27030_s3 + $0x13cc] sm:$0xf]  ;;  %v15664_v5 = vor.u32 %v18996_v36, %v15661_v35  ;;  %v15721_v20 = vld [vmem:[%s27030_s3 + $0x129c] sm:$0xf0] }
 0x3bb   : > { %v6365_v37 = vpop.f32.mrf.mxu1  ;;  %v6383_v22 = vpop.f32.mrf.mxu2  ;;  %v15877_v46 = vld [vmem:[%s27030_s3 + $0x13d4] sm:$0xf0]  ;;  %v15736_v55 = vor.u32 %v19014_v61, %v15733_v7  ;;  %v15709_v0 = vld [vmem:[%s27030_s3 + $0x1284] sm:$0xf0]  ;;  %v19044_v59 = vld [vmem:[%s27030_s3 + $0x139c] sm:$0xf] }
 0x3bc   : > { %v6366_v21 = vadd.f32 %v6365_v37, %v24698_v10  ;;  %v6352_v24 = vpop.f32.mrf.mxu0  ;;  %7730 = vmatpush.bf16.msrb.mxu1 %v15688_v56  ;;  %v18999_v10 = vld [vmem:[%s27030_s3 + $0x1234] sm:$0xf]  ;;  %v15880_v56 = vor.u32 %v19050_v32, %v15877_v46  ;;  %v24886_v37 = vsel %vm494_vm0, %v6856_v58, %v24819_v8  ;;  %v15853_v36 = vld [vmem:[%s27030_s3 + $0x13a4] sm:$0xf0]  ;;  %v15625_v9 = vld [vmem:[%s27030_s3 + $0x11dc] sm:$0xf0] }
 0x3bd   : > { %v5366_v33 = vpop.f32.mrf.mxu3  ;;  %7749 = vmatpush.bf16.msrb.mxu2 %v15772_v43  ;;  %v15676_v13 = vor.u32 %v18999_v10, %v15673_v18  ;;  %v15637_v10 = vld [vmem:[%s27030_s3 + $0x11f4] sm:$0xf0]  ;;  %v19074_v18 = vld [vmem:[%s27030_s3 + $0x148c] sm:$0xf]  ;;  %v15856_v51 = vor.u32 %v19044_v59, %v15853_v36  ;;  %v27058_v61 = vld [vmem:[#allocation7_spill] sm:$0xff] }
 0x3be   : > { %v24821_v60 = vadd.f32 %v6383_v22, %v6366_v21  ;;  %7716 = vmatpush.bf16.msrb.mxu0 %v15544_v27  ;;  %7700 = vmatpush.bf16.msrb.mxu3 %v15996_v39  ;;  %v15505_v27 = vld [vmem:[%s27030_s3 + $0x10ec] sm:$0xf0]  ;;  %v19011_v39 = vld [vmem:[%s27030_s3 + $0x1294] sm:$0xf]  ;;  %v15865_v33 = vld [vmem:[%s27030_s3 + $0x13bc] sm:$0xf0]  ;;  %v15976_v26 = vor.u32 %v19074_v18, %v15973_v34 }
 0x3bf   : > { %v19047_v21 = vld [vmem:[%s27030_s3 + $0x13b4] sm:$0xf]  ;;  %v15724_v24 = vor.u32 %v19011_v39, %v15721_v20  ;;  %v6862_v7 = vrot.slane %v27058_v61, 2  ;;  %v15949_v39 = vld [vmem:[%s27030_s3 + $0x1464] sm:$0xf0] }
 0x3c0   : > { %7617 = vmatmul.bf16.gmra.mxu2 %v24690_v23  ;;  %7731 = vmatpush.bf16.msrb.mxu1 %v15676_v13  ;;  %v15868_v41 = vor.u32 %v19047_v21, %v15865_v33  ;;  %v19008_v13 = vld [vmem:[%s27030_s3 + $0x127c] sm:$0xf]  ;;  %v15829_v20 = vld [vmem:[%s27030_s3 + $0x1374] sm:$0xf0] }
 0x3c1   : > { %7750 = vmatpush.bf16.msrb.mxu2 %v15760_v15  ;;  %v18990_v15 = vld [vmem:[%s27030_s3 + $0x11ec] sm:$0xf]  ;;  %v15712_v32 = vor.u32 %v19008_v13, %v15709_v0  ;;  %v18980_v18 = vld [vmem:[%s27030_s3 + $0x1198] sm:$0xf0] }
 0x3c2   : > { %7630 = vmatmul.bf16.vlgmr.msra.gmra.mxu3 %v24844_v19  ;;  %7717 = vmatpush.bf16.msrb.mxu0 %v15532_v29  ;;  %v24934_v29 = vrot.slane %v20975_v49, 2  ;;  %v18987_v49 = vld [vmem:[%s27030_s3 + $0x11d4] sm:$0xf] }
 0x3c3   : > { %v6368_v38 = vpop.f32.mrf.mxu1  ;;  %v6386_v16 = vpop.f32.mrf.mxu2  ;;  %7701 = vmatpush.bf16.msrb.mxu3 %v15984_v14  ;;  %v15640_v14 = vor.u32 %v18990_v15, %v15637_v10  ;;  %v15595_v10 = vld [vmem:[%s27030_s3 + $0x1190] sm:$0xf] }
 0x3c4   : > { %v6369_v43 = vadd.f32 %v6368_v38, %v24754_v45  ;;  %v6417_v57 = vpop.f32.mrf.mxu0  ;;  %v18993_v45 = vld [vmem:[%s27030_s3 + $0x1204] sm:$0xf]  ;;  %7732 = vmatpush.bf16.msrb.mxu1 %v15664_v5  ;;  %v27059_v38 = vld [vmem:[#allocation8_spill] sm:$0xff]  ;;  %v24957_v46 = vsel %vm494_vm0, %v6862_v7, %v24934_v29 }
 0x3c5   : > { %v6399_v40 = vpop.f32.mrf.mxu3  ;;  %7751 = vmatpush.bf16.msrb.mxu2 %v15748_v3  ;;  %v15652_v22 = vor.u32 %v18993_v45, %v15649_v53 }
 0x3c6   : > { %v6400_v62 = vadd.f32 %v6399_v40, %v24757_v52  ;;  %v24880_v28 = vadd.f32 %v6386_v16, %v6369_v43  ;;  %15320 = vmatmul.msk.bf16.gmra.mxu1 %vm2718_vm5, %v21190_v2  ;;  %7718 = vmatpush.bf16.msrb.mxu0 %v15520_v31  ;;  %v18957_v2 = vld [vmem:[%s27030_s3 + $0x10e4] sm:$0xf]  ;;  %v24951_v16 = vrot.slane %v27059_v38, 2  ;;  %v15628_v43 = vor.u32 %v18987_v49, %v15625_v9  ;;  %v15961_v40 = vld [vmem:[%s27030_s3 + $0x147c] sm:$0xf0] }
 0x3c7   : > { %7648 = vmatmul.bf16.vlgmr.msra.gmra.mxu0 %v24886_v37  ;;  %7766 = vmatpush.bf16.msra.mxu3 %v15880_v56  ;;  %v15508_v12 = vor.u32 %v18957_v2, %v15505_v27  ;;  %v15697_v56 = vld [vmem:[%s27030_s3 + $0x126c] sm:$0xf0]  ;;  %v15613_v2 = vld [vmem:[%s27030_s3 + $0x11c4] sm:$0xf0]  ;;  %v19068_v27 = vld [vmem:[%s27030_s3 + $0x145c] sm:$0xf] }
 0x3c8   : > { %v24894_v52 = vadd.f32 %v6417_v57, %v6400_v62  ;;  %7733 = vmatpush.bf16.msrb.mxu1 %v15652_v22  ;;  %v19005_v57 = vld [vmem:[%s27030_s3 + $0x1264] sm:$0xf]  ;;  %v18984_v22 = vld [vmem:[%s27030_s3 + $0x11bc] sm:$0xf]  ;;  %v15952_v15 = vor.u32 %v19068_v27, %v15949_v39  ;;  %v15817_v49 = vld [vmem:[%s27030_s3 + $0x135c] sm:$0xf0] }
 0x3c9   : > { %7752 = vmatpush.bf16.msrb.mxu2 %v15736_v55  ;;  %v19041_v62 = vld [vmem:[%s27030_s3 + $0x1384] sm:$0xf]  ;;  %v15841_v55 = vld [vmem:[%s27030_s3 + $0x138c] sm:$0xf0]  ;;  %v15700_v45 = vor.u32 %v19005_v57, %v15697_v56  ;;  %v15583_v9 = vld [vmem:[%s27030_s3 + $0x1178] sm:$0xf] }
 0x3ca   : > { %7719 = vmatpush.bf16.msrb.mxu0 %v15508_v12  ;;  %v15844_v53 = vor.u32 %v19041_v62, %v15841_v55  ;;  %v19038_v12 = vld [vmem:[%s27030_s3 + $0x136c] sm:$0xf]  ;;  %v15925_v38 = vld [vmem:[%s27030_s3 + $0x1434] sm:$0xf0]  ;;  %v15571_v57 = vld [vmem:[%s27030_s3 + $0x1160] sm:$0xf] }
 0x3cb   : > { %v6370_v6 = vpop.f32.mrf.mxu1  ;;  %v6388_v47 = vpop.f32.mrf.mxu2  ;;  %7767 = vmatpush.bf16.msra.mxu3 %v15868_v41  ;;  %v15616_v41 = vor.u32 %v18984_v22, %v15613_v2  ;;  %v27060_v22 = vld [vmem:[#allocation10_spill] sm:$0xff]  ;;  %v27061_v39 = vld [vmem:[#allocation9_spill] sm:$0xff] }
 0x3cc   : > { %v6419_v35 = vpop.f32.mrf.mxu0  ;;  %7734 = vmatpush.bf16.msrb.mxu1 %v15640_v14  ;;  %v15832_v6 = vor.u32 %v19038_v12, %v15829_v20  ;;  %v15596_v47 = vor.u32 %v18980_v18, %v15595_v10  ;;  %v15601_v14 = vld [vmem:[%s27030_s3 + $0x11ac] sm:$0xf0]  ;;  %v25063_v2 = vrot.slane %v27060_v22, 2  ;;  %v6865_v12 = vrot.slane %v27061_v39, 2  ;;  %v18971_v18 = vld [vmem:[%s27030_s3 + $0x1150] sm:$0xf0] }
 0x3cd   : > { %v6401_v3 = vpop.f32.mrf.mxu3  ;;  %7753 = vmatpush.bf16.msrb.mxu2 %v15724_v24  ;;  %v6859_v24 = vrot.slane %v20957_v11, 2  ;;  %v18981_v11 = vld [vmem:[%s27030_s3 + $0x11a4] sm:$0xf]  ;;  %v15793_v10 = vld [vmem:[%s27030_s3 + $0x132c] sm:$0xf0] }
 0x3ce   : > { %v6402_v31 = vadd.f32 %v6401_v3, %v24821_v60  ;;  %7784 = vmatpush.bf16.msra.mxu0 %v15976_v26  ;;  %v19071_v60 = vld [vmem:[%s27030_s3 + $0x1474] sm:$0xf]  ;;  %v15604_v3 = vor.u32 %v18981_v11, %v15601_v14  ;;  %v15691_v11 = vld [vmem:[%s27030_s3 + $0x1250] sm:$0xf]  ;;  %v19086_v22 = vld [vmem:[%s27030_s3 + $0x14ec] sm:$0xf] }
 0x3cf   : > { %7768 = vmatpush.bf16.msra.mxu3 %v15856_v51  ;;  %v15964_v58 = vor.u32 %v19071_v60, %v15961_v40  ;;  %v25016_v59 = vsel %vm494_vm0, %v6859_v24, %v24951_v16  ;;  %v15805_v40 = vld [vmem:[%s27030_s3 + $0x1344] sm:$0xf0]  ;;  %v19059_v24 = vld [vmem:[%s27030_s3 + $0x1414] sm:$0xf]  ;;  %v15787_v39 = vld [vmem:[%s27030_s3 + $0x1310] sm:$0xf] }
 0x3d0   : > { %v24953_v5 = vadd.f32 %v6419_v35, %v6402_v31  ;;  %7684 = vmatmul.bf16.vlgmr.msra.gmra.mxu2 %v24957_v46  ;;  %7735 = vmatpush.bf16.msrb.mxu1 %v15628_v43  ;;  %v15937_v35 = vld [vmem:[%s27030_s3 + $0x144c] sm:$0xf0]  ;;  %v18977_v31 = vld [vmem:[%s27030_s3 + $0x1180] sm:$0xf0]  ;;  %v19032_v43 = vld [vmem:[%s27030_s3 + $0x133c] sm:$0xf] }
 0x3d1   : > { %7754 = vmatpush.bf16.msrb.mxu2 %v15712_v32  ;;  %v15584_v7 = vor.u32 %v18977_v31, %v15583_v9  ;;  %v19062_v32 = vld [vmem:[%s27030_s3 + $0x142c] sm:$0xf]  ;;  %v15808_v27 = vor.u32 %v19032_v43, %v15805_v40  ;;  %v19053_v40 = vld [vmem:[%s27030_s3 + $0x13e4] sm:$0xf] }
 0x3d2   : > { %7635 = vmatmul.bf16.gmra.mxu3 %v24815_v42  ;;  %7785 = vmatpush.bf16.msra.mxu0 %v15964_v58  ;;  %v15928_v60 = vor.u32 %v19062_v32, %v15925_v38  ;;  %v18974_v58 = vld [vmem:[%s27030_s3 + $0x1168] sm:$0xf0] }
 0x3d3   : > { %v6435_v21 = vpop.f32.mrf.mxu1  ;;  %v24997_v33 = vpop.f32.mrf.mxu2  ;;  %7769 = vmatpush.bf16.msra.mxu3 %v15844_v53  ;;  %v15572_v20 = vor.u32 %v18974_v58, %v15571_v57  ;;  %v18965_v58 = vld [vmem:[%s27030_s3 + $0x1120] sm:$0xf0] }
 0x3d4   : > { %v6436_v34 = vadd.f32 %v6435_v21, %v24894_v52  ;;  %v6422_v0 = vpop.f32.mrf.mxu0  ;;  %7736 = vmatpush.bf16.msrb.mxu1 %v15616_v41  ;;  %v19029_v41 = vld [vmem:[%s27030_s3 + $0x1324] sm:$0xf] }
 0x3d5   : > { %v6404_v13 = vpop.f32.mrf.mxu3  ;;  %7755 = vmatpush.bf16.msrb.mxu2 %v15700_v45 }
 0x3d6   : > { %v6405_v26 = vadd.f32 %v6404_v13, %v24880_v28  ;;  %v25019_v52 = vadd.f32 %v6436_v34, %v24012_v30  ;;  %7666 = vmatmul.bf16.vlgmr.msra.gmra.mxu1 %v25016_v59  ;;  %7786 = vmatpush.bf16.msra.mxu0 %v15952_v15  ;;  %v19065_v28 = vld [vmem:[%s27030_s3 + $0x1444] sm:$0xf]  ;;  %v19035_v30 = vld [vmem:[%s27030_s3 + $0x1354] sm:$0xf]  ;;  %v25090_v34 = vsel %vm494_vm0, %v6865_v12, %v25063_v2 }
 0x3d7   : > { %7653 = vmatmul.bf16.gmra.mxu0 %v24819_v8  ;;  %7770 = vmatpush.bf16.msra.mxu3 %v15832_v6  ;;  %v15940_v51 = vor.u32 %v19065_v28, %v15937_v35  ;;  %v15820_v61 = vor.u32 %v19035_v30, %v15817_v49  ;;  %v15796_v13 = vor.u32 %v19029_v41, %v15793_v10  ;;  %v15901_v6 = vld [vmem:[%s27030_s3 + $0x1404] sm:$0xf0]  ;;  %v19004_v28 = vld [vmem:[%s27030_s3 + $0x1258] sm:$0xf0] }
 0x3d8   : > { %v6423_v36 = vadd.f32 %v6422_v0, %v6405_v26  ;;  %7737 = vmatpush.bf16.msrb.mxu1 %v15604_v3  ;;  %v19056_v0 = vld [vmem:[%s27030_s3 + $0x13fc] sm:$0xf]  ;;  %v15547_v26 = vld [vmem:[%s27030_s3 + $0x1130] sm:$0xf] }
 0x3d9   : > { %7820 = vmatpush.bf16.msra.mxu2 %v15596_v47  ;;  %v15904_v14 = vor.u32 %v19056_v0, %v15901_v6  ;;  %v18968_v3 = vld [vmem:[%s27030_s3 + $0x1138] sm:$0xf0] }
 0x3da   : > { %7787 = vmatpush.bf16.msra.mxu0 %v15940_v51  ;;  %v15692_v51 = vor.u32 %v19004_v28, %v15691_v11  ;;  %v15548_v38 = vor.u32 %v18968_v3, %v15547_v26  ;;  %v16009_v11 = vld [vmem:[%s27030_s3 + $0x14dc] sm:$0xf0] }
 0x3db   : > { %v6437_v56 = vpop.f32.mrf.mxu1  ;;  %v25059_v62 = vpop.f32.mrf.mxu2  ;;  %7771 = vmatpush.bf16.msra.mxu3 %v15820_v61  ;;  %v19089_v61 = vld [vmem:[%s27030_s3 + $0x1504] sm:$0xf] }
 0x3dc   : > { %v6438_v55 = vadd.f32 %v6437_v56, %v24953_v5  ;;  %v6424_v53 = vpop.f32.mrf.mxu0  ;;  %v15913_v5 = vld [vmem:[%s27030_s3 + $0x141c] sm:$0xf0]  ;;  %v15679_v56 = vld [vmem:[%s27030_s3 + $0x1238] sm:$0xf] }
 0x3dd   : > { %v6406_v45 = vpop.f32.mrf.mxu3  ;;  %7821 = vmatpush.bf16.msra.mxu2 %v15584_v7  ;;  %v15916_v15 = vor.u32 %v19059_v24, %v15913_v5  ;;  %v16033_v7 = vld [vmem:[%s27030_s3 + $0x150c] sm:$0xf0]  ;;  %v15523_v24 = vld [vmem:[%s27030_s3 + $0x1100] sm:$0xf]  ;;  %v18962_v5 = vld [vmem:[%s27030_s3 + $0x1108] sm:$0xf0] }
 0x3de   : > { %v25067_v21 = vadd.f32 %v6438_v55, %v24055_v54  ;;  %7788 = vmatpush.bf16.msra.mxu0 %v15928_v60  ;;  %v15559_v54 = vld [vmem:[%s27030_s3 + $0x1148] sm:$0xf]  ;;  %v16036_v43 = vor.u32 %v19089_v61, %v16033_v7  ;;  %v19001_v55 = vld [vmem:[%s27030_s3 + $0x1240] sm:$0xf0]  ;;  %v15524_v26 = vor.u32 %v18962_v5, %v15523_v24  ;;  %v18995_v61 = vld [vmem:[%s27030_s3 + $0x1210] sm:$0xf0] }
 0x3df   : > { %7772 = vmatpush.bf16.msra.mxu3 %v15808_v27  ;;  %v15560_v47 = vor.u32 %v18971_v18, %v15559_v54  ;;  %v15680_v53 = vor.u32 %v19001_v55, %v15679_v56  ;;  %v16021_v27 = vld [vmem:[%s27030_s3 + $0x14f4] sm:$0xf0]  ;;  %v15667_v54 = vld [vmem:[%s27030_s3 + $0x1220] sm:$0xf]  ;;  %v18998_v18 = vld [vmem:[%s27030_s3 + $0x1228] sm:$0xf0] }
 0x3e0   : > { %7689 = vmatmul.bf16.gmra.mxu2 %v24934_v29  ;;  %7805 = vmatpush.bf16.msra.mxu1 %v16036_v43  ;;  %v16024_v12 = vor.u32 %v19086_v22, %v16021_v27  ;;  %v15997_v43 = vld [vmem:[%s27030_s3 + $0x14c4] sm:$0xf0]  ;;  %v15979_v22 = vld [vmem:[%s27030_s3 + $0x1490] sm:$0xf]  ;;  %v19076_v27 = vld [vmem:[%s27030_s3 + $0x1498] sm:$0xf0] }
 0x3e1   : > { %7822 = vmatpush.bf16.msra.mxu2 %v15572_v20  ;;  %v19028_v20 = vld [vmem:[%s27030_s3 + $0x1318] sm:$0xf0]  ;;  %v15980_v24 = vor.u32 %v19076_v27, %v15979_v22  ;;  %v19077_v5 = vld [vmem:[%s27030_s3 + $0x14a4] sm:$0xf]  ;;  %v15607_v27 = vld [vmem:[%s27030_s3 + $0x11a8] sm:$0xf] }
 0x3e2   : > { %16041 = vmatmul.msk.bf16.vlgmr.msrb.gmra.mxu3 %vm2718_vm5, %v25090_v34  ;;  %7789 = vmatpush.bf16.msra.mxu0 %v15916_v15  ;;  %v15788_v10 = vor.u32 %v19028_v20, %v15787_v39  ;;  %v19013_v22 = vld [vmem:[%s27030_s3 + $0x12a0] sm:$0xf0] }
 0x3e3   : > { %v6440_v35 = vpop.f32.mrf.mxu1  ;;  %v25112_v30 = vpop.f32.mrf.mxu2  ;;  %7773 = vmatpush.bf16.msra.mxu3 %v15796_v13  ;;  %v19083_v13 = vld [vmem:[%s27030_s3 + $0x14d4] sm:$0xf] }
 0x3e4   : > { %v6441_v49 = vadd.f32 %v6440_v35, %v6423_v36  ;;  %v6489_v31 = vpop.f32.mrf.mxu0  ;;  %7806 = vmatpush.bf16.msra.mxu1 %v16024_v12  ;;  %v16012_v3 = vor.u32 %v19083_v13, %v16009_v11  ;;  %v15775_v35 = vld [vmem:[%s27030_s3 + $0x12f8] sm:$0xf]  ;;  %v19073_v11 = vld [vmem:[%s27030_s3 + $0x1480] sm:$0xf0] }
 0x3e5   : > { %v6471_v9 = vpop.f32.mrf.mxu3  ;;  %7823 = vmatpush.bf16.msra.mxu2 %v15560_v47  ;;  %v15668_v47 = vor.u32 %v18998_v18, %v15667_v54  ;;  %v15751_v18 = vld [vmem:[%s27030_s3 + $0x12c8] sm:$0xf]  ;;  %v15631_v13 = vld [vmem:[%s27030_s3 + $0x11d8] sm:$0xf] }
 0x3e6   : > { %v6472_v32 = vadd.f32 %v6471_v9, %v24997_v33  ;;  %v25122_v60 = vadd.f32 %v6441_v49, %v24123_v44  ;;  %7671 = vmatmul.bf16.gmra.mxu1 %v24951_v16  ;;  %7790 = vmatpush.bf16.msra.mxu0 %v15904_v14  ;;  %v15889_v33 = vld [vmem:[%s27030_s3 + $0x13ec] sm:$0xf0]  ;;  %v15535_v44 = vld [vmem:[%s27030_s3 + $0x1118] sm:$0xf]  ;;  %v15511_v49 = vld [vmem:[%s27030_s3 + $0x10e8] sm:$0xf] }
 0x3e7   : > { %7838 = vmatpush.bf16.msrb.mxu3 %v15692_v51  ;;  %7720 = vmatmul.bf16.vlgmr.msrb.gmra.mxu0 %v24707_v50  ;;  %v15892_v57 = vor.u32 %v19053_v40, %v15889_v33  ;;  %v15536_v45 = vor.u32 %v18965_v58, %v15535_v44  ;;  %v19025_v51 = vld [vmem:[%s27030_s3 + $0x1300] sm:$0xf0]  ;;  %v18959_v9 = vld [vmem:[%s27030_s3 + $0x10f0] sm:$0xf0]  ;;  %v15763_v40 = vld [vmem:[%s27030_s3 + $0x12e0] sm:$0xf] }
 0x3e8   : > { %v25125_v36 = vadd.f32 %v6489_v31, %v6472_v32  ;;  %7807 = vmatpush.bf16.msra.mxu1 %v16012_v3  ;;  %v15655_v31 = vld [vmem:[%s27030_s3 + $0x1208] sm:$0xf]  ;;  %v15512_v7 = vor.u32 %v18959_v9, %v15511_v49  ;;  %v19022_v44 = vld [vmem:[%s27030_s3 + $0x12e8] sm:$0xf0]  ;;  %v18992_v58 = vld [vmem:[%s27030_s3 + $0x11f8] sm:$0xf0] }
 0x3e9   : > { %7824 = vmatpush.bf16.msra.mxu2 %v15548_v38  ;;  %v15656_v32 = vor.u32 %v18995_v61, %v15655_v31  ;;  %v19080_v38 = vld [vmem:[%s27030_s3 + $0x14bc] sm:$0xf]  ;;  %v15883_v3 = vld [vmem:[%s27030_s3 + $0x13d0] sm:$0xf]  ;;  %v15619_v9 = vld [vmem:[%s27030_s3 + $0x11c0] sm:$0xf] }
 0x3ea   : > { %7791 = vmatpush.bf16.msra.mxu0 %v15892_v57  ;;  %v16000_v33 = vor.u32 %v19080_v38, %v15997_v43  ;;  %v15643_v57 = vld [vmem:[%s27030_s3 + $0x11f0] sm:$0xf]  ;;  %v18986_v31 = vld [vmem:[%s27030_s3 + $0x11c8] sm:$0xf0]  ;;  %v15955_v43 = vld [vmem:[%s27030_s3 + $0x1460] sm:$0xf] }
 0x3eb   : > { %v6442_v41 = vpop.f32.mrf.mxu1  ;;  %v6460_v15 = vpop.f32.mrf.mxu2  ;;  %7839 = vmatpush.bf16.msrb.mxu3 %v15680_v53  ;;  %v15644_v53 = vor.u32 %v18992_v58, %v15643_v57  ;;  %v15620_v38 = vor.u32 %v18986_v31, %v15619_v9  ;;  %v15871_v58 = vld [vmem:[%s27030_s3 + $0x13b8] sm:$0xf] }
 0x3ec   : > { %v6491_v6 = vpop.f32.mrf.mxu0  ;;  %7808 = vmatpush.bf16.msra.mxu1 %v16000_v33  ;;  %v15985_v41 = vld [vmem:[%s27030_s3 + $0x14ac] sm:$0xf0] }
 0x3ed   : > { %v6473_v0 = vpop.f32.mrf.mxu3  ;;  %7825 = vmatpush.bf16.msra.mxu2 %v15536_v45  ;;  %v15764_v45 = vor.u32 %v19022_v44, %v15763_v40  ;;  %v19070_v40 = vld [vmem:[%s27030_s3 + $0x1468] sm:$0xf0] }
 0x3ee   : > { %v6474_v14 = vadd.f32 %v6473_v0, %v25059_v62  ;;  %7856 = vmatpush.bf16.msrb.mxu0 %v15788_v10  ;;  %v15776_v62 = vor.u32 %v19025_v51, %v15775_v35  ;;  %v15988_v10 = vor.u32 %v19077_v5, %v15985_v41  ;;  %v19052_v35 = vld [vmem:[%s27030_s3 + $0x13d8] sm:$0xf0]  ;;  %v15739_v51 = vld [vmem:[%s27030_s3 + $0x12b0] sm:$0xf]  ;;  %v15859_v41 = vld [vmem:[%s27030_s3 + $0x13a0] sm:$0xf] }
 0x3ef   : > { %7840 = vmatpush.bf16.msrb.mxu3 %v15668_v47  ;;  %v15967_v47 = vld [vmem:[%s27030_s3 + $0x1478] sm:$0xf]  ;;  %v15884_v49 = vor.u32 %v19052_v35, %v15883_v3 }
 0x3f0   : > { %v25177_v28 = vadd.f32 %v6491_v6, %v6474_v14  ;;  %7756 = vmatmul.bf16.vlgmr.msrb.gmra.mxu2 %v24886_v37  ;;  %7809 = vmatpush.bf16.msra.mxu1 %v15988_v10  ;;  %v18989_v6 = vld [vmem:[%s27030_s3 + $0x11e0] sm:$0xf0]  ;;  %v15715_v10 = vld [vmem:[%s27030_s3 + $0x1280] sm:$0xf] }
 0x3f1   : > { %7826 = vmatpush.bf16.msra.mxu2 %v15524_v26  ;;  %v15632_v14 = vor.u32 %v18989_v6, %v15631_v13  ;;  %v15968_v26 = vor.u32 %v19073_v11, %v15967_v47  ;;  %v19010_v13 = vld [vmem:[%s27030_s3 + $0x1288] sm:$0xf0]  ;;  %v15931_v6 = vld [vmem:[%s27030_s3 + $0x1430] sm:$0xf]  ;;  %v19064_v47 = vld [vmem:[%s27030_s3 + $0x1438] sm:$0xf0] }
 0x3f2   : > { %16042 = vmatmul.msk.bf16.gmra.mxu3 %vm2718_vm5, %v25063_v2  ;;  %7857 = vmatpush.bf16.msrb.mxu0 %v15776_v62  ;;  %v19016_v62 = vld [vmem:[%s27030_s3 + $0x12b8] sm:$0xf0]  ;;  %v15932_v9 = vor.u32 %v19064_v47, %v15931_v6 }
 0x3f3   : > { %v6507_v56 = vpop.f32.mrf.mxu1  ;;  %v6525_v55 = vpop.f32.mrf.mxu2  ;;  %7841 = vmatpush.bf16.msrb.mxu3 %v15656_v32  ;;  %v15740_v32 = vor.u32 %v19016_v62, %v15739_v51  ;;  %v15847_v51 = vld [vmem:[%s27030_s3 + $0x1388] sm:$0xf] }
 0x3f4   : > { %v6508_v39 = vadd.f32 %v6507_v56, %v25125_v36  ;;  %v6494_v20 = vpop.f32.mrf.mxu0  ;;  %v19049_v56 = vld [vmem:[%s27030_s3 + $0x13c0] sm:$0xf0] }
 0x3f5   : > { %v6476_v12 = vpop.f32.mrf.mxu3  ;;  %7827 = vmatpush.bf16.msra.mxu2 %v15512_v7 }
 0x3f6   : > { %v6477_v15 = vadd.f32 %v6476_v12, %v25112_v30  ;;  %v25232_v54 = vadd.f32 %v6525_v55, %v6508_v39  ;;  %7738 = vmatmul.bf16.vlgmr.msrb.gmra.mxu1 %v24844_v19  ;;  %7858 = vmatpush.bf16.msrb.mxu0 %v15764_v45  ;;  %v19019_v30 = vld [vmem:[%s27030_s3 + $0x12d0] sm:$0xf0]  ;;  %v15956_v55 = vor.u32 %v19070_v40, %v15955_v43  ;;  %v15835_v43 = vld [vmem:[%s27030_s3 + $0x1370] sm:$0xf]  ;;  %v19040_v40 = vld [vmem:[%s27030_s3 + $0x1378] sm:$0xf0] }
 0x3f7   : > { %7725 = vmatmul.bf16.gmra.mxu0 %v24690_v23  ;;  %7842 = vmatpush.bf16.msrb.mxu3 %v15644_v53  ;;  %v15752_v0 = vor.u32 %v19019_v30, %v15751_v18  ;;  %v15872_v45 = vor.u32 %v19049_v56, %v15871_v58  ;;  %v18983_v12 = vld [vmem:[%s27030_s3 + $0x11b0] sm:$0xf0]  ;;  %v19058_v58 = vld [vmem:[%s27030_s3 + $0x1408] sm:$0xf0] }
 0x3f8   : > { %v25235_v36 = vadd.f32 %v6494_v20, %v6477_v15  ;;  %7874 = vmatpush.bf16.msrb.mxu1 %v15884_v49  ;;  %v15943_v20 = vld [vmem:[%s27030_s3 + $0x1448] sm:$0xf]  ;;  %v15608_v5 = vor.u32 %v18983_v12, %v15607_v27  ;;  %v19046_v15 = vld [vmem:[%s27030_s3 + $0x13a8] sm:$0xf0]  ;;  %v19043_v49 = vld [vmem:[%s27030_s3 + $0x1390] sm:$0xf0] }
 0x3f9   : > { %7892 = vmatpush.bf16.msrb.mxu2 %v15980_v24  ;;  %v19067_v24 = vld [vmem:[%s27030_s3 + $0x1450] sm:$0xf0]  ;;  %v15860_v30 = vor.u32 %v19046_v15, %v15859_v41  ;;  %v15848_v31 = vor.u32 %v19043_v49, %v15847_v51  ;;  %v16039_v15 = vld [vmem:[%s27030_s3 + $0x1508] sm:$0xf] }
 0x3fa   : > { %7859 = vmatpush.bf16.msrb.mxu0 %v15752_v0  ;;  %v15944_v18 = vor.u32 %v19067_v24, %v15943_v20  ;;  %v15716_v0 = vor.u32 %v19010_v13, %v15715_v10  ;;  %v19055_v41 = vld [vmem:[%s27030_s3 + $0x13f0] sm:$0xf0]  ;;  %v19034_v10 = vld [vmem:[%s27030_s3 + $0x1348] sm:$0xf0] }
 0x3fb   : > { %v6509_v61 = vpop.f32.mrf.mxu1  ;;  %v6527_v7 = vpop.f32.mrf.mxu2  ;;  %7843 = vmatpush.bf16.msrb.mxu3 %v15632_v14 }
 0x3fc   : > { %v6510_v33 = vadd.f32 %v6509_v61, %v25177_v28  ;;  %v6496_v57 = vpop.f32.mrf.mxu0  ;;  %v15727_v28 = vld [vmem:[%s27030_s3 + $0x1298] sm:$0xf]  ;;  %7875 = vmatpush.bf16.msrb.mxu1 %v15872_v45 }
 0x3fd   : > { %v6478_v44 = vpop.f32.mrf.mxu3  ;;  %7893 = vmatpush.bf16.msrb.mxu2 %v15968_v26  ;;  %v15728_v39 = vor.u32 %v19013_v22, %v15727_v28  ;;  %v15907_v57 = vld [vmem:[%s27030_s3 + $0x1400] sm:$0xf]  ;;  %v15823_v45 = vld [vmem:[%s27030_s3 + $0x1358] sm:$0xf]  ;;  %v19037_v28 = vld [vmem:[%s27030_s3 + $0x1360] sm:$0xf0] }
 0x3fe   : > { %v25287_v53 = vadd.f32 %v6527_v7, %v6510_v33  ;;  %7860 = vmatpush.bf16.msrb.mxu0 %v15740_v32  ;;  %v15703_v7 = vld [vmem:[%s27030_s3 + $0x1268] sm:$0xf]  ;;  %v15919_v32 = vld [vmem:[%s27030_s3 + $0x1418] sm:$0xf]  ;;  %v15836_v44 = vor.u32 %v19040_v40, %v15835_v43  ;;  %v15908_v20 = vor.u32 %v19058_v58, %v15907_v57  ;;  %v19079_v57 = vld [vmem:[%s27030_s3 + $0x14b0] sm:$0xf0] }
 0x3ff   : > { %7844 = vmatpush.bf16.msrb.mxu3 %v15620_v38 }
 0x400   : > { %7761 = vmatmul.bf16.gmra.mxu2 %v24819_v8  ;;  %7876 = vmatpush.bf16.msrb.mxu1 %v15860_v30 }
 0x401   : > { %7894 = vmatpush.bf16.msrb.mxu2 %v15956_v55 }
 0x402   : > { %7774 = vmatmul.bf16.vlgmr.msra.gmra.mxu3 %v25016_v59  ;;  %7861 = vmatpush.bf16.msrb.mxu0 %v15728_v39  ;;  %v15824_v39 = vor.u32 %v19037_v28, %v15823_v45 }
 0x403   : > { %v6512_v11 = vpop.f32.mrf.mxu1  ;;  %v6530_v14 = vpop.f32.mrf.mxu2  ;;  %7845 = vmatpush.bf16.msrb.mxu3 %v15608_v5  ;;  %v15895_v5 = vld [vmem:[%s27030_s3 + $0x13e8] sm:$0xf] }
 0x404   : > { %v6513_v26 = vadd.f32 %v6512_v11, %v25235_v36  ;;  %v6561_v35 = vpop.f32.mrf.mxu0  ;;  %7877 = vmatpush.bf16.msrb.mxu1 %v15848_v31 }
 0x405   : > { %v6543_v3 = vpop.f32.mrf.mxu3  ;;  %7895 = vmatpush.bf16.msrb.mxu2 %v15944_v18  ;;  %v15896_v18 = vor.u32 %v19055_v41, %v15895_v5 }
 0x406   : > { %v6544_v62 = vadd.f32 %v6543_v3, %v25232_v54  ;;  %v6531_v61 = vadd.f32 %v6530_v14, %v6513_v26  ;;  %7743 = vmatmul.bf16.gmra.mxu1 %v24815_v42  ;;  %7862 = vmatpush.bf16.msrb.mxu0 %v15716_v0  ;;  %v19007_v54 = vld [vmem:[%s27030_s3 + $0x1270] sm:$0xf0]  ;;  %v19088_v0 = vld [vmem:[%s27030_s3 + $0x14f8] sm:$0xf0] }
 0x407   : > { %7792 = vmatmul.bf16.vlgmr.msra.gmra.mxu0 %v24957_v46  ;;  %v15704_v38 = vor.u32 %v19007_v54, %v15703_v7  ;;  %v19085_v7 = vld [vmem:[%s27030_s3 + $0x14e0] sm:$0xf0] }
 0x408   : > { %v25337_v36 = vadd.f32 %v6544_v62, %v24342_v17  ;;  %v19061_v17 = vld [vmem:[%s27030_s3 + $0x1420] sm:$0xf0]  ;;  %7878 = vmatpush.bf16.msrb.mxu1 %v15836_v44  ;;  %v15799_v62 = vld [vmem:[%s27030_s3 + $0x1328] sm:$0xf] }
 0x409   : > { %7896 = vmatpush.bf16.msrb.mxu2 %v15932_v9  ;;  %v15920_v33 = vor.u32 %v19061_v17, %v15919_v32  ;;  %v19031_v9 = vld [vmem:[%s27030_s3 + $0x1330] sm:$0xf0]  ;;  %v16003_v32 = vld [vmem:[%s27030_s3 + $0x14c0] sm:$0xf]  ;;  %v15991_v44 = vld [vmem:[%s27030_s3 + $0x14a8] sm:$0xf] }
 0x40a   : > { %7863 = vmatpush.bf16.msrb.mxu0 %v15704_v38  ;;  %v15992_v58 = vor.u32 %v19079_v57, %v15991_v44  ;;  %v19144_v44 = vld [vmem:[%s27032_s5 + $0x1a0] sm:$0xff] }
 0x40b   : > { %v6514_v56 = vpop.f32.mrf.mxu1  ;;  %v6532_v55 = vpop.f32.mrf.mxu2 }
 0x40c   : > { %v25370_v27 = vpop.f32.mrf.mxu0  ;;  %7879 = vmatpush.bf16.msrb.mxu1 %v15824_v39 }
 0x40d   : > { %v6545_v22 = vpop.f32.mrf.mxu3  ;;  %7897 = vmatpush.bf16.msrb.mxu2 %v15920_v33 }
 0x40e   : > { %v6546_v12 = vadd.f32 %v6545_v22, %v25287_v53  ;;  %v15811_v53 = vld [vmem:[%s27030_s3 + $0x1340] sm:$0xf] }
 0x40f   : > { %v15812_v13 = vor.u32 %v19034_v10, %v15811_v53  ;;  %v19097_v53 = vld [vmem:[%s27032_s5 + $0x28] sm:$0xff] }
 0x410   : > { %v25374_v24 = vadd.f32 %v6546_v12, %v24386_v4  ;;  %7828 = vmatmul.bf16.vlgmr.msra.gmra.mxu2 %v24707_v50  ;;  %v19091_v4 = vld [vmem:[%s27030_s3 + $0x1510] sm:$0xf0]  ;;  %v16027_v50 = vld [vmem:[%s27030_s3 + $0x14f0] sm:$0xf] }
 0x411   : > { %7898 = vmatpush.bf16.msrb.mxu2 %v15908_v20  ;;  %v16040_v30 = vor.u32 %v19091_v4, %v16039_v15  ;;  %v16028_v11 = vor.u32 %v19088_v0, %v16027_v50  ;;  %7880 = vmatpush.bf16.msrb.mxu1 %v15812_v13  ;;  %v19098_v4 = vld [vmem:[%s27032_s5 + $0x30] sm:$0xff] }
 0x412   : > { %7779 = vmatmul.bf16.gmra.mxu3 %v24951_v16 }
 0x413   : > { %v6579_v6 = vpop.f32.mrf.mxu1  ;;  %v6597_v47 = vpop.f32.mrf.mxu2  ;;  %7913 = vmatpush.bf16.msra.mxu3 %v16040_v30 }
 0x414   : > { %v6580_v14 = vadd.f32 %v6579_v6, %v6561_v35  ;;  %v6566_v3 = vpop.f32.mrf.mxu0  ;;  %v15800_v35 = vor.u32 %v19031_v9, %v15799_v62  ;;  %v19096_v6 = vld [vmem:[%s27032_s5 + $0x20] sm:$0xff]  ;;  %v19093_v62 = vld [vmem:[%s27032_s5 + $0x8] sm:$0xff] }
 0x415   : > { %v6548_v26 = vpop.f32.mrf.mxu3  ;;  %7899 = vmatpush.bf16.msrb.mxu2 %v15896_v18 }
 0x416   : > { %v6549_v51 = vadd.f32 %v6548_v26, %v6531_v61  ;;  %v6598_v49 = vadd.f32 %v6597_v47, %v6580_v14  ;;  %16043 = vmatmul.msk.bf16.vlgmr.msra.gmra.mxu1 %vm2718_vm5, %v25090_v34  ;;  %v16015_v61 = vld [vmem:[%s27030_s3 + $0x14d8] sm:$0xf]  ;;  %v19117_v47 = vld [vmem:[%s27032_s5 + $0xc8] sm:$0xff] }
 0x417   : > { %7797 = vmatmul.bf16.gmra.mxu0 %v24934_v29  ;;  %7914 = vmatpush.bf16.msra.mxu3 %v16028_v11  ;;  %v16016_v54 = vor.u32 %v19085_v7, %v16015_v61 }
 0x418   : > { %v25411_v31 = vadd.f32 %v6549_v51, %v24437_v25  ;;  %v19082_v25 = vld [vmem:[%s27030_s3 + $0x14c8] sm:$0xf0]  ;;  %7881 = vmatpush.bf16.msrb.mxu1 %v15800_v35  ;;  %v19115_v51 = vld [vmem:[%s27032_s5 + $0xb8] sm:$0xff] }
 0x419   : > { %v16004_v43 = vor.u32 %v19082_v25, %v16003_v32 }
 0x41b   : > { %v25426_v38 = vpop.f32.mrf.mxu1  ;;  %v25428_v17 = vpop.f32.mrf.mxu2  ;;  %7915 = vmatpush.bf16.msra.mxu3 %v16016_v54 }
 0x41c   : > { %v6568_v33 = vpop.f32.mrf.mxu0 }
 0x41d   : > { %v6550_v40 = vpop.f32.mrf.mxu3  ;;  %v19113_v33 = vld [vmem:[%s27032_s5 + $0xa8] sm:$0xff] }
 0x41e   : > { %v19092_v40 = vld [vmem:[%s27032_s5] sm:$0xff] }
 0x41f   : > { %7916 = vmatpush.bf16.msra.mxu3 %v16004_v43 }
 0x420   : > { %7833 = vmatmul.bf16.gmra.mxu2 %v24690_v23  ;;  %v19099_v23 = vld [vmem:[%s27032_s5 + $0x38] sm:$0xff] }
 0x422   : > { %7846 = vmatmul.bf16.vlgmr.msrb.gmra.mxu3 %v24844_v19 }
 0x423   : > { %v6584_v56 = vpop.f32.mrf.mxu1  ;;  %v6602_v55 = vpop.f32.mrf.mxu2  ;;  %7917 = vmatpush.bf16.msra.mxu3 %v15992_v58 }
 0x424   : > { %v6585_v45 = vadd.f32 %v6584_v56, %v6566_v3  ;;  %v6633_v22 = vpop.f32.mrf.mxu0  ;;  %v19094_v3 = vld [vmem:[%s27032_s5 + $0x10] sm:$0xff] }
 0x425   : > { %v6615_v28 = vpop.f32.mrf.mxu3 }
 0x426   : > { %v6616_v39 = vadd.f32 %v6615_v28, %v6598_v49  ;;  %v6603_v12 = vadd.f32 %v6602_v55, %v6585_v45  ;;  %16044 = vmatmul.msk.bf16.gmra.mxu1 %vm2718_vm5, %v25063_v2  ;;  %v19114_v49 = vld [vmem:[%s27032_s5 + $0xb0] sm:$0xff] }
 0x427   : > { %7864 = vmatmul.bf16.vlgmr.msrb.gmra.mxu0 %v24886_v37  ;;  %8331 = vmatpush.bf16.msrb.mxu3 %v19099_v23  ;;  %v19118_v37 = vld [vmem:[%s27032_s5 + $0xd0] sm:$0xff] }
 0x428   : > { %v6634_v20 = vadd.f32 %v6633_v22, %v6616_v39  ;;  %8174 = vmatpush.bf16.msra.mxu0 %v19118_v37  ;;  %v19111_v22 = vld [vmem:[%s27032_s5 + $0x98] sm:$0xff] }
 0x429   : > { %v19143_v39 = vld [vmem:[%s27032_s5 + $0x198] sm:$0xff] }
 0x42b   : > { %v6586_v19 = vpop.f32.mrf.mxu1  ;;  %v6604_v5 = vpop.f32.mrf.mxu2  ;;  %8332 = vmatpush.bf16.msrb.mxu3 %v19098_v4 }
 0x42c   : > { %v25446_v15 = vpop.f32.mrf.mxu0  ;;  %8175 = vmatpush.bf16.msra.mxu0 %v19117_v47 }
 0x42d   : > { %v25444_v41 = vpop.f32.mrf.mxu3 }
 0x42f   : > { %8333 = vmatpush.bf16.msrb.mxu3 %v19097_v53 }
 0x430   : > { %7900 = vmatmul.bf16.vlgmr.msrb.gmra.mxu2 %v24957_v46 }
 0x432   : > { %7851 = vmatmul.bf16.gmra.mxu3 %v24815_v42 }
 0x433   : > { %v6651_v10 = vpop.f32.mrf.mxu1  ;;  %v25459_v18 = vpop.f32.mrf.mxu2  ;;  %8334 = vmatpush.bf16.msrb.mxu3 %v19096_v6 }
 0x434   : > { %v6652_v30 = vadd.f32 %v6651_v10, %v6634_v20  ;;  %v6638_v50 = vpop.f32.mrf.mxu0  ;;  %v19142_v20 = vld [vmem:[%s27032_s5 + $0x190] sm:$0xff] }
 0x435   : > { %v6620_v13 = vpop.f32.mrf.mxu3  ;;  %v19106_v10 = vld [vmem:[%s27032_s5 + $0x70] sm:$0xff] }
 0x436   : > { %v6621_v0 = vadd.f32 %v6620_v13, %v6603_v12  ;;  %v25462_v46 = vadd.f32 %v6652_v30, %v24656_v1  ;;  %7882 = vmatmul.bf16.vlgmr.msrb.gmra.mxu1 %v25016_v59  ;;  %v19116_v1 = vld [vmem:[%s27032_s5 + $0xc0] sm:$0xff]  ;;  %v19095_v59 = vld [vmem:[%s27032_s5 + $0x18] sm:$0xff]  ;;  %v19105_v13 = vld [vmem:[%s27032_s5 + $0x68] sm:$0xff] }
 0x437   : > { %7869 = vmatmul.bf16.gmra.mxu0 %v24819_v8  ;;  %8335 = vmatpush.bf16.msrb.mxu3 %v19095_v59 }
 0x438   : > { %v6639_v42 = vadd.f32 %v6638_v50, %v6621_v0  ;;  %8176 = vmatpush.bf16.msra.mxu0 %v19116_v1  ;;  %v19140_v50 = vld [vmem:[%s27032_s5 + $0x180] sm:$0xff]  ;;  %v19126_v0 = vld [vmem:[%s27032_s5 + $0x110] sm:$0xff] }
 0x439   : > { %8187 = vmatpush.bf16.msra.mxu1 %v19126_v0 }
 0x43b   : > { %v25478_v11 = vpop.f32.mrf.mxu1  ;;  %v7615_v8 = vpop.f32.mrf.mxu2  ;;  %8336 = vmatpush.bf16.msrb.mxu3 %v19094_v3 }
 0x43c   : > { %v6640_v26 = vpop.f32.mrf.mxu0  ;;  %8177 = vmatpush.bf16.msra.mxu0 %v19115_v51 }
 0x43d   : > { %v6622_v14 = vpop.f32.mrf.mxu3 }
 0x43f   : > { %8337 = vmatpush.bf16.msrb.mxu3 %v19093_v62  ;;  %v19139_v62 = vld [vmem:[%s27032_s5 + $0x178] sm:$0xff] }
 0x440   : > { %7905 = vmatmul.bf16.gmra.mxu2 %v24934_v29  ;;  %8178 = vmatpush.bf16.msra.mxu0 %v19114_v49  ;;  %v19104_v49 = vld [vmem:[%s27032_s5 + $0x60] sm:$0xff] }
 0x442   : > { %16045 = vmatmul.msk.bf16.vlgmr.msra.gmra.mxu3 %vm2718_vm5, %v25090_v34 }
 0x443   : > { %v6656_v9 = vpop.f32.mrf.mxu1  ;;  %v7618_v35 = vpop.f32.mrf.mxu2  ;;  %8338 = vmatpush.bf16.msrb.mxu3 %v19092_v40 }
 0x444   : > { %v6657_v61 = vadd.f32 %v6656_v9, %v6639_v42  ;;  %v7649_v54 = vpop.f32.mrf.mxu0  ;;  %8179 = vmatpush.bf16.msra.mxu0 %v19113_v33  ;;  %v25547_v42 = vld [vmem:[%s27031_s4] sm:$0x7] }
 0x445   : > { %v7631_v7 = vpop.f32.mrf.mxu3  ;;  %v7939_v51 = vperm.slane %v25547_v42, 0 }
 0x446   : > { %v25496_v29 = vadd.f32 %v6657_v61, %v24768_v48  ;;  %7887 = vmatmul.bf16.gmra.mxu1 %v24951_v16  ;;  %v19145_v48 = vld [vmem:[%s27032_s5 + $0x1a8] sm:$0xff]  ;;  %v19112_v16 = vld [vmem:[%s27032_s5 + $0xa0] sm:$0xff]  ;;  %v7632_v12 = vadd.f32 %v7631_v7, %v25459_v18 }
 0x447   : > { %8549 = vmatpush.bf16.msra.mxu3 %v19145_v48  ;;  %v19141_v18 = vld [vmem:[%s27032_s5 + $0x188] sm:$0xff] }
 0x448   : > { %8180 = vmatpush.bf16.msra.mxu0 %v19112_v16  ;;  %v7650_v37 = vadd.f32 %v7649_v54, %v7632_v12  ;;  %v19125_v7 = vld [vmem:[%s27032_s5 + $0x108] sm:$0xff] }
 0x449   : > { %8188 = vmatpush.bf16.msra.mxu1 %v19125_v7  ;;  %v19119_v7 = vld [vmem:[%s27032_s5 + $0xd8] sm:$0xff] }
 0x44b   : > { %v6658_v34 = vpop.f32.mrf.mxu1  ;;  %v7620_v32 = vpop.f32.mrf.mxu2  ;;  %8550 = vmatpush.bf16.msra.mxu3 %v19144_v44  ;;  %v19175_v44 = vld [vmem:[%s27032_s5 + $0x298] sm:$0xff] }
 0x44c   : > { %v7651_v43 = vpop.f32.mrf.mxu0  ;;  %8181 = vmatpush.bf16.msra.mxu0 %v19111_v22  ;;  %v19103_v34 = vld [vmem:[%s27032_s5 + $0x58] sm:$0xff]  ;;  %v19138_v32 = vld [vmem:[%s27032_s5 + $0x170] sm:$0xff] }
 0x44d   : > { %v7633_v25 = vpop.f32.mrf.mxu3  ;;  %v19174_v22 = vld [vmem:[%s27032_s5 + $0x290] sm:$0xff] }
 0x44e   : > { %v7634_v30 = vadd.f32 %v7633_v25, %v7615_v8 }
 0x44f   : > { %8551 = vmatpush.bf16.msra.mxu3 %v19143_v39 }
 0x450   : > { %v7652_v26 = vadd.f32 %v7651_v43, %v7634_v30 }
 0x452   : > { %16046 = vmatmul.msk.bf16.gmra.mxu3 %vm2718_vm5, %v25063_v2  ;;  %v19107_v2 = vld [vmem:[%s27032_s5 + $0x78] sm:$0xff] }
 0x453   : > { %v7667_v57 = vpop.f32.mrf.mxu1  ;;  %v7685_v58 = vpop.f32.mrf.mxu2  ;;  %8344 = vmatpush.bf16.msrb.mxu0 %v19107_v2  ;;  %8552 = vmatpush.bf16.msra.mxu3 %v19142_v20  ;;  %v19122_v2 = vld [vmem:[%s27032_s5 + $0xf0] sm:$0xff] }
 0x454   : > { %v7654_v55 = vpop.f32.mrf.mxu0  ;;  %v7668_v53 = vadd.f32 %v7667_v57, %v7650_v37  ;;  %v19100_v37 = vld [vmem:[%s27032_s5 + $0x40] sm:$0xff] }
 0x455   : > { %v7636_v56 = vpop.f32.mrf.mxu3 }
 0x456   : > { %v7637_v45 = vadd.f32 %v7636_v56, %v7618_v35  ;;  %v7686_v6 = vadd.f32 %v7685_v58, %v7668_v53  ;;  %v19102_v56 = vld [vmem:[%s27032_s5 + $0x50] sm:$0xff] }
 0x457   : > { %8345 = vmatpush.bf16.msrb.mxu0 %v19106_v10  ;;  %8553 = vmatpush.bf16.msra.mxu3 %v19141_v18  ;;  %v19156_v10 = vld [vmem:[%s27032_s5 + $0x200] sm:$0xff] }
 0x458   : > { %v7655_v28 = vadd.f32 %v7654_v55, %v7637_v45  ;;  %v19172_v18 = vld [vmem:[%s27032_s5 + $0x280] sm:$0xff] }
 0x45b   : > { %v7669_v23 = vpop.f32.mrf.mxu1  ;;  %v7687_v19 = vpop.f32.mrf.mxu2  ;;  %8346 = vmatpush.bf16.msrb.mxu0 %v19105_v13  ;;  %8554 = vmatpush.bf16.msra.mxu3 %v19140_v50 }
 0x45c   : > { %v7656_v4 = vpop.f32.mrf.mxu0  ;;  %v7670_v35 = vadd.f32 %v7669_v23, %v7652_v26  ;;  %v19170_v26 = vld [vmem:[%s27032_s5 + $0x270] sm:$0xff] }
 0x45d   : > { %v7638_v5 = vpop.f32.mrf.mxu3 }
 0x45e   : > { %v7688_v25 = vadd.f32 %v7687_v19, %v7670_v35  ;;  %v19173_v5 = vld [vmem:[%s27032_s5 + $0x288] sm:$0xff] }
 0x45f   : > { %8347 = vmatpush.bf16.msrb.mxu0 %v19104_v49  ;;  %8555 = vmatpush.bf16.msra.mxu3 %v19139_v62  ;;  %v19153_v35 = vld [vmem:[%s27032_s5 + $0x1e8] sm:$0xff] }
 0x463   : > { %v7672_v47 = vpop.f32.mrf.mxu1  ;;  %v7690_v1 = vpop.f32.mrf.mxu2  ;;  %8348 = vmatpush.bf16.msrb.mxu0 %v19103_v34  ;;  %8556 = vmatpush.bf16.msra.mxu3 %v19138_v32  ;;  %v19152_v34 = vld [vmem:[%s27032_s5 + $0x1e0] sm:$0xff] }
 0x464   : > { %v7673_v59 = vadd.f32 %v7672_v47, %v7655_v28  ;;  %v25549_v14 = vpop.f32.mrf.mxu0  ;;  %v19123_v28 = vld [vmem:[%s27032_s5 + $0xf8] sm:$0xff] }
 0x465   : > { %v7703_v8 = vpop.f32.mrf.mxu3  ;;  %v19171_v47 = vld [vmem:[%s27032_s5 + $0x278] sm:$0xff] }
 0x466   : > { %v7704_v3 = vadd.f32 %v7703_v8, %v7686_v6  ;;  %v7691_v9 = vadd.f32 %v7690_v1, %v7673_v59  ;;  %v19121_v1 = vld [vmem:[%s27032_s5 + $0xe8] sm:$0xff]  ;;  %v19120_v59 = vld [vmem:[%s27032_s5 + $0xe0] sm:$0xff]  ;;  %v19154_v8 = vld [vmem:[%s27032_s5 + $0x1f0] sm:$0xff] }
 0x467   : > { %8349 = vmatpush.bf16.msrb.mxu0 %v19102_v56 }
 0x468   : > { %v7928_v61 = vadd.f32 %v7704_v3, %v25019_v52  ;;  %v19124_v52 = vld [vmem:[%s27032_s5 + $0x100] sm:$0xff] }
 0x469   : > { %8189 = vmatpush.bf16.msra.mxu1 %v19124_v52  ;;  %v19168_v52 = vld [vmem:[%s27032_s5 + $0x260] sm:$0xff] }
 0x46a   : > { %v7945_v54 = vadd.f32 %v7939_v51, %v7928_v61  ;;  %v19169_v61 = vld [vmem:[%s27032_s5 + $0x268] sm:$0xff] }
 0x46b   : > { %v7674_v40 = vpop.f32.mrf.mxu1  ;;  %v7692_v33 = vpop.f32.mrf.mxu2 }
 0x46c   : > { %v7954_v43 = vmax.f32 %v7945_v54, 0.0  ;;  %v25571_v16 = vpop.f32.mrf.mxu0 }
 0x46d   : > { %v7705_v48 = vpop.f32.mrf.mxu3  ;;  %8190 = vmatpush.bf16.msra.mxu1 %v19123_v28  ;;  %v19129_v28 = vld [vmem:[%s27032_s5 + $0x128] sm:$0x30] }
 0x46e   : > { %v25576_v57 = vpack.c.bf16 %v7954_v43, %v7954_v43  ;;  %v7706_v58 = vadd.f32 %v7705_v48, %v7688_v25 }
 0x470   : > { %v7931_v55 = vadd.f32 %v7706_v58, %v25067_v21  ;;  %8339 = vmatmul.bf16.vlgmr.msrb.gmra.mxu3 %v25576_v57  ;;  %v25584_v45 = vshrl.u32 %v25576_v57, 16  ;;  %v19101_v21 = vld [vmem:[%s27032_s5 + $0x48] sm:$0xff]  ;;  %v19151_v58 = vld [vmem:[%s27032_s5 + $0x1d8] sm:$0xff] }
 0x471   : > { %8942 = vmatpush.bf16.msrb.mxu3 %v19175_v44  ;;  %8350 = vmatpush.bf16.msrb.mxu0 %v19101_v21 }
 0x472   : > { %v25592_v39 = vadd.f32 %v7939_v51, %v7931_v55  ;;  %8182 = vmatmul.bf16.vlgmr.msra.gmra.mxu0 %v25584_v45  ;;  %8191 = vmatpush.bf16.msra.mxu1 %v19122_v2  ;;  %v16159_v55 = vld [vmem:[%s27032_s5 + $0x128] sm:$0xf] }
 0x473   : > { %v7739_v12 = vpop.f32.mrf.mxu1  ;;  %v7757_v20 = vpop.f32.mrf.mxu2  ;;  %v16160_v21 = vor.u32 %v19129_v28, %v16159_v55  ;;  %v19135_v28 = vld [vmem:[%s27032_s5 + $0x158] sm:$0xff] }
 0x474   : > { %v7726_v19 = vpop.f32.mrf.mxu0  ;;  %v7740_v32 = vadd.f32 %v7739_v12, %v25549_v14  ;;  %v19150_v14 = vld [vmem:[%s27032_s5 + $0x1d0] sm:$0xff] }
 0x475   : > { %v7708_v23 = vpop.f32.mrf.mxu3  ;;  %8943 = vmatpush.bf16.msrb.mxu3 %v19174_v22  ;;  %8351 = vmatpush.bf16.msrb.mxu0 %v19100_v37  ;;  %v8172_v37 = vsel %vm494_vm0, %v16160_v21, 0  ;;  %v19200_v21 = vld [vmem:[%s27032_s5 + $0x360] sm:$0xff] }
 0x476   : > { %v7709_v4 = vadd.f32 %v7708_v23, %v7691_v9  ;;  %8192 = vmatpush.bf16.msra.mxu1 %v19121_v1  ;;  %v7758_v40 = vadd.f32 %v7757_v20, %v7740_v32  ;;  %v7940_v23 = vperm.slane %v25547_v42, 1  ;;  %8205 = vmatpush.bf16.msra.mxu2 %v8172_v37 }
 0x478   : > { %v7934_v53 = vadd.f32 %v7709_v4, %v25122_v60  ;;  %v19155_v60 = vld [vmem:[%s27032_s5 + $0x1f8] sm:$0xff]  ;;  %v19149_v4 = vld [vmem:[%s27032_s5 + $0x1c8] sm:$0xff] }
 0x479   : > { %8944 = vmatpush.bf16.msrb.mxu3 %v19173_v5  ;;  %8739 = vmatpush.bf16.msra.mxu0 %v19156_v10 }
 0x47a   : > { %v25614_v30 = vadd.f32 %v7939_v51, %v7934_v53  ;;  %8193 = vmatpush.bf16.msra.mxu1 %v19120_v59 }
 0x47b   : > { %v7741_v13 = vpop.f32.mrf.mxu1  ;;  %v7759_v50 = vpop.f32.mrf.mxu2 }
 0x47c   : > { %v7728_v6 = vpop.f32.mrf.mxu0  ;;  %v7742_v56 = vadd.f32 %v7741_v13, %v25571_v16 }
 0x47d   : > { %v7710_v0 = vpop.f32.mrf.mxu3  ;;  %8945 = vmatpush.bf16.msrb.mxu3 %v19172_v18  ;;  %8740 = vmatpush.bf16.msra.mxu0 %v19155_v60  ;;  %v19127_v6 = vld [vmem:[%s27032_s5 + $0x118] sm:$0xff] }
 0x47e   : > { %8194 = vmatpush.bf16.msra.mxu1 %v19119_v7  ;;  %v7760_v20 = vadd.f32 %v7759_v50, %v7742_v56  ;;  %v19128_v50 = vld [vmem:[%s27032_s5 + $0x120] sm:$0xff]  ;;  %v19110_v7 = vld [vmem:[%s27032_s5 + $0x90] sm:$0x30] }
 0x47f   : > { %8206 = vmatpush.bf16.msra.mxu2 %v19128_v50  ;;  %v19134_v50 = vld [vmem:[%s27032_s5 + $0x150] sm:$0xff] }
 0x481   : > { %8946 = vmatpush.bf16.msrb.mxu3 %v19171_v47  ;;  %8741 = vmatpush.bf16.msra.mxu0 %v19154_v8 }
 0x483   : > { %v7744_v3 = vpop.f32.mrf.mxu1  ;;  %v7762_v51 = vpop.f32.mrf.mxu2  ;;  %8207 = vmatpush.bf16.msra.mxu2 %v19127_v6 }
 0x484   : > { %v7745_v49 = vadd.f32 %v7744_v3, %v7726_v19  ;;  %v7793_v9 = vpop.f32.mrf.mxu0 }
 0x485   : > { %v7775_v62 = vpop.f32.mrf.mxu3  ;;  %8947 = vmatpush.bf16.msrb.mxu3 %v19170_v26  ;;  %8742 = vmatpush.bf16.msra.mxu0 %v19153_v35 }
 0x486   : > { %v7763_v54 = vadd.f32 %v7762_v51, %v7745_v49  ;;  %v7776_v44 = vadd.f32 %v7775_v62, %v7758_v40  ;;  %v19137_v51 = vld [vmem:[%s27032_s5 + $0x168] sm:$0xff]  ;;  %v19202_v49 = vld [vmem:[%s27032_s5 + $0x370] sm:$0xff] }
 0x487   : > { %8536 = vmatpush.bf16.msrb.mxu2 %v19137_v51 }
 0x488   : > { %v7794_v22 = vadd.f32 %v7793_v9, %v7776_v44 }
 0x489   : > { %8948 = vmatpush.bf16.msrb.mxu3 %v19169_v61  ;;  %8743 = vmatpush.bf16.msra.mxu0 %v19152_v34  ;;  %v16236_v61 = vld [vmem:[%s27032_s5 + $0x90] sm:$0xf] }
 0x48a   : > { %v16237_v32 = vor.u32 %v19110_v7, %v16236_v61 }
 0x48b   : > { %v7746_v25 = vpop.f32.mrf.mxu1  ;;  %v7764_v43 = vpop.f32.mrf.mxu2 }
 0x48c   : > { %v7795_v48 = vpop.f32.mrf.mxu0  ;;  %v19201_v25 = vld [vmem:[%s27032_s5 + $0x368] sm:$0xff]  ;;  %v8329_v40 = vsel %vm494_vm0, %v16237_v32, 0  ;;  %v19204_v32 = vld [vmem:[%s27032_s5 + $0x380] sm:$0xff] }
 0x48d   : > { %v7777_v33 = vpop.f32.mrf.mxu3  ;;  %8949 = vmatpush.bf16.msrb.mxu3 %v19168_v52  ;;  %8744 = vmatpush.bf16.msra.mxu0 %v19151_v58  ;;  %v19186_v52 = vld [vmem:[%s27032_s5 + $0x2f0] sm:$0x30]  ;;  %v19109_v58 = vld [vmem:[%s27032_s5 + $0x88] sm:$0xff] }
 0x48e   : > { %v7778_v10 = vadd.f32 %v7777_v33, %v7760_v20  ;;  %8362 = vmatpush.bf16.msrb.mxu1 %v8329_v40  ;;  %v19203_v40 = vld [vmem:[%s27032_s5 + $0x378] sm:$0xff] }
 0x490   : > { %v7796_v60 = vadd.f32 %v7795_v48, %v7778_v10  ;;  %v16351_v10 = vld [vmem:[%s27032_s5 + $0x1c0] sm:$0xf] }
 0x491   : > { %8745 = vmatpush.bf16.msra.mxu0 %v19150_v14 }
 0x492   : > { %8363 = vmatpush.bf16.msrb.mxu1 %v19109_v58  ;;  %v19232_v58 = vld [vmem:[%s27032_s5 + $0x460] sm:$0xff] }
 0x493   : > { %v7811_v2 = vpop.f32.mrf.mxu1  ;;  %v25663_v12 = vpop.f32.mrf.mxu2 }
 0x494   : > { %v7812_v16 = vadd.f32 %v7811_v2, %v7794_v22  ;;  %v7798_v5 = vpop.f32.mrf.mxu0  ;;  %v19185_v22 = vld [vmem:[%s27032_s5 + $0x2e8] sm:$0xff] }
 0x495   : > { %v7780_v19 = vpop.f32.mrf.mxu3  ;;  %8746 = vmatpush.bf16.msra.mxu0 %v19149_v4 }
 0x496   : > { %v7781_v53 = vadd.f32 %v7780_v19, %v7763_v54  ;;  %v7929_v18 = vadd.f32 %v7812_v16, %v25337_v36  ;;  %v16581_v54 = vld [vmem:[%s27032_s5 + $0x2f0] sm:$0xf]  ;;  %v19199_v16 = vld [vmem:[%s27032_s5 + $0x358] sm:$0xff] }
 0x497   : > { %v16582_v43 = vor.u32 %v19186_v52, %v16581_v54  ;;  %v19196_v54 = vld [vmem:[%s27032_s5 + $0x340] sm:$0xff]  ;;  %v19146_v52 = vld [vmem:[%s27032_s5 + $0x1b0] sm:$0xff] }
 0x498   : > { %v7799_v13 = vadd.f32 %v7798_v5, %v7781_v53  ;;  %v7946_v0 = vadd.f32 %v7940_v23, %v7929_v18  ;;  %v8615_v53 = vrot.slane %v25584_v45, 1  ;;  %v8818_v18 = vrot.slane %v25576_v57, 2 }
 0x499   : > { %v8940_v44 = vsel %vm494_vm0, %v16582_v43, 0 }
 0x49a   : > { %v7955_v47 = vmax.f32 %v7946_v0, 0.0  ;;  %v19184_v0 = vld [vmem:[%s27032_s5 + $0x2e0] sm:$0xff] }
 0x49b   : > { %v7813_v1 = vpop.f32.mrf.mxu1  ;;  %v25677_v59 = vpop.f32.mrf.mxu2 }
 0x49c   : > { %v25679_v8 = vpack.c.bf16 %v7955_v47, %v7955_v47  ;;  %v7814_v36 = vadd.f32 %v7813_v1, %v7796_v60  ;;  %v7800_v3 = vpop.f32.mrf.mxu0  ;;  %v16696_v60 = vld [vmem:[%s27032_s5 + $0x388] sm:$0xf]  ;;  %v19205_v47 = vld [vmem:[%s27032_s5 + $0x388] sm:$0x30] }
 0x49d   : > { %v7782_v26 = vpop.f32.mrf.mxu3  ;;  %v16697_v1 = vor.u32 %v19205_v47, %v16696_v60  ;;  %v16466_v47 = vld [vmem:[%s27032_s5 + $0x258] sm:$0xf] }
 0x49e   : > { %v7932_v62 = vadd.f32 %v7814_v36, %v25374_v24  ;;  %8352 = vmatmul.bf16.vlgmr.msrb.gmra.mxu0 %v25679_v8  ;;  %v25690_v9 = vshrl.u32 %v25679_v8, 16  ;;  %v8413_v35 = vrot.slane %v25679_v8, 1  ;;  %v19136_v24 = vld [vmem:[%s27032_s5 + $0x160] sm:$0xff]  ;;  %v19133_v36 = vld [vmem:[%s27032_s5 + $0x148] sm:$0xff] }
 0x49f   : > { %8537 = vmatpush.bf16.msrb.mxu2 %v19136_v24  ;;  %8973 = vmatpush.bf16.msrb.mxu0 %v8940_v44  ;;  %v19197_v26 = vld [vmem:[%s27032_s5 + $0x348] sm:$0xff]  ;;  %v9143_v51 = vsel %vm494_vm0, %v16697_v1, 0  ;;  %v19195_v44 = vld [vmem:[%s27032_s5 + $0x338] sm:$0xff] }
 0x4a0   : > { %v25705_v34 = vadd.f32 %v7940_v23, %v7932_v62  ;;  %8195 = vmatmul.bf16.vlgmr.msra.gmra.mxu1 %v25690_v9  ;;  %8557 = vmatmul.bf16.vlgmr.msra.gmra.mxu3 %v8413_v35  ;;  %v19167_v1 = vld [vmem:[%s27032_s5 + $0x258] sm:$0x30] }
 0x4a1   : > { %9158 = vmatpush.bf16.msra.mxu3 %v19202_v49  ;;  %v19147_v49 = vld [vmem:[%s27032_s5 + $0x1b8] sm:$0xff] }
 0x4a3   : > { %v7816_v33 = vpop.f32.mrf.mxu1  ;;  %v7834_v48 = vpop.f32.mrf.mxu2  ;;  %8538 = vmatpush.bf16.msrb.mxu2 %v19135_v28  ;;  %8974 = vmatpush.bf16.msrb.mxu0 %v19185_v22 }
 0x4a4   : > { %v7817_v56 = vadd.f32 %v7816_v33, %v7799_v13  ;;  %v25719_v55 = vpop.f32.mrf.mxu0  ;;  %v19148_v13 = vld [vmem:[%s27032_s5 + $0x1c0] sm:$0x30]  ;;  %v19131_v33 = vld [vmem:[%s27032_s5 + $0x138] sm:$0xff] }
 0x4a5   : > { %v7847_v14 = vpop.f32.mrf.mxu3  ;;  %9159 = vmatpush.bf16.msra.mxu3 %v19201_v25  ;;  %v16352_v6 = vor.u32 %v19148_v13, %v16351_v10  ;;  %v19132_v25 = vld [vmem:[%s27032_s5 + $0x140] sm:$0xff]  ;;  %v25818_v13 = vperm.slane %v25547_v42, 2 }
 0x4a6   : > { %v7935_v2 = vadd.f32 %v7817_v56, %v25411_v31  ;;  %v19198_v31 = vld [vmem:[%s27032_s5 + $0x350] sm:$0xff]  ;;  %v19228_v42 = vld [vmem:[%s27032_s5 + $0x440] sm:$0xff] }
 0x4a7   : > { %8539 = vmatpush.bf16.msrb.mxu2 %v19134_v50  ;;  %v8534_v3 = vsel %vm494_vm0, %v16352_v6, 0  ;;  %8975 = vmatpush.bf16.msrb.mxu0 %v19184_v0  ;;  %v19229_v0 = vld [vmem:[%s27032_s5 + $0x448] sm:$0xff] }
 0x4a8   : > { %v25731_v20 = vadd.f32 %v7940_v23, %v7935_v2  ;;  %v19108_v23 = vld [vmem:[%s27032_s5 + $0x80] sm:$0xff]  ;;  %v19231_v2 = vld [vmem:[%s27032_s5 + $0x458] sm:$0xff] }
 0x4a9   : > { %9160 = vmatpush.bf16.msra.mxu3 %v19200_v21  ;;  %8364 = vmatpush.bf16.msrb.mxu1 %v19108_v23 }
 0x4ab   : > { %v7818_v19 = vpop.f32.mrf.mxu1  ;;  %v7836_v5 = vpop.f32.mrf.mxu2  ;;  %8540 = vmatpush.bf16.msrb.mxu2 %v19133_v36 }
 0x4ac   : > { %v25738_v37 = vpop.f32.mrf.mxu0  ;;  %v19130_v19 = vld [vmem:[%s27032_s5 + $0x130] sm:$0xff] }
 0x4ad   : > { %v25736_v4 = vpop.f32.mrf.mxu3  ;;  %9161 = vmatpush.bf16.msra.mxu3 %v19199_v16  ;;  %8567 = vmatpush.bf16.msra.mxu1 %v8534_v3  ;;  %v19230_v5 = vld [vmem:[%s27032_s5 + $0x450] sm:$0xff] }
 0x4ae   : > { %8747 = vmatmul.bf16.vlgmr.msra.gmra.mxu0 %v8615_v53 }
 0x4af   : > { %9176 = vmatpush.bf16.msra.mxu0 %v9143_v51  ;;  %8541 = vmatpush.bf16.msrb.mxu2 %v19132_v25  ;;  %v19220_v25 = vld [vmem:[%s27032_s5 + $0x400] sm:$0xff] }
 0x4b0   : > { %8950 = vmatmul.bf16.vlgmr.msrb.gmra.mxu3 %v8818_v18 }
 0x4b1   : > { %9162 = vmatpush.bf16.msra.mxu3 %v19198_v31  ;;  %8568 = vmatpush.bf16.msra.mxu1 %v19147_v49  ;;  %v16467_v49 = vor.u32 %v19167_v1, %v16466_v47  ;;  %v19159_v47 = vld [vmem:[%s27032_s5 + $0x218] sm:$0xff]  ;;  %v19278_v1 = vld [vmem:[%s27032_s5 + $0x5d0] sm:$0xff] }
 0x4b3   : > { %v7883_v62 = vpop.f32.mrf.mxu1  ;;  %v7901_v35 = vpop.f32.mrf.mxu2  ;;  %9177 = vmatpush.bf16.msra.mxu0 %v19204_v32  ;;  %8542 = vmatpush.bf16.msrb.mxu2 %v19131_v33  ;;  %v8737_v32 = vsel %vm494_vm0, %v16467_v49, 0  ;;  %v19166_v33 = vld [vmem:[%s27032_s5 + $0x250] sm:$0xff] }
 0x4b4   : > { %v7870_v7 = vpop.f32.mrf.mxu0 }
 0x4b5   : > { %v7852_v61 = vpop.f32.mrf.mxu3  ;;  %9163 = vmatpush.bf16.msra.mxu3 %v19197_v26  ;;  %8569 = vmatpush.bf16.msra.mxu1 %v19146_v52 }
 0x4b6   : > { %v7853_v24 = vadd.f32 %v7852_v61, %v7834_v48  ;;  %v7848_v48 = vadd.f32 %v7847_v14, %v25663_v12  ;;  %v9022_v14 = vrot.slane %v25690_v9, 2  ;;  %v19221_v61 = vld [vmem:[%s27032_s5 + $0x408] sm:$0xff] }
 0x4b7   : > { %9178 = vmatpush.bf16.msra.mxu0 %v19203_v40  ;;  %8543 = vmatpush.bf16.msrb.mxu2 %v19130_v19 }
 0x4b8   : > { %v7871_v43 = vadd.f32 %v7870_v7, %v7853_v24  ;;  %v7866_v12 = vadd.f32 %v25719_v55, %v7848_v48  ;;  %v19227_v7 = vld [vmem:[%s27032_s5 + $0x438] sm:$0xff]  ;;  %v7850_v24 = vadd.f32 %v25736_v4, %v25677_v59  ;;  %v17041_v59 = vld [vmem:[%s27032_s5 + $0x550] sm:$0xf]  ;;  %v19262_v4 = vld [vmem:[%s27032_s5 + $0x550] sm:$0x30] }
 0x4b9   : > { %9164 = vmatpush.bf16.msra.mxu3 %v19196_v54 }
 0x4ba   : > { %v7884_v16 = vadd.f32 %v7883_v62, %v7866_v12  ;;  %v6582_v62 = vadd.f32 %v25426_v38, %v25370_v27  ;;  %v19163_v38 = vld [vmem:[%s27032_s5 + $0x238] sm:$0xff]  ;;  %v7868_v40 = vadd.f32 %v25738_v37, %v7850_v24  ;;  %v19225_v37 = vld [vmem:[%s27032_s5 + $0x428] sm:$0xff]  ;;  %v19180_v24 = vld [vmem:[%s27032_s5 + $0x2c0] sm:$0xff] }
 0x4bb   : > { %v25802_v56 = vpop.f32.mrf.mxu1  ;;  %v25804_v28 = vpop.f32.mrf.mxu2 }
 0x4bc   : > { %v7872_v21 = vpop.f32.mrf.mxu0  ;;  %v7902_v55 = vadd.f32 %v7901_v35, %v7884_v16  ;;  %v6600_v52 = vadd.f32 %v25428_v17, %v6582_v62  ;;  %v19226_v17 = vld [vmem:[%s27032_s5 + $0x430] sm:$0xff]  ;;  %v19161_v16 = vld [vmem:[%s27032_s5 + $0x228] sm:$0xff] }
 0x4bd   : > { %v7854_v22 = vpop.f32.mrf.mxu3  ;;  %9165 = vmatpush.bf16.msra.mxu3 %v19195_v44  ;;  %v19162_v44 = vld [vmem:[%s27032_s5 + $0x230] sm:$0xff]  ;;  %v19157_v62 = vld [vmem:[%s27032_s5 + $0x208] sm:$0xff] }
 0x4be   : > { %v7886_v22 = vadd.f32 %v25802_v56, %v7868_v40  ;;  %v19165_v56 = vld [vmem:[%s27032_s5 + $0x248] sm:$0xff]  ;;  %v19250_v40 = vld [vmem:[%s27032_s5 + $0x4f0] sm:$0xff] }
 0x4c0   : > { %9166 = vmatmul.bf16.vlgmr.msra.gmra.mxu3 %v9022_v14 }
 0x4c1   : > { %9551 = vmatpush.bf16.msrb.mxu3 %v19232_v58  ;;  %v17042_v58 = vor.u32 %v19262_v4, %v17041_v59  ;;  %v8616_v59 = vrot.slane %v25690_v9, 1  ;;  %v19193_v4 = vld [vmem:[%s27032_s5 + $0x328] sm:$0xff] }
 0x4c3   : > { %v7888_v53 = vpop.f32.mrf.mxu1  ;;  %v7906_v31 = vpop.f32.mrf.mxu2 }
 0x4c4   : > { %v7889_v23 = vadd.f32 %v7888_v53, %v7871_v43  ;;  %v6618_v43 = vadd.f32 %v25444_v41, %v6600_v52  ;;  %v19219_v41 = vld [vmem:[%s27032_s5 + $0x3f8] sm:$0xff]  ;;  %v9427_v53 = vrot.slane %v25584_v45, 3 }
 0x4c5   : > { %9552 = vmatpush.bf16.msrb.mxu3 %v19231_v2  ;;  %v7919_v10 = vpop.f32.mrf.mxu3  ;;  %v9750_v2 = vsel %vm494_vm0, %v17042_v58, 0  ;;  %v19275_v52 = vld [vmem:[%s27032_s5 + $0x5b8] sm:$0xff] }
 0x4c6   : > { %v7920_v18 = vadd.f32 %v7919_v10, %v7902_v55  ;;  %v7907_v50 = vadd.f32 %v7906_v31, %v7889_v23  ;;  %v6636_v12 = vadd.f32 %v25446_v15, %v6618_v43  ;;  %v19261_v31 = vld [vmem:[%s27032_s5 + $0x548] sm:$0xff] }
 0x4c8   : > { %v7930_v6 = vadd.f32 %v7920_v18, %v25462_v46  ;;  %v19164_v46 = vld [vmem:[%s27032_s5 + $0x240] sm:$0xff]  ;;  %v6654_v19 = vadd.f32 %v25478_v11, %v6636_v12  ;;  %v19183_v18 = vld [vmem:[%s27032_s5 + $0x2d8] sm:$0xff] }
 0x4c9   : > { %9553 = vmatpush.bf16.msrb.mxu3 %v19230_v5  ;;  %v7904_v5 = vadd.f32 %v25804_v28, %v7886_v22  ;;  %v19160_v28 = vld [vmem:[%s27032_s5 + $0x220] sm:$0xff]  ;;  %v19178_v22 = vld [vmem:[%s27032_s5 + $0x2b0] sm:$0xff] }
 0x4ca   : > { %v7947_v60 = vadd.f32 %v25818_v13, %v7930_v6  ;;  %v6665_v23 = vadd.f32 %v6654_v19, %v24703_v63  ;;  %v8412_v6 = vrot.slane %v25576_v57, 1  ;;  %v7958_v19 = vmax.f32 %v25705_v34, 0.0  ;;  %v19271_v34 = vld [vmem:[%s27032_s5 + $0x598] sm:$0xff] }
 0x4cb   : > { %v7890_v26 = vpop.f32.mrf.mxu1  ;;  %v7908_v3 = vpop.f32.mrf.mxu2 }
 0x4cc   : > { %v7956_v36 = vmax.f32 %v7947_v60, 0.0  ;;  %v19260_v60 = vld [vmem:[%s27032_s5 + $0x540] sm:$0xff]  ;;  %v19158_v3 = vld [vmem:[%s27032_s5 + $0x210] sm:$0xff] }
 0x4cd   : > { %9554 = vmatpush.bf16.msrb.mxu3 %v19229_v0  ;;  %v7921_v51 = vpop.f32.mrf.mxu3 }
 0x4ce   : > { %v25839_v35 = vpack.c.bf16 %v7956_v36, %v7956_v36  ;;  %v7922_v55 = vadd.f32 %v7921_v51, %v7904_v5  ;;  %v19216_v36 = vld [vmem:[%s27032_s5 + $0x3e0] sm:$0xff]  ;;  %v19277_v51 = vld [vmem:[%s27032_s5 + $0x5c8] sm:$0xff] }
 0x4d0   : > { %16238 = vmatmul.msk.bf16.vlgmr.msrb.gmra.mxu1 %vm8167_vm6, %v25839_v35  ;;  %v25852_v54 = vshrl.u32 %v25839_v35, 16  ;;  %v8820_v27 = vrot.slane %v25839_v35, 2  ;;  %v8414_v10 = vrot.slane %v25839_v35, 1  ;;  %v7933_v0 = vadd.f32 %v7922_v55, %v6665_v23  ;;  %v19213_v55 = vld [vmem:[%s27032_s5 + $0x3c8] sm:$0xff]  ;;  %v19212_v23 = vld [vmem:[%s27032_s5 + $0x3c0] sm:$0xff] }
 0x4d1   : > { %9555 = vmatpush.bf16.msrb.mxu3 %v19228_v42  ;;  %8752 = vmatpush.bf16.msrb.mxu1 %v19164_v46  ;;  %v19182_v42 = vld [vmem:[%s27032_s5 + $0x2d0] sm:$0xff]  ;;  %v19181_v46 = vld [vmem:[%s27032_s5 + $0x2c8] sm:$0xff] }
 0x4d2   : > { %16161 = vmatmul.msk.bf16.vlgmr.msra.gmra.mxu2 %vm8167_vm6, %v25852_v54  ;;  %16583 = vmatmul.msk.bf16.vlgmr.msrb.gmra.mxu0 %vm8167_vm6, %v8820_v27  ;;  %v9023_v63 = vrot.slane %v25852_v54, 2  ;;  %v7950_v26 = vadd.f32 %v25818_v13, %v7933_v0  ;;  %v19214_v27 = vld [vmem:[%s27032_s5 + $0x3d0] sm:$0xff]  ;;  %v8617_v43 = vrot.slane %v25852_v54, 1  ;;  %v19224_v0 = vld [vmem:[%s27032_s5 + $0x420] sm:$0x30] }
 0x4d3   : > { %9361 = vmatpush.bf16.msrb.mxu0 %v19221_v61  ;;  %8770 = vmatpush.bf16.msra.mxu2 %v8737_v32  ;;  %v19276_v61 = vld [vmem:[%s27032_s5 + $0x5c0] sm:$0xff]  ;;  %v19251_v32 = vld [vmem:[%s27032_s5 + $0x4f8] sm:$0xff] }
 0x4d4   : > { %v7959_v49 = vmax.f32 %v7950_v26, 0.0  ;;  %v19187_v26 = vld [vmem:[%s27032_s5 + $0x2f8] sm:$0xff] }
 0x4d5   : > { %9556 = vmatpush.bf16.msrb.mxu3 %v19227_v7  ;;  %8753 = vmatpush.bf16.msrb.mxu1 %v19163_v38  ;;  %v7924_v48 = vpop.f32.mrf.mxu3  ;;  %v19194_v7 = vld [vmem:[%s27032_s5 + $0x330] sm:$0xff] }
 0x4d6   : > { %v7925_v21 = vadd.f32 %v7924_v48, %v7907_v50  ;;  %v19217_v50 = vld [vmem:[%s27032_s5 + $0x3e8] sm:$0xff]  ;;  %v25969_v38 = vpack.c.bf16 %v7959_v49, %v7959_v49  ;;  %v19274_v48 = vld [vmem:[%s27032_s5 + $0x5b0] sm:$0xff]  ;;  %v19244_v49 = vld [vmem:[%s27032_s5 + $0x4c0] sm:$0xff] }
 0x4d7   : > { %9362 = vmatpush.bf16.msrb.mxu0 %v19220_v25  ;;  %8771 = vmatpush.bf16.msra.mxu2 %v19166_v33  ;;  %v9225_v33 = vrot.slane %v25679_v8, 3 }
 0x4d8   : > { %v7936_v14 = vadd.f32 %v7925_v21, %v25496_v29  ;;  %v19218_v29 = vld [vmem:[%s27032_s5 + $0x3f0] sm:$0xff]  ;;  %v19249_v21 = vld [vmem:[%s27032_s5 + $0x4e8] sm:$0xff] }
 0x4d9   : > { %9557 = vmatpush.bf16.msrb.mxu3 %v19226_v17  ;;  %8754 = vmatpush.bf16.msrb.mxu1 %v19162_v44  ;;  %v19179_v17 = vld [vmem:[%s27032_s5 + $0x2b8] sm:$0xff]  ;;  %v19192_v44 = vld [vmem:[%s27032_s5 + $0x320] sm:$0xff] }
 0x4da   : > { %v25902_v15 = vadd.f32 %v25818_v13, %v7936_v14  ;;  %v19215_v13 = vld [vmem:[%s27032_s5 + $0x3d8] sm:$0xff]  ;;  %v19177_v14 = vld [vmem:[%s27032_s5 + $0x2a8] sm:$0xff] }
 0x4db   : > { %9363 = vmatpush.bf16.msrb.mxu0 %v19219_v41  ;;  %8772 = vmatpush.bf16.msra.mxu2 %v19165_v56  ;;  %v19273_v41 = vld [vmem:[%s27032_s5 + $0x5a8] sm:$0xff]  ;;  %v19248_v56 = vld [vmem:[%s27032_s5 + $0x4e0] sm:$0xff] }
 0x4dd   : > { %9558 = vmatpush.bf16.msrb.mxu3 %v19225_v37  ;;  %8755 = vmatpush.bf16.msrb.mxu1 %v19161_v16  ;;  %v7926_v11 = vpop.f32.mrf.mxu3  ;;  %v19191_v37 = vld [vmem:[%s27032_s5 + $0x318] sm:$0xff]  ;;  %v19190_v16 = vld [vmem:[%s27032_s5 + $0x310] sm:$0xff] }
 0x4de   : > { %v19308_v11 = vld [vmem:[%s27032_s5 + $0x6c0] sm:$0xff] }
 0x4df   : > { %9364 = vmatpush.bf16.msrb.mxu0 %v19218_v29  ;;  %v19176_v29 = vld [vmem:[%s27032_s5 + $0x2a0] sm:$0xff] }
 0x4e0   : > { %9559 = vmatmul.bf16.vlgmr.msrb.gmra.mxu3 %v9427_v53  ;;  %16353 = vmatmul.msk.bf16.vlgmr.msra.gmra.mxu1 %vm8167_vm6, %v8414_v10  ;;  %v19247_v53 = vld [vmem:[%s27032_s5 + $0x4d8] sm:$0xff]  ;;  %v19246_v10 = vld [vmem:[%s27032_s5 + $0x4d0] sm:$0xff] }
 0x4e1   : > { %9783 = vmatpush.bf16.msra.mxu3 %v9750_v2  ;;  %8756 = vmatpush.bf16.msrb.mxu1 %v19160_v28  ;;  %v19272_v2 = vld [vmem:[%s27032_s5 + $0x5a0] sm:$0xff]  ;;  %v26045_v28 = vpack.c.bf16 %v7958_v19, %v7958_v19 }
 0x4e2   : > { %8544 = vmatmul.bf16.vlgmr.msrb.gmra.mxu2 %v8412_v6  ;;  %16698 = vmatmul.msk.bf16.vlgmr.msra.gmra.mxu0 %vm8167_vm6, %v9023_v63  ;;  %v19188_v6 = vld [vmem:[%s27032_s5 + $0x300] sm:$0xff]  ;;  %v19307_v63 = vld [vmem:[%s27032_s5 + $0x6b8] sm:$0xff] }
 0x4e3   : > { %8955 = vmatpush.bf16.msrb.mxu2 %v19183_v18  ;;  %9365 = vmatpush.bf16.msrb.mxu0 %v19217_v50  ;;  %v8819_v18 = vrot.slane %v25679_v8, 2  ;;  %v16811_v50 = vld [vmem:[%s27032_s5 + $0x420] sm:$0xf]  ;;  %v26067_v8 = vshrl.u32 %v26045_v28, 16 }
 0x4e5   : > { %9784 = vmatpush.bf16.msra.mxu3 %v19261_v31  ;;  %8757 = vmatpush.bf16.msrb.mxu1 %v19159_v47  ;;  %v19189_v31 = vld [vmem:[%s27032_s5 + $0x308] sm:$0xff] }
 0x4e6   : > { %v19281_v47 = vld [vmem:[%s27032_s5 + $0x5e8] sm:$0x30] }
 0x4e7   : > { %8956 = vmatpush.bf16.msrb.mxu2 %v19182_v42  ;;  %9366 = vmatpush.bf16.msrb.mxu0 %v19216_v36  ;;  %v19245_v42 = vld [vmem:[%s27032_s5 + $0x4c8] sm:$0xff]  ;;  %v16812_v36 = vor.u32 %v19224_v0, %v16811_v50  ;;  %v19294_v0 = vld [vmem:[%s27032_s5 + $0x650] sm:$0xff] }
 0x4e9   : > { %9785 = vmatpush.bf16.msra.mxu3 %v19260_v60  ;;  %8758 = vmatpush.bf16.msrb.mxu1 %v19158_v3  ;;  %v17156_v60 = vld [vmem:[%s27032_s5 + $0x5e8] sm:$0xf]  ;;  %v19306_v3 = vld [vmem:[%s27032_s5 + $0x6b0] sm:$0xff] }
 0x4eb   : > { %8957 = vmatpush.bf16.msrb.mxu2 %v19181_v46  ;;  %9367 = vmatpush.bf16.msrb.mxu0 %v19215_v13  ;;  %v9346_v46 = vsel %vm494_vm0, %v16812_v36, 0  ;;  %v19210_v13 = vld [vmem:[%s27032_s5 + $0x3b0] sm:$0xff] }
 0x4ed   : > { %9973 = vmatpush.bf16.msrb.mxu3 %v19278_v1  ;;  %8759 = vmatpush.bf16.msrb.mxu1 %v19157_v62  ;;  %v19211_v1 = vld [vmem:[%s27032_s5 + $0x3b8] sm:$0xff]  ;;  %v7957_v62 = vmax.f32 %v25592_v39, 0.0  ;;  %v19209_v39 = vld [vmem:[%s27032_s5 + $0x3a8] sm:$0xff] }
 0x4ef   : > { %8958 = vmatpush.bf16.msrb.mxu2 %v19180_v24  ;;  %9368 = vmatpush.bf16.msrb.mxu0 %v19214_v27  ;;  %v25983_v25 = vpop.f32.mrf.mxu0  ;;  %v9021_v24 = vrot.slane %v25584_v45, 2  ;;  %v19223_v27 = vld [vmem:[%s27032_s5 + $0x418] sm:$0xff]  ;;  %v19304_v45 = vld [vmem:[%s27032_s5 + $0x6a0] sm:$0xff] }
 0x4f0   : > { %17043 = vmatmul.msk.bf16.vlgmr.msra.gmra.mxu3 %vm8167_vm6, %v25969_v38  ;;  %8760 = vmatmul.bf16.vlgmr.msrb.gmra.mxu1 %v8616_v59  ;;  %v19222_v59 = vld [vmem:[%s27032_s5 + $0x410] sm:$0xff] }
 0x4f1   : > { %9974 = vmatpush.bf16.msrb.mxu3 %v19277_v51  ;;  %9145 = vmatpush.bf16.msra.mxu1 %v19194_v7  ;;  %v17157_v51 = vor.u32 %v19281_v47, %v17156_v60  ;;  %v19305_v7 = vld [vmem:[%s27032_s5 + $0x6a8] sm:$0xff]  ;;  %v19236_v60 = vld [vmem:[%s27032_s5 + $0x480] sm:$0xff]  ;;  %v19259_v47 = vld [vmem:[%s27032_s5 + $0x538] sm:$0xff] }
 0x4f2   : > { %16468 = vmatmul.msk.bf16.vlgmr.msra.gmra.mxu2 %vm8167_vm6, %v8617_v43  ;;  %9369 = vmatmul.bf16.vlgmr.msrb.gmra.mxu0 %v9225_v33  ;;  %v19279_v43 = vld [vmem:[%s27032_s5 + $0x5d8] sm:$0xff] }
 0x4f3   : > { %9752 = vmatpush.bf16.msra.mxu0 %v19251_v32  ;;  %8959 = vmatpush.bf16.msrb.mxu2 %v19179_v17  ;;  %v26000_v58 = vpop.f32.mrf.mxu3  ;;  %v26107_v32 = vpack.c.bf16 %v7957_v62, %v7957_v62  ;;  %v19240_v17 = vld [vmem:[%s27032_s5 + $0x4a0] sm:$0xff]  ;;  %v19303_v33 = vld [vmem:[%s27032_s5 + $0x698] sm:$0xff]  ;;  %v19234_v62 = vld [vmem:[%s27032_s5 + $0x470] sm:$0xff] }
 0x4f5   : > { %9975 = vmatpush.bf16.msrb.mxu3 %v19276_v61  ;;  %9146 = vmatpush.bf16.msra.mxu1 %v19193_v4  ;;  %v9958_v61 = vsel %vm494_vm0, %v17157_v51, 0  ;;  %v19208_v4 = vld [vmem:[%s27032_s5 + $0x3a0] sm:$0xff]  ;;  %v19354_v51 = vld [vmem:[%s27032_s5 + $0x830] sm:$0xff] }
 0x4f7   : > { %9753 = vmatpush.bf16.msra.mxu0 %v19250_v40  ;;  %8960 = vmatpush.bf16.msrb.mxu2 %v19178_v22  ;;  %v8185_v12 = vpop.f32.mrf.mxu0  ;;  %v19297_v40 = vld [vmem:[%s27032_s5 + $0x668] sm:$0xff]  ;;  %v19207_v22 = vld [vmem:[%s27032_s5 + $0x398] sm:$0xff] }
 0x4f9   : > { %9976 = vmatpush.bf16.msrb.mxu3 %v19275_v52  ;;  %9147 = vmatpush.bf16.msra.mxu1 %v19192_v44  ;;  %v19280_v52 = vld [vmem:[%s27032_s5 + $0x5e0] sm:$0xff]  ;;  %v19243_v44 = vld [vmem:[%s27032_s5 + $0x4b8] sm:$0x30] }
 0x4fb   : > { %9754 = vmatpush.bf16.msra.mxu0 %v19249_v21  ;;  %8961 = vmatpush.bf16.msrb.mxu2 %v19177_v14  ;;  %v8342_v5 = vpop.f32.mrf.mxu3  ;;  %v19239_v21 = vld [vmem:[%s27032_s5 + $0x498] sm:$0xff]  ;;  %v17501_v14 = vld [vmem:[%s27032_s5 + $0x7b0] sm:$0xf] }
 0x4fd   : > { %9977 = vmatpush.bf16.msrb.mxu3 %v19274_v48  ;;  %9148 = vmatpush.bf16.msra.mxu1 %v19191_v37  ;;  %v16926_v48 = vld [vmem:[%s27032_s5 + $0x4b8] sm:$0xf]  ;;  %v19302_v37 = vld [vmem:[%s27032_s5 + $0x690] sm:$0xff] }
 0x4fe   : > { %v16927_v12 = vor.u32 %v19243_v44, %v16926_v48  ;;  %v19351_v48 = vld [vmem:[%s27032_s5 + $0x818] sm:$0xff]  ;;  %v19269_v44 = vld [vmem:[%s27032_s5 + $0x588] sm:$0xff] }
 0x4ff   : > { %9755 = vmatpush.bf16.msra.mxu0 %v19248_v56  ;;  %8962 = vmatpush.bf16.msrb.mxu2 %v19176_v29  ;;  %v19338_v56 = vld [vmem:[%s27032_s5 + $0x7b0] sm:$0x30]  ;;  %v19295_v29 = vld [vmem:[%s27032_s5 + $0x658] sm:$0xff] }
 0x500   : > { %v17502_v19 = vor.u32 %v19338_v56, %v17501_v14  ;;  %v9549_v5 = vsel %vm494_vm0, %v16927_v12, 0  ;;  %v19350_v12 = vld [vmem:[%s27032_s5 + $0x810] sm:$0xff]  ;;  %v19268_v14 = vld [vmem:[%s27032_s5 + $0x580] sm:$0xff] }
 0x501   : > { %9978 = vmatpush.bf16.msrb.mxu3 %v19273_v41  ;;  %9149 = vmatpush.bf16.msra.mxu1 %v19190_v16  ;;  %v19296_v41 = vld [vmem:[%s27032_s5 + $0x660] sm:$0xff]  ;;  %v19238_v16 = vld [vmem:[%s27032_s5 + $0x490] sm:$0xff] }
 0x502   : > { %8963 = vmatmul.bf16.vlgmr.msrb.gmra.mxu2 %v8819_v18  ;;  %v10570_v18 = vsel %vm494_vm0, %v17502_v19, 0  ;;  %v19254_v56 = vld [vmem:[%s27032_s5 + $0x510] sm:$0xff]  ;;  %v19267_v19 = vld [vmem:[%s27032_s5 + $0x578] sm:$0xff] }
 0x503   : > { %9348 = vmatpush.bf16.msra.mxu2 %v19213_v55  ;;  %9756 = vmatpush.bf16.msra.mxu0 %v19247_v53  ;;  %v19301_v55 = vld [vmem:[%s27032_s5 + $0x688] sm:$0xff]  ;;  %v26172_v53 = vshrl.u32 %v26107_v32, 16 }
 0x505   : > { %9979 = vmatpush.bf16.msrb.mxu3 %v19272_v2  ;;  %9150 = vmatpush.bf16.msra.mxu1 %v19189_v31  ;;  %v19206_v2 = vld [vmem:[%s27032_s5 + $0x390] sm:$0xff] }
 0x507   : > { %9349 = vmatpush.bf16.msra.mxu2 %v19212_v23  ;;  %9757 = vmatpush.bf16.msra.mxu0 %v19246_v10  ;;  %v9224_v23 = vrot.slane %v25576_v57, 3  ;;  %v26183_v10 = vshrl.u32 %v25969_v38, 16  ;;  %v10245_v57 = vrot.slane %v26172_v53, 1 }
 0x509   : > { %9980 = vmatpush.bf16.msrb.mxu3 %v19271_v34  ;;  %9151 = vmatpush.bf16.msra.mxu1 %v19188_v6  ;;  %v9226_v34 = vrot.slane %v25839_v35, 3  ;;  %v19242_v35 = vld [vmem:[%s27032_s5 + $0x4b0] sm:$0xff] }
 0x50b   : > { %9350 = vmatpush.bf16.msra.mxu2 %v19211_v1  ;;  %9758 = vmatpush.bf16.msra.mxu0 %v19245_v42  ;;  %v19293_v1 = vld [vmem:[%s27032_s5 + $0x648] sm:$0xff] }
 0x50c   : > { %9981 = vmatmul.bf16.vlgmr.msrb.gmra.mxu3 %v26067_v8 }
 0x50d   : > { %10369 = vmatpush.bf16.msra.mxu3 %v19308_v11  ;;  %9152 = vmatpush.bf16.msra.mxu1 %v19187_v26  ;;  %v19237_v11 = vld [vmem:[%s27032_s5 + $0x488] sm:$0xff]  ;;  %v19336_v26 = vld [vmem:[%s27032_s5 + $0x7a0] sm:$0xff] }
 0x50f   : > { %9351 = vmatpush.bf16.msra.mxu2 %v19210_v13  ;;  %9759 = vmatpush.bf16.msra.mxu0 %v19244_v49  ;;  %v19258_v13 = vld [vmem:[%s27032_s5 + $0x530] sm:$0xff]  ;;  %v19292_v49 = vld [vmem:[%s27032_s5 + $0x640] sm:$0xff] }
 0x510   : > { %9153 = vmatmul.bf16.vlgmr.msra.gmra.mxu1 %v9021_v24  ;;  %v19291_v24 = vld [vmem:[%s27032_s5 + $0x638] sm:$0xff] }
 0x511   : > { %10370 = vmatpush.bf16.msra.mxu3 %v19307_v63  ;;  %9379 = vmatpush.bf16.msrb.mxu1 %v9346_v46  ;;  %v19337_v63 = vld [vmem:[%s27032_s5 + $0x7a8] sm:$0xff] }
 0x512   : > { %9760 = vmatmul.bf16.vlgmr.msra.gmra.mxu0 %v26107_v32 }
 0x513   : > { %9991 = vmatpush.bf16.msrb.mxu0 %v9958_v61  ;;  %9352 = vmatpush.bf16.msra.mxu2 %v19209_v39  ;;  %v19353_v61 = vld [vmem:[%s27032_s5 + $0x828] sm:$0xff] }
 0x515   : > { %10371 = vmatpush.bf16.msra.mxu3 %v19306_v3  ;;  %9380 = vmatpush.bf16.msrb.mxu1 %v19223_v27  ;;  %v19235_v3 = vld [vmem:[%s27032_s5 + $0x478] sm:$0xff] }
 0x517   : > { %9992 = vmatpush.bf16.msrb.mxu0 %v19280_v52  ;;  %9353 = vmatpush.bf16.msra.mxu2 %v19208_v4  ;;  %v19233_v52 = vld [vmem:[%s27032_s5 + $0x468] sm:$0xff]  ;;  %v19270_v4 = vld [vmem:[%s27032_s5 + $0x590] sm:$0xff] }
 0x519   : > { %10372 = vmatpush.bf16.msra.mxu3 %v19305_v7  ;;  %9381 = vmatpush.bf16.msrb.mxu1 %v19222_v59  ;;  %v19257_v7 = vld [vmem:[%s27032_s5 + $0x528] sm:$0xff]  ;;  %v19352_v59 = vld [vmem:[%s27032_s5 + $0x820] sm:$0xff] }
 0x51b   : > { %9993 = vmatpush.bf16.msrb.mxu0 %v19279_v43  ;;  %9354 = vmatpush.bf16.msra.mxu2 %v19207_v22  ;;  %v26175_v31 = vpop.f32.mrf.mxu0  ;;  %v10450_v43 = vrot.slane %v25969_v38, 2  ;;  %v19255_v22 = vld [vmem:[%s27032_s5 + $0x518] sm:$0xff] }
 0x51d   : > { %10373 = vmatpush.bf16.msra.mxu3 %v19304_v45  ;;  %9564 = vmatpush.bf16.msra.mxu1 %v19240_v17  ;;  %v8196_v50 = vpop.f32.mrf.mxu1  ;;  %v9429_v45 = vrot.slane %v25852_v54, 3  ;;  %v19256_v17 = vld [vmem:[%s27032_s5 + $0x520] sm:$0xff]  ;;  %v19290_v54 = vld [vmem:[%s27032_s5 + $0x630] sm:$0xff] }
 0x51e   : > { %v26193_v6 = vadd.f32 %v8196_v50, %v25983_v25  ;;  %v19241_v25 = vld [vmem:[%s27032_s5 + $0x4a8] sm:$0xff]  ;;  %v19347_v50 = vld [vmem:[%s27032_s5 + $0x7f8] sm:$0xff] }
 0x51f   : > { %10179 = vmatpush.bf16.msra.mxu0 %v19297_v40  ;;  %9355 = vmatpush.bf16.msra.mxu2 %v19206_v2  ;;  %v19327_v40 = vld [vmem:[%s27032_s5 + $0x758] sm:$0xff]  ;;  %v19325_v2 = vld [vmem:[%s27032_s5 + $0x748] sm:$0xff] }
 0x520   : > { %16813 = vmatmul.msk.bf16.vlgmr.msrb.gmra.mxu1 %vm8167_vm6, %v9226_v34  ;;  %v19348_v34 = vld [vmem:[%s27032_s5 + $0x800] sm:$0xff] }
 0x521   : > { %10374 = vmatpush.bf16.msra.mxu3 %v19303_v33  ;;  %9565 = vmatpush.bf16.msra.mxu1 %v19239_v21  ;;  %v9428_v33 = vrot.slane %v25690_v9, 3 }
 0x522   : > { %9356 = vmatmul.bf16.vlgmr.msra.gmra.mxu2 %v9224_v23  ;;  %17158 = vmatmul.msk.bf16.vlgmr.msrb.gmra.mxu0 %vm8167_vm6, %v26183_v10  ;;  %v19252_v23 = vld [vmem:[%s27032_s5 + $0x500] sm:$0xff] }
 0x523   : > { %10180 = vmatpush.bf16.msra.mxu0 %v19296_v41  ;;  %9582 = vmatpush.bf16.msrb.mxu2 %v9549_v5  ;;  %v8355_v42 = vpop.f32.mrf.mxu0  ;;  %v26213_v36 = vpop.f32.mrf.mxu3  ;;  %v10043_v41 = vrot.slane %v26045_v28, 1  ;;  %v19253_v5 = vld [vmem:[%s27032_s5 + $0x508] sm:$0xff] }
 0x524   : > { %v10652_v42 = vrot.slane %v26067_v8, 2 }
 0x525   : > { %10375 = vmatpush.bf16.msra.mxu3 %v19302_v37  ;;  %9566 = vmatpush.bf16.msra.mxu1 %v19238_v16  ;;  %v8198_v46 = vpop.f32.mrf.mxu1  ;;  %v19326_v37 = vld [vmem:[%s27032_s5 + $0x750] sm:$0xff]  ;;  %v19349_v16 = vld [vmem:[%s27032_s5 + $0x808] sm:$0xff] }
 0x526   : > { %v17616_v46 = vld [vmem:[%s27032_s5 + $0x848] sm:$0xf] }
 0x527   : > { %10181 = vmatpush.bf16.msra.mxu0 %v19295_v29  ;;  %9583 = vmatpush.bf16.msrb.mxu2 %v19242_v35  ;;  %v19323_v35 = vld [vmem:[%s27032_s5 + $0x738] sm:$0xff] }
 0x529   : > { %10376 = vmatpush.bf16.msra.mxu3 %v19301_v55  ;;  %9567 = vmatpush.bf16.msra.mxu1 %v19237_v11  ;;  %v19324_v55 = vld [vmem:[%s27032_s5 + $0x740] sm:$0xff]  ;;  %v19266_v11 = vld [vmem:[%s27032_s5 + $0x570] sm:$0xff] }
 0x52b   : > { %10182 = vmatpush.bf16.msra.mxu0 %v19294_v0  ;;  %9584 = vmatpush.bf16.msrb.mxu2 %v19241_v25  ;;  %v8560_v27 = vpop.f32.mrf.mxu3  ;;  %v26242_v39 = vpop.f32.mrf.mxu0  ;;  %v19265_v0 = vld [vmem:[%s27032_s5 + $0x568] sm:$0xff]  ;;  %v19322_v25 = vld [vmem:[%s27032_s5 + $0x730] sm:$0xff] }
 0x52c   : > { %10377 = vmatmul.bf16.vlgmr.msra.gmra.mxu3 %v10245_v57  ;;  %v19384_v57 = vld [vmem:[%s27032_s5 + $0x920] sm:$0xff]  ;;  %v19286_v27 = vld [vmem:[%s27032_s5 + $0x610] sm:$0xff] }
 0x52d   : > { %10603 = vmatpush.bf16.msrb.mxu3 %v10570_v18  ;;  %9568 = vmatpush.bf16.msra.mxu1 %v19236_v60  ;;  %v19289_v18 = vld [vmem:[%s27032_s5 + $0x628] sm:$0xff] }
 0x52f   : > { %9765 = vmatpush.bf16.msra.mxu2 %v19259_v47  ;;  %10183 = vmatpush.bf16.msra.mxu0 %v19293_v1  ;;  %v17271_v47 = vld [vmem:[%s27032_s5 + $0x680] sm:$0xf]  ;;  %v19300_v1 = vld [vmem:[%s27032_s5 + $0x680] sm:$0x30] }
 0x531   : > { %10604 = vmatpush.bf16.msrb.mxu3 %v19337_v63  ;;  %9569 = vmatpush.bf16.msra.mxu1 %v19235_v3  ;;  %v19288_v63 = vld [vmem:[%s27032_s5 + $0x620] sm:$0xff]  ;;  %v19383_v3 = vld [vmem:[%s27032_s5 + $0x918] sm:$0xff] }
 0x532   : > { %16928 = vmatmul.msk.bf16.vlgmr.msrb.gmra.mxu2 %vm8167_vm6, %v9429_v45 }
 0x533   : > { %9766 = vmatpush.bf16.msra.mxu2 %v19258_v13  ;;  %10184 = vmatpush.bf16.msra.mxu0 %v19292_v49  ;;  %v8750_v21 = vpop.f32.mrf.mxu0  ;;  %v26276_v9 = vpop.f32.mrf.mxu3  ;;  %v19357_v13 = vld [vmem:[%s27032_s5 + $0x848] sm:$0x30] }
 0x534   : > { %v19321_v49 = vld [vmem:[%s27032_s5 + $0x728] sm:$0xff]  ;;  %v19298_v21 = vld [vmem:[%s27032_s5 + $0x670] sm:$0xff] }
 0x535   : > { %10605 = vmatpush.bf16.msrb.mxu3 %v19336_v26  ;;  %9570 = vmatpush.bf16.msra.mxu1 %v19234_v62  ;;  %v19264_v26 = vld [vmem:[%s27032_s5 + $0x560] sm:$0xff]  ;;  %v17272_v62 = vor.u32 %v19300_v1, %v17271_v47 }
 0x537   : > { %9767 = vmatpush.bf16.msra.mxu2 %v19257_v7  ;;  %10185 = vmatpush.bf16.msra.mxu0 %v19291_v24  ;;  %v19382_v7 = vld [vmem:[%s27032_s5 + $0x910] sm:$0xff]  ;;  %v17617_v24 = vor.u32 %v19357_v13, %v17616_v46  ;;  %v10164_v45 = vsel %vm494_vm0, %v17272_v62, 0  ;;  %v10044_v46 = vrot.slane %v25969_v38, 1  ;;  %v19313_v13 = vld [vmem:[%s27032_s5 + $0x6e8] sm:$0xff]  ;;  %v10042_v62 = vrot.slane %v26107_v32, 1 }
 0x539   : > { %10788 = vmatpush.bf16.msra.mxu3 %v19354_v51  ;;  %9571 = vmatpush.bf16.msra.mxu1 %v19233_v52  ;;  %v19287_v51 = vld [vmem:[%s27032_s5 + $0x618] sm:$0xff] }
 0x53b   : > { %9768 = vmatpush.bf16.msra.mxu2 %v19256_v17  ;;  %10186 = vmatpush.bf16.msra.mxu0 %v19290_v54  ;;  %v8953_v29 = vpop.f32.mrf.mxu3  ;;  %v10773_v17 = vsel %vm494_vm0, %v17617_v24, 0  ;;  %v19381_v54 = vld [vmem:[%s27032_s5 + $0x908] sm:$0xff]  ;;  %v19318_v24 = vld [vmem:[%s27032_s5 + $0x710] sm:$0xff] }
 0x53c   : > { %17503 = vmatmul.msk.bf16.vlgmr.msrb.gmra.mxu3 %vm8167_vm6, %v10450_v43  ;;  %9572 = vmatmul.bf16.vlgmr.msra.gmra.mxu1 %v9428_v33  ;;  %v19285_v33 = vld [vmem:[%s27032_s5 + $0x608] sm:$0xff]  ;;  %v17386_v29 = vld [vmem:[%s27032_s5 + $0x718] sm:$0xf] }
 0x53d   : > { %10789 = vmatpush.bf16.msra.mxu3 %v19353_v61  ;;  %9960 = vmatpush.bf16.msrb.mxu1 %v19270_v4  ;;  %v19263_v61 = vld [vmem:[%s27032_s5 + $0x558] sm:$0xff] }
 0x53e   : > { %10187 = vmatmul.bf16.vlgmr.msra.gmra.mxu0 %v10043_v41  ;;  %v19284_v41 = vld [vmem:[%s27032_s5 + $0x600] sm:$0xff] }
 0x53f   : > { %10572 = vmatpush.bf16.msrb.mxu0 %v19327_v40  ;;  %9769 = vmatpush.bf16.msra.mxu2 %v19255_v22  ;;  %v19299_v40 = vld [vmem:[%s27032_s5 + $0x678] sm:$0xff]  ;;  %v19380_v22 = vld [vmem:[%s27032_s5 + $0x900] sm:$0xff] }
 0x541   : > { %10790 = vmatpush.bf16.msra.mxu3 %v19352_v59  ;;  %9961 = vmatpush.bf16.msrb.mxu1 %v19269_v44  ;;  %v19320_v59 = vld [vmem:[%s27032_s5 + $0x720] sm:$0xff] }
 0x542   : > { %v19356_v44 = vld [vmem:[%s27032_s5 + $0x840] sm:$0xff] }
 0x543   : > { %10573 = vmatpush.bf16.msrb.mxu0 %v19326_v37  ;;  %9770 = vmatpush.bf16.msra.mxu2 %v19254_v56  ;;  %v26333_v60 = vpop.f32.mrf.mxu3  ;;  %v19316_v37 = vld [vmem:[%s27032_s5 + $0x700] sm:$0xff]  ;;  %v19355_v56 = vld [vmem:[%s27032_s5 + $0x838] sm:$0xff] }
 0x545   : > { %10791 = vmatpush.bf16.msra.mxu3 %v19351_v48  ;;  %9962 = vmatpush.bf16.msrb.mxu1 %v19268_v14  ;;  %v10448_v48 = vrot.slane %v26107_v32, 2 }
 0x547   : > { %10574 = vmatpush.bf16.msrb.mxu0 %v19325_v2  ;;  %9771 = vmatpush.bf16.msra.mxu2 %v19253_v5 }
 0x549   : > { %10792 = vmatpush.bf16.msra.mxu3 %v19350_v12  ;;  %9963 = vmatpush.bf16.msrb.mxu1 %v19267_v19  ;;  %v19379_v19 = vld [vmem:[%s27032_s5 + $0x8f8] sm:$0xff] }
 0x54b   : > { %10575 = vmatpush.bf16.msrb.mxu0 %v19324_v55  ;;  %9772 = vmatpush.bf16.msra.mxu2 %v19252_v23  ;;  %v9169_v52 = vpop.f32.mrf.mxu3  ;;  %v19319_v55 = vld [vmem:[%s27032_s5 + $0x718] sm:$0x30]  ;;  %v19372_v23 = vld [vmem:[%s27032_s5 + $0x8c0] sm:$0xff] }
 0x54c   : > { %v11057_v52 = vrot.slane %v26172_v53, 3 }
 0x54d   : > { %10793 = vmatpush.bf16.msra.mxu3 %v19349_v16  ;;  %9964 = vmatpush.bf16.msrb.mxu1 %v19266_v11  ;;  %v8366_v4 = vpop.f32.mrf.mxu1  ;;  %v19373_v16 = vld [vmem:[%s27032_s5 + $0x8c8] sm:$0xff]  ;;  %v19315_v11 = vld [vmem:[%s27032_s5 + $0x6f8] sm:$0xff] }
 0x54e   : > { %9773 = vmatmul.bf16.vlgmr.msra.gmra.mxu2 %v26045_v28 }
 0x54f   : > { %10166 = vmatpush.bf16.msrb.mxu2 %v19289_v18  ;;  %10576 = vmatpush.bf16.msrb.mxu0 %v19323_v35  ;;  %v26381_v43 = vpop.f32.mrf.mxu0  ;;  %v17387_v35 = vor.u32 %v19319_v55, %v17386_v29  ;;  %v19333_v55 = vld [vmem:[%s27032_s5 + $0x788] sm:$0xff] }
 0x551   : > { %10794 = vmatpush.bf16.msra.mxu3 %v19348_v34  ;;  %9965 = vmatpush.bf16.msrb.mxu1 %v19265_v0  ;;  %v19283_v34 = vld [vmem:[%s27032_s5 + $0x5f8] sm:$0xff]  ;;  %v19414_v0 = vld [vmem:[%s27032_s5 + $0xa10] sm:$0x30] }
 0x553   : > { %10167 = vmatpush.bf16.msrb.mxu2 %v19288_v63  ;;  %10577 = vmatpush.bf16.msrb.mxu0 %v19322_v25 }
 0x555   : > { %10795 = vmatpush.bf16.msra.mxu3 %v19347_v50  ;;  %9966 = vmatpush.bf16.msrb.mxu1 %v19264_v26  ;;  %v8209_v12 = vpop.f32.mrf.mxu2  ;;  %v8368_v14 = vpop.f32.mrf.mxu1  ;;  %v17961_v50 = vld [vmem:[%s27032_s5 + $0xa10] sm:$0xf]  ;;  %v19371_v26 = vld [vmem:[%s27032_s5 + $0x8b8] sm:$0xff] }
 0x556   : > { %v8210_v2 = vadd.f32 %v8209_v12, %v26193_v6  ;;  %v17962_v1 = vor.u32 %v19414_v0, %v17961_v50  ;;  %v19334_v12 = vld [vmem:[%s27032_s5 + $0x790] sm:$0xff]  ;;  %v19368_v14 = vld [vmem:[%s27032_s5 + $0x8a0] sm:$0xff] }
 0x557   : > { %10168 = vmatpush.bf16.msrb.mxu2 %v19287_v51  ;;  %10578 = vmatpush.bf16.msrb.mxu0 %v19321_v49  ;;  %v8979_v5 = vpop.f32.mrf.mxu0  ;;  %v19366_v50 = vld [vmem:[%s27032_s5 + $0x890] sm:$0xff] }
 0x558   : > { %10796 = vmatmul.bf16.vlgmr.msra.gmra.mxu3 %v10652_v42  ;;  %v8341_v6 = vadd.f32 %v26000_v58, %v8210_v2  ;;  %v19378_v58 = vld [vmem:[%s27032_s5 + $0x8f0] sm:$0xff]  ;;  %v10367_v42 = vsel %vm494_vm0, %v17387_v35, 0  ;;  %v19429_v5 = vld [vmem:[%s27032_s5 + $0xa88] sm:$0xff]  ;;  %v19332_v35 = vld [vmem:[%s27032_s5 + $0x780] sm:$0xff] }
 0x559   : > { %11181 = vmatpush.bf16.msrb.mxu3 %v19384_v57  ;;  %9967 = vmatpush.bf16.msrb.mxu1 %v19263_v61  ;;  %v19314_v57 = vld [vmem:[%s27032_s5 + $0x6f0] sm:$0xff]  ;;  %v10653_v61 = vrot.slane %v26183_v10, 2 }
 0x55a   : > { %v8354_v18 = vadd.f32 %v26175_v31, %v8341_v6  ;;  %v19282_v31 = vld [vmem:[%s27032_s5 + $0x5f0] sm:$0xff]  ;;  %v19367_v6 = vld [vmem:[%s27032_s5 + $0x898] sm:$0xff] }
 0x55b   : > { %10169 = vmatpush.bf16.msrb.mxu2 %v19286_v27  ;;  %10579 = vmatpush.bf16.msrb.mxu0 %v19320_v59  ;;  %v19370_v27 = vld [vmem:[%s27032_s5 + $0x8b0] sm:$0xff]  ;;  %v19312_v59 = vld [vmem:[%s27032_s5 + $0x6e0] sm:$0xff] }
 0x55c   : > { %9968 = vmatmul.bf16.vlgmr.msrb.gmra.mxu1 %v26172_v53  ;;  %v8367_v63 = vadd.f32 %v8366_v4, %v8354_v18  ;;  %v19310_v2 = vld [vmem:[%s27032_s5 + $0x6d0] sm:$0xff] }
 0x55d   : > { %11182 = vmatpush.bf16.msrb.mxu3 %v19383_v3  ;;  %10197 = vmatpush.bf16.msra.mxu1 %v10164_v45  ;;  %v8211_v25 = vpop.f32.mrf.mxu2  ;;  %v8571_v47 = vpop.f32.mrf.mxu1  ;;  %v19377_v3 = vld [vmem:[%s27032_s5 + $0x8e8] sm:$0xff] }
 0x55e   : > { %10580 = vmatmul.bf16.vlgmr.msrb.gmra.mxu0 %v10448_v48  ;;  %v19413_v45 = vld [vmem:[%s27032_s5 + $0xa08] sm:$0xff]  ;;  %v10246_v25 = vrot.slane %v26067_v8, 1 }
 0x55f   : > { %10806 = vmatpush.bf16.msra.mxu0 %v10773_v17  ;;  %10170 = vmatpush.bf16.msrb.mxu2 %v19285_v33  ;;  %v26455_v51 = vpop.f32.mrf.mxu0  ;;  %v19335_v33 = vld [vmem:[%s27032_s5 + $0x798] sm:$0xff]  ;;  %v19369_v48 = vld [vmem:[%s27032_s5 + $0x8a8] sm:$0xff] }
 0x561   : > { %11183 = vmatpush.bf16.msrb.mxu3 %v19382_v7  ;;  %10198 = vmatpush.bf16.msra.mxu1 %v19299_v40  ;;  %v11380_v7 = vsel %vm494_vm0, %v17962_v1, 0  ;;  %v19345_v1 = vld [vmem:[%s27032_s5 + $0x7e8] sm:$0xff] }
 0x563   : > { %10807 = vmatpush.bf16.msra.mxu0 %v19356_v44  ;;  %10171 = vmatpush.bf16.msrb.mxu2 %v19284_v41  ;;  %v26462_v49 = vpop.f32.mrf.mxu3 }
 0x565   : > { %11184 = vmatpush.bf16.msrb.mxu3 %v19381_v54  ;;  %10199 = vmatpush.bf16.msra.mxu1 %v19298_v21  ;;  %v8545_v4 = vpop.f32.mrf.mxu2  ;;  %v8573_v17 = vpop.f32.mrf.mxu1  ;;  %v19317_v54 = vld [vmem:[%s27032_s5 + $0x708] sm:$0xff]  ;;  %v19412_v21 = vld [vmem:[%s27032_s5 + $0xa00] sm:$0xff] }
 0x566   : > { %v8559_v40 = vadd.f32 %v26213_v36, %v8545_v4  ;;  %v19311_v36 = vld [vmem:[%s27032_s5 + $0x6d8] sm:$0xff]  ;;  %v19329_v17 = vld [vmem:[%s27032_s5 + $0x768] sm:$0xff] }
 0x567   : > { %10808 = vmatpush.bf16.msra.mxu0 %v19355_v56  ;;  %10172 = vmatpush.bf16.msrb.mxu2 %v19283_v34  ;;  %v9182_v44 = vpop.f32.mrf.mxu0  ;;  %v7962_v34 = vmax.f32 %v25902_v15, 0.0  ;;  %v19346_v15 = vld [vmem:[%s27032_s5 + $0x7f0] sm:$0xff]  ;;  %v19343_v4 = vld [vmem:[%s27032_s5 + $0x7d8] sm:$0xff] }
 0x568   : > { %v19328_v44 = vld [vmem:[%s27032_s5 + $0x760] sm:$0xff] }
 0x569   : > { %11185 = vmatpush.bf16.msrb.mxu3 %v19380_v22  ;;  %10382 = vmatpush.bf16.msrb.mxu1 %v19316_v37  ;;  %v8572_v22 = vadd.f32 %v8571_v47, %v8559_v40  ;;  %v19430_v37 = vld [vmem:[%s27032_s5 + $0xa90] sm:$0xff]  ;;  %v26541_v0 = vpack.c.bf16 %v7962_v34, %v7962_v34  ;;  %v19427_v47 = vld [vmem:[%s27032_s5 + $0xa78] sm:$0xff]  ;;  %v19424_v40 = vld [vmem:[%s27032_s5 + $0xa60] sm:$0xff] }
 0x56b   : > { %10991 = vmatpush.bf16.msrb.mxu0 %v19373_v16  ;;  %10173 = vmatpush.bf16.msrb.mxu2 %v19282_v31  ;;  %v9562_v41 = vpop.f32.mrf.mxu3  ;;  %v8575_v56 = vadd.f32 %v8572_v22, %v8367_v63  ;;  %v19403_v31 = vld [vmem:[%s27032_s5 + $0x9b8] sm:$0xff]  ;;  %v19365_v22 = vld [vmem:[%s27032_s5 + $0x888] sm:$0xff] }
 0x56c   : > { %17273 = vmatmul.msk.bf16.vlgmr.msra.gmra.mxu1 %vm8167_vm6, %v10044_v46 }
 0x56d   : > { %11186 = vmatpush.bf16.msrb.mxu3 %v19379_v19  ;;  %10383 = vmatpush.bf16.msrb.mxu1 %v19315_v11  ;;  %v8547_v16 = vpop.f32.mrf.mxu2  ;;  %v8761_v19 = vpop.f32.mrf.mxu1 }
 0x56e   : > { %10174 = vmatmul.bf16.vlgmr.msrb.gmra.mxu2 %v10042_v62  ;;  %17618 = vmatmul.msk.bf16.vlgmr.msra.gmra.mxu0 %vm8167_vm6, %v10653_v61  ;;  %v8762_v29 = vadd.f32 %v8761_v19, %v26242_v39  ;;  %v10247_v39 = vrot.slane %v26183_v10, 1  ;;  %v19402_v62 = vld [vmem:[%s27032_s5 + $0x9b0] sm:$0xff] }
 0x56f   : > { %10992 = vmatpush.bf16.msrb.mxu0 %v19372_v23  ;;  %10400 = vmatpush.bf16.msra.mxu2 %v10367_v42  ;;  %v26520_v11 = vpop.f32.mrf.mxu0  ;;  %v19309_v23 = vld [vmem:[%s27032_s5 + $0x6c8] sm:$0xff]  ;;  %v19398_v19 = vld [vmem:[%s27032_s5 + $0x990] sm:$0xff] }
 0x571   : > { %11187 = vmatpush.bf16.msrb.mxu3 %v19378_v58  ;;  %10384 = vmatpush.bf16.msrb.mxu1 %v19314_v57  ;;  %v19428_v58 = vld [vmem:[%s27032_s5 + $0xa80] sm:$0xff] }
 0x573   : > { %10993 = vmatpush.bf16.msrb.mxu0 %v19371_v26  ;;  %10401 = vmatpush.bf16.msra.mxu2 %v19318_v24  ;;  %v26525_v18 = vpop.f32.mrf.mxu3  ;;  %v19331_v26 = vld [vmem:[%s27032_s5 + $0x778] sm:$0xff]  ;;  %v19344_v24 = vld [vmem:[%s27032_s5 + $0x7e0] sm:$0xff] }
 0x575   : > { %11188 = vmatpush.bf16.msrb.mxu3 %v19377_v3  ;;  %10385 = vmatpush.bf16.msrb.mxu1 %v19313_v13  ;;  %v8763_v57 = vpop.f32.mrf.mxu1  ;;  %v8774_v63 = vpop.f32.mrf.mxu2  ;;  %v10855_v13 = vrot.slane %v26045_v28, 3 }
 0x576   : > { %v8775_v42 = vadd.f32 %v8774_v63, %v8762_v29  ;;  %v19339_v63 = vld [vmem:[%s27032_s5 + $0x7b8] sm:$0xff] }
 0x577   : > { %10994 = vmatpush.bf16.msrb.mxu0 %v19370_v27  ;;  %10402 = vmatpush.bf16.msra.mxu2 %v19317_v54  ;;  %v9372_v46 = vpop.f32.mrf.mxu0  ;;  %v19330_v27 = vld [vmem:[%s27032_s5 + $0x770] sm:$0xff]  ;;  %v19400_v54 = vld [vmem:[%s27032_s5 + $0x9a0] sm:$0xff] }
 0x578   : > { %11189 = vmatmul.bf16.vlgmr.msrb.gmra.mxu3 %v11057_v52  ;;  %v8778_v3 = vadd.f32 %v8775_v42, %v8575_v56  ;;  %v19401_v52 = vld [vmem:[%s27032_s5 + $0x9a8] sm:$0xff]  ;;  %v10449_v56 = vrot.slane %v26045_v28, 2  ;;  %v19376_v28 = vld [vmem:[%s27032_s5 + $0x8e0] sm:$0x30]  ;;  %v19362_v42 = vld [vmem:[%s27032_s5 + $0x870] sm:$0xff]  ;;  %v7960_v46 = vmax.f32 %v25614_v30, 0.0 }
 0x579   : > { %11413 = vmatpush.bf16.msra.mxu3 %v11380_v7  ;;  %10386 = vmatpush.bf16.msrb.mxu1 %v19312_v59  ;;  %v19426_v7 = vld [vmem:[%s27032_s5 + $0xa70] sm:$0xff]  ;;  %v19425_v59 = vld [vmem:[%s27032_s5 + $0xa68] sm:$0xff] }
 0x57a   : > { %v19361_v30 = vld [vmem:[%s27032_s5 + $0x868] sm:$0xff] }
 0x57b   : > { %10585 = vmatpush.bf16.msrb.mxu2 %v19335_v33  ;;  %10995 = vmatpush.bf16.msrb.mxu0 %v19369_v48  ;;  %v9789_v61 = vpop.f32.mrf.mxu3  ;;  %v19342_v33 = vld [vmem:[%s27032_s5 + $0x7d0] sm:$0xff]  ;;  %v7961_v48 = vmax.f32 %v25731_v20, 0.0  ;;  %v19423_v20 = vld [vmem:[%s27032_s5 + $0xa58] sm:$0xff] }
 0x57c   : > { %v19457_v61 = vld [vmem:[%s27032_s5 + $0xb68] sm:$0xff] }
 0x57d   : > { %11414 = vmatpush.bf16.msra.mxu3 %v19413_v45  ;;  %10387 = vmatpush.bf16.msrb.mxu1 %v19311_v36  ;;  %v8776_v45 = vpop.f32.mrf.mxu2  ;;  %v26605_v36 = vpack.c.bf16 %v7961_v48, %v7961_v48  ;;  %v19455_v48 = vld [vmem:[%s27032_s5 + $0xb58] sm:$0xff] }
 0x57e   : > { %17388 = vmatmul.msk.bf16.vlgmr.msra.gmra.mxu2 %vm8167_vm6, %v10247_v39  ;;  %v19363_v39 = vld [vmem:[%s27032_s5 + $0x878] sm:$0xff]  ;;  %v19432_v45 = vld [vmem:[%s27032_s5 + $0xaa0] sm:$0xff] }
 0x57f   : > { %10586 = vmatpush.bf16.msrb.mxu2 %v19334_v12  ;;  %10996 = vmatpush.bf16.msrb.mxu0 %v19368_v14  ;;  %v19460_v12 = vld [vmem:[%s27032_s5 + $0xb80] sm:$0xff]  ;;  %v11465_v29 = vshrl.u32 %v26605_v36, 16 }
 0x581   : > { %11415 = vmatpush.bf16.msra.mxu3 %v19412_v21  ;;  %10388 = vmatpush.bf16.msrb.mxu1 %v19310_v2  ;;  %v19399_v21 = vld [vmem:[%s27032_s5 + $0x998] sm:$0xff]  ;;  %v19364_v2 = vld [vmem:[%s27032_s5 + $0x880] sm:$0xff] }
 0x583   : > { %10587 = vmatpush.bf16.msrb.mxu2 %v19333_v55  ;;  %10997 = vmatpush.bf16.msrb.mxu0 %v19367_v6  ;;  %v19340_v6 = vld [vmem:[%s27032_s5 + $0x7c0] sm:$0xff] }
 0x585   : > { %11603 = vmatpush.bf16.msrb.mxu3 %v19430_v37  ;;  %10389 = vmatpush.bf16.msrb.mxu1 %v19309_v23  ;;  %v8964_v41 = vpop.f32.mrf.mxu2  ;;  %v19341_v37 = vld [vmem:[%s27032_s5 + $0x7c8] sm:$0xff] }
 0x586   : > { %v8965_v14 = vadd.f32 %v8964_v41, %v26276_v9  ;;  %v17731_v9 = vld [vmem:[%s27032_s5 + $0x8e0] sm:$0xf]  ;;  %v19391_v41 = vld [vmem:[%s27032_s5 + $0x958] sm:$0xff] }
 0x587   : > { %10588 = vmatpush.bf16.msrb.mxu2 %v19332_v35  ;;  %10998 = vmatpush.bf16.msrb.mxu0 %v19366_v50  ;;  %v17732_v50 = vor.u32 %v19376_v28, %v17731_v9  ;;  %v19447_v28 = vld [vmem:[%s27032_s5 + $0xb18] sm:$0xff] }
 0x588   : > { %17963 = vmatmul.msk.bf16.vlgmr.msra.gmra.mxu3 %vm8167_vm6, %v26541_v0  ;;  %10390 = vmatmul.bf16.vlgmr.msrb.gmra.mxu1 %v10246_v25  ;;  %v19458_v25 = vld [vmem:[%s27032_s5 + $0xb70] sm:$0xff] }
 0x589   : > { %11604 = vmatpush.bf16.msrb.mxu3 %v19429_v5  ;;  %10775 = vmatpush.bf16.msra.mxu1 %v19346_v15  ;;  %v8978_v5 = vadd.f32 %v26381_v43, %v8965_v14  ;;  %v19459_v43 = vld [vmem:[%s27032_s5 + $0xb78] sm:$0xff]  ;;  %v19433_v15 = vld [vmem:[%s27032_s5 + $0xaa8] sm:$0x30] }
 0x58a   : > { %10999 = vmatmul.bf16.vlgmr.msrb.gmra.mxu0 %v10855_v13 }
 0x58b   : > { %11382 = vmatpush.bf16.msra.mxu0 %v19403_v31  ;;  %10589 = vmatpush.bf16.msrb.mxu2 %v19331_v26  ;;  %v8981_v34 = vadd.f32 %v8978_v5, %v8778_v3  ;;  %v10976_v26 = vsel %vm494_vm0, %v17732_v50, 0  ;;  %v19396_v3 = vld [vmem:[%s27032_s5 + $0x980] sm:$0xff]  ;;  %v10854_v50 = vrot.slane %v26107_v32, 3 }
 0x58d   : > { %11605 = vmatpush.bf16.msrb.mxu3 %v19428_v58  ;;  %10776 = vmatpush.bf16.msra.mxu1 %v19345_v1  ;;  %v9154_v55 = vpop.f32.mrf.mxu1  ;;  %v18076_v58 = vld [vmem:[%s27032_s5 + $0xaa8] sm:$0xf]  ;;  %v8966_v57 = vpop.f32.mrf.mxu2 }
 0x58e   : > { %v9168_v23 = vadd.f32 %v26333_v60, %v9154_v55  ;;  %v19397_v60 = vld [vmem:[%s27032_s5 + $0x988] sm:$0xff]  ;;  %v19388_v57 = vld [vmem:[%s27032_s5 + $0x940] sm:$0xff] }
 0x58f   : > { %11383 = vmatpush.bf16.msra.mxu0 %v19402_v62  ;;  %10590 = vmatpush.bf16.msrb.mxu2 %v19330_v27  ;;  %v26618_v16 = vpop.f32.mrf.mxu3  ;;  %v26649_v35 = vpop.f32.mrf.mxu0  ;;  %v19453_v55 = vld [vmem:[%s27032_s5 + $0xb48] sm:$0xff] }
 0x590   : > { %v9181_v31 = vadd.f32 %v26455_v51, %v9168_v23 }
 0x591   : > { %11606 = vmatpush.bf16.msrb.mxu3 %v19427_v47  ;;  %10777 = vmatpush.bf16.msra.mxu1 %v19344_v24  ;;  %v18077_v47 = vor.u32 %v19433_v15, %v18076_v58  ;;  %v19375_v24 = vld [vmem:[%s27032_s5 + $0x8d8] sm:$0xff]  ;;  %v19389_v58 = vld [vmem:[%s27032_s5 + $0x948] sm:$0xff]  ;;  %v11467_v15 = vshrl.u32 %v26541_v0, 16 }
 0x592   : > { %v26661_v1 = vadd.f32 %v9181_v31, %v8981_v34  ;;  %v10856_v34 = vrot.slane %v25969_v38, 3  ;;  %v19394_v38 = vld [vmem:[%s27032_s5 + $0x970] sm:$0xff] }
 0x593   : > { %11384 = vmatpush.bf16.msra.mxu0 %v19401_v52  ;;  %10591 = vmatpush.bf16.msrb.mxu2 %v19329_v17  ;;  %v11588_v62 = vsel %vm494_vm0, %v18077_v47, 0  ;;  %v26682_v52 = vpack.c.bf16 %v7960_v46, %v7960_v46  ;;  %v19392_v17 = vld [vmem:[%s27032_s5 + $0x960] sm:$0xff]  ;;  %v19411_v47 = vld [vmem:[%s27032_s5 + $0x9f8] sm:$0xff] }
 0x595   : > { %11607 = vmatpush.bf16.msrb.mxu3 %v19426_v7  ;;  %10778 = vmatpush.bf16.msra.mxu1 %v19343_v4  ;;  %v9156_v13 = vpop.f32.mrf.mxu1  ;;  %v10651_v7 = vrot.slane %v26172_v53, 2  ;;  %v19456_v53 = vld [vmem:[%s27032_s5 + $0xb60] sm:$0xff] }
 0x596   : > { %v19360_v4 = vld [vmem:[%s27032_s5 + $0x860] sm:$0xff]  ;;  %v19386_v13 = vld [vmem:[%s27032_s5 + $0x930] sm:$0xff] }
 0x597   : > { %11385 = vmatpush.bf16.msra.mxu0 %v19400_v54  ;;  %10592 = vmatpush.bf16.msrb.mxu2 %v19328_v44  ;;  %v9984_v51 = vpop.f32.mrf.mxu3  ;;  %v9763_v27 = vpop.f32.mrf.mxu0  ;;  %v19431_v54 = vld [vmem:[%s27032_s5 + $0xa98] sm:$0xff] }
 0x598   : > { %v17846_v44 = vld [vmem:[%s27032_s5 + $0x978] sm:$0xf] }
 0x599   : > { %11608 = vmatpush.bf16.msrb.mxu3 %v19425_v59  ;;  %10779 = vmatpush.bf16.msra.mxu1 %v19342_v33  ;;  %v19374_v59 = vld [vmem:[%s27032_s5 + $0x8d0] sm:$0xff]  ;;  %v19449_v33 = vld [vmem:[%s27032_s5 + $0xb28] sm:$0xff]  ;;  %v19387_v51 = vld [vmem:[%s27032_s5 + $0x938] sm:$0xff] }
 0x59a   : > { %10593 = vmatmul.bf16.vlgmr.msrb.gmra.mxu2 %v10449_v56  ;;  %v19358_v56 = vld [vmem:[%s27032_s5 + $0x850] sm:$0xff] }
 0x59b   : > { %10978 = vmatpush.bf16.msra.mxu2 %v19365_v22  ;;  %11386 = vmatpush.bf16.msra.mxu0 %v19399_v21  ;;  %v19395_v22 = vld [vmem:[%s27032_s5 + $0x978] sm:$0x30] }
 0x59c   : > { %v17847_v14 = vor.u32 %v19395_v22, %v17846_v44  ;;  %v19407_v44 = vld [vmem:[%s27032_s5 + $0x9d8] sm:$0xff]  ;;  %v11673_v22 = vrot.slane %v26605_v36, 1 }
 0x59d   : > { %11609 = vmatpush.bf16.msrb.mxu3 %v19424_v40  ;;  %10780 = vmatpush.bf16.msra.mxu1 %v19341_v37  ;;  %v9383_v40 = vpop.f32.mrf.mxu1  ;;  %v19448_v37 = vld [vmem:[%s27032_s5 + $0xb20] sm:$0xff] }
 0x59e   : > { %v11179_v9 = vsel %vm494_vm0, %v17847_v14, 0  ;;  %v19405_v14 = vld [vmem:[%s27032_s5 + $0x9c8] sm:$0xff] }
 0x59f   : > { %10979 = vmatpush.bf16.msra.mxu2 %v19364_v2  ;;  %11387 = vmatpush.bf16.msra.mxu0 %v19398_v19  ;;  %v26715_v21 = vpop.f32.mrf.mxu0  ;;  %v19390_v2 = vld [vmem:[%s27032_s5 + $0x950] sm:$0xff] }
 0x5a1   : > { %11610 = vmatpush.bf16.msrb.mxu3 %v19423_v20  ;;  %10781 = vmatpush.bf16.msra.mxu1 %v19340_v6  ;;  %v19359_v20 = vld [vmem:[%s27032_s5 + $0x858] sm:$0xff]  ;;  %v11462_v6 = vshrl.u32 %v26682_v52, 16 }
 0x5a3   : > { %10980 = vmatpush.bf16.msra.mxu2 %v19363_v39  ;;  %11388 = vmatpush.bf16.msra.mxu0 %v19397_v60  ;;  %v11875_v31 = vrot.slane %v11462_v6, 1 }
 0x5a4   : > { %11611 = vmatmul.bf16.vlgmr.msrb.gmra.mxu3 %v11465_v29 }
 0x5a5   : > { %11999 = vmatpush.bf16.msra.mxu3 %v19460_v12  ;;  %10782 = vmatpush.bf16.msra.mxu1 %v19339_v63  ;;  %v19454_v12 = vld [vmem:[%s27032_s5 + $0xb50] sm:$0xff]  ;;  %v9357_v19 = vpop.f32.mrf.mxu2  ;;  %v9385_v5 = vpop.f32.mrf.mxu1  ;;  %v19393_v63 = vld [vmem:[%s27032_s5 + $0x968] sm:$0xff] }
 0x5a7   : > { %10981 = vmatpush.bf16.msra.mxu2 %v19362_v42  ;;  %11389 = vmatpush.bf16.msra.mxu0 %v19396_v3  ;;  %v9997_v23 = vpop.f32.mrf.mxu0  ;;  %v19444_v3 = vld [vmem:[%s27032_s5 + $0xb00] sm:$0xff] }
 0x5a8   : > { %10783 = vmatmul.bf16.vlgmr.msra.gmra.mxu1 %v10651_v7  ;;  %v19409_v7 = vld [vmem:[%s27032_s5 + $0x9e8] sm:$0xff]  ;;  %v18191_v23 = vld [vmem:[%s27032_s5 + $0xb40] sm:$0xf] }
 0x5a9   : > { %12000 = vmatpush.bf16.msra.mxu3 %v19459_v43  ;;  %11009 = vmatpush.bf16.msrb.mxu1 %v10976_v26  ;;  %v9371_v43 = vadd.f32 %v26520_v11, %v9357_v19  ;;  %v19446_v11 = vld [vmem:[%s27032_s5 + $0xb10] sm:$0xff]  ;;  %v19441_v19 = vld [vmem:[%s27032_s5 + $0xae8] sm:$0xff] }
 0x5aa   : > { %11390 = vmatmul.bf16.vlgmr.msra.gmra.mxu0 %v26682_v52  ;;  %v19410_v26 = vld [vmem:[%s27032_s5 + $0x9f0] sm:$0xff] }
 0x5ab   : > { %11621 = vmatpush.bf16.msrb.mxu0 %v11588_v62  ;;  %10982 = vmatpush.bf16.msra.mxu2 %v19361_v30  ;;  %v9384_v60 = vadd.f32 %v9383_v40, %v9371_v43 }
 0x5ad   : > { %12001 = vmatpush.bf16.msra.mxu3 %v19458_v25  ;;  %11010 = vmatpush.bf16.msrb.mxu1 %v19375_v24  ;;  %v9387_v32 = vadd.f32 %v9384_v60, %v26661_v1  ;;  %v9359_v25 = vpop.f32.mrf.mxu2  ;;  %v19445_v1 = vld [vmem:[%s27032_s5 + $0xb08] sm:$0xff]  ;;  %v19443_v24 = vld [vmem:[%s27032_s5 + $0xaf8] sm:$0xff] }
 0x5af   : > { %11622 = vmatpush.bf16.msrb.mxu0 %v19432_v45  ;;  %10983 = vmatpush.bf16.msra.mxu2 %v19360_v4  ;;  %v26745_v39 = vpop.f32.mrf.mxu3  ;;  %v19385_v45 = vld [vmem:[%s27032_s5 + $0x928] sm:$0xff]  ;;  %v19422_v4 = vld [vmem:[%s27032_s5 + $0xa50] sm:$0xff] }
 0x5b1   : > { %12002 = vmatpush.bf16.msra.mxu3 %v19457_v61  ;;  %11011 = vmatpush.bf16.msrb.mxu1 %v19374_v59  ;;  %v11059_v59 = vrot.slane %v26183_v10, 3  ;;  %v11058_v10 = vrot.slane %v26067_v8, 3  ;;  %v19420_v8 = vld [vmem:[%s27032_s5 + $0xa40] sm:$0xff] }
 0x5b3   : > { %11623 = vmatpush.bf16.msrb.mxu0 %v19431_v54  ;;  %10984 = vmatpush.bf16.msra.mxu2 %v19359_v20  ;;  %v19442_v54 = vld [vmem:[%s27032_s5 + $0xaf0] sm:$0xff] }
 0x5b5   : > { %12003 = vmatpush.bf16.msra.mxu3 %v19456_v53  ;;  %11194 = vmatpush.bf16.msra.mxu1 %v19392_v17  ;;  %v9586_v61 = vpop.f32.mrf.mxu2  ;;  %v19408_v17 = vld [vmem:[%s27032_s5 + $0x9e0] sm:$0xff] }
 0x5b7   : > { %11809 = vmatpush.bf16.msra.mxu0 %v19449_v33  ;;  %10985 = vmatpush.bf16.msra.mxu2 %v19358_v56  ;;  %v10380_v42 = vpop.f32.mrf.mxu3  ;;  %v19421_v33 = vld [vmem:[%s27032_s5 + $0xa48] sm:$0xff]  ;;  %v19418_v56 = vld [vmem:[%s27032_s5 + $0xa30] sm:$0xff] }
 0x5b8   : > { %17733 = vmatmul.msk.bf16.vlgmr.msrb.gmra.mxu1 %vm8167_vm6, %v10856_v34  ;;  %v19440_v34 = vld [vmem:[%s27032_s5 + $0xae0] sm:$0xff] }
 0x5b9   : > { %12004 = vmatpush.bf16.msra.mxu3 %v19455_v48  ;;  %11195 = vmatpush.bf16.msra.mxu1 %v19391_v41  ;;  %v9573_v46 = vpop.f32.mrf.mxu1 }
 0x5ba   : > { %10986 = vmatmul.bf16.vlgmr.msra.gmra.mxu2 %v10854_v50  ;;  %18078 = vmatmul.msk.bf16.vlgmr.msrb.gmra.mxu0 %vm8167_vm6, %v11467_v15  ;;  %v9574_v62 = vadd.f32 %v9573_v46, %v26462_v49  ;;  %v19436_v46 = vld [vmem:[%s27032_s5 + $0xac0] sm:$0xff] }
 0x5bb   : > { %11810 = vmatpush.bf16.msra.mxu0 %v19448_v37  ;;  %11212 = vmatpush.bf16.msrb.mxu2 %v11179_v9  ;;  %v26796_v30 = vpop.f32.mrf.mxu0  ;;  %v19406_v37 = vld [vmem:[%s27032_s5 + $0x9d0] sm:$0xff] }
 0x5bc   : > { %v9587_v27 = vadd.f32 %v9586_v61, %v9574_v62  ;;  %v19471_v61 = vld [vmem:[%s27032_s5 + $0xbd8] sm:$0x30] }
 0x5bd   : > { %12005 = vmatpush.bf16.msra.mxu3 %v19454_v12  ;;  %11196 = vmatpush.bf16.msra.mxu1 %v19390_v2  ;;  %v9588_v48 = vpop.f32.mrf.mxu2  ;;  %v19419_v12 = vld [vmem:[%s27032_s5 + $0xa38] sm:$0xff]  ;;  %v19404_v2 = vld [vmem:[%s27032_s5 + $0x9c0] sm:$0xff] }
 0x5be   : > { %v9590_v49 = vadd.f32 %v9587_v27, %v9387_v32  ;;  %v11672_v48 = vrot.slane %v26682_v52, 1  ;;  %v19469_v52 = vld [vmem:[%s27032_s5 + $0xbc8] sm:$0xff] }
 0x5bf   : > { %11811 = vmatpush.bf16.msra.mxu0 %v19447_v28  ;;  %11213 = vmatpush.bf16.msrb.mxu2 %v19394_v38  ;;  %v26801_v53 = vpop.f32.mrf.mxu3  ;;  %v19417_v28 = vld [vmem:[%s27032_s5 + $0xa28] sm:$0xff]  ;;  %v19439_v38 = vld [vmem:[%s27032_s5 + $0xad8] sm:$0xff] }
 0x5c1   : > { %12006 = vmatpush.bf16.msra.mxu3 %v19453_v55  ;;  %11197 = vmatpush.bf16.msra.mxu1 %v19389_v58  ;;  %v9575_v40 = vpop.f32.mrf.mxu1 }
 0x5c3   : > { %11812 = vmatpush.bf16.msra.mxu0 %v19446_v11  ;;  %11214 = vmatpush.bf16.msrb.mxu2 %v19393_v63  ;;  %v10190_v20 = vpop.f32.mrf.mxu0  ;;  %v19415_v63 = vld [vmem:[%s27032_s5 + $0xa18] sm:$0xff] }
 0x5c4   : > { %12007 = vmatmul.bf16.vlgmr.msra.gmra.mxu3 %v11875_v31  ;;  %v19470_v20 = vld [vmem:[%s27032_s5 + $0xbd0] sm:$0xff] }
 0x5c5   : > { %11198 = vmatpush.bf16.msra.mxu1 %v19388_v57 }
 0x5c7   : > { %11395 = vmatpush.bf16.msra.mxu2 %v19411_v47  ;;  %11813 = vmatpush.bf16.msra.mxu0 %v19445_v1  ;;  %v10609_v41 = vpop.f32.mrf.mxu3  ;;  %v19438_v1 = vld [vmem:[%s27032_s5 + $0xad0] sm:$0xff] }
 0x5c9   : > { %11199 = vmatpush.bf16.msra.mxu1 %v19387_v51  ;;  %v19437_v51 = vld [vmem:[%s27032_s5 + $0xac8] sm:$0xff] }
 0x5ca   : > { %17848 = vmatmul.msk.bf16.vlgmr.msrb.gmra.mxu2 %vm8167_vm6, %v11059_v59  ;;  %v19466_v59 = vld [vmem:[%s27032_s5 + $0xbb0] sm:$0xff] }
 0x5cb   : > { %11396 = vmatpush.bf16.msra.mxu2 %v19410_v26  ;;  %11814 = vmatpush.bf16.msra.mxu0 %v19444_v3  ;;  %v19450_v3 = vld [vmem:[%s27032_s5 + $0xb30] sm:$0xff] }
 0x5cd   : > { %11200 = vmatpush.bf16.msra.mxu1 %v19386_v13  ;;  %v19468_v13 = vld [vmem:[%s27032_s5 + $0xbc0] sm:$0xff] }
 0x5cf   : > { %11397 = vmatpush.bf16.msra.mxu2 %v19409_v7  ;;  %11815 = vmatpush.bf16.msra.mxu0 %v19443_v24  ;;  %v19435_v7 = vld [vmem:[%s27032_s5 + $0xab8] sm:$0xff] }
 0x5d0   : > { %v19467_v24 = vld [vmem:[%s27032_s5 + $0xbb8] sm:$0xff] }
 0x5d1   : > { %11201 = vmatpush.bf16.msra.mxu1 %v19385_v45  ;;  %v9774_v5 = vpop.f32.mrf.mxu2 }
 0x5d2   : > { %v9775_v9 = vadd.f32 %v9774_v5, %v26649_v35  ;;  %v19452_v35 = vld [vmem:[%s27032_s5 + $0xb40] sm:$0x30] }
 0x5d3   : > { %11398 = vmatpush.bf16.msra.mxu2 %v19408_v17  ;;  %11816 = vmatpush.bf16.msra.mxu0 %v19442_v54  ;;  %v18192_v11 = vor.u32 %v19452_v35, %v18191_v23  ;;  %v11674_v17 = vrot.slane %v26541_v0, 1 }
 0x5d4   : > { %11202 = vmatmul.bf16.vlgmr.msra.gmra.mxu1 %v11058_v10  ;;  %v9788_v55 = vadd.f32 %v26525_v18, %v9775_v9  ;;  %v19416_v18 = vld [vmem:[%s27032_s5 + $0xa20] sm:$0xff] }
 0x5d5   : > { %11590 = vmatpush.bf16.msrb.mxu1 %v19422_v4 }
 0x5d6   : > { %11817 = vmatmul.bf16.vlgmr.msra.gmra.mxu0 %v11673_v22  ;;  %v9791_v58 = vadd.f32 %v9788_v55, %v9590_v49  ;;  %v19434_v49 = vld [vmem:[%s27032_s5 + $0xab0] sm:$0xff]  ;;  %v19461_v55 = vld [vmem:[%s27032_s5 + $0xb88] sm:$0xff] }
 0x5d7   : > { %11399 = vmatpush.bf16.msra.mxu2 %v19407_v44 }
 0x5d9   : > { %11591 = vmatpush.bf16.msrb.mxu1 %v19421_v33  ;;  %v9969_v60 = vpop.f32.mrf.mxu1  ;;  %v9776_v32 = vpop.f32.mrf.mxu2  ;;  %v19465_v33 = vld [vmem:[%s27032_s5 + $0xba8] sm:$0xff] }
 0x5da   : > { %v9983_v50 = vadd.f32 %v26618_v16, %v9969_v60  ;;  %v11794_v16 = vsel %vm494_vm0, %v18192_v11, 0 }
 0x5db   : > { %11400 = vmatpush.bf16.msra.mxu2 %v19406_v37  ;;  %v26848_v43 = vpop.f32.mrf.mxu3  ;;  %v26867_v31 = vpop.f32.mrf.mxu0 }
 0x5dc   : > { %v9996_v57 = vadd.f32 %v26715_v21, %v9983_v50  ;;  %v19451_v21 = vld [vmem:[%s27032_s5 + $0xb38] sm:$0xff] }
 0x5dd   : > { %11592 = vmatpush.bf16.msrb.mxu1 %v19420_v8 }
 0x5de   : > { %v9999_v25 = vadd.f32 %v9996_v57, %v9791_v58 }
 0x5df   : > { %11401 = vmatpush.bf16.msra.mxu2 %v19405_v14 }
 0x5e1   : > { %11593 = vmatpush.bf16.msrb.mxu1 %v19419_v12  ;;  %v9971_v42 = vpop.f32.mrf.mxu1  ;;  %v19463_v12 = vld [vmem:[%s27032_s5 + $0xb98] sm:$0xff] }
 0x5e3   : > { %11402 = vmatpush.bf16.msra.mxu2 %v19404_v2  ;;  %v10799_v47 = vpop.f32.mrf.mxu3  ;;  %v10583_v26 = vpop.f32.mrf.mxu0 }
 0x5e5   : > { %11594 = vmatpush.bf16.msrb.mxu1 %v19418_v56  ;;  %v19462_v56 = vld [vmem:[%s27032_s5 + $0xb90] sm:$0xff] }
 0x5e6   : > { %11403 = vmatmul.bf16.vlgmr.msra.gmra.mxu2 %v26605_v36 }
 0x5e7   : > { %11796 = vmatpush.bf16.msrb.mxu2 %v19441_v19 }
 0x5e9   : > { %11595 = vmatpush.bf16.msrb.mxu1 %v19417_v28  ;;  %v10201_v62 = vpop.f32.mrf.mxu1 }
 0x5eb   : > { %11797 = vmatpush.bf16.msrb.mxu2 %v19440_v34  ;;  %v10810_v27 = vpop.f32.mrf.mxu0  ;;  %v11877_v34 = vrot.slane %v11467_v15, 1 }
 0x5ed   : > { %11596 = vmatpush.bf16.msrb.mxu1 %v19416_v18 }
 0x5ef   : > { %11798 = vmatpush.bf16.msrb.mxu2 %v19439_v38 }
 0x5f1   : > { %11597 = vmatpush.bf16.msrb.mxu1 %v19415_v63  ;;  %v10175_v54 = vpop.f32.mrf.mxu2  ;;  %v10203_v40 = vpop.f32.mrf.mxu1 }
 0x5f2   : > { %v10189_v10 = vadd.f32 %v26796_v30, %v10175_v54  ;;  %v19464_v30 = vld [vmem:[%s27032_s5 + $0xba0] sm:$0xff]  ;;  %v19478_v40 = vld [vmem:[%s27034_s7 + $0x30] sm:$0xff] }
 0x5f3   : > { %11799 = vmatpush.bf16.msrb.mxu2 %v19438_v1  ;;  %v10812_v44 = vpop.f32.mrf.mxu0 }
 0x5f4   : > { %11598 = vmatmul.bf16.vlgmr.msrb.gmra.mxu1 %v11462_v6  ;;  %v18306_v6 = vld [vmem:[%s27032_s5 + $0xbd8] sm:$0xf]  ;;  %v10202_v41 = vadd.f32 %v10201_v62, %v10189_v10 }
 0x5f5   : > { %11827 = vmatpush.bf16.msra.mxu1 %v11794_v16  ;;  %v18307_v45 = vor.u32 %v19471_v61, %v18306_v6 }
 0x5f6   : > { %v10205_v8 = vadd.f32 %v10202_v41, %v9999_v25 }
 0x5f7   : > { %11800 = vmatpush.bf16.msrb.mxu2 %v19437_v51  ;;  %v11997_v4 = vsel %vm494_vm0, %v18307_v45, 0 }
 0x5f9   : > { %11828 = vmatpush.bf16.msra.mxu1 %v19451_v21  ;;  %v10177_v37 = vpop.f32.mrf.mxu2 }
 0x5fb   : > { %11801 = vmatpush.bf16.msrb.mxu2 %v19436_v46  ;;  %v26920_v22 = vpop.f32.mrf.mxu3 }
 0x5fd   : > { %11829 = vmatpush.bf16.msra.mxu1 %v19450_v3 }
 0x5ff   : > { %11802 = vmatpush.bf16.msrb.mxu2 %v19435_v7 }
 0x601   : > { %12012 = vmatpush.bf16.msrb.mxu1 %v19468_v13  ;;  %v10404_v5 = vpop.f32.mrf.mxu2 }
 0x603   : > { %11803 = vmatpush.bf16.msrb.mxu2 %v19434_v49  ;;  %v11192_v14 = vpop.f32.mrf.mxu3 }
 0x604   : > { %18193 = vmatmul.msk.bf16.vlgmr.msra.gmra.mxu1 %vm8167_vm6, %v11674_v17 }
 0x605   : > { %12013 = vmatpush.bf16.msrb.mxu1 %v19467_v24  ;;  %v10391_v2 = vpop.f32.mrf.mxu1 }
 0x606   : > { %11804 = vmatmul.bf16.vlgmr.msrb.gmra.mxu2 %v11672_v48  ;;  %v10392_v19 = vadd.f32 %v10391_v2, %v26745_v39  ;;  %v11876_v39 = vrot.slane %v11465_v29, 1  ;;  %v19474_v2 = vld [vmem:[%s27034_s7 + $0x10] sm:$0xff] }
 0x607   : > { %12030 = vmatpush.bf16.msra.mxu2 %v11997_v4  ;;  %v11000_v28 = vpop.f32.mrf.mxu0 }
 0x608   : > { %v10405_v9 = vadd.f32 %v10404_v5, %v10392_v19  ;;  %v19473_v19 = vld [vmem:[%s27034_s7 + $0x8] sm:$0xff]  ;;  %v12129_v5 = vld [vmem:[%s27036_s9 + $0x18] sm:$0x1] }
 0x609   : > { %12014 = vmatpush.bf16.msrb.mxu1 %v19466_v59  ;;  %v10406_v18 = vpop.f32.mrf.mxu2  ;;  %v19479_v59 = vld [vmem:[%s27034_s7 + $0x38] sm:$0xff] }
 0x60a   : > { %v10408_v23 = vadd.f32 %v10405_v9, %v10205_v8  ;;  %12108 = vmatpush.bf16.msrb.mxu0 %v19479_v59  ;;  %v12144_v9 = vunpack.c.l.b16 %v12129_v5 }
 0x60b   : > { %12031 = vmatpush.bf16.msra.mxu2 %v19470_v20  ;;  %v11417_v35 = vpop.f32.mrf.mxu3 }
 0x60d   : > { %12015 = vmatpush.bf16.msrb.mxu1 %v19465_v33  ;;  %v10393_v58 = vpop.f32.mrf.mxu1  ;;  %v19477_v33 = vld [vmem:[%s27034_s7 + $0x28] sm:$0xff] }
 0x60e   : > { %12109 = vmatpush.bf16.msrb.mxu0 %v19478_v40  ;;  %v19482_v58 = vld [vmem:[%s27036_s9 + $0x10] sm:$0xff] }
 0x60f   : > { %12032 = vmatpush.bf16.msra.mxu2 %v19469_v52  ;;  %v11002_v60 = vpop.f32.mrf.mxu0 }
 0x611   : > { %12016 = vmatpush.bf16.msrb.mxu1 %v19464_v30 }
 0x612   : > { %12110 = vmatpush.bf16.msrb.mxu0 %v19477_v33 }
 0x613   : > { %v11419_v50 = vpop.f32.mrf.mxu3 }
 0x615   : > { %12017 = vmatpush.bf16.msrb.mxu1 %v19463_v12  ;;  %v19475_v12 = vld [vmem:[%s27034_s7 + $0x18] sm:$0xff] }
 0x616   : > { %18308 = vmatmul.msk.bf16.vlgmr.msra.gmra.mxu2 %vm8167_vm6, %v11877_v34 }
 0x619   : > { %12018 = vmatpush.bf16.msrb.mxu1 %v19462_v56 }
 0x61d   : > { %12019 = vmatpush.bf16.msrb.mxu1 %v19461_v55  ;;  %v10594_v38 = vpop.f32.mrf.mxu2  ;;  %v19472_v55 = vld [vmem:[%s27034_s7] sm:$0xff] }
 0x61e   : > { %v10595_v11 = vadd.f32 %v10594_v38, %v26867_v31 }
 0x620   : > { %12020 = vmatmul.bf16.vlgmr.msrb.gmra.mxu1 %v11876_v39  ;;  %v10608_v32 = vadd.f32 %v26801_v53, %v10595_v11  ;;  %v19481_v39 = vld [vmem:[%s27036_s9 + $0x8] sm:$0xff] }
 0x622   : > { %v10611_v15 = vadd.f32 %v10608_v32, %v10408_v23 }
 0x625   : > { %v10784_v57 = vpop.f32.mrf.mxu1  ;;  %v10596_v47 = vpop.f32.mrf.mxu2 }
 0x626   : > { %v10798_v63 = vadd.f32 %v26848_v43, %v10784_v57  ;;  %v12039_v57 = vld [vmem:[%s27033_s6] sm:$0x1] }
 0x627   : > { %v11612_v0 = vpop.f32.mrf.mxu3  ;;  %v11391_v25 = vpop.f32.mrf.mxu0 }
 0x628   : > { %v10811_v16 = vadd.f32 %v10810_v27, %v10798_v63 }
 0x62a   : > { %v10814_v1 = vadd.f32 %v10811_v16, %v10611_v15 }
 0x62d   : > { %v10786_v29 = vpop.f32.mrf.mxu1 }
 0x62e   : > { %v19480_v29 = vld [vmem:[%s27036_s9] sm:$0xff] }
 0x62f   : > { %v11614_v36 = vpop.f32.mrf.mxu3  ;;  %v11393_v42 = vpop.f32.mrf.mxu0 }
 0x630   : > { %v12059_v42 = vld [vmem:[%s27035_s8] sm:$0x1] }
 0x635   : > { %v11013_v21 = vpop.f32.mrf.mxu1 }
 0x637   : > { %v11625_v51 = vpop.f32.mrf.mxu0 }
 0x63d   : > { %v10987_v26 = vpop.f32.mrf.mxu2  ;;  %v11015_v3 = vpop.f32.mrf.mxu1 }
 0x63e   : > { %v11001_v46 = vadd.f32 %v11000_v28, %v10987_v26  ;;  %v12148_v28 = vpack.c.b16 %v12144_v9, %v12144_v9 }
 0x63f   : > { %v11627_v31 = vpop.f32.mrf.mxu0 }
 0x640   : > { %v11014_v53 = vadd.f32 %v11013_v21, %v11001_v46  ;;  %v12130_v31 = vld [vmem:[%s27037_s10] sm:$0x1] }
 0x642   : > { %v11017_v62 = vadd.f32 %v11014_v53, %v10814_v1 }
 0x645   : > { %v10989_v6 = vpop.f32.mrf.mxu2 }
 0x647   : > { %v12008_v13 = vpop.f32.mrf.mxu3 }
 0x64d   : > { %v11216_v43 = vpop.f32.mrf.mxu2 }
 0x64f   : > { %v12010_v61 = vpop.f32.mrf.mxu3 }
 0x651   : > { %v11203_v7 = vpop.f32.mrf.mxu1 }
 0x652   : > { %v11204_v4 = vadd.f32 %v11203_v7, %v26920_v22  ;;  %v19476_v22 = vld [vmem:[%s27034_s7 + $0x20] sm:$0xff] }
 0x653   : > { %v11818_v24 = vpop.f32.mrf.mxu0  ;;  %12111 = vmatpush.bf16.msrb.mxu0 %v19476_v22 }
 0x654   : > { %v11217_v17 = vadd.f32 %v11216_v43, %v11204_v4 }
 0x655   : > { %v11218_v27 = vpop.f32.mrf.mxu2 }
 0x656   : > { %v11220_v48 = vadd.f32 %v11217_v17, %v11017_v62 }
 0x657   : > { %12112 = vmatpush.bf16.msrb.mxu0 %v19475_v12 }
 0x659   : > { %v11205_v45 = vpop.f32.mrf.mxu1 }
 0x65b   : > { %v11820_v49 = vpop.f32.mrf.mxu0  ;;  %12113 = vmatpush.bf16.msrb.mxu0 %v19474_v2 }
 0x65f   : > { %12114 = vmatpush.bf16.msrb.mxu0 %v19473_v19 }
 0x663   : > { %12115 = vmatpush.bf16.msrb.mxu0 %v19472_v55 }
 0x669   : > { %v11404_v54 = vpop.f32.mrf.mxu2 }
 0x66a   : > { %v11405_v10 = vadd.f32 %v11404_v54, %v11391_v25 }
 0x66c   : > { %v11418_v44 = vadd.f32 %v11417_v35, %v11405_v10  ;;  %v12158_v35 = vsel %vm12156_vm7, %v12148_v28, 0 }
 0x66d   : > { %12164 = vmatpush.bf16.msrb.mxu2 %v12158_v35 }
 0x66e   : > { %v11421_v20 = vadd.f32 %v11418_v44, %v11220_v48 }
 0x671   : > { %v11599_v41 = vpop.f32.mrf.mxu1  ;;  %v11406_v52 = vpop.f32.mrf.mxu2  ;;  %12165 = vmatpush.bf16.msrb.mxu2 %v19482_v58 }
 0x672   : > { %v11613_v30 = vadd.f32 %v11612_v0, %v11599_v41 }
 0x674   : > { %v11626_v8 = vadd.f32 %v11625_v51, %v11613_v30 }
 0x675   : > { %12166 = vmatpush.bf16.msrb.mxu2 %v19481_v39 }
 0x676   : > { %v11629_v37 = vadd.f32 %v11626_v8, %v11421_v20 }
 0x679   : > { %v11601_v14 = vpop.f32.mrf.mxu1  ;;  %12167 = vmatpush.bf16.msrb.mxu2 %v19480_v29 }
 0x681   : > { %v11831_v56 = vpop.f32.mrf.mxu1 }
 0x689   : > { %v11805_v34 = vpop.f32.mrf.mxu2  ;;  %v11833_v23 = vpop.f32.mrf.mxu1 }
 0x68a   : > { %v11819_v60 = vadd.f32 %v11818_v24, %v11805_v34 }
 0x68c   : > { %v11832_v50 = vadd.f32 %v11831_v56, %v11819_v60 }
 0x68e   : > { %v11835_v0 = vadd.f32 %v11832_v50, %v11629_v37 }
 0x691   : > { %v11807_v18 = vpop.f32.mrf.mxu2 }
 0x699   : > { %v12034_v32 = vpop.f32.mrf.mxu2 }
 0x69d   : > { %v12021_v38 = vpop.f32.mrf.mxu1 }
 0x69e   : > { %v12022_v11 = vadd.f32 %v12021_v38, %v12008_v13 }
 0x6a0   : > { %v12035_v15 = vadd.f32 %v12034_v32, %v12022_v11 }
 0x6a1   : > { %v12036_v1 = vpop.f32.mrf.mxu2 }
 0x6a2   : > { %v12038_v63 = vadd.f32 %v12035_v15, %v11835_v0 }
 0x6a4   : > { %v12040_v25 = vadd.f32 %v12039_v57, %v12038_v63 }
 0x6a5   : > { %v12023_v47 = vpop.f32.mrf.mxu1 }
 0x6a6   : > { %v12041_v16 = vmax.f32 %v12040_v25, 0.0 }
 0x6a8   : > { %v12042_v36 = vpack.c.bf16 %v12041_v16, %v12041_v16 }
 0x6aa   : > { %12116 = vmatmul.bf16.vlgmr.msrb.gmra.mxu0 %v12042_v36 }
 0x727   : > { %v12117_v21 = vpop.f32.mrf.mxu0 }
 0x728   : > { %v12118_v51 = vadd.f32 %v12117_v21, %v12059_v42 }
 0x72a   : > { %v12121_v26 = vmax.f32 %v12118_v51, 0.0 }
 0x72c   : > { %v12122_v3 = vpack.c.bf16 %v12121_v26, %v12121_v26 }
 0x72e   : > { %18353 = vmatmul.msk.bf16.vlgmr.msrb.gmra.mxu2 %vm12152_vm8, %v12122_v3 }
 0x72f   : > { %v12119_v46 = vpop.f32.mrf.mxu0 }
 0x7b1   : > { %v12169_v13 = vpop.f32.mrf.mxu2 }
 0x7b2   : > { %v12170_v53 = vadd.f32 %v12169_v13, %v12130_v31 }
 0x7b4   : > { %12174 = vst.msk [vmem:[%s378_s15] sm:$0x1] %vm12173_vm9, %v12170_v53 }
 0x7b5   : > { %19551 = shalt.err (!%p19548_p3)
}
 0x7b6   : > { %19485 = dma.vmem_to_hbm [thread:$0]  (%p19686_p5), %s12187_s16, 16, %s12189_s19, %s12176_s22  }
 0x7b9   : > { %v12171_v62 = vpop.f32.mrf.mxu2 }
 0x7ba PF: > { %p19491_p4 = scmp.ge.s32.totalorder %s19586_s20, 2  ;;  %s12200_s26 = sand.u32 1, %s19574_s17  }
 0x7bb   : > { %s12201_s14 = scalar_lea.sflag [#allocation3], %s12200_s26 }
 0x7bc   : > { %p19488_p7 = pnand %p19491_p4, %p19690_p6 }
 0x7be   : > { %p19489_p8 = pneg %p19488_p7 }
 0x7c0   : > { %19569 = dma.done.wait (%p19489_p8), %s12201_s14, 16  }
 0x7c1   : > { %19571 = vsyncadd (%p19489_p8), %s12201_s14, 4294967280  ;;  %s27062_s15 = sld [smem:[#allocation5_spill]]  ;;  %p21_p9 = scmp.ge.s32.totalorder %s19673_s23, 4  }
 0x7c2   : > { %s27063_s19 = sld [smem:[#allocation6_spill]]  ;;  %s27064_s17 = smov %s19578_s18 }
 0x7c3   : > { %s27066_s20 = smov %s19673_s23  ;;  %23 = sbr.rel (!%p21_p9) target bundleno = 3 (0x3), region = 126 }
 0x7c7   : > { %s27065_s18 = smov %s27062_s15 }
 0x7c8   :  { %12206 = vsyncpa [#allocation3], 1 }
 0x7c9   :  { %12208 = vsyncpa [#allocation3 + $0x1], 1 }

</bundles_post_ra>
